<compile_context>
chip_gen: v6e
topology: v6e:2x2x1
jax: 0.10.0
libtpu: 0.0.40
codegen_flags: <defaults>
</compile_context>

<pallas_src>
import math

import jax
import jax.numpy as jnp
from jax.experimental import pallas as pl
from jax.experimental.pallas import tpu as pltpu

ACT = jnp.bfloat16                      # activation storage dtype (MXU-native)
F32 = jnp.float32
VMEM_LIMIT = 48 * 1024 * 1024           # explicit scoped-VMEM budget (safe on v5e/v6e/v7x)


def _round_up(v, m):
    return ((v + m - 1) // m) * m


# ============================================================== tiled linear (fused LN / GELU / residual)
def _make_linear_kernel(nk, has_ln, eps, act, has_res):
    def kern(*refs):
        it = iter(refs)
        x_ref = next(it)
        w_ref = next(it)
        b_ref = next(it)
        g_ref = be_ref = r_ref = None
        if has_ln:
            g_ref = next(it)
            be_ref = next(it)
        if has_res:
            r_ref = next(it)
        o_ref = next(it)
        acc_ref = next(it)

        @pl.when(pl.program_id(2) == 0)
        def _():
            acc_ref[...] = jnp.zeros_like(acc_ref)

        x = x_ref[...]
        if has_ln:
            xf = x.astype(F32)
            mu = jnp.mean(xf, axis=-1, keepdims=True)
            xc = xf - mu
            var = jnp.mean(xc * xc, axis=-1, keepdims=True)
            xf = xc * jax.lax.rsqrt(var + eps) * g_ref[...] + be_ref[...]
            x = xf.astype(jnp.bfloat16)
        acc_ref[...] += jnp.dot(x, w_ref[...], preferred_element_type=F32)

        @pl.when(pl.program_id(2) == nk - 1)
        def _():
            y = acc_ref[...] + b_ref[...]
            if act == "gelu":
                # TODO(synk): tanh-form GELU in-kernel (exact erf lowering inside Mosaic not guaranteed).
                c = math.sqrt(2.0 / math.pi)
                y = 0.5 * y * (1.0 + jnp.tanh(c * (y + 0.044715 * y * y * y)))
            if has_res:
                y = y + r_ref[...].astype(F32)
            o_ref[...] = y.astype(o_ref.dtype)

    return kern


def pallas_linear(x, w, b, *, ln=None, act=None, residual=None, out_dtype=ACT):
    """y = [res +] act(LN(x) @ w + b).  x: (..., K), w: (K, N) bf16, b: (1, N) f32."""
    lead = x.shape[:-1]
    K = x.shape[-1]
    N = w.shape[-1]
    assert w.shape[0] == K
    x2 = x.reshape(-1, K).astype(jnp.bfloat16)
    M = x2.shape[0]

    # --- tile selection (rows padded to tm; K/N blocks either divide exactly or span fully)
    tm = 256
    Mp = _round_up(M, 8)
    if Mp <= tm:
        tm = Mp
    else:
        Mp = _round_up(M, tm)
    if N % 512 == 0:
        tn = 512
    elif N % 256 == 0:
        tn = 256
    elif N % 128 == 0:
        tn = 128
    else:
        tn = N
    if ln is not None or K <= 1024:
        tk = K                                 # LN prologue needs the full row
    elif K % 512 == 0:
        tk = 512
    elif K % 256 == 0:
        tk = 256
    elif K % 128 == 0:
        tk = 128
    else:
        tk = K
    nk = K // tk
    assert ln is None or nk == 1

    if Mp > M:
        x2 = jnp.pad(x2, ((0, Mp - M), (0, 0)))

    inputs = [x2, w.astype(jnp.bfloat16), b.astype(F32).reshape(1, N)]
    in_specs = [
        pl.BlockSpec((tm, tk), lambda i, j, k: (i, k)),
        pl.BlockSpec((tk, tn), lambda i, j, k: (k, j)),
        pl.BlockSpec((1, tn), lambda i, j, k: (0, j)),
    ]
    has_ln = ln is not None
    eps = 0.0
    if has_ln:
        g, be, eps = ln
        inputs += [g.astype(F32).reshape(1, K), be.astype(F32).reshape(1, K)]
        in_specs += [pl.BlockSpec((1, tk), lambda i, j, k: (0, k)),
                     pl.BlockSpec((1, tk), lambda i, j, k: (0, k))]
    has_res = residual is not None
    if has_res:
        r2 = residual.reshape(-1, N).astype(jnp.bfloat16)
        if Mp > M:
            r2 = jnp.pad(r2, ((0, Mp - M), (0, 0)))
        inputs.append(r2)
        in_specs.append(pl.BlockSpec((tm, tn), lambda i, j, k: (i, j)))

    out = pl.pallas_call(
        _make_linear_kernel(nk, has_ln, eps, act, has_res),
        out_shape=jax.ShapeDtypeStruct((Mp, N), out_dtype),
        grid=(Mp // tm, N // tn, nk),
        in_specs=in_specs,
        out_specs=pl.BlockSpec((tm, tn), lambda i, j, k: (i, j)),
        scratch_shapes=[pltpu.VMEM((tm, tn), F32)],
        compiler_params=pltpu.CompilerParams(
            dimension_semantics=("parallel", "parallel", "arbitrary"),
            vmem_limit_bytes=VMEM_LIMIT),
    )(*inputs)
    if Mp > M:
        out = out[:M]
    return out.reshape(*lead, N)


# ============================================================== fused multi-head attention (per-head LN + softmax)
def _ln_rows(x, g, b, eps):
    mu = jnp.mean(x, axis=-1, keepdims=True)
    xc = x - mu
    var = jnp.mean(xc * xc, axis=-1, keepdims=True)
    return xc * jax.lax.rsqrt(var + eps) * g + b


def _make_attn_kernel(nh, dh, scale, flags, eps):
    def kern(*refs):
        it = iter(refs)
        q_ref = next(it)
        k_ref = next(it)
        v_ref = next(it)
        lns = []
        for f in flags:
            lns.append((next(it), next(it)) if f else None)
        o_ref = next(it)

        outs = []
        for h in range(nh):
            lo = h * dh
            qh = q_ref[0, :, lo:lo + dh].astype(F32)
            kh = k_ref[0, :, lo:lo + dh].astype(F32)
            vh = v_ref[0, :, lo:lo + dh].astype(F32)
            if lns[0] is not None:
                qh = _ln_rows(qh, lns[0][0][...], lns[0][1][...], eps)
            if lns[1] is not None:
                kh = _ln_rows(kh, lns[1][0][...], lns[1][1][...], eps)
            if lns[2] is not None:
                vh = _ln_rows(vh, lns[2][0][...], lns[2][1][...], eps)
            s = jax.lax.dot_general(
                qh.astype(jnp.bfloat16), kh.astype(jnp.bfloat16),
                (((1,), (1,)), ((), ())), preferred_element_type=F32) * scale
            s = s - jnp.max(s, axis=-1, keepdims=True)
            p = jnp.exp(s)
            p = p * pl.reciprocal(jnp.sum(p, axis=-1, keepdims=True), approx=True)
            oh = jnp.dot(p.astype(jnp.bfloat16), vh.astype(jnp.bfloat16),
                         preferred_element_type=F32)
            outs.append(oh)
        res = outs[0] if nh == 1 else jnp.concatenate(outs, axis=-1)
        o_ref[0] = res.astype(o_ref.dtype)

    return kern


def pallas_attention(q, k, v, nh, dh, scale, q_ln, k_ln, v_ln):
    """Per-batch-element all-head attention with lane-dense (Nq, C) output."""
    B, Nq, C = q.shape
    Nk = k.shape[1]
    flags = (q_ln is not None, k_ln is not None, v_ln is not None)
    inputs = [q, k, v]
    in_specs = [pl.BlockSpec((1, Nq, C), lambda b: (b, 0, 0)),
                pl.BlockSpec((1, Nk, C), lambda b: (b, 0, 0)),
                pl.BlockSpec((1, Nk, C), lambda b: (b, 0, 0))]
    for ln in (q_ln, k_ln, v_ln):
        if ln is not None:
            inputs += [ln[0], ln[1]]
            in_specs += [pl.BlockSpec((1, dh), lambda b: (0, 0)),
                         pl.BlockSpec((1, dh), lambda b: (0, 0))]
    return pl.pallas_call(
        _make_attn_kernel(nh, dh, scale, flags, 1e-5),
        out_shape=jax.ShapeDtypeStruct((B, Nq, C), ACT),
        grid=(B,),
        in_specs=in_specs,
        out_specs=pl.BlockSpec((1, Nq, C), lambda b: (b, 0, 0)),
        compiler_params=pltpu.CompilerParams(
            dimension_semantics=("parallel",), vmem_limit_bytes=VMEM_LIMIT),
    )(*inputs)


# ============================================================== pooling kernels (depthwise conv / max over taps)
def _tapsum_kernel(x_ref, w_ref, o_ref):
    x = x_ref[0].astype(F32)                     # (K, L, C)
    o_ref[0] = jnp.sum(x * w_ref[...], axis=0).astype(o_ref.dtype)


def pallas_depthwise_tapconv(taps, w_k1c):
    """Depthwise 3-D conv pooling as a weighted reduction over taps.  taps:(B,K,L,C)  w:(K,1,C)."""
    B, K, L, C = taps.shape
    return pl.pallas_call(
        _tapsum_kernel,
        out_shape=jax.ShapeDtypeStruct((B, L, C), ACT),
        grid=(B,),
        in_specs=[pl.BlockSpec((1, K, L, C), lambda i: (i, 0, 0, 0)),
                  pl.BlockSpec((K, 1, C), lambda i: (0, 0, 0))],
        out_specs=pl.BlockSpec((1, L, C), lambda i: (i, 0, 0)),
        compiler_params=pltpu.CompilerParams(
            dimension_semantics=("parallel",), vmem_limit_bytes=VMEM_LIMIT),
    )(taps, w_k1c)


def _tapmax_kernel(x_ref, o_ref):
    o_ref[0] = jnp.max(x_ref[0].astype(F32), axis=0).astype(o_ref.dtype)


def pallas_maxpool_taps(taps):
    """MaxPool3d as a max reduction over taps.  taps:(B,K,L,C)."""
    B, K, L, C = taps.shape
    return pl.pallas_call(
        _tapmax_kernel,
        out_shape=jax.ShapeDtypeStruct((B, L, C), ACT),
        grid=(B,),
        in_specs=[pl.BlockSpec((1, K, L, C), lambda i: (i, 0, 0, 0))],
        out_specs=pl.BlockSpec((1, L, C), lambda i: (i, 0, 0)),
        compiler_params=pltpu.CompilerParams(
            dimension_semantics=("parallel",), vmem_limit_bytes=VMEM_LIMIT),
    )(taps)


# ============================================================== final LayerNorm + spatial-token mean (fused, tiled)
def _make_meannorm_kernel(eps):
    def kern(x_ref, g_ref, b_ref, o_ref):
        x = x_ref[...].astype(F32)               # (tb, n, C)
        mu = jnp.mean(x, axis=-1, keepdims=True)
        xc = x - mu
        var = jnp.mean(xc * xc, axis=-1, keepdims=True)
        y = xc * jax.lax.rsqrt(var + eps) * g_ref[...] + b_ref[...]
        o_ref[...] = jnp.mean(y, axis=1).astype(o_ref.dtype)
    return kern


def pallas_norm_mean_tokens(x, g, b, eps):
    """LayerNorm over C then mean over the spatial-token axis.  x:(M,n,C) -> (M,C) f32."""
    M, n, C = x.shape
    tb = 256
    Mp = _round_up(M, 8)
    if Mp <= tb:
        tb = Mp
    else:
        Mp = _round_up(M, tb)
    xp = jnp.pad(x, ((0, Mp - M), (0, 0), (0, 0))) if Mp > M else x
    out = pl.pallas_call(
        _make_meannorm_kernel(eps),
        out_shape=jax.ShapeDtypeStruct((Mp, C), F32),
        grid=(Mp // tb,),
        in_specs=[pl.BlockSpec((tb, n, C), lambda i: (i, 0, 0)),
                  pl.BlockSpec((1, C), lambda i: (0, 0)),
                  pl.BlockSpec((1, C), lambda i: (0, 0))],
        out_specs=pl.BlockSpec((tb, C), lambda i: (i, 0)),
        compiler_params=pltpu.CompilerParams(
            dimension_semantics=("parallel",), vmem_limit_bytes=VMEM_LIMIT),
    )(xp, g.astype(F32).reshape(1, C), b.astype(F32).reshape(1, C))
    return out[:M]


# ============================================================== conv glue (tap windows via strided slices)
def _gather_tap_slabs(x_cl, kernel, stride, padding, pad_value):
    """x_cl:(B,T,H,W,C) channel-last -> list of K slabs (B, L, C); tap order (dt,dh,dw) row-major."""
    B, T, H, W, C = x_cl.shape
    kt, kh, kw = kernel
    st, sh, sw = stride
    pt, ph, pw = padding
    xp = jnp.pad(x_cl, ((0, 0), (pt, pt), (ph, ph), (pw, pw), (0, 0)),
                 constant_values=pad_value)
    To = (T + 2 * pt - kt) // st + 1
    Ho = (H + 2 * ph - kh) // sh + 1
    Wo = (W + 2 * pw - kw) // sw + 1
    slabs = []
    for dt in range(kt):
        for dh in range(kh):
            for dw in range(kw):
                g = jax.lax.slice(
                    xp,
                    (0, dt, dh, dw, 0),
                    (B, dt + (To - 1) * st + 1, dh + (Ho - 1) * sh + 1,
                     dw + (Wo - 1) * sw + 1, C),
                    (1, st, sh, sw, 1))
                slabs.append(g.reshape(B, To * Ho * Wo, C))
    return slabs, (To, Ho, Wo)


def patch_embed_forward(x, w2, b, kernel, stride, padding):
    """PatchEmbed: Conv3d as im2col + tiled Pallas matmul.  x:(B,Cin,T,H,W) -> (B, L, Cout)."""
    B = x.shape[0]
    x_cl = jnp.transpose(x, (0, 2, 3, 4, 1)).astype(jnp.bfloat16)
    slabs, (To, Ho, Wo) = _gather_tap_slabs(x_cl, kernel, stride, padding, 0.0)
    patches = jnp.concatenate(slabs, axis=-1)        # (B, L, K*Cin), row order (dt,dh,dw,cin)
    L = To * Ho * Wo
    y = pallas_linear(patches.reshape(B * L, patches.shape[-1]), w2, b)
    return y.reshape(B, L, -1), (To, Ho, Wo)


def attention_pool_conv(x, thw, w_k1c, kernel, stride, has_cls):
    """MViT attention_pool (mode='conv'); per-head LN is fused later into the attention kernel."""
    B, N, C = x.shape
    T, H, W = thw
    if has_cls:
        cls_tok, tok = x[:, :1, :], x[:, 1:, :]
    else:
        cls_tok, tok = None, x
    x_cl = tok.reshape(B, T, H, W, C)
    padding = [k // 2 for k in kernel]
    # TODO(synk): taps are still materialized K-fold in HBM by XLA; an in-kernel shifted-window
    #             gather over the padded volume would remove this duplication.
    slabs, (To, Ho, Wo) = _gather_tap_slabs(x_cl, kernel, stride, padding, 0.0)
    taps = jnp.stack(slabs, axis=1)                  # (B, K, L, C)
    pooled = pallas_depthwise_tapconv(taps, w_k1c)   # (B, L, C)
    if has_cls:
        pooled = jnp.concatenate([cls_tok, pooled], axis=1)
    return pooled, [To, Ho, Wo]


def attention_pool_max(x, thw, kernel, stride, has_cls):
    """Skip-path pooling (MaxPool3d, ceil_mode=False).  x:(B,N,C)."""
    B, N, C = x.shape
    T, H, W = thw
    if has_cls:
        cls_tok, tok = x[:, :1, :], x[:, 1:, :]
    else:
        cls_tok, tok = None, x
    x_cl = tok.reshape(B, T, H, W, C)
    padding = [k // 2 for k in kernel]
    slabs, (To, Ho, Wo) = _gather_tap_slabs(x_cl, kernel, stride, padding, -jnp.inf)
    taps = jnp.stack(slabs, axis=1)
    pooled = pallas_maxpool_taps(taps)
    if has_cls:
        pooled = jnp.concatenate([cls_tok, pooled], axis=1)
    return pooled, [To, Ho, Wo]


# ============================================================== MViT blocks
def multiscale_attention(p, x, x_res, thw, bc, has_cls):
    B, N, C = x.shape
    nh = bc["num_heads"]
    dh = C // nh
    # norm1 fused into the qkv matmul; q/k/v are head-major channel slices (no transposes).
    qkv = pallas_linear(x, p["qkv_w"], p["qkv_b"], ln=(p["norm1_g"], p["norm1_b"], 1e-6))
    q, k, v = qkv[..., :C], qkv[..., C:2 * C], qkv[..., 2 * C:]
    q_ln = k_ln = v_ln = None
    if bc["kernel_q"]:
        q, q_shape = attention_pool_conv(q, thw, p["pool_q_w"], bc["kernel_q"],
                                         bc["stride_q"], has_cls)
        q_ln = (p["norm_q_g"], p["norm_q_b"])
    else:
        q_shape = thw
    if bc["kernel_kv"]:
        k, _ = attention_pool_conv(k, thw, p["pool_k_w"], bc["kernel_kv"],
                                   bc["stride_kv"], has_cls)
        k_ln = (p["norm_k_g"], p["norm_k_b"])
        v, _ = attention_pool_conv(v, thw, p["pool_v_w"], bc["kernel_kv"],
                                   bc["stride_kv"], has_cls)
        v_ln = (p["norm_v_g"], p["norm_v_b"])
    scale = dh ** -0.5
    o = pallas_attention(q, k, v, nh, dh, scale, q_ln, k_ln, v_ln)      # (B, Nq, C)
    # projection with the skip-path residual fused into its epilogue (drop_path == identity).
    o = pallas_linear(o, p["attn_proj_w"], p["attn_proj_b"], residual=x_res)
    return o, q_shape


def multiscale_block(p, x, thw, bc, has_cls):
    if bc["kernel_skip"]:
        x_res, _ = attention_pool_max(x, thw, bc["kernel_skip"], bc["stride_skip"], has_cls)
    else:
        x_res = x
    x, thw_new = multiscale_attention(p, x, x_res, thw, bc, has_cls)
    # MLP: norm2 fused into fc1 (and the block projection), GELU fused into fc1,
    # residual fused into fc2.
    h = pallas_linear(x, p["fc1_w"], p["fc1_b"],
                      ln=(p["norm2_g"], p["norm2_b"], 1e-6), act="gelu")
    if bc["dim"] != bc["dim_out"]:
        x_id = pallas_linear(x, p["blk_proj_w"], p["blk_proj_b"],
                             ln=(p["norm2_g"], p["norm2_b"], 1e-6))
    else:
        x_id = x
    x = pallas_linear(h, p["fc2_w"], p["fc2_b"], residual=x_id)
    return x, thw_new


def mvit_forward(params, x, cfg, blk_cfgs):
    """MViT.forward.  x:(B, C, T, H, W) -> (B, C', T')."""
    B = x.shape[0]
    tokens, (To, Ho, Wo) = patch_embed_forward(
        x, params["patch_w"], params["patch_b"],
        cfg["PATCH_KERNEL"], cfg["PATCH_STRIDE"], cfg["PATCH_PADDING"])
    T = cfg["NUM_FRAMES"] // cfg["PATCH_STRIDE"][0]
    C = tokens.shape[-1]
    cls = jnp.broadcast_to(params["cls_token"], (B, 1, C))
    xt = jnp.concatenate([cls, tokens], axis=1)
    pos = (jnp.tile(params["pos_embed_spatial"], (1, To, 1))
           + jnp.repeat(params["pos_embed_temporal"], Ho * Wo, axis=1))
    pos = jnp.concatenate([params["pos_embed_class"], pos], axis=1)
    xt = xt + pos
    thw = [To, Ho, Wo]
    for p, bc in zip(params["blocks"], blk_cfgs):
        xt, thw = multiscale_block(p, xt, thw, bc, has_cls=True)
    xt = xt[:, 1:]                                  # drop cls; final LN fused into the mean kernel
    Cout = xt.shape[-1]
    n = xt.shape[1] // T
    feat = pallas_norm_mean_tokens(xt.reshape(B * T, n, Cout),
                                   params["norm_g"], params["norm_b"], eps=1e-6)
    return jnp.transpose(feat.reshape(B, T, Cout), (0, 2, 1))


def chunk_mvit_forward(params, x, cfg, blk_cfgs, chunk_size):
    """ChunkMVit.forward (forward_mode='batch')."""
    if x.ndim == 6:      # chunk-first: (num_chunks, B, C, chunk_size, H, W)
        nc, B, C, cs, H, W = x.shape
        feat = mvit_forward(params, x.reshape(nc * B, C, cs, H, W), cfg, blk_cfgs)
        return feat.reshape(nc, B, feat.shape[1], feat.shape[2])
    elif x.ndim == 5:    # batch-first: (B, C, D, H, W)
        B, C, D, H, W = x.shape
        pad_d = (chunk_size - D % chunk_size) % chunk_size
        if pad_d:
            x = jnp.pad(x, ((0, 0), (0, 0), (0, pad_d), (0, 0), (0, 0)))
        nc = (D + pad_d) // chunk_size
        xr = (x.reshape(B, C, nc, chunk_size, H, W)
               .transpose(0, 2, 1, 3, 4, 5)
               .reshape(B * nc, C, chunk_size, H, W))
        feat = mvit_forward(params, xr, cfg, blk_cfgs)
        c, d = feat.shape[1], feat.shape[2]
        feat = feat.reshape(B, nc, c, d).transpose(0, 2, 1, 3).reshape(B, c, nc * d)
        return feat[:, :, : nc * d - pad_d]
    raise ValueError(f"dimension of x should be 5 or 6. Got: {x.shape}")


# ============================================================== config / params
def round_width(width, multiplier, min_width=1, divisor=1):
    if not multiplier:
        return width
    width *= multiplier
    min_width = min_width or divisor
    width_out = max(min_width, int(width + divisor / 2) // divisor * divisor)
    if width_out < 0.9 * width:
        width_out += divisor
    return int(width_out)


def build_block_cfgs(cfg):
    depth = cfg["DEPTH"]
    dim_mul = [1.0] * (depth + 1)
    head_mul = [1.0] * (depth + 1)
    for idx, m in cfg["DIM_MUL"]:
        dim_mul[idx] = m
    for idx, m in cfg["HEAD_MUL"]:
        head_mul[idx] = m
    pool_q = [[] for _ in range(depth)]
    pool_kv = [[] for _ in range(depth)]
    stride_q = [[] for _ in range(depth)]
    stride_kv = [[] for _ in range(depth)]
    for entry in cfg["POOL_Q_STRIDE"]:
        i = entry[0]
        stride_q[i] = list(entry[1:])
        pool_q[i] = (list(cfg["POOL_KVQ_KERNEL"]) if cfg["POOL_KVQ_KERNEL"] is not None
                     else [s + 1 if s > 1 else s for s in entry[1:]])
    pool_kv_stride = []
    if cfg["POOL_KV_STRIDE_ADAPTIVE"] is not None:
        _skv = list(cfg["POOL_KV_STRIDE_ADAPTIVE"])
        for i in range(depth):
            if len(stride_q[i]) > 0:
                _skv = [max(_skv[d] // stride_q[i][d], 1) for d in range(len(_skv))]
            pool_kv_stride.append([i] + _skv)
    for entry in pool_kv_stride:
        i = entry[0]
        stride_kv[i] = list(entry[1:])
        pool_kv[i] = (list(cfg["POOL_KVQ_KERNEL"]) if cfg["POOL_KVQ_KERNEL"] is not None
                      else [s + 1 if s > 1 else s for s in entry[1:]])

    blk_cfgs = []
    embed_dim = cfg["EMBED_DIM"]
    num_heads = cfg["NUM_HEADS"]
    for i in range(depth):
        num_heads = round_width(num_heads, head_mul[i])
        embed_dim = round_width(embed_dim, dim_mul[i], divisor=num_heads)
        dim_out = round_width(embed_dim, dim_mul[i + 1],
                              divisor=round_width(num_heads, head_mul[i + 1]))
        kq, sq = list(pool_q[i]), list(stride_q[i])
        kkv, skv = list(pool_kv[i]), list(stride_kv[i])
        # MultiScaleAttention skips pooling when kernel & stride are all ones
        if math.prod(kq) == 1 and math.prod(sq) == 1:
            kq = []
        if math.prod(kkv) == 1 and math.prod(skv) == 1:
            kkv = []
        kernel_skip = [s + 1 if s > 1 else s for s in sq]
        blk_cfgs.append(dict(
            dim=embed_dim, dim_out=dim_out, num_heads=num_heads,
            kernel_q=kq, stride_q=sq, kernel_kv=kkv, stride_kv=skv,
            kernel_skip=kernel_skip, stride_skip=list(sq),
            mlp_hidden=int(embed_dim * cfg["MLP_RATIO"])))
    return blk_cfgs


def init_params(cfg, blk_cfgs, key):
    """Synthetic weights, pre-laid-out once (transposed / head-tiled / bf16) for the kernels."""
    keys = iter(jax.random.split(key, 512))

    def nrm(shape, std=0.02, dtype=jnp.bfloat16):
        return (std * jax.random.normal(next(keys), shape, F32)).astype(dtype)

    params = {}
    ed = cfg["EMBED_DIM"]
    cin = cfg["IN_CHANNELS"]
    kt, kh, kw = cfg["PATCH_KERNEL"]
    w_conv = nrm((ed, cin, kt, kh, kw), dtype=F32)     # torch Conv3d layout
    params["patch_w"] = (jnp.transpose(w_conv, (2, 3, 4, 1, 0))
                         .reshape(kt * kh * kw * cin, ed).astype(jnp.bfloat16))
    params["patch_b"] = jnp.zeros((1, ed), F32)
    pdims = [cfg["NUM_FRAMES"] // cfg["PATCH_STRIDE"][0],
             cfg["SPATIAL_SIZE"] // cfg["PATCH_STRIDE"][1],
             cfg["SPATIAL_SIZE"] // cfg["PATCH_STRIDE"][2]]
    params["cls_token"] = nrm((1, 1, ed))
    params["pos_embed_spatial"] = nrm((1, pdims[1] * pdims[2], ed))
    params["pos_embed_temporal"] = nrm((1, pdims[0], ed))
    params["pos_embed_class"] = nrm((1, 1, ed))

    blocks = []
    for bc in blk_cfgs:
        dim, dim_out, nh = bc["dim"], bc["dim_out"], bc["num_heads"]
        dh = dim // nh
        p = {}
        p["norm1_g"] = jnp.ones((1, dim), F32)
        p["norm1_b"] = jnp.zeros((1, dim), F32)
        p["qkv_w"] = nrm((dim, 3 * dim))
        p["qkv_b"] = jnp.zeros((1, 3 * dim), F32)
        p["attn_proj_w"] = nrm((dim, dim))
        p["attn_proj_b"] = jnp.zeros((1, dim), F32)

        def pool_weight(kernel):
            K = math.prod(kernel)
            w = nrm((dh, 1) + tuple(kernel), dtype=F32)       # torch (dh, 1, kt, kh, kw), groups=dh
            w_kd = w.reshape(dh, K).T                         # (K, dh)
            return jnp.tile(w_kd, (1, nh)).reshape(K, 1, dim)  # tiled across heads -> (K, 1, C)

        if bc["kernel_q"]:
            p["pool_q_w"] = pool_weight(bc["kernel_q"])
            p["norm_q_g"] = jnp.ones((1, dh), F32)
            p["norm_q_b"] = jnp.zeros((1, dh), F32)
        if bc["kernel_kv"]:
            p["pool_k_w"] = pool_weight(bc["kernel_kv"])
            p["norm_k_g"] = jnp.ones((1, dh), F32)
            p["norm_k_b"] = jnp.zeros((1, dh), F32)
            p["pool_v_w"] = pool_weight(bc["kernel_kv"])
            p["norm_v_g"] = jnp.ones((1, dh), F32)
            p["norm_v_b"] = jnp.zeros((1, dh), F32)
        p["norm2_g"] = jnp.ones((1, dim), F32)
        p["norm2_b"] = jnp.zeros((1, dim), F32)
        hidden = bc["mlp_hidden"]
        p["fc1_w"] = nrm((dim, hidden))
        p["fc1_b"] = jnp.zeros((1, hidden), F32)
        p["fc2_w"] = nrm((hidden, dim_out))
        p["fc2_b"] = jnp.zeros((1, dim_out), F32)
        if dim != dim_out:
            p["blk_proj_w"] = nrm((dim, dim_out))
            p["blk_proj_b"] = jnp.zeros((1, dim_out), F32)
        blocks.append(p)
    params["blocks"] = blocks
    fdim = blk_cfgs[-1]["dim_out"]
    params["norm_g"] = jnp.ones((1, fdim), F32)
    params["norm_b"] = jnp.zeros((1, fdim), F32)
    return params


# ============================================================== main
if __name__ == "__main__":
    # Small but faithful MViT config (chunk_size == NUM_FRAMES per chunk).
    CFG = dict(
        SPATIAL_SIZE=16, NUM_FRAMES=8, IN_CHANNELS=3,
        CLS_EMBED_ON=True, SEP_POS_EMBED=True,
        NUM_HEADS=1, EMBED_DIM=32,
        PATCH_KERNEL=(3, 7, 7), PATCH_STRIDE=(2, 4, 4), PATCH_PADDING=(1, 3, 3),
        MLP_RATIO=4.0, QKV_BIAS=True, MODE="conv", DEPTH=4,
        POOL_Q_STRIDE=[[1, 1, 2, 2]], POOL_KVQ_KERNEL=None,
        DIM_MUL=[[1, 2.0]], HEAD_MUL=[[1, 2.0]],
        POOL_KV_STRIDE_ADAPTIVE=[1, 2, 2],
    )
    chunk_size = CFG["NUM_FRAMES"]

    blk_cfgs = build_block_cfgs(CFG)
    key = jax.random.PRNGKey(0)
    key_params, key_input = jax.random.split(key)
    params = init_params(CFG, blk_cfgs, key_params)

    # chunk-first input: (num_chunks, B, C, chunk_size, H, W)
    x = jax.random.normal(key_input, (2, 1, 3, 8, 16, 16), F32)

    fwd = jax.jit(lambda p, inp: chunk_mvit_forward(p, inp, CFG, blk_cfgs, chunk_size))
    out = fwd(params, x)
    jax.block_until_ready(out)

    expected_c = blk_cfgs[-1]["dim_out"]
    expected_t = CFG["NUM_FRAMES"] // CFG["PATCH_STRIDE"][0]
    assert out.shape == (2, 1, expected_c, expected_t), out.shape
    assert bool(jnp.all(jnp.isfinite(out)))
    print("KERNEL_OK")
</pallas_src>

<mosaic_0001>
module attributes {stable_mosaic.version = 11 : i64} {
  func.func @kern(%arg0: i32, %arg1: i32, %arg2: i32, %arg3: memref<128x441xbf16, #tpu.memory_space<vmem>>, %arg4: memref<441x32xbf16, #tpu.memory_space<vmem>>, %arg5: memref<1x32xf32, #tpu.memory_space<vmem>>, %arg6: memref<128x32xbf16, #tpu.memory_space<vmem>>, %arg7: memref<128x32xf32, #tpu.memory_space<vmem>>) attributes {dimension_semantics = [#tpu.dimension_semantics<parallel>, #tpu.dimension_semantics<parallel>, #tpu.dimension_semantics<arbitrary>], iteration_bounds = array<i64: 1, 1, 1>, scalar_prefetch = 0 : i64, scratch_operands = 1 : i64, tpu.core_type = #tpu.core_type<tc>, window_params = [{transform_indices = @transform_0, window_bounds = array<i64: 128, 441>}, {transform_indices = @transform_1, window_bounds = array<i64: 441, 32>}, {transform_indices = @transform_2, window_bounds = array<i64: 1, 32>}, {transform_indices = @transform_3, window_bounds = array<i64: 128, 32>}]} {
    %c0_i32 = arith.constant 0 : i32
    %0 = arith.cmpi eq, %arg2, %c0_i32 : i32
    %1 = arith.extui %0 : i1 to i32
    %c0_i32_0 = arith.constant 0 : i32
    %2 = arith.cmpi ne, %1, %c0_i32_0 : i32
    scf.if %2 {
      %cst_10 = arith.constant 0.000000e+00 : f32
      %12 = vector.broadcast %cst_10 : f32 to vector<128x32xf32>
      %c0_11 = arith.constant 0 : index
      %c0_12 = arith.constant 0 : index
      %13 = vector.load %arg7[%c0_11, %c0_12] : memref<128x32xf32, #tpu.memory_space<vmem>>, vector<128x32xf32>
      tpu.vector_store %arg7[%c0_11, %c0_12], %12 {strides = array<i32>} : memref<128x32xf32, #tpu.memory_space<vmem>>, vector<128x32xf32>,
    } else {
    }
    %c0 = arith.constant 0 : index
    %c0_1 = arith.constant 0 : index
    %3 = vector.load %arg3[%c0, %c0_1] : memref<128x441xbf16, #tpu.memory_space<vmem>>, vector<128x441xbf16>
    %c0_2 = arith.constant 0 : index
    %c0_3 = arith.constant 0 : index
    %4 = vector.load %arg7[%c0_2, %c0_3] : memref<128x32xf32, #tpu.memory_space<vmem>>, vector<128x32xf32>
    %c0_4 = arith.constant 0 : index
    %c0_5 = arith.constant 0 : index
    %5 = vector.load %arg4[%c0_4, %c0_5] : memref<441x32xbf16, #tpu.memory_space<vmem>>, vector<441x32xbf16>
    %cst = arith.constant dense<0.000000e+00> : vector<128x32xf32>
    %6 = tpu.matmul %3, %5, %cst {dimension_numbers = #tpu.dot_dimension_numbers<[1], [0], [0], [1], [0, 0, 1, 1], [], []>} : vector<128x441xbf16>, vector<441x32xbf16>, vector<128x32xf32> -> vector<128x32xf32>
    %7 = arith.addf %4, %6 : vector<128x32xf32>
    %c0_6 = arith.constant 0 : index
    %c0_7 = arith.constant 0 : index
    %8 = vector.load %arg7[%c0_6, %c0_7] : memref<128x32xf32, #tpu.memory_space<vmem>>, vector<128x32xf32>
    tpu.vector_store %arg7[%c0_6, %c0_7], %7 {strides = array<i32>} : memref<128x32xf32, #tpu.memory_space<vmem>>, vector<128x32xf32>,
    %c0_i32_8 = arith.constant 0 : i32
    %9 = arith.cmpi eq, %arg2, %c0_i32_8 : i32
    %10 = arith.extui %9 : i1 to i32
    %c0_i32_9 = arith.constant 0 : i32
    %11 = arith.cmpi ne, %10, %c0_i32_9 : i32
    scf.if %11 {
      %c0_10 = arith.constant 0 : index
      %c0_11 = arith.constant 0 : index
      %12 = vector.load %arg7[%c0_10, %c0_11] : memref<128x32xf32, #tpu.memory_space<vmem>>, vector<128x32xf32>
      %c0_12 = arith.constant 0 : index
      %c0_13 = arith.constant 0 : index
      %13 = vector.load %arg5[%c0_12, %c0_13] : memref<1x32xf32, #tpu.memory_space<vmem>>, vector<1x32xf32>
      %14 = vector.broadcast %13 : vector<1x32xf32> to vector<128x32xf32>
      %15 = arith.addf %12, %14 : vector<128x32xf32>
      %16 = arith.truncf %15 : vector<128x32xf32> to vector<128x32xbf16>
      %c0_14 = arith.constant 0 : index
      %c0_15 = arith.constant 0 : index
      %17 = vector.load %arg6[%c0_14, %c0_15] : memref<128x32xbf16, #tpu.memory_space<vmem>>, vector<128x32xbf16>
      tpu.vector_store %arg6[%c0_14, %c0_15], %16 {strides = array<i32>} : memref<128x32xbf16, #tpu.memory_space<vmem>>, vector<128x32xbf16>,
    } else {
    }
    return
  }
  func.func @transform_0(%arg0: i32, %arg1: i32, %arg2: i32) -> (i32, i32) {
    %c0_i32 = arith.constant 0 : i32
    return %arg0, %arg2 : i32, i32
  }
  func.func @transform_1(%arg0: i32, %arg1: i32, %arg2: i32) -> (i32, i32) {
    %c0_i32 = arith.constant 0 : i32
    return %arg2, %arg1 : i32, i32
  }
  func.func @transform_2(%arg0: i32, %arg1: i32, %arg2: i32) -> (i32, i32) {
    %c0_i32 = arith.constant 0 : i32
    %c0_i32_0 = arith.constant 0 : i32
    return %c0_i32, %arg1 : i32, i32
  }
  func.func @transform_3(%arg0: i32, %arg1: i32, %arg2: i32) -> (i32, i32) {
    %c0_i32 = arith.constant 0 : i32
    return %arg0, %arg1 : i32, i32
  }
}

module attributes {stable_mosaic.version = 11 : i64} {
  func.func @kern(%arg0: i32, %arg1: i32, %arg2: i32, %arg3: memref<136x32xbf16, #tpu.memory_space<vmem>>, %arg4: memref<32x96xbf16, #tpu.memory_space<vmem>>, %arg5: memref<1x96xf32, #tpu.memory_space<vmem>>, %arg6: memref<1x32xf32, #tpu.memory_space<vmem>>, %arg7: memref<1x32xf32, #tpu.memory_space<vmem>>, %arg8: memref<136x96xbf16, #tpu.memory_space<vmem>>, %arg9: memref<136x96xf32, #tpu.memory_space<vmem>>) attributes {dimension_semantics = [#tpu.dimension_semantics<parallel>, #tpu.dimension_semantics<parallel>, #tpu.dimension_semantics<arbitrary>], iteration_bounds = array<i64: 1, 1, 1>, scalar_prefetch = 0 : i64, scratch_operands = 1 : i64, tpu.core_type = #tpu.core_type<tc>, window_params = [{transform_indices = @transform_0, window_bounds = array<i64: 136, 32>}, {transform_indices = @transform_1, window_bounds = array<i64: 32, 96>}, {transform_indices = @transform_2, window_bounds = array<i64: 1, 96>}, {transform_indices = @transform_3, window_bounds = array<i64: 1, 32>}, {transform_indices = @transform_4, window_bounds = array<i64: 1, 32>}, {transform_indices = @transform_5, window_bounds = array<i64: 136, 96>}]} {
    %c0_i32 = arith.constant 0 : i32
    %0 = arith.cmpi eq, %arg2, %c0_i32 : i32
    %1 = arith.extui %0 : i1 to i32
    %c0_i32_0 = arith.constant 0 : i32
    %2 = arith.cmpi ne, %1, %c0_i32_0 : i32
    scf.if %2 {
      %cst_19 = arith.constant 0.000000e+00 : f32
      %36 = vector.broadcast %cst_19 : f32 to vector<136x96xf32>
      %c0_20 = arith.constant 0 : index
      %c0_21 = arith.constant 0 : index
      %37 = vector.load %arg9[%c0_20, %c0_21] : memref<136x96xf32, #tpu.memory_space<vmem>>, vector<136x96xf32>
      tpu.vector_store %arg9[%c0_20, %c0_21], %36 {strides = array<i32>} : memref<136x96xf32, #tpu.memory_space<vmem>>, vector<136x96xf32>,
    } else {
    }
    %c0 = arith.constant 0 : index
    %c0_1 = arith.constant 0 : index
    %3 = vector.load %arg3[%c0, %c0_1] : memref<136x32xbf16, #tpu.memory_space<vmem>>, vector<136x32xbf16>
    %4 = arith.extf %3 : vector<136x32xbf16> to vector<136x32xf32>
    %cst = arith.constant dense<0.000000e+00> : vector<136xf32>
    %5 = vector.multi_reduction <add>, %4, %cst [1] : vector<136x32xf32> to vector<136xf32>
    %6 = vector.shape_cast %5 : vector<136xf32> to vector<136x1xf32>
    %cst_2 = arith.constant 3.200000e+01 : f32
    %7 = vector.broadcast %cst_2 : f32 to vector<136x1xf32>
    %8 = arith.divf %6, %7 : vector<136x1xf32>
    %9 = vector.broadcast %8 : vector<136x1xf32> to vector<136x32xf32>
    %10 = arith.subf %4, %9 : vector<136x32xf32>
    %11 = arith.mulf %10, %10 : vector<136x32xf32>
    %cst_3 = arith.constant dense<0.000000e+00> : vector<136xf32>
    %12 = vector.multi_reduction <add>, %11, %cst_3 [1] : vector<136x32xf32> to vector<136xf32>
    %13 = vector.shape_cast %12 : vector<136xf32> to vector<136x1xf32>
    %cst_4 = arith.constant 3.200000e+01 : f32
    %14 = vector.broadcast %cst_4 : f32 to vector<136x1xf32>
    %15 = arith.divf %13, %14 : vector<136x1xf32>
    %cst_5 = arith.constant 9.99999997E-7 : f32
    %16 = vector.broadcast %cst_5 : f32 to vector<136x1xf32>
    %17 = arith.addf %15, %16 : vector<136x1xf32>
    %18 = math.rsqrt %17 : vector<136x1xf32>
    %19 = vector.broadcast %18 : vector<136x1xf32> to vector<136x32xf32>
    %20 = arith.mulf %10, %19 : vector<136x32xf32>
    %c0_6 = arith.constant 0 : index
    %c0_7 = arith.constant 0 : index
    %21 = vector.load %arg6[%c0_6, %c0_7] : memref<1x32xf32, #tpu.memory_space<vmem>>, vector<1x32xf32>
    %22 = vector.broadcast %21 : vector<1x32xf32> to vector<136x32xf32>
    %23 = arith.mulf %20, %22 : vector<136x32xf32>
    %c0_8 = arith.constant 0 : index
    %c0_9 = arith.constant 0 : index
    %24 = vector.load %arg7[%c0_8, %c0_9] : memref<1x32xf32, #tpu.memory_space<vmem>>, vector<1x32xf32>
    %25 = vector.broadcast %24 : vector<1x32xf32> to vector<136x32xf32>
    %26 = arith.addf %23, %25 : vector<136x32xf32>
    %27 = arith.truncf %26 : vector<136x32xf32> to vector<136x32xbf16>
    %c0_10 = arith.constant 0 : index
    %c0_11 = arith.constant 0 : index
    %28 = vector.load %arg9[%c0_10, %c0_11] : memref<136x96xf32, #tpu.memory_space<vmem>>, vector<136x96xf32>
    %c0_12 = arith.constant 0 : index
    %c0_13 = arith.constant 0 : index
    %29 = vector.load %arg4[%c0_12, %c0_13] : memref<32x96xbf16, #tpu.memory_space<vmem>>, vector<32x96xbf16>
    %cst_14 = arith.constant dense<0.000000e+00> : vector<136x96xf32>
    %30 = tpu.matmul %27, %29, %cst_14 {dimension_numbers = #tpu.dot_dimension_numbers<[1], [0], [0], [1], [0, 0, 1, 1], [], []>} : vector<136x32xbf16>, vector<32x96xbf16>, vector<136x96xf32> -> vector<136x96xf32>
    %31 = arith.addf %28, %30 : vector<136x96xf32>
    %c0_15 = arith.constant 0 : index
    %c0_16 = arith.constant 0 : index
    %32 = vector.load %arg9[%c0_15, %c0_16] : memref<136x96xf32, #tpu.memory_space<vmem>>, vector<136x96xf32>
    tpu.vector_store %arg9[%c0_15, %c0_16], %31 {strides = array<i32>} : memref<136x96xf32, #tpu.memory_space<vmem>>, vector<136x96xf32>,
    %c0_i32_17 = arith.constant 0 : i32
    %33 = arith.cmpi eq, %arg2, %c0_i32_17 : i32
    %34 = arith.extui %33 : i1 to i32
    %c0_i32_18 = arith.constant 0 : i32
    %35 = arith.cmpi ne, %34, %c0_i32_18 : i32
    scf.if %35 {
      %c0_19 = arith.constant 0 : index
      %c0_20 = arith.constant 0 : index
      %36 = vector.load %arg9[%c0_19, %c0_20] : memref<136x96xf32, #tpu.memory_space<vmem>>, vector<136x96xf32>
      %c0_21 = arith.constant 0 : index
      %c0_22 = arith.constant 0 : index
      %37 = vector.load %arg5[%c0_21, %c0_22] : memref<1x96xf32, #tpu.memory_space<vmem>>, vector<1x96xf32>
      %38 = vector.broadcast %37 : vector<1x96xf32> to vector<136x96xf32>
      %39 = arith.addf %36, %38 : vector<136x96xf32>
      %40 = arith.truncf %39 : vector<136x96xf32> to vector<136x96xbf16>
      %c0_23 = arith.constant 0 : index
      %c0_24 = arith.constant 0 : index
      %41 = vector.load %arg8[%c0_23, %c0_24] : memref<136x96xbf16, #tpu.memory_space<vmem>>, vector<136x96xbf16>
      tpu.vector_store %arg8[%c0_23, %c0_24], %40 {strides = array<i32>} : memref<136x96xbf16, #tpu.memory_space<vmem>>, vector<136x96xbf16>,
    } else {
    }
    return
  }
  func.func @transform_0(%arg0: i32, %arg1: i32, %arg2: i32) -> (i32, i32) {
    %c0_i32 = arith.constant 0 : i32
    return %arg0, %arg2 : i32, i32
  }
  func.func @transform_1(%arg0: i32, %arg1: i32, %arg2: i32) -> (i32, i32) {
    %c0_i32 = arith.constant 0 : i32
    return %arg2, %arg1 : i32, i32
  }
  func.func @transform_2(%arg0: i32, %arg1: i32, %arg2: i32) -> (i32, i32) {
    %c0_i32 = arith.constant 0 : i32
    %c0_i32_0 = arith.constant 0 : i32
    return %c0_i32, %arg1 : i32, i32
  }
  func.func @transform_3(%arg0: i32, %arg1: i32, %arg2: i32) -> (i32, i32) {
    %c0_i32 = arith.constant 0 : i32
    %c0_i32_0 = arith.constant 0 : i32
    return %c0_i32, %arg2 : i32, i32
  }
  func.func @transform_4(%arg0: i32, %arg1: i32, %arg2: i32) -> (i32, i32) {
    %c0_i32 = arith.constant 0 : i32
    %c0_i32_0 = arith.constant 0 : i32
    return %c0_i32, %arg2 : i32, i32
  }
  func.func @transform_5(%arg0: i32, %arg1: i32, %arg2: i32) -> (i32, i32) {
    %c0_i32 = arith.constant 0 : i32
    return %arg0, %arg1 : i32, i32
  }
}

module attributes {stable_mosaic.version = 11 : i64} {
  func.func @_tapsum_kernel(%arg0: i32, %arg1: memref<1x9x16x32xbf16, #tpu.memory_space<vmem>>, %arg2: memref<9x1x32xf32, #tpu.memory_space<vmem>>, %arg3: memref<1x16x32xbf16, #tpu.memory_space<vmem>>) attributes {dimension_semantics = [#tpu.dimension_semantics<parallel>], iteration_bounds = array<i64: 2>, scalar_prefetch = 0 : i64, scratch_operands = 0 : i64, tpu.core_type = #tpu.core_type<tc>, window_params = [{transform_indices = @transform_0, window_bounds = array<i64: 1, 9, 16, 32>}, {pipeline_mode = #tpu.pipeline_mode<synchronous>, transform_indices = @transform_1, window_bounds = array<i64: 9, 1, 32>}, {transform_indices = @transform_2, window_bounds = array<i64: 1, 16, 32>}]} {
    %c0 = arith.constant 0 : index
    %c0_0 = arith.constant 0 : index
    %c0_1 = arith.constant 0 : index
    %c0_2 = arith.constant 0 : index
    %0 = vector.load %arg1[%c0, %c0_0, %c0_1, %c0_2] : memref<1x9x16x32xbf16, #tpu.memory_space<vmem>>, vector<1x9x16x32xbf16>
    %1 = vector.shape_cast %0 : vector<1x9x16x32xbf16> to vector<9x16x32xbf16>
    %2 = arith.extf %1 : vector<9x16x32xbf16> to vector<9x16x32xf32>
    %c0_3 = arith.constant 0 : index
    %c0_4 = arith.constant 0 : index
    %c0_5 = arith.constant 0 : index
    %3 = vector.load %arg2[%c0_3, %c0_4, %c0_5] : memref<9x1x32xf32, #tpu.memory_space<vmem>>, vector<9x1x32xf32>
    %4 = vector.broadcast %3 : vector<9x1x32xf32> to vector<9x16x32xf32>
    %5 = arith.mulf %2, %4 : vector<9x16x32xf32>
    %cst = arith.constant dense<0.000000e+00> : vector<16x32xf32>
    %6 = vector.multi_reduction <add>, %5, %cst [0] : vector<9x16x32xf32> to vector<16x32xf32>
    %7 = arith.truncf %6 : vector<16x32xf32> to vector<16x32xbf16>
    %c0_6 = arith.constant 0 : index
    %c0_7 = arith.constant 0 : index
    %c0_8 = arith.constant 0 : index
    %8 = vector.load %arg3[%c0_6, %c0_7, %c0_8] : memref<1x16x32xbf16, #tpu.memory_space<vmem>>, vector<1x16x32xbf16>
    %9 = vector.shape_cast %8 : vector<1x16x32xbf16> to vector<16x32xbf16>
    %10 = vector.shape_cast %7 : vector<16x32xbf16> to vector<1x16x32xbf16>
    tpu.vector_store %arg3[%c0_6, %c0_7, %c0_8], %10 {strides = array<i32>} : memref<1x16x32xbf16, #tpu.memory_space<vmem>>, vector<1x16x32xbf16>,
    return
  }
  func.func @transform_0(%arg0: i32) -> (i32, i32, i32, i32) {
    %c0_i32 = arith.constant 0 : i32
    %c0_i32_0 = arith.constant 0 : i32
    %c0_i32_1 = arith.constant 0 : i32
    %c0_i32_2 = arith.constant 0 : i32
    return %arg0, %c0_i32, %c0_i32_0, %c0_i32_1 : i32, i32, i32, i32
  }
  func.func @transform_1(%arg0: i32) -> (i32, i32, i32) {
    %c0_i32 = arith.constant 0 : i32
    %c0_i32_0 = arith.constant 0 : i32
    %c0_i32_1 = arith.constant 0 : i32
    %c0_i32_2 = arith.constant 0 : i32
    return %c0_i32, %c0_i32_0, %c0_i32_1 : i32, i32, i32
  }
  func.func @transform_2(%arg0: i32) -> (i32, i32, i32) {
    %c0_i32 = arith.constant 0 : i32
    %c0_i32_0 = arith.constant 0 : i32
    %c0_i32_1 = arith.constant 0 : i32
    return %arg0, %c0_i32, %c0_i32_0 : i32, i32, i32
  }
}

module attributes {stable_mosaic.version = 11 : i64} {
  func.func @kern(%arg0: i32, %arg1: i32, %arg2: i32, %arg3: memref<136x32xbf16, #tpu.memory_space<vmem>>, %arg4: memref<32x32xbf16, #tpu.memory_space<vmem>>, %arg5: memref<1x32xf32, #tpu.memory_space<vmem>>, %arg6: memref<136x32xbf16, #tpu.memory_space<vmem>>, %arg7: memref<136x32xbf16, #tpu.memory_space<vmem>>, %arg8: memref<136x32xf32, #tpu.memory_space<vmem>>) attributes {dimension_semantics = [#tpu.dimension_semantics<parallel>, #tpu.dimension_semantics<parallel>, #tpu.dimension_semantics<arbitrary>], iteration_bounds = array<i64: 1, 1, 1>, scalar_prefetch = 0 : i64, scratch_operands = 1 : i64, tpu.core_type = #tpu.core_type<tc>, window_params = [{transform_indices = @transform_0, window_bounds = array<i64: 136, 32>}, {transform_indices = @transform_1, window_bounds = array<i64: 32, 32>}, {transform_indices = @transform_2, window_bounds = array<i64: 1, 32>}, {transform_indices = @transform_3, window_bounds = array<i64: 136, 32>}, {transform_indices = @transform_4, window_bounds = array<i64: 136, 32>}]} {
    %c0_i32 = arith.constant 0 : i32
    %0 = arith.cmpi eq, %arg2, %c0_i32 : i32
    %1 = arith.extui %0 : i1 to i32
    %c0_i32_0 = arith.constant 0 : i32
    %2 = arith.cmpi ne, %1, %c0_i32_0 : i32
    scf.if %2 {
      %cst_10 = arith.constant 0.000000e+00 : f32
      %12 = vector.broadcast %cst_10 : f32 to vector<136x32xf32>
      %c0_11 = arith.constant 0 : index
      %c0_12 = arith.constant 0 : index
      %13 = vector.load %arg8[%c0_11, %c0_12] : memref<136x32xf32, #tpu.memory_space<vmem>>, vector<136x32xf32>
      tpu.vector_store %arg8[%c0_11, %c0_12], %12 {strides = array<i32>} : memref<136x32xf32, #tpu.memory_space<vmem>>, vector<136x32xf32>,
    } else {
    }
    %c0 = arith.constant 0 : index
    %c0_1 = arith.constant 0 : index
    %3 = vector.load %arg3[%c0, %c0_1] : memref<136x32xbf16, #tpu.memory_space<vmem>>, vector<136x32xbf16>
    %c0_2 = arith.constant 0 : index
    %c0_3 = arith.constant 0 : index
    %4 = vector.load %arg8[%c0_2, %c0_3] : memref<136x32xf32, #tpu.memory_space<vmem>>, vector<136x32xf32>
    %c0_4 = arith.constant 0 : index
    %c0_5 = arith.constant 0 : index
    %5 = vector.load %arg4[%c0_4, %c0_5] : memref<32x32xbf16, #tpu.memory_space<vmem>>, vector<32x32xbf16>
    %cst = arith.constant dense<0.000000e+00> : vector<136x32xf32>
    %6 = tpu.matmul %3, %5, %cst {dimension_numbers = #tpu.dot_dimension_numbers<[1], [0], [0], [1], [0, 0, 1, 1], [], []>} : vector<136x32xbf16>, vector<32x32xbf16>, vector<136x32xf32> -> vector<136x32xf32>
    %7 = arith.addf %4, %6 : vector<136x32xf32>
    %c0_6 = arith.constant 0 : index
    %c0_7 = arith.constant 0 : index
    %8 = vector.load %arg8[%c0_6, %c0_7] : memref<136x32xf32, #tpu.memory_space<vmem>>, vector<136x32xf32>
    tpu.vector_store %arg8[%c0_6, %c0_7], %7 {strides = array<i32>} : memref<136x32xf32, #tpu.memory_space<vmem>>, vector<136x32xf32>,
    %c0_i32_8 = arith.constant 0 : i32
    %9 = arith.cmpi eq, %arg2, %c0_i32_8 : i32
    %10 = arith.extui %9 : i1 to i32
    %c0_i32_9 = arith.constant 0 : i32
    %11 = arith.cmpi ne, %10, %c0_i32_9 : i32
    scf.if %11 {
      %c0_10 = arith.constant 0 : index
      %c0_11 = arith.constant 0 : index
      %12 = vector.load %arg8[%c0_10, %c0_11] : memref<136x32xf32, #tpu.memory_space<vmem>>, vector<136x32xf32>
      %c0_12 = arith.constant 0 : index
      %c0_13 = arith.constant 0 : index
      %13 = vector.load %arg5[%c0_12, %c0_13] : memref<1x32xf32, #tpu.memory_space<vmem>>, vector<1x32xf32>
      %14 = vector.broadcast %13 : vector<1x32xf32> to vector<136x32xf32>
      %15 = arith.addf %12, %14 : vector<136x32xf32>
      %c0_14 = arith.constant 0 : index
      %c0_15 = arith.constant 0 : index
      %16 = vector.load %arg6[%c0_14, %c0_15] : memref<136x32xbf16, #tpu.memory_space<vmem>>, vector<136x32xbf16>
      %17 = arith.extf %16 : vector<136x32xbf16> to vector<136x32xf32>
      %18 = arith.addf %15, %17 : vector<136x32xf32>
      %19 = arith.truncf %18 : vector<136x32xf32> to vector<136x32xbf16>
      %c0_16 = arith.constant 0 : index
      %c0_17 = arith.constant 0 : index
      %20 = vector.load %arg7[%c0_16, %c0_17] : memref<136x32xbf16, #tpu.memory_space<vmem>>, vector<136x32xbf16>
      tpu.vector_store %arg7[%c0_16, %c0_17], %19 {strides = array<i32>} : memref<136x32xbf16, #tpu.memory_space<vmem>>, vector<136x32xbf16>,
    } else {
    }
    return
  }
  func.func @transform_0(%arg0: i32, %arg1: i32, %arg2: i32) -> (i32, i32) {
    %c0_i32 = arith.constant 0 : i32
    return %arg0, %arg2 : i32, i32
  }
  func.func @transform_1(%arg0: i32, %arg1: i32, %arg2: i32) -> (i32, i32) {
    %c0_i32 = arith.constant 0 : i32
    return %arg2, %arg1 : i32, i32
  }
  func.func @transform_2(%arg0: i32, %arg1: i32, %arg2: i32) -> (i32, i32) {
    %c0_i32 = arith.constant 0 : i32
    %c0_i32_0 = arith.constant 0 : i32
    return %c0_i32, %arg1 : i32, i32
  }
  func.func @transform_3(%arg0: i32, %arg1: i32, %arg2: i32) -> (i32, i32) {
    %c0_i32 = arith.constant 0 : i32
    return %arg0, %arg1 : i32, i32
  }
  func.func @transform_4(%arg0: i32, %arg1: i32, %arg2: i32) -> (i32, i32) {
    %c0_i32 = arith.constant 0 : i32
    return %arg0, %arg1 : i32, i32
  }
}

module attributes {stable_mosaic.version = 11 : i64} {
  func.func @kern(%arg0: i32, %arg1: memref<1x65x32xbf16, #tpu.memory_space<vmem>>, %arg2: memref<1x17x32xbf16, #tpu.memory_space<vmem>>, %arg3: memref<1x17x32xbf16, #tpu.memory_space<vmem>>, %arg4: memref<1x32xf32, #tpu.memory_space<vmem>>, %arg5: memref<1x32xf32, #tpu.memory_space<vmem>>, %arg6: memref<1x32xf32, #tpu.memory_space<vmem>>, %arg7: memref<1x32xf32, #tpu.memory_space<vmem>>, %arg8: memref<1x65x32xbf16, #tpu.memory_space<vmem>>) attributes {dimension_semantics = [#tpu.dimension_semantics<parallel>], iteration_bounds = array<i64: 2>, scalar_prefetch = 0 : i64, scratch_operands = 0 : i64, tpu.core_type = #tpu.core_type<tc>, window_params = [{transform_indices = @transform_0, window_bounds = array<i64: 1, 65, 32>}, {transform_indices = @transform_1, window_bounds = array<i64: 1, 17, 32>}, {transform_indices = @transform_2, window_bounds = array<i64: 1, 17, 32>}, {pipeline_mode = #tpu.pipeline_mode<synchronous>, transform_indices = @transform_3, window_bounds = array<i64: 1, 32>}, {pipeline_mode = #tpu.pipeline_mode<synchronous>, transform_indices = @transform_4, window_bounds = array<i64: 1, 32>}, {pipeline_mode = #tpu.pipeline_mode<synchronous>, transform_indices = @transform_5, window_bounds = array<i64: 1, 32>}, {pipeline_mode = #tpu.pipeline_mode<synchronous>, transform_indices = @transform_6, window_bounds = array<i64: 1, 32>}, {transform_indices = @transform_7, window_bounds = array<i64: 1, 65, 32>}]} {
    %c0 = arith.constant 0 : index
    %c0_0 = arith.constant 0 : index
    %c0_1 = arith.constant 0 : index
    %0 = vector.load %arg1[%c0, %c0_0, %c0_1] : memref<1x65x32xbf16, #tpu.memory_space<vmem>>, vector<1x65x32xbf16>
    %1 = vector.shape_cast %0 : vector<1x65x32xbf16> to vector<65x32xbf16>
    %2 = arith.extf %1 : vector<65x32xbf16> to vector<65x32xf32>
    %c0_2 = arith.constant 0 : index
    %c0_3 = arith.constant 0 : index
    %c0_4 = arith.constant 0 : index
    %3 = vector.load %arg2[%c0_2, %c0_3, %c0_4] : memref<1x17x32xbf16, #tpu.memory_space<vmem>>, vector<1x17x32xbf16>
    %4 = vector.shape_cast %3 : vector<1x17x32xbf16> to vector<17x32xbf16>
    %5 = arith.extf %4 : vector<17x32xbf16> to vector<17x32xf32>
    %c0_5 = arith.constant 0 : index
    %c0_6 = arith.constant 0 : index
    %c0_7 = arith.constant 0 : index
    %6 = vector.load %arg3[%c0_5, %c0_6, %c0_7] : memref<1x17x32xbf16, #tpu.memory_space<vmem>>, vector<1x17x32xbf16>
    %7 = vector.shape_cast %6 : vector<1x17x32xbf16> to vector<17x32xbf16>
    %8 = arith.extf %7 : vector<17x32xbf16> to vector<17x32xf32>
    %c0_8 = arith.constant 0 : index
    %c0_9 = arith.constant 0 : index
    %9 = vector.load %arg4[%c0_8, %c0_9] : memref<1x32xf32, #tpu.memory_space<vmem>>, vector<1x32xf32>
    %c0_10 = arith.constant 0 : index
    %c0_11 = arith.constant 0 : index
    %10 = vector.load %arg5[%c0_10, %c0_11] : memref<1x32xf32, #tpu.memory_space<vmem>>, vector<1x32xf32>
    %cst = arith.constant dense<0.000000e+00> : vector<17xf32>
    %11 = vector.multi_reduction <add>, %5, %cst [1] : vector<17x32xf32> to vector<17xf32>
    %12 = vector.shape_cast %11 : vector<17xf32> to vector<17x1xf32>
    %cst_12 = arith.constant 3.200000e+01 : f32
    %13 = vector.broadcast %cst_12 : f32 to vector<17x1xf32>
    %14 = arith.divf %12, %13 : vector<17x1xf32>
    %15 = vector.broadcast %14 : vector<17x1xf32> to vector<17x32xf32>
    %16 = arith.subf %5, %15 : vector<17x32xf32>
    %17 = arith.mulf %16, %16 : vector<17x32xf32>
    %cst_13 = arith.constant dense<0.000000e+00> : vector<17xf32>
    %18 = vector.multi_reduction <add>, %17, %cst_13 [1] : vector<17x32xf32> to vector<17xf32>
    %19 = vector.shape_cast %18 : vector<17xf32> to vector<17x1xf32>
    %cst_14 = arith.constant 3.200000e+01 : f32
    %20 = vector.broadcast %cst_14 : f32 to vector<17x1xf32>
    %21 = arith.divf %19, %20 : vector<17x1xf32>
    %cst_15 = arith.constant 9.99999974E-6 : f32
    %22 = vector.broadcast %cst_15 : f32 to vector<17x1xf32>
    %23 = arith.addf %21, %22 : vector<17x1xf32>
    %24 = math.rsqrt %23 : vector<17x1xf32>
    %25 = vector.broadcast %24 : vector<17x1xf32> to vector<17x32xf32>
    %26 = arith.mulf %16, %25 : vector<17x32xf32>
    %27 = vector.broadcast %9 : vector<1x32xf32> to vector<17x32xf32>
    %28 = arith.mulf %26, %27 : vector<17x32xf32>
    %29 = vector.broadcast %10 : vector<1x32xf32> to vector<17x32xf32>
    %30 = arith.addf %28, %29 : vector<17x32xf32>
    %c0_16 = arith.constant 0 : index
    %c0_17 = arith.constant 0 : index
    %31 = vector.load %arg6[%c0_16, %c0_17] : memref<1x32xf32, #tpu.memory_space<vmem>>, vector<1x32xf32>
    %c0_18 = arith.constant 0 : index
    %c0_19 = arith.constant 0 : index
    %32 = vector.load %arg7[%c0_18, %c0_19] : memref<1x32xf32, #tpu.memory_space<vmem>>, vector<1x32xf32>
    %cst_20 = arith.constant dense<0.000000e+00> : vector<17xf32>
    %33 = vector.multi_reduction <add>, %8, %cst_20 [1] : vector<17x32xf32> to vector<17xf32>
    %34 = vector.shape_cast %33 : vector<17xf32> to vector<17x1xf32>
    %cst_21 = arith.constant 3.200000e+01 : f32
    %35 = vector.broadcast %cst_21 : f32 to vector<17x1xf32>
    %36 = arith.divf %34, %35 : vector<17x1xf32>
    %37 = vector.broadcast %36 : vector<17x1xf32> to vector<17x32xf32>
    %38 = arith.subf %8, %37 : vector<17x32xf32>
    %39 = arith.mulf %38, %38 : vector<17x32xf32>
    %cst_22 = arith.constant dense<0.000000e+00> : vector<17xf32>
    %40 = vector.multi_reduction <add>, %39, %cst_22 [1] : vector<17x32xf32> to vector<17xf32>
    %41 = vector.shape_cast %40 : vector<17xf32> to vector<17x1xf32>
    %cst_23 = arith.constant 3.200000e+01 : f32
    %42 = vector.broadcast %cst_23 : f32 to vector<17x1xf32>
    %43 = arith.divf %41, %42 : vector<17x1xf32>
    %cst_24 = arith.constant 9.99999974E-6 : f32
    %44 = vector.broadcast %cst_24 : f32 to vector<17x1xf32>
    %45 = arith.addf %43, %44 : vector<17x1xf32>
    %46 = math.rsqrt %45 : vector<17x1xf32>
    %47 = vector.broadcast %46 : vector<17x1xf32> to vector<17x32xf32>
    %48 = arith.mulf %38, %47 : vector<17x32xf32>
    %49 = vector.broadcast %31 : vector<1x32xf32> to vector<17x32xf32>
    %50 = arith.mulf %48, %49 : vector<17x32xf32>
    %51 = vector.broadcast %32 : vector<1x32xf32> to vector<17x32xf32>
    %52 = arith.addf %50, %51 : vector<17x32xf32>
    %53 = arith.truncf %2 : vector<65x32xf32> to vector<65x32xbf16>
    %54 = arith.truncf %30 : vector<17x32xf32> to vector<17x32xbf16>
    %cst_25 = arith.constant dense<0.000000e+00> : vector<65x17xf32>
    %55 = tpu.matmul %53, %54, %cst_25 {dimension_numbers = #tpu.dot_dimension_numbers<[1], [1], [0], [0], [0, 0, 1, 0], [], []>} : vector<65x32xbf16>, vector<17x32xbf16>, vector<65x17xf32> -> vector<65x17xf32>
    %cst_26 = arith.constant 0.176776692 : f32
    %56 = vector.broadcast %cst_26 : f32 to vector<65x17xf32>
    %57 = arith.mulf %55, %56 : vector<65x17xf32>
    %cst_27 = arith.constant dense<0xFF800000> : vector<65xf32>
    %58 = vector.multi_reduction <maximumf>, %57, %cst_27 [1] : vector<65x17xf32> to vector<65xf32>
    %59 = vector.shape_cast %58 : vector<65xf32> to vector<65x1xf32>
    %60 = vector.broadcast %59 : vector<65x1xf32> to vector<65x17xf32>
    %61 = arith.subf %57, %60 : vector<65x17xf32>
    %62 = math.exp %61 : vector<65x17xf32>
    %cst_28 = arith.constant dense<0.000000e+00> : vector<65xf32>
    %63 = vector.multi_reduction <add>, %62, %cst_28 [1] : vector<65x17xf32> to vector<65xf32>
    %64 = vector.shape_cast %63 : vector<65xf32> to vector<65x1xf32>
    %65 = tpu.reciprocal %64 {approx = true} : vector<65x1xf32> -> vector<65x1xf32>
    %66 = vector.broadcast %65 : vector<65x1xf32> to vector<65x17xf32>
    %67 = arith.mulf %62, %66 : vector<65x17xf32>
    %68 = arith.truncf %67 : vector<65x17xf32> to vector<65x17xbf16>
    %69 = arith.truncf %52 : vector<17x32xf32> to vector<17x32xbf16>
    %cst_29 = arith.constant dense<0.000000e+00> : vector<65x32xf32>
    %70 = tpu.matmul %68, %69, %cst_29 {dimension_numbers = #tpu.dot_dimension_numbers<[1], [0], [0], [1], [0, 0, 1, 1], [], []>} : vector<65x17xbf16>, vector<17x32xbf16>, vector<65x32xf32> -> vector<65x32xf32>
    %71 = arith.truncf %70 : vector<65x32xf32> to vector<65x32xbf16>
    %c0_30 = arith.constant 0 : index
    %c0_31 = arith.constant 0 : index
    %c0_32 = arith.constant 0 : index
    %72 = vector.load %arg8[%c0_30, %c0_31, %c0_32] : memref<1x65x32xbf16, #tpu.memory_space<vmem>>, vector<1x65x32xbf16>
    %73 = vector.shape_cast %72 : vector<1x65x32xbf16> to vector<65x32xbf16>
    %74 = vector.shape_cast %71 : vector<65x32xbf16> to vector<1x65x32xbf16>
    tpu.vector_store %arg8[%c0_30, %c0_31, %c0_32], %74 {strides = array<i32>} : memref<1x65x32xbf16, #tpu.memory_space<vmem>>, vector<1x65x32xbf16>,
    return
  }
  func.func @transform_0(%arg0: i32) -> (i32, i32, i32) {
    %c0_i32 = arith.constant 0 : i32
    %c0_i32_0 = arith.constant 0 : i32
    %c0_i32_1 = arith.constant 0 : i32
    return %arg0, %c0_i32, %c0_i32_0 : i32, i32, i32
  }
  func.func @transform_1(%arg0: i32) -> (i32, i32, i32) {
    %c0_i32 = arith.constant 0 : i32
    %c0_i32_0 = arith.constant 0 : i32
    %c0_i32_1 = arith.constant 0 : i32
    return %arg0, %c0_i32, %c0_i32_0 : i32, i32, i32
  }
  func.func @transform_2(%arg0: i32) -> (i32, i32, i32) {
    %c0_i32 = arith.constant 0 : i32
    %c0_i32_0 = arith.constant 0 : i32
    %c0_i32_1 = arith.constant 0 : i32
    return %arg0, %c0_i32, %c0_i32_0 : i32, i32, i32
  }
  func.func @transform_3(%arg0: i32) -> (i32, i32) {
    %c0_i32 = arith.constant 0 : i32
    %c0_i32_0 = arith.constant 0 : i32
    %c0_i32_1 = arith.constant 0 : i32
    return %c0_i32, %c0_i32_0 : i32, i32
  }
  func.func @transform_4(%arg0: i32) -> (i32, i32) {
    %c0_i32 = arith.constant 0 : i32
    %c0_i32_0 = arith.constant 0 : i32
    %c0_i32_1 = arith.constant 0 : i32
    return %c0_i32, %c0_i32_0 : i32, i32
  }
  func.func @transform_5(%arg0: i32) -> (i32, i32) {
    %c0_i32 = arith.constant 0 : i32
    %c0_i32_0 = arith.constant 0 : i32
    %c0_i32_1 = arith.constant 0 : i32
    return %c0_i32, %c0_i32_0 : i32, i32
  }
  func.func @transform_6(%arg0: i32) -> (i32, i32) {
    %c0_i32 = arith.constant 0 : i32
    %c0_i32_0 = arith.constant 0 : i32
    %c0_i32_1 = arith.constant 0 : i32
    return %c0_i32, %c0_i32_0 : i32, i32
  }
  func.func @transform_7(%arg0: i32) -> (i32, i32, i32) {
    %c0_i32 = arith.constant 0 : i32
    %c0_i32_0 = arith.constant 0 : i32
    %c0_i32_1 = arith.constant 0 : i32
    return %arg0, %c0_i32, %c0_i32_0 : i32, i32, i32
  }
}

module attributes {stable_mosaic.version = 11 : i64} {
  func.func @kern(%arg0: i32, %arg1: i32, %arg2: i32, %arg3: memref<136x32xbf16, #tpu.memory_space<vmem>>, %arg4: memref<32x64xbf16, #tpu.memory_space<vmem>>, %arg5: memref<1x64xf32, #tpu.memory_space<vmem>>, %arg6: memref<1x32xf32, #tpu.memory_space<vmem>>, %arg7: memref<1x32xf32, #tpu.memory_space<vmem>>, %arg8: memref<136x64xbf16, #tpu.memory_space<vmem>>, %arg9: memref<136x64xf32, #tpu.memory_space<vmem>>) attributes {dimension_semantics = [#tpu.dimension_semantics<parallel>, #tpu.dimension_semantics<parallel>, #tpu.dimension_semantics<arbitrary>], iteration_bounds = array<i64: 1, 1, 1>, scalar_prefetch = 0 : i64, scratch_operands = 1 : i64, tpu.core_type = #tpu.core_type<tc>, window_params = [{transform_indices = @transform_0, window_bounds = array<i64: 136, 32>}, {transform_indices = @transform_1, window_bounds = array<i64: 32, 64>}, {transform_indices = @transform_2, window_bounds = array<i64: 1, 64>}, {transform_indices = @transform_3, window_bounds = array<i64: 1, 32>}, {transform_indices = @transform_4, window_bounds = array<i64: 1, 32>}, {transform_indices = @transform_5, window_bounds = array<i64: 136, 64>}]} {
    %c0_i32 = arith.constant 0 : i32
    %0 = arith.cmpi eq, %arg2, %c0_i32 : i32
    %1 = arith.extui %0 : i1 to i32
    %c0_i32_0 = arith.constant 0 : i32
    %2 = arith.cmpi ne, %1, %c0_i32_0 : i32
    scf.if %2 {
      %cst_19 = arith.constant 0.000000e+00 : f32
      %36 = vector.broadcast %cst_19 : f32 to vector<136x64xf32>
      %c0_20 = arith.constant 0 : index
      %c0_21 = arith.constant 0 : index
      %37 = vector.load %arg9[%c0_20, %c0_21] : memref<136x64xf32, #tpu.memory_space<vmem>>, vector<136x64xf32>
      tpu.vector_store %arg9[%c0_20, %c0_21], %36 {strides = array<i32>} : memref<136x64xf32, #tpu.memory_space<vmem>>, vector<136x64xf32>,
    } else {
    }
    %c0 = arith.constant 0 : index
    %c0_1 = arith.constant 0 : index
    %3 = vector.load %arg3[%c0, %c0_1] : memref<136x32xbf16, #tpu.memory_space<vmem>>, vector<136x32xbf16>
    %4 = arith.extf %3 : vector<136x32xbf16> to vector<136x32xf32>
    %cst = arith.constant dense<0.000000e+00> : vector<136xf32>
    %5 = vector.multi_reduction <add>, %4, %cst [1] : vector<136x32xf32> to vector<136xf32>
    %6 = vector.shape_cast %5 : vector<136xf32> to vector<136x1xf32>
    %cst_2 = arith.constant 3.200000e+01 : f32
    %7 = vector.broadcast %cst_2 : f32 to vector<136x1xf32>
    %8 = arith.divf %6, %7 : vector<136x1xf32>
    %9 = vector.broadcast %8 : vector<136x1xf32> to vector<136x32xf32>
    %10 = arith.subf %4, %9 : vector<136x32xf32>
    %11 = arith.mulf %10, %10 : vector<136x32xf32>
    %cst_3 = arith.constant dense<0.000000e+00> : vector<136xf32>
    %12 = vector.multi_reduction <add>, %11, %cst_3 [1] : vector<136x32xf32> to vector<136xf32>
    %13 = vector.shape_cast %12 : vector<136xf32> to vector<136x1xf32>
    %cst_4 = arith.constant 3.200000e+01 : f32
    %14 = vector.broadcast %cst_4 : f32 to vector<136x1xf32>
    %15 = arith.divf %13, %14 : vector<136x1xf32>
    %cst_5 = arith.constant 9.99999997E-7 : f32
    %16 = vector.broadcast %cst_5 : f32 to vector<136x1xf32>
    %17 = arith.addf %15, %16 : vector<136x1xf32>
    %18 = math.rsqrt %17 : vector<136x1xf32>
    %19 = vector.broadcast %18 : vector<136x1xf32> to vector<136x32xf32>
    %20 = arith.mulf %10, %19 : vector<136x32xf32>
    %c0_6 = arith.constant 0 : index
    %c0_7 = arith.constant 0 : index
    %21 = vector.load %arg6[%c0_6, %c0_7] : memref<1x32xf32, #tpu.memory_space<vmem>>, vector<1x32xf32>
    %22 = vector.broadcast %21 : vector<1x32xf32> to vector<136x32xf32>
    %23 = arith.mulf %20, %22 : vector<136x32xf32>
    %c0_8 = arith.constant 0 : index
    %c0_9 = arith.constant 0 : index
    %24 = vector.load %arg7[%c0_8, %c0_9] : memref<1x32xf32, #tpu.memory_space<vmem>>, vector<1x32xf32>
    %25 = vector.broadcast %24 : vector<1x32xf32> to vector<136x32xf32>
    %26 = arith.addf %23, %25 : vector<136x32xf32>
    %27 = arith.truncf %26 : vector<136x32xf32> to vector<136x32xbf16>
    %c0_10 = arith.constant 0 : index
    %c0_11 = arith.constant 0 : index
    %28 = vector.load %arg9[%c0_10, %c0_11] : memref<136x64xf32, #tpu.memory_space<vmem>>, vector<136x64xf32>
    %c0_12 = arith.constant 0 : index
    %c0_13 = arith.constant 0 : index
    %29 = vector.load %arg4[%c0_12, %c0_13] : memref<32x64xbf16, #tpu.memory_space<vmem>>, vector<32x64xbf16>
    %cst_14 = arith.constant dense<0.000000e+00> : vector<136x64xf32>
    %30 = tpu.matmul %27, %29, %cst_14 {dimension_numbers = #tpu.dot_dimension_numbers<[1], [0], [0], [1], [0, 0, 1, 1], [], []>} : vector<136x32xbf16>, vector<32x64xbf16>, vector<136x64xf32> -> vector<136x64xf32>
    %31 = arith.addf %28, %30 : vector<136x64xf32>
    %c0_15 = arith.constant 0 : index
    %c0_16 = arith.constant 0 : index
    %32 = vector.load %arg9[%c0_15, %c0_16] : memref<136x64xf32, #tpu.memory_space<vmem>>, vector<136x64xf32>
    tpu.vector_store %arg9[%c0_15, %c0_16], %31 {strides = array<i32>} : memref<136x64xf32, #tpu.memory_space<vmem>>, vector<136x64xf32>,
    %c0_i32_17 = arith.constant 0 : i32
    %33 = arith.cmpi eq, %arg2, %c0_i32_17 : i32
    %34 = arith.extui %33 : i1 to i32
    %c0_i32_18 = arith.constant 0 : i32
    %35 = arith.cmpi ne, %34, %c0_i32_18 : i32
    scf.if %35 {
      %c0_19 = arith.constant 0 : index
      %c0_20 = arith.constant 0 : index
      %36 = vector.load %arg9[%c0_19, %c0_20] : memref<136x64xf32, #tpu.memory_space<vmem>>, vector<136x64xf32>
      %c0_21 = arith.constant 0 : index
      %c0_22 = arith.constant 0 : index
      %37 = vector.load %arg5[%c0_21, %c0_22] : memref<1x64xf32, #tpu.memory_space<vmem>>, vector<1x64xf32>
      %38 = vector.broadcast %37 : vector<1x64xf32> to vector<136x64xf32>
      %39 = arith.addf %36, %38 : vector<136x64xf32>
      %40 = arith.truncf %39 : vector<136x64xf32> to vector<136x64xbf16>
      %c0_23 = arith.constant 0 : index
      %c0_24 = arith.constant 0 : index
      %41 = vector.load %arg8[%c0_23, %c0_24] : memref<136x64xbf16, #tpu.memory_space<vmem>>, vector<136x64xbf16>
      tpu.vector_store %arg8[%c0_23, %c0_24], %40 {strides = array<i32>} : memref<136x64xbf16, #tpu.memory_space<vmem>>, vector<136x64xbf16>,
    } else {
    }
    return
  }
  func.func @transform_0(%arg0: i32, %arg1: i32, %arg2: i32) -> (i32, i32) {
    %c0_i32 = arith.constant 0 : i32
    return %arg0, %arg2 : i32, i32
  }
  func.func @transform_1(%arg0: i32, %arg1: i32, %arg2: i32) -> (i32, i32) {
    %c0_i32 = arith.constant 0 : i32
    return %arg2, %arg1 : i32, i32
  }
  func.func @transform_2(%arg0: i32, %arg1: i32, %arg2: i32) -> (i32, i32) {
    %c0_i32 = arith.constant 0 : i32
    %c0_i32_0 = arith.constant 0 : i32
    return %c0_i32, %arg1 : i32, i32
  }
  func.func @transform_3(%arg0: i32, %arg1: i32, %arg2: i32) -> (i32, i32) {
    %c0_i32 = arith.constant 0 : i32
    %c0_i32_0 = arith.constant 0 : i32
    return %c0_i32, %arg2 : i32, i32
  }
  func.func @transform_4(%arg0: i32, %arg1: i32, %arg2: i32) -> (i32, i32) {
    %c0_i32 = arith.constant 0 : i32
    %c0_i32_0 = arith.constant 0 : i32
    return %c0_i32, %arg2 : i32, i32
  }
  func.func @transform_5(%arg0: i32, %arg1: i32, %arg2: i32) -> (i32, i32) {
    %c0_i32 = arith.constant 0 : i32
    return %arg0, %arg1 : i32, i32
  }
}

module attributes {stable_mosaic.version = 11 : i64} {
  func.func @kern(%arg0: i32, %arg1: i32, %arg2: i32, %arg3: memref<136x32xbf16, #tpu.memory_space<vmem>>, %arg4: memref<32x128xbf16, #tpu.memory_space<vmem>>, %arg5: memref<1x128xf32, #tpu.memory_space<vmem>>, %arg6: memref<1x32xf32, #tpu.memory_space<vmem>>, %arg7: memref<1x32xf32, #tpu.memory_space<vmem>>, %arg8: memref<136x128xbf16, #tpu.memory_space<vmem>>, %arg9: memref<136x128xf32, #tpu.memory_space<vmem>>) attributes {dimension_semantics = [#tpu.dimension_semantics<parallel>, #tpu.dimension_semantics<parallel>, #tpu.dimension_semantics<arbitrary>], iteration_bounds = array<i64: 1, 1, 1>, scalar_prefetch = 0 : i64, scratch_operands = 1 : i64, tpu.core_type = #tpu.core_type<tc>, window_params = [{transform_indices = @transform_0, window_bounds = array<i64: 136, 32>}, {transform_indices = @transform_1, window_bounds = array<i64: 32, 128>}, {transform_indices = @transform_2, window_bounds = array<i64: 1, 128>}, {transform_indices = @transform_3, window_bounds = array<i64: 1, 32>}, {transform_indices = @transform_4, window_bounds = array<i64: 1, 32>}, {transform_indices = @transform_5, window_bounds = array<i64: 136, 128>}]} {
    %c0_i32 = arith.constant 0 : i32
    %0 = arith.cmpi eq, %arg2, %c0_i32 : i32
    %1 = arith.extui %0 : i1 to i32
    %c0_i32_0 = arith.constant 0 : i32
    %2 = arith.cmpi ne, %1, %c0_i32_0 : i32
    scf.if %2 {
      %cst_19 = arith.constant 0.000000e+00 : f32
      %36 = vector.broadcast %cst_19 : f32 to vector<136x128xf32>
      %c0_20 = arith.constant 0 : index
      %c0_21 = arith.constant 0 : index
      %37 = vector.load %arg9[%c0_20, %c0_21] : memref<136x128xf32, #tpu.memory_space<vmem>>, vector<136x128xf32>
      tpu.vector_store %arg9[%c0_20, %c0_21], %36 {strides = array<i32>} : memref<136x128xf32, #tpu.memory_space<vmem>>, vector<136x128xf32>,
    } else {
    }
    %c0 = arith.constant 0 : index
    %c0_1 = arith.constant 0 : index
    %3 = vector.load %arg3[%c0, %c0_1] : memref<136x32xbf16, #tpu.memory_space<vmem>>, vector<136x32xbf16>
    %4 = arith.extf %3 : vector<136x32xbf16> to vector<136x32xf32>
    %cst = arith.constant dense<0.000000e+00> : vector<136xf32>
    %5 = vector.multi_reduction <add>, %4, %cst [1] : vector<136x32xf32> to vector<136xf32>
    %6 = vector.shape_cast %5 : vector<136xf32> to vector<136x1xf32>
    %cst_2 = arith.constant 3.200000e+01 : f32
    %7 = vector.broadcast %cst_2 : f32 to vector<136x1xf32>
    %8 = arith.divf %6, %7 : vector<136x1xf32>
    %9 = vector.broadcast %8 : vector<136x1xf32> to vector<136x32xf32>
    %10 = arith.subf %4, %9 : vector<136x32xf32>
    %11 = arith.mulf %10, %10 : vector<136x32xf32>
    %cst_3 = arith.constant dense<0.000000e+00> : vector<136xf32>
    %12 = vector.multi_reduction <add>, %11, %cst_3 [1] : vector<136x32xf32> to vector<136xf32>
    %13 = vector.shape_cast %12 : vector<136xf32> to vector<136x1xf32>
    %cst_4 = arith.constant 3.200000e+01 : f32
    %14 = vector.broadcast %cst_4 : f32 to vector<136x1xf32>
    %15 = arith.divf %13, %14 : vector<136x1xf32>
    %cst_5 = arith.constant 9.99999997E-7 : f32
    %16 = vector.broadcast %cst_5 : f32 to vector<136x1xf32>
    %17 = arith.addf %15, %16 : vector<136x1xf32>
    %18 = math.rsqrt %17 : vector<136x1xf32>
    %19 = vector.broadcast %18 : vector<136x1xf32> to vector<136x32xf32>
    %20 = arith.mulf %10, %19 : vector<136x32xf32>
    %c0_6 = arith.constant 0 : index
    %c0_7 = arith.constant 0 : index
    %21 = vector.load %arg6[%c0_6, %c0_7] : memref<1x32xf32, #tpu.memory_space<vmem>>, vector<1x32xf32>
    %22 = vector.broadcast %21 : vector<1x32xf32> to vector<136x32xf32>
    %23 = arith.mulf %20, %22 : vector<136x32xf32>
    %c0_8 = arith.constant 0 : index
    %c0_9 = arith.constant 0 : index
    %24 = vector.load %arg7[%c0_8, %c0_9] : memref<1x32xf32, #tpu.memory_space<vmem>>, vector<1x32xf32>
    %25 = vector.broadcast %24 : vector<1x32xf32> to vector<136x32xf32>
    %26 = arith.addf %23, %25 : vector<136x32xf32>
    %27 = arith.truncf %26 : vector<136x32xf32> to vector<136x32xbf16>
    %c0_10 = arith.constant 0 : index
    %c0_11 = arith.constant 0 : index
    %28 = vector.load %arg9[%c0_10, %c0_11] : memref<136x128xf32, #tpu.memory_space<vmem>>, vector<136x128xf32>
    %c0_12 = arith.constant 0 : index
    %c0_13 = arith.constant 0 : index
    %29 = vector.load %arg4[%c0_12, %c0_13] : memref<32x128xbf16, #tpu.memory_space<vmem>>, vector<32x128xbf16>
    %cst_14 = arith.constant dense<0.000000e+00> : vector<136x128xf32>
    %30 = tpu.matmul %27, %29, %cst_14 {dimension_numbers = #tpu.dot_dimension_numbers<[1], [0], [0], [1], [0, 0, 1, 1], [], []>} : vector<136x32xbf16>, vector<32x128xbf16>, vector<136x128xf32> -> vector<136x128xf32>
    %31 = arith.addf %28, %30 : vector<136x128xf32>
    %c0_15 = arith.constant 0 : index
    %c0_16 = arith.constant 0 : index
    %32 = vector.load %arg9[%c0_15, %c0_16] : memref<136x128xf32, #tpu.memory_space<vmem>>, vector<136x128xf32>
    tpu.vector_store %arg9[%c0_15, %c0_16], %31 {strides = array<i32>} : memref<136x128xf32, #tpu.memory_space<vmem>>, vector<136x128xf32>,
    %c0_i32_17 = arith.constant 0 : i32
    %33 = arith.cmpi eq, %arg2, %c0_i32_17 : i32
    %34 = arith.extui %33 : i1 to i32
    %c0_i32_18 = arith.constant 0 : i32
    %35 = arith.cmpi ne, %34, %c0_i32_18 : i32
    scf.if %35 {
      %c0_19 = arith.constant 0 : index
      %c0_20 = arith.constant 0 : index
      %36 = vector.load %arg9[%c0_19, %c0_20] : memref<136x128xf32, #tpu.memory_space<vmem>>, vector<136x128xf32>
      %c0_21 = arith.constant 0 : index
      %c0_22 = arith.constant 0 : index
      %37 = vector.load %arg5[%c0_21, %c0_22] : memref<1x128xf32, #tpu.memory_space<vmem>>, vector<1x128xf32>
      %38 = vector.broadcast %37 : vector<1x128xf32> to vector<136x128xf32>
      %39 = arith.addf %36, %38 : vector<136x128xf32>
      %cst_23 = arith.constant 5.000000e-01 : f32
      %40 = vector.broadcast %cst_23 : f32 to vector<136x128xf32>
      %41 = arith.mulf %40, %39 : vector<136x128xf32>
      %cst_24 = arith.constant 4.471500e-02 : f32
      %42 = vector.broadcast %cst_24 : f32 to vector<136x128xf32>
      %43 = arith.mulf %42, %39 : vector<136x128xf32>
      %44 = arith.mulf %43, %39 : vector<136x128xf32>
      %45 = arith.mulf %44, %39 : vector<136x128xf32>
      %46 = arith.addf %39, %45 : vector<136x128xf32>
      %cst_25 = arith.constant 0.797884583 : f32
      %47 = vector.broadcast %cst_25 : f32 to vector<136x128xf32>
      %48 = arith.mulf %47, %46 : vector<136x128xf32>
      %49 = math.tanh %48 : vector<136x128xf32>
      %cst_26 = arith.constant 1.000000e+00 : f32
      %50 = vector.broadcast %cst_26 : f32 to vector<136x128xf32>
      %51 = arith.addf %50, %49 : vector<136x128xf32>
      %52 = arith.mulf %41, %51 : vector<136x128xf32>
      %53 = arith.truncf %52 : vector<136x128xf32> to vector<136x128xbf16>
      %c0_27 = arith.constant 0 : index
      %c0_28 = arith.constant 0 : index
      %54 = vector.load %arg8[%c0_27, %c0_28] : memref<136x128xbf16, #tpu.memory_space<vmem>>, vector<136x128xbf16>
      tpu.vector_store %arg8[%c0_27, %c0_28], %53 {strides = array<i32>} : memref<136x128xbf16, #tpu.memory_space<vmem>>, vector<136x128xbf16>,
    } else {
    }
    return
  }
  func.func @transform_0(%arg0: i32, %arg1: i32, %arg2: i32) -> (i32, i32) {
    %c0_i32 = arith.constant 0 : i32
    return %arg0, %arg2 : i32, i32
  }
  func.func @transform_1(%arg0: i32, %arg1: i32, %arg2: i32) -> (i32, i32) {
    %c0_i32 = arith.constant 0 : i32
    return %arg2, %arg1 : i32, i32
  }
  func.func @transform_2(%arg0: i32, %arg1: i32, %arg2: i32) -> (i32, i32) {
    %c0_i32 = arith.constant 0 : i32
    %c0_i32_0 = arith.constant 0 : i32
    return %c0_i32, %arg1 : i32, i32
  }
  func.func @transform_3(%arg0: i32, %arg1: i32, %arg2: i32) -> (i32, i32) {
    %c0_i32 = arith.constant 0 : i32
    %c0_i32_0 = arith.constant 0 : i32
    return %c0_i32, %arg2 : i32, i32
  }
  func.func @transform_4(%arg0: i32, %arg1: i32, %arg2: i32) -> (i32, i32) {
    %c0_i32 = arith.constant 0 : i32
    %c0_i32_0 = arith.constant 0 : i32
    return %c0_i32, %arg2 : i32, i32
  }
  func.func @transform_5(%arg0: i32, %arg1: i32, %arg2: i32) -> (i32, i32) {
    %c0_i32 = arith.constant 0 : i32
    return %arg0, %arg1 : i32, i32
  }
}

module attributes {stable_mosaic.version = 11 : i64} {
  func.func @kern(%arg0: i32, %arg1: i32, %arg2: i32, %arg3: memref<136x128xbf16, #tpu.memory_space<vmem>>, %arg4: memref<128x64xbf16, #tpu.memory_space<vmem>>, %arg5: memref<1x64xf32, #tpu.memory_space<vmem>>, %arg6: memref<136x64xbf16, #tpu.memory_space<vmem>>, %arg7: memref<136x64xbf16, #tpu.memory_space<vmem>>, %arg8: memref<136x64xf32, #tpu.memory_space<vmem>>) attributes {dimension_semantics = [#tpu.dimension_semantics<parallel>, #tpu.dimension_semantics<parallel>, #tpu.dimension_semantics<arbitrary>], iteration_bounds = array<i64: 1, 1, 1>, scalar_prefetch = 0 : i64, scratch_operands = 1 : i64, tpu.core_type = #tpu.core_type<tc>, window_params = [{transform_indices = @transform_0, window_bounds = array<i64: 136, 128>}, {transform_indices = @transform_1, window_bounds = array<i64: 128, 64>}, {transform_indices = @transform_2, window_bounds = array<i64: 1, 64>}, {transform_indices = @transform_3, window_bounds = array<i64: 136, 64>}, {transform_indices = @transform_4, window_bounds = array<i64: 136, 64>}]} {
    %c0_i32 = arith.constant 0 : i32
    %0 = arith.cmpi eq, %arg2, %c0_i32 : i32
    %1 = arith.extui %0 : i1 to i32
    %c0_i32_0 = arith.constant 0 : i32
    %2 = arith.cmpi ne, %1, %c0_i32_0 : i32
    scf.if %2 {
      %cst_10 = arith.constant 0.000000e+00 : f32
      %12 = vector.broadcast %cst_10 : f32 to vector<136x64xf32>
      %c0_11 = arith.constant 0 : index
      %c0_12 = arith.constant 0 : index
      %13 = vector.load %arg8[%c0_11, %c0_12] : memref<136x64xf32, #tpu.memory_space<vmem>>, vector<136x64xf32>
      tpu.vector_store %arg8[%c0_11, %c0_12], %12 {strides = array<i32>} : memref<136x64xf32, #tpu.memory_space<vmem>>, vector<136x64xf32>,
    } else {
    }
    %c0 = arith.constant 0 : index
    %c0_1 = arith.constant 0 : index
    %3 = vector.load %arg3[%c0, %c0_1] : memref<136x128xbf16, #tpu.memory_space<vmem>>, vector<136x128xbf16>
    %c0_2 = arith.constant 0 : index
    %c0_3 = arith.constant 0 : index
    %4 = vector.load %arg8[%c0_2, %c0_3] : memref<136x64xf32, #tpu.memory_space<vmem>>, vector<136x64xf32>
    %c0_4 = arith.constant 0 : index
    %c0_5 = arith.constant 0 : index
    %5 = vector.load %arg4[%c0_4, %c0_5] : memref<128x64xbf16, #tpu.memory_space<vmem>>, vector<128x64xbf16>
    %cst = arith.constant dense<0.000000e+00> : vector<136x64xf32>
    %6 = tpu.matmul %3, %5, %cst {dimension_numbers = #tpu.dot_dimension_numbers<[1], [0], [0], [1], [0, 0, 1, 1], [], []>} : vector<136x128xbf16>, vector<128x64xbf16>, vector<136x64xf32> -> vector<136x64xf32>
    %7 = arith.addf %4, %6 : vector<136x64xf32>
    %c0_6 = arith.constant 0 : index
    %c0_7 = arith.constant 0 : index
    %8 = vector.load %arg8[%c0_6, %c0_7] : memref<136x64xf32, #tpu.memory_space<vmem>>, vector<136x64xf32>
    tpu.vector_store %arg8[%c0_6, %c0_7], %7 {strides = array<i32>} : memref<136x64xf32, #tpu.memory_space<vmem>>, vector<136x64xf32>,
    %c0_i32_8 = arith.constant 0 : i32
    %9 = arith.cmpi eq, %arg2, %c0_i32_8 : i32
    %10 = arith.extui %9 : i1 to i32
    %c0_i32_9 = arith.constant 0 : i32
    %11 = arith.cmpi ne, %10, %c0_i32_9 : i32
    scf.if %11 {
      %c0_10 = arith.constant 0 : index
      %c0_11 = arith.constant 0 : index
      %12 = vector.load %arg8[%c0_10, %c0_11] : memref<136x64xf32, #tpu.memory_space<vmem>>, vector<136x64xf32>
      %c0_12 = arith.constant 0 : index
      %c0_13 = arith.constant 0 : index
      %13 = vector.load %arg5[%c0_12, %c0_13] : memref<1x64xf32, #tpu.memory_space<vmem>>, vector<1x64xf32>
      %14 = vector.broadcast %13 : vector<1x64xf32> to vector<136x64xf32>
      %15 = arith.addf %12, %14 : vector<136x64xf32>
      %c0_14 = arith.constant 0 : index
      %c0_15 = arith.constant 0 : index
      %16 = vector.load %arg6[%c0_14, %c0_15] : memref<136x64xbf16, #tpu.memory_space<vmem>>, vector<136x64xbf16>
      %17 = arith.extf %16 : vector<136x64xbf16> to vector<136x64xf32>
      %18 = arith.addf %15, %17 : vector<136x64xf32>
      %19 = arith.truncf %18 : vector<136x64xf32> to vector<136x64xbf16>
      %c0_16 = arith.constant 0 : index
      %c0_17 = arith.constant 0 : index
      %20 = vector.load %arg7[%c0_16, %c0_17] : memref<136x64xbf16, #tpu.memory_space<vmem>>, vector<136x64xbf16>
      tpu.vector_store %arg7[%c0_16, %c0_17], %19 {strides = array<i32>} : memref<136x64xbf16, #tpu.memory_space<vmem>>, vector<136x64xbf16>,
    } else {
    }
    return
  }
  func.func @transform_0(%arg0: i32, %arg1: i32, %arg2: i32) -> (i32, i32) {
    %c0_i32 = arith.constant 0 : i32
    return %arg0, %arg2 : i32, i32
  }
  func.func @transform_1(%arg0: i32, %arg1: i32, %arg2: i32) -> (i32, i32) {
    %c0_i32 = arith.constant 0 : i32
    return %arg2, %arg1 : i32, i32
  }
  func.func @transform_2(%arg0: i32, %arg1: i32, %arg2: i32) -> (i32, i32) {
    %c0_i32 = arith.constant 0 : i32
    %c0_i32_0 = arith.constant 0 : i32
    return %c0_i32, %arg1 : i32, i32
  }
  func.func @transform_3(%arg0: i32, %arg1: i32, %arg2: i32) -> (i32, i32) {
    %c0_i32 = arith.constant 0 : i32
    return %arg0, %arg1 : i32, i32
  }
  func.func @transform_4(%arg0: i32, %arg1: i32, %arg2: i32) -> (i32, i32) {
    %c0_i32 = arith.constant 0 : i32
    return %arg0, %arg1 : i32, i32
  }
}

module attributes {stable_mosaic.version = 11 : i64} {
  func.func @_tapmax_kernel(%arg0: i32, %arg1: memref<1x9x16x64xbf16, #tpu.memory_space<vmem>>, %arg2: memref<1x16x64xbf16, #tpu.memory_space<vmem>>) attributes {dimension_semantics = [#tpu.dimension_semantics<parallel>], iteration_bounds = array<i64: 2>, scalar_prefetch = 0 : i64, scratch_operands = 0 : i64, tpu.core_type = #tpu.core_type<tc>, window_params = [{transform_indices = @transform_0, window_bounds = array<i64: 1, 9, 16, 64>}, {transform_indices = @transform_1, window_bounds = array<i64: 1, 16, 64>}]} {
    %c0 = arith.constant 0 : index
    %c0_0 = arith.constant 0 : index
    %c0_1 = arith.constant 0 : index
    %c0_2 = arith.constant 0 : index
    %0 = vector.load %arg1[%c0, %c0_0, %c0_1, %c0_2] : memref<1x9x16x64xbf16, #tpu.memory_space<vmem>>, vector<1x9x16x64xbf16>
    %1 = vector.shape_cast %0 : vector<1x9x16x64xbf16> to vector<9x16x64xbf16>
    %2 = arith.extf %1 : vector<9x16x64xbf16> to vector<9x16x64xf32>
    %cst = arith.constant dense<0xFF800000> : vector<16x64xf32>
    %3 = vector.multi_reduction <maximumf>, %2, %cst [0] : vector<9x16x64xf32> to vector<16x64xf32>
    %4 = arith.truncf %3 : vector<16x64xf32> to vector<16x64xbf16>
    %c0_3 = arith.constant 0 : index
    %c0_4 = arith.constant 0 : index
    %c0_5 = arith.constant 0 : index
    %5 = vector.load %arg2[%c0_3, %c0_4, %c0_5] : memref<1x16x64xbf16, #tpu.memory_space<vmem>>, vector<1x16x64xbf16>
    %6 = vector.shape_cast %5 : vector<1x16x64xbf16> to vector<16x64xbf16>
    %7 = vector.shape_cast %4 : vector<16x64xbf16> to vector<1x16x64xbf16>
    tpu.vector_store %arg2[%c0_3, %c0_4, %c0_5], %7 {strides = array<i32>} : memref<1x16x64xbf16, #tpu.memory_space<vmem>>, vector<1x16x64xbf16>,
    return
  }
  func.func @transform_0(%arg0: i32) -> (i32, i32, i32, i32) {
    %c0_i32 = arith.constant 0 : i32
    %c0_i32_0 = arith.constant 0 : i32
    %c0_i32_1 = arith.constant 0 : i32
    %c0_i32_2 = arith.constant 0 : i32
    return %arg0, %c0_i32, %c0_i32_0, %c0_i32_1 : i32, i32, i32, i32
  }
  func.func @transform_1(%arg0: i32) -> (i32, i32, i32) {
    %c0_i32 = arith.constant 0 : i32
    %c0_i32_0 = arith.constant 0 : i32
    %c0_i32_1 = arith.constant 0 : i32
    return %arg0, %c0_i32, %c0_i32_0 : i32, i32, i32
  }
}

module attributes {stable_mosaic.version = 11 : i64} {
  func.func @kern(%arg0: i32, %arg1: i32, %arg2: i32, %arg3: memref<136x64xbf16, #tpu.memory_space<vmem>>, %arg4: memref<64x192xbf16, #tpu.memory_space<vmem>>, %arg5: memref<1x192xf32, #tpu.memory_space<vmem>>, %arg6: memref<1x64xf32, #tpu.memory_space<vmem>>, %arg7: memref<1x64xf32, #tpu.memory_space<vmem>>, %arg8: memref<136x192xbf16, #tpu.memory_space<vmem>>, %arg9: memref<136x192xf32, #tpu.memory_space<vmem>>) attributes {dimension_semantics = [#tpu.dimension_semantics<parallel>, #tpu.dimension_semantics<parallel>, #tpu.dimension_semantics<arbitrary>], iteration_bounds = array<i64: 1, 1, 1>, scalar_prefetch = 0 : i64, scratch_operands = 1 : i64, tpu.core_type = #tpu.core_type<tc>, window_params = [{transform_indices = @transform_0, window_bounds = array<i64: 136, 64>}, {transform_indices = @transform_1, window_bounds = array<i64: 64, 192>}, {transform_indices = @transform_2, window_bounds = array<i64: 1, 192>}, {transform_indices = @transform_3, window_bounds = array<i64: 1, 64>}, {transform_indices = @transform_4, window_bounds = array<i64: 1, 64>}, {transform_indices = @transform_5, window_bounds = array<i64: 136, 192>}]} {
    %c0_i32 = arith.constant 0 : i32
    %0 = arith.cmpi eq, %arg2, %c0_i32 : i32
    %1 = arith.extui %0 : i1 to i32
    %c0_i32_0 = arith.constant 0 : i32
    %2 = arith.cmpi ne, %1, %c0_i32_0 : i32
    scf.if %2 {
      %cst_19 = arith.constant 0.000000e+00 : f32
      %36 = vector.broadcast %cst_19 : f32 to vector<136x192xf32>
      %c0_20 = arith.constant 0 : index
      %c0_21 = arith.constant 0 : index
      %37 = vector.load %arg9[%c0_20, %c0_21] : memref<136x192xf32, #tpu.memory_space<vmem>>, vector<136x192xf32>
      tpu.vector_store %arg9[%c0_20, %c0_21], %36 {strides = array<i32>} : memref<136x192xf32, #tpu.memory_space<vmem>>, vector<136x192xf32>,
    } else {
    }
    %c0 = arith.constant 0 : index
    %c0_1 = arith.constant 0 : index
    %3 = vector.load %arg3[%c0, %c0_1] : memref<136x64xbf16, #tpu.memory_space<vmem>>, vector<136x64xbf16>
    %4 = arith.extf %3 : vector<136x64xbf16> to vector<136x64xf32>
    %cst = arith.constant dense<0.000000e+00> : vector<136xf32>
    %5 = vector.multi_reduction <add>, %4, %cst [1] : vector<136x64xf32> to vector<136xf32>
    %6 = vector.shape_cast %5 : vector<136xf32> to vector<136x1xf32>
    %cst_2 = arith.constant 6.400000e+01 : f32
    %7 = vector.broadcast %cst_2 : f32 to vector<136x1xf32>
    %8 = arith.divf %6, %7 : vector<136x1xf32>
    %9 = vector.broadcast %8 : vector<136x1xf32> to vector<136x64xf32>
    %10 = arith.subf %4, %9 : vector<136x64xf32>
    %11 = arith.mulf %10, %10 : vector<136x64xf32>
    %cst_3 = arith.constant dense<0.000000e+00> : vector<136xf32>
    %12 = vector.multi_reduction <add>, %11, %cst_3 [1] : vector<136x64xf32> to vector<136xf32>
    %13 = vector.shape_cast %12 : vector<136xf32> to vector<136x1xf32>
    %cst_4 = arith.constant 6.400000e+01 : f32
    %14 = vector.broadcast %cst_4 : f32 to vector<136x1xf32>
    %15 = arith.divf %13, %14 : vector<136x1xf32>
    %cst_5 = arith.constant 9.99999997E-7 : f32
    %16 = vector.broadcast %cst_5 : f32 to vector<136x1xf32>
    %17 = arith.addf %15, %16 : vector<136x1xf32>
    %18 = math.rsqrt %17 : vector<136x1xf32>
    %19 = vector.broadcast %18 : vector<136x1xf32> to vector<136x64xf32>
    %20 = arith.mulf %10, %19 : vector<136x64xf32>
    %c0_6 = arith.constant 0 : index
    %c0_7 = arith.constant 0 : index
    %21 = vector.load %arg6[%c0_6, %c0_7] : memref<1x64xf32, #tpu.memory_space<vmem>>, vector<1x64xf32>
    %22 = vector.broadcast %21 : vector<1x64xf32> to vector<136x64xf32>
    %23 = arith.mulf %20, %22 : vector<136x64xf32>
    %c0_8 = arith.constant 0 : index
    %c0_9 = arith.constant 0 : index
    %24 = vector.load %arg7[%c0_8, %c0_9] : memref<1x64xf32, #tpu.memory_space<vmem>>, vector<1x64xf32>
    %25 = vector.broadcast %24 : vector<1x64xf32> to vector<136x64xf32>
    %26 = arith.addf %23, %25 : vector<136x64xf32>
    %27 = arith.truncf %26 : vector<136x64xf32> to vector<136x64xbf16>
    %c0_10 = arith.constant 0 : index
    %c0_11 = arith.constant 0 : index
    %28 = vector.load %arg9[%c0_10, %c0_11] : memref<136x192xf32, #tpu.memory_space<vmem>>, vector<136x192xf32>
    %c0_12 = arith.constant 0 : index
    %c0_13 = arith.constant 0 : index
    %29 = vector.load %arg4[%c0_12, %c0_13] : memref<64x192xbf16, #tpu.memory_space<vmem>>, vector<64x192xbf16>
    %cst_14 = arith.constant dense<0.000000e+00> : vector<136x192xf32>
    %30 = tpu.matmul %27, %29, %cst_14 {dimension_numbers = #tpu.dot_dimension_numbers<[1], [0], [0], [1], [0, 0, 1, 1], [], []>} : vector<136x64xbf16>, vector<64x192xbf16>, vector<136x192xf32> -> vector<136x192xf32>
    %31 = arith.addf %28, %30 : vector<136x192xf32>
    %c0_15 = arith.constant 0 : index
    %c0_16 = arith.constant 0 : index
    %32 = vector.load %arg9[%c0_15, %c0_16] : memref<136x192xf32, #tpu.memory_space<vmem>>, vector<136x192xf32>
    tpu.vector_store %arg9[%c0_15, %c0_16], %31 {strides = array<i32>} : memref<136x192xf32, #tpu.memory_space<vmem>>, vector<136x192xf32>,
    %c0_i32_17 = arith.constant 0 : i32
    %33 = arith.cmpi eq, %arg2, %c0_i32_17 : i32
    %34 = arith.extui %33 : i1 to i32
    %c0_i32_18 = arith.constant 0 : i32
    %35 = arith.cmpi ne, %34, %c0_i32_18 : i32
    scf.if %35 {
      %c0_19 = arith.constant 0 : index
      %c0_20 = arith.constant 0 : index
      %36 = vector.load %arg9[%c0_19, %c0_20] : memref<136x192xf32, #tpu.memory_space<vmem>>, vector<136x192xf32>
      %c0_21 = arith.constant 0 : index
      %c0_22 = arith.constant 0 : index
      %37 = vector.load %arg5[%c0_21, %c0_22] : memref<1x192xf32, #tpu.memory_space<vmem>>, vector<1x192xf32>
      %38 = vector.broadcast %37 : vector<1x192xf32> to vector<136x192xf32>
      %39 = arith.addf %36, %38 : vector<136x192xf32>
      %40 = arith.truncf %39 : vector<136x192xf32> to vector<136x192xbf16>
      %c0_23 = arith.constant 0 : index
      %c0_24 = arith.constant 0 : index
      %41 = vector.load %arg8[%c0_23, %c0_24] : memref<136x192xbf16, #tpu.memory_space<vmem>>, vector<136x192xbf16>
      tpu.vector_store %arg8[%c0_23, %c0_24], %40 {strides = array<i32>} : memref<136x192xbf16, #tpu.memory_space<vmem>>, vector<136x192xbf16>,
    } else {
    }
    return
  }
  func.func @transform_0(%arg0: i32, %arg1: i32, %arg2: i32) -> (i32, i32) {
    %c0_i32 = arith.constant 0 : i32
    return %arg0, %arg2 : i32, i32
  }
  func.func @transform_1(%arg0: i32, %arg1: i32, %arg2: i32) -> (i32, i32) {
    %c0_i32 = arith.constant 0 : i32
    return %arg2, %arg1 : i32, i32
  }
  func.func @transform_2(%arg0: i32, %arg1: i32, %arg2: i32) -> (i32, i32) {
    %c0_i32 = arith.constant 0 : i32
    %c0_i32_0 = arith.constant 0 : i32
    return %c0_i32, %arg1 : i32, i32
  }
  func.func @transform_3(%arg0: i32, %arg1: i32, %arg2: i32) -> (i32, i32) {
    %c0_i32 = arith.constant 0 : i32
    %c0_i32_0 = arith.constant 0 : i32
    return %c0_i32, %arg2 : i32, i32
  }
  func.func @transform_4(%arg0: i32, %arg1: i32, %arg2: i32) -> (i32, i32) {
    %c0_i32 = arith.constant 0 : i32
    %c0_i32_0 = arith.constant 0 : i32
    return %c0_i32, %arg2 : i32, i32
  }
  func.func @transform_5(%arg0: i32, %arg1: i32, %arg2: i32) -> (i32, i32) {
    %c0_i32 = arith.constant 0 : i32
    return %arg0, %arg1 : i32, i32
  }
}

module attributes {stable_mosaic.version = 11 : i64} {
  func.func @_tapsum_kernel(%arg0: i32, %arg1: memref<1x9x16x64xbf16, #tpu.memory_space<vmem>>, %arg2: memref<9x1x64xf32, #tpu.memory_space<vmem>>, %arg3: memref<1x16x64xbf16, #tpu.memory_space<vmem>>) attributes {dimension_semantics = [#tpu.dimension_semantics<parallel>], iteration_bounds = array<i64: 2>, scalar_prefetch = 0 : i64, scratch_operands = 0 : i64, tpu.core_type = #tpu.core_type<tc>, window_params = [{transform_indices = @transform_0, window_bounds = array<i64: 1, 9, 16, 64>}, {pipeline_mode = #tpu.pipeline_mode<synchronous>, transform_indices = @transform_1, window_bounds = array<i64: 9, 1, 64>}, {transform_indices = @transform_2, window_bounds = array<i64: 1, 16, 64>}]} {
    %c0 = arith.constant 0 : index
    %c0_0 = arith.constant 0 : index
    %c0_1 = arith.constant 0 : index
    %c0_2 = arith.constant 0 : index
    %0 = vector.load %arg1[%c0, %c0_0, %c0_1, %c0_2] : memref<1x9x16x64xbf16, #tpu.memory_space<vmem>>, vector<1x9x16x64xbf16>
    %1 = vector.shape_cast %0 : vector<1x9x16x64xbf16> to vector<9x16x64xbf16>
    %2 = arith.extf %1 : vector<9x16x64xbf16> to vector<9x16x64xf32>
    %c0_3 = arith.constant 0 : index
    %c0_4 = arith.constant 0 : index
    %c0_5 = arith.constant 0 : index
    %3 = vector.load %arg2[%c0_3, %c0_4, %c0_5] : memref<9x1x64xf32, #tpu.memory_space<vmem>>, vector<9x1x64xf32>
    %4 = vector.broadcast %3 : vector<9x1x64xf32> to vector<9x16x64xf32>
    %5 = arith.mulf %2, %4 : vector<9x16x64xf32>
    %cst = arith.constant dense<0.000000e+00> : vector<16x64xf32>
    %6 = vector.multi_reduction <add>, %5, %cst [0] : vector<9x16x64xf32> to vector<16x64xf32>
    %7 = arith.truncf %6 : vector<16x64xf32> to vector<16x64xbf16>
    %c0_6 = arith.constant 0 : index
    %c0_7 = arith.constant 0 : index
    %c0_8 = arith.constant 0 : index
    %8 = vector.load %arg3[%c0_6, %c0_7, %c0_8] : memref<1x16x64xbf16, #tpu.memory_space<vmem>>, vector<1x16x64xbf16>
    %9 = vector.shape_cast %8 : vector<1x16x64xbf16> to vector<16x64xbf16>
    %10 = vector.shape_cast %7 : vector<16x64xbf16> to vector<1x16x64xbf16>
    tpu.vector_store %arg3[%c0_6, %c0_7, %c0_8], %10 {strides = array<i32>} : memref<1x16x64xbf16, #tpu.memory_space<vmem>>, vector<1x16x64xbf16>,
    return
  }
  func.func @transform_0(%arg0: i32) -> (i32, i32, i32, i32) {
    %c0_i32 = arith.constant 0 : i32
    %c0_i32_0 = arith.constant 0 : i32
    %c0_i32_1 = arith.constant 0 : i32
    %c0_i32_2 = arith.constant 0 : i32
    return %arg0, %c0_i32, %c0_i32_0, %c0_i32_1 : i32, i32, i32, i32
  }
  func.func @transform_1(%arg0: i32) -> (i32, i32, i32) {
    %c0_i32 = arith.constant 0 : i32
    %c0_i32_0 = arith.constant 0 : i32
    %c0_i32_1 = arith.constant 0 : i32
    %c0_i32_2 = arith.constant 0 : i32
    return %c0_i32, %c0_i32_0, %c0_i32_1 : i32, i32, i32
  }
  func.func @transform_2(%arg0: i32) -> (i32, i32, i32) {
    %c0_i32 = arith.constant 0 : i32
    %c0_i32_0 = arith.constant 0 : i32
    %c0_i32_1 = arith.constant 0 : i32
    return %arg0, %c0_i32, %c0_i32_0 : i32, i32, i32
  }
}

module attributes {stable_mosaic.version = 11 : i64} {
  func.func @kern(%arg0: i32, %arg1: memref<1x17x64xbf16, #tpu.memory_space<vmem>>, %arg2: memref<1x65x64xbf16, #tpu.memory_space<vmem>>, %arg3: memref<1x65x64xbf16, #tpu.memory_space<vmem>>, %arg4: memref<1x32xf32, #tpu.memory_space<vmem>>, %arg5: memref<1x32xf32, #tpu.memory_space<vmem>>, %arg6: memref<1x17x64xbf16, #tpu.memory_space<vmem>>) attributes {dimension_semantics = [#tpu.dimension_semantics<parallel>], iteration_bounds = array<i64: 2>, scalar_prefetch = 0 : i64, scratch_operands = 0 : i64, tpu.core_type = #tpu.core_type<tc>, window_params = [{transform_indices = @transform_0, window_bounds = array<i64: 1, 17, 64>}, {transform_indices = @transform_1, window_bounds = array<i64: 1, 65, 64>}, {transform_indices = @transform_2, window_bounds = array<i64: 1, 65, 64>}, {pipeline_mode = #tpu.pipeline_mode<synchronous>, transform_indices = @transform_3, window_bounds = array<i64: 1, 32>}, {pipeline_mode = #tpu.pipeline_mode<synchronous>, transform_indices = @transform_4, window_bounds = array<i64: 1, 32>}, {transform_indices = @transform_5, window_bounds = array<i64: 1, 17, 64>}]} {
    %c0 = arith.constant 0 : index
    %c0_0 = arith.constant 0 : index
    %c0_1 = arith.constant 0 : index
    %0 = vector.load %arg1[%c0, %c0_0, %c0_1] : memref<1x17x64xbf16, #tpu.memory_space<vmem>>, vector<1x17x32xbf16>
    %1 = vector.shape_cast %0 : vector<1x17x32xbf16> to vector<17x32xbf16>
    %2 = arith.extf %1 : vector<17x32xbf16> to vector<17x32xf32>
    %c0_2 = arith.constant 0 : index
    %c0_3 = arith.constant 0 : index
    %c0_4 = arith.constant 0 : index
    %3 = vector.load %arg2[%c0_2, %c0_3, %c0_4] : memref<1x65x64xbf16, #tpu.memory_space<vmem>>, vector<1x65x32xbf16>
    %4 = vector.shape_cast %3 : vector<1x65x32xbf16> to vector<65x32xbf16>
    %5 = arith.extf %4 : vector<65x32xbf16> to vector<65x32xf32>
    %c0_5 = arith.constant 0 : index
    %c0_6 = arith.constant 0 : index
    %c0_7 = arith.constant 0 : index
    %6 = vector.load %arg3[%c0_5, %c0_6, %c0_7] : memref<1x65x64xbf16, #tpu.memory_space<vmem>>, vector<1x65x32xbf16>
    %7 = vector.shape_cast %6 : vector<1x65x32xbf16> to vector<65x32xbf16>
    %8 = arith.extf %7 : vector<65x32xbf16> to vector<65x32xf32>
    %c0_8 = arith.constant 0 : index
    %c0_9 = arith.constant 0 : index
    %9 = vector.load %arg4[%c0_8, %c0_9] : memref<1x32xf32, #tpu.memory_space<vmem>>, vector<1x32xf32>
    %c0_10 = arith.constant 0 : index
    %c0_11 = arith.constant 0 : index
    %10 = vector.load %arg5[%c0_10, %c0_11] : memref<1x32xf32, #tpu.memory_space<vmem>>, vector<1x32xf32>
    %cst = arith.constant dense<0.000000e+00> : vector<17xf32>
    %11 = vector.multi_reduction <add>, %2, %cst [1] : vector<17x32xf32> to vector<17xf32>
    %12 = vector.shape_cast %11 : vector<17xf32> to vector<17x1xf32>
    %cst_12 = arith.constant 3.200000e+01 : f32
    %13 = vector.broadcast %cst_12 : f32 to vector<17x1xf32>
    %14 = arith.divf %12, %13 : vector<17x1xf32>
    %15 = vector.broadcast %14 : vector<17x1xf32> to vector<17x32xf32>
    %16 = arith.subf %2, %15 : vector<17x32xf32>
    %17 = arith.mulf %16, %16 : vector<17x32xf32>
    %cst_13 = arith.constant dense<0.000000e+00> : vector<17xf32>
    %18 = vector.multi_reduction <add>, %17, %cst_13 [1] : vector<17x32xf32> to vector<17xf32>
    %19 = vector.shape_cast %18 : vector<17xf32> to vector<17x1xf32>
    %cst_14 = arith.constant 3.200000e+01 : f32
    %20 = vector.broadcast %cst_14 : f32 to vector<17x1xf32>
    %21 = arith.divf %19, %20 : vector<17x1xf32>
    %cst_15 = arith.constant 9.99999974E-6 : f32
    %22 = vector.broadcast %cst_15 : f32 to vector<17x1xf32>
    %23 = arith.addf %21, %22 : vector<17x1xf32>
    %24 = math.rsqrt %23 : vector<17x1xf32>
    %25 = vector.broadcast %24 : vector<17x1xf32> to vector<17x32xf32>
    %26 = arith.mulf %16, %25 : vector<17x32xf32>
    %27 = vector.broadcast %9 : vector<1x32xf32> to vector<17x32xf32>
    %28 = arith.mulf %26, %27 : vector<17x32xf32>
    %29 = vector.broadcast %10 : vector<1x32xf32> to vector<17x32xf32>
    %30 = arith.addf %28, %29 : vector<17x32xf32>
    %31 = arith.truncf %30 : vector<17x32xf32> to vector<17x32xbf16>
    %32 = arith.truncf %5 : vector<65x32xf32> to vector<65x32xbf16>
    %cst_16 = arith.constant dense<0.000000e+00> : vector<17x65xf32>
    %33 = tpu.matmul %31, %32, %cst_16 {dimension_numbers = #tpu.dot_dimension_numbers<[1], [1], [0], [0], [0, 0, 1, 0], [], []>} : vector<17x32xbf16>, vector<65x32xbf16>, vector<17x65xf32> -> vector<17x65xf32>
    %cst_17 = arith.constant 0.176776692 : f32
    %34 = vector.broadcast %cst_17 : f32 to vector<17x65xf32>
    %35 = arith.mulf %33, %34 : vector<17x65xf32>
    %cst_18 = arith.constant dense<0xFF800000> : vector<17xf32>
    %36 = vector.multi_reduction <maximumf>, %35, %cst_18 [1] : vector<17x65xf32> to vector<17xf32>
    %37 = vector.shape_cast %36 : vector<17xf32> to vector<17x1xf32>
    %38 = vector.broadcast %37 : vector<17x1xf32> to vector<17x65xf32>
    %39 = arith.subf %35, %38 : vector<17x65xf32>
    %40 = math.exp %39 : vector<17x65xf32>
    %cst_19 = arith.constant dense<0.000000e+00> : vector<17xf32>
    %41 = vector.multi_reduction <add>, %40, %cst_19 [1] : vector<17x65xf32> to vector<17xf32>
    %42 = vector.shape_cast %41 : vector<17xf32> to vector<17x1xf32>
    %43 = tpu.reciprocal %42 {approx = true} : vector<17x1xf32> -> vector<17x1xf32>
    %44 = vector.broadcast %43 : vector<17x1xf32> to vector<17x65xf32>
    %45 = arith.mulf %40, %44 : vector<17x65xf32>
    %46 = arith.truncf %45 : vector<17x65xf32> to vector<17x65xbf16>
    %47 = arith.truncf %8 : vector<65x32xf32> to vector<65x32xbf16>
    %cst_20 = arith.constant dense<0.000000e+00> : vector<17x32xf32>
    %48 = tpu.matmul %46, %47, %cst_20 {dimension_numbers = #tpu.dot_dimension_numbers<[1], [0], [0], [1], [0, 0, 1, 1], [], []>} : vector<17x65xbf16>, vector<65x32xbf16>, vector<17x32xf32> -> vector<17x32xf32>
    %c0_21 = arith.constant 0 : index
    %c0_22 = arith.constant 0 : index
    %c32 = arith.constant 32 : index
    %49 = vector.load %arg1[%c0_21, %c0_22, %c32] : memref<1x17x64xbf16, #tpu.memory_space<vmem>>, vector<1x17x32xbf16>
    %50 = vector.shape_cast %49 : vector<1x17x32xbf16> to vector<17x32xbf16>
    %51 = arith.extf %50 : vector<17x32xbf16> to vector<17x32xf32>
    %c0_23 = arith.constant 0 : index
    %c0_24 = arith.constant 0 : index
    %c32_25 = arith.constant 32 : index
    %52 = vector.load %arg2[%c0_23, %c0_24, %c32_25] : memref<1x65x64xbf16, #tpu.memory_space<vmem>>, vector<1x65x32xbf16>
    %53 = vector.shape_cast %52 : vector<1x65x32xbf16> to vector<65x32xbf16>
    %54 = arith.extf %53 : vector<65x32xbf16> to vector<65x32xf32>
    %c0_26 = arith.constant 0 : index
    %c0_27 = arith.constant 0 : index
    %c32_28 = arith.constant 32 : index
    %55 = vector.load %arg3[%c0_26, %c0_27, %c32_28] : memref<1x65x64xbf16, #tpu.memory_space<vmem>>, vector<1x65x32xbf16>
    %56 = vector.shape_cast %55 : vector<1x65x32xbf16> to vector<65x32xbf16>
    %57 = arith.extf %56 : vector<65x32xbf16> to vector<65x32xf32>
    %c0_29 = arith.constant 0 : index
    %c0_30 = arith.constant 0 : index
    %58 = vector.load %arg4[%c0_29, %c0_30] : memref<1x32xf32, #tpu.memory_space<vmem>>, vector<1x32xf32>
    %c0_31 = arith.constant 0 : index
    %c0_32 = arith.constant 0 : index
    %59 = vector.load %arg5[%c0_31, %c0_32] : memref<1x32xf32, #tpu.memory_space<vmem>>, vector<1x32xf32>
    %cst_33 = arith.constant dense<0.000000e+00> : vector<17xf32>
    %60 = vector.multi_reduction <add>, %51, %cst_33 [1] : vector<17x32xf32> to vector<17xf32>
    %61 = vector.shape_cast %60 : vector<17xf32> to vector<17x1xf32>
    %cst_34 = arith.constant 3.200000e+01 : f32
    %62 = vector.broadcast %cst_34 : f32 to vector<17x1xf32>
    %63 = arith.divf %61, %62 : vector<17x1xf32>
    %64 = vector.broadcast %63 : vector<17x1xf32> to vector<17x32xf32>
    %65 = arith.subf %51, %64 : vector<17x32xf32>
    %66 = arith.mulf %65, %65 : vector<17x32xf32>
    %cst_35 = arith.constant dense<0.000000e+00> : vector<17xf32>
    %67 = vector.multi_reduction <add>, %66, %cst_35 [1] : vector<17x32xf32> to vector<17xf32>
    %68 = vector.shape_cast %67 : vector<17xf32> to vector<17x1xf32>
    %cst_36 = arith.constant 3.200000e+01 : f32
    %69 = vector.broadcast %cst_36 : f32 to vector<17x1xf32>
    %70 = arith.divf %68, %69 : vector<17x1xf32>
    %cst_37 = arith.constant 9.99999974E-6 : f32
    %71 = vector.broadcast %cst_37 : f32 to vector<17x1xf32>
    %72 = arith.addf %70, %71 : vector<17x1xf32>
    %73 = math.rsqrt %72 : vector<17x1xf32>
    %74 = vector.broadcast %73 : vector<17x1xf32> to vector<17x32xf32>
    %75 = arith.mulf %65, %74 : vector<17x32xf32>
    %76 = vector.broadcast %58 : vector<1x32xf32> to vector<17x32xf32>
    %77 = arith.mulf %75, %76 : vector<17x32xf32>
    %78 = vector.broadcast %59 : vector<1x32xf32> to vector<17x32xf32>
    %79 = arith.addf %77, %78 : vector<17x32xf32>
    %80 = arith.truncf %79 : vector<17x32xf32> to vector<17x32xbf16>
    %81 = arith.truncf %54 : vector<65x32xf32> to vector<65x32xbf16>
    %cst_38 = arith.constant dense<0.000000e+00> : vector<17x65xf32>
    %82 = tpu.matmul %80, %81, %cst_38 {dimension_numbers = #tpu.dot_dimension_numbers<[1], [1], [0], [0], [0, 0, 1, 0], [], []>} : vector<17x32xbf16>, vector<65x32xbf16>, vector<17x65xf32> -> vector<17x65xf32>
    %cst_39 = arith.constant 0.176776692 : f32
    %83 = vector.broadcast %cst_39 : f32 to vector<17x65xf32>
    %84 = arith.mulf %82, %83 : vector<17x65xf32>
    %cst_40 = arith.constant dense<0xFF800000> : vector<17xf32>
    %85 = vector.multi_reduction <maximumf>, %84, %cst_40 [1] : vector<17x65xf32> to vector<17xf32>
    %86 = vector.shape_cast %85 : vector<17xf32> to vector<17x1xf32>
    %87 = vector.broadcast %86 : vector<17x1xf32> to vector<17x65xf32>
    %88 = arith.subf %84, %87 : vector<17x65xf32>
    %89 = math.exp %88 : vector<17x65xf32>
    %cst_41 = arith.constant dense<0.000000e+00> : vector<17xf32>
    %90 = vector.multi_reduction <add>, %89, %cst_41 [1] : vector<17x65xf32> to vector<17xf32>
    %91 = vector.shape_cast %90 : vector<17xf32> to vector<17x1xf32>
    %92 = tpu.reciprocal %91 {approx = true} : vector<17x1xf32> -> vector<17x1xf32>
    %93 = vector.broadcast %92 : vector<17x1xf32> to vector<17x65xf32>
    %94 = arith.mulf %89, %93 : vector<17x65xf32>
    %95 = arith.truncf %94 : vector<17x65xf32> to vector<17x65xbf16>
    %96 = arith.truncf %57 : vector<65x32xf32> to vector<65x32xbf16>
    %cst_42 = arith.constant dense<0.000000e+00> : vector<17x32xf32>
    %97 = tpu.matmul %95, %96, %cst_42 {dimension_numbers = #tpu.dot_dimension_numbers<[1], [0], [0], [1], [0, 0, 1, 1], [], []>} : vector<17x65xbf16>, vector<65x32xbf16>, vector<17x32xf32> -> vector<17x32xf32>
    %98 = tpu.concatenate %48, %97 in 1 : vector<17x32xf32>, vector<17x32xf32> -> vector<17x64xf32>
    %99 = arith.truncf %98 : vector<17x64xf32> to vector<17x64xbf16>
    %c0_43 = arith.constant 0 : index
    %c0_44 = arith.constant 0 : index
    %c0_45 = arith.constant 0 : index
    %100 = vector.load %arg6[%c0_43, %c0_44, %c0_45] : memref<1x17x64xbf16, #tpu.memory_space<vmem>>, vector<1x17x64xbf16>
    %101 = vector.shape_cast %100 : vector<1x17x64xbf16> to vector<17x64xbf16>
    %102 = vector.shape_cast %99 : vector<17x64xbf16> to vector<1x17x64xbf16>
    tpu.vector_store %arg6[%c0_43, %c0_44, %c0_45], %102 {strides = array<i32>} : memref<1x17x64xbf16, #tpu.memory_space<vmem>>, vector<1x17x64xbf16>,
    return
  }
  func.func @transform_0(%arg0: i32) -> (i32, i32, i32) {
    %c0_i32 = arith.constant 0 : i32
    %c0_i32_0 = arith.constant 0 : i32
    %c0_i32_1 = arith.constant 0 : i32
    return %arg0, %c0_i32, %c0_i32_0 : i32, i32, i32
  }
  func.func @transform_1(%arg0: i32) -> (i32, i32, i32) {
    %c0_i32 = arith.constant 0 : i32
    %c0_i32_0 = arith.constant 0 : i32
    %c0_i32_1 = arith.constant 0 : i32
    return %arg0, %c0_i32, %c0_i32_0 : i32, i32, i32
  }
  func.func @transform_2(%arg0: i32) -> (i32, i32, i32) {
    %c0_i32 = arith.constant 0 : i32
    %c0_i32_0 = arith.constant 0 : i32
    %c0_i32_1 = arith.constant 0 : i32
    return %arg0, %c0_i32, %c0_i32_0 : i32, i32, i32
  }
  func.func @transform_3(%arg0: i32) -> (i32, i32) {
    %c0_i32 = arith.constant 0 : i32
    %c0_i32_0 = arith.constant 0 : i32
    %c0_i32_1 = arith.constant 0 : i32
    return %c0_i32, %c0_i32_0 : i32, i32
  }
  func.func @transform_4(%arg0: i32) -> (i32, i32) {
    %c0_i32 = arith.constant 0 : i32
    %c0_i32_0 = arith.constant 0 : i32
    %c0_i32_1 = arith.constant 0 : i32
    return %c0_i32, %c0_i32_0 : i32, i32
  }
  func.func @transform_5(%arg0: i32) -> (i32, i32, i32) {
    %c0_i32 = arith.constant 0 : i32
    %c0_i32_0 = arith.constant 0 : i32
    %c0_i32_1 = arith.constant 0 : i32
    return %arg0, %c0_i32, %c0_i32_0 : i32, i32, i32
  }
}

module attributes {stable_mosaic.version = 11 : i64} {
  func.func @kern(%arg0: i32, %arg1: i32, %arg2: i32, %arg3: memref<40x64xbf16, #tpu.memory_space<vmem>>, %arg4: memref<64x64xbf16, #tpu.memory_space<vmem>>, %arg5: memref<1x64xf32, #tpu.memory_space<vmem>>, %arg6: memref<40x64xbf16, #tpu.memory_space<vmem>>, %arg7: memref<40x64xbf16, #tpu.memory_space<vmem>>, %arg8: memref<40x64xf32, #tpu.memory_space<vmem>>) attributes {dimension_semantics = [#tpu.dimension_semantics<parallel>, #tpu.dimension_semantics<parallel>, #tpu.dimension_semantics<arbitrary>], iteration_bounds = array<i64: 1, 1, 1>, scalar_prefetch = 0 : i64, scratch_operands = 1 : i64, tpu.core_type = #tpu.core_type<tc>, window_params = [{transform_indices = @transform_0, window_bounds = array<i64: 40, 64>}, {transform_indices = @transform_1, window_bounds = array<i64: 64, 64>}, {transform_indices = @transform_2, window_bounds = array<i64: 1, 64>}, {transform_indices = @transform_3, window_bounds = array<i64: 40, 64>}, {transform_indices = @transform_4, window_bounds = array<i64: 40, 64>}]} {
    %c0_i32 = arith.constant 0 : i32
    %0 = arith.cmpi eq, %arg2, %c0_i32 : i32
    %1 = arith.extui %0 : i1 to i32
    %c0_i32_0 = arith.constant 0 : i32
    %2 = arith.cmpi ne, %1, %c0_i32_0 : i32
    scf.if %2 {
      %cst_10 = arith.constant 0.000000e+00 : f32
      %12 = vector.broadcast %cst_10 : f32 to vector<40x64xf32>
      %c0_11 = arith.constant 0 : index
      %c0_12 = arith.constant 0 : index
      %13 = vector.load %arg8[%c0_11, %c0_12] : memref<40x64xf32, #tpu.memory_space<vmem>>, vector<40x64xf32>
      tpu.vector_store %arg8[%c0_11, %c0_12], %12 {strides = array<i32>} : memref<40x64xf32, #tpu.memory_space<vmem>>, vector<40x64xf32>,
    } else {
    }
    %c0 = arith.constant 0 : index
    %c0_1 = arith.constant 0 : index
    %3 = vector.load %arg3[%c0, %c0_1] : memref<40x64xbf16, #tpu.memory_space<vmem>>, vector<40x64xbf16>
    %c0_2 = arith.constant 0 : index
    %c0_3 = arith.constant 0 : index
    %4 = vector.load %arg8[%c0_2, %c0_3] : memref<40x64xf32, #tpu.memory_space<vmem>>, vector<40x64xf32>
    %c0_4 = arith.constant 0 : index
    %c0_5 = arith.constant 0 : index
    %5 = vector.load %arg4[%c0_4, %c0_5] : memref<64x64xbf16, #tpu.memory_space<vmem>>, vector<64x64xbf16>
    %cst = arith.constant dense<0.000000e+00> : vector<40x64xf32>
    %6 = tpu.matmul %3, %5, %cst {dimension_numbers = #tpu.dot_dimension_numbers<[1], [0], [0], [1], [0, 0, 1, 1], [], []>} : vector<40x64xbf16>, vector<64x64xbf16>, vector<40x64xf32> -> vector<40x64xf32>
    %7 = arith.addf %4, %6 : vector<40x64xf32>
    %c0_6 = arith.constant 0 : index
    %c0_7 = arith.constant 0 : index
    %8 = vector.load %arg8[%c0_6, %c0_7] : memref<40x64xf32, #tpu.memory_space<vmem>>, vector<40x64xf32>
    tpu.vector_store %arg8[%c0_6, %c0_7], %7 {strides = array<i32>} : memref<40x64xf32, #tpu.memory_space<vmem>>, vector<40x64xf32>,
    %c0_i32_8 = arith.constant 0 : i32
    %9 = arith.cmpi eq, %arg2, %c0_i32_8 : i32
    %10 = arith.extui %9 : i1 to i32
    %c0_i32_9 = arith.constant 0 : i32
    %11 = arith.cmpi ne, %10, %c0_i32_9 : i32
    scf.if %11 {
      %c0_10 = arith.constant 0 : index
      %c0_11 = arith.constant 0 : index
      %12 = vector.load %arg8[%c0_10, %c0_11] : memref<40x64xf32, #tpu.memory_space<vmem>>, vector<40x64xf32>
      %c0_12 = arith.constant 0 : index
      %c0_13 = arith.constant 0 : index
      %13 = vector.load %arg5[%c0_12, %c0_13] : memref<1x64xf32, #tpu.memory_space<vmem>>, vector<1x64xf32>
      %14 = vector.broadcast %13 : vector<1x64xf32> to vector<40x64xf32>
      %15 = arith.addf %12, %14 : vector<40x64xf32>
      %c0_14 = arith.constant 0 : index
      %c0_15 = arith.constant 0 : index
      %16 = vector.load %arg6[%c0_14, %c0_15] : memref<40x64xbf16, #tpu.memory_space<vmem>>, vector<40x64xbf16>
      %17 = arith.extf %16 : vector<40x64xbf16> to vector<40x64xf32>
      %18 = arith.addf %15, %17 : vector<40x64xf32>
      %19 = arith.truncf %18 : vector<40x64xf32> to vector<40x64xbf16>
      %c0_16 = arith.constant 0 : index
      %c0_17 = arith.constant 0 : index
      %20 = vector.load %arg7[%c0_16, %c0_17] : memref<40x64xbf16, #tpu.memory_space<vmem>>, vector<40x64xbf16>
      tpu.vector_store %arg7[%c0_16, %c0_17], %19 {strides = array<i32>} : memref<40x64xbf16, #tpu.memory_space<vmem>>, vector<40x64xbf16>,
    } else {
    }
    return
  }
  func.func @transform_0(%arg0: i32, %arg1: i32, %arg2: i32) -> (i32, i32) {
    %c0_i32 = arith.constant 0 : i32
    return %arg0, %arg2 : i32, i32
  }
  func.func @transform_1(%arg0: i32, %arg1: i32, %arg2: i32) -> (i32, i32) {
    %c0_i32 = arith.constant 0 : i32
    return %arg2, %arg1 : i32, i32
  }
  func.func @transform_2(%arg0: i32, %arg1: i32, %arg2: i32) -> (i32, i32) {
    %c0_i32 = arith.constant 0 : i32
    %c0_i32_0 = arith.constant 0 : i32
    return %c0_i32, %arg1 : i32, i32
  }
  func.func @transform_3(%arg0: i32, %arg1: i32, %arg2: i32) -> (i32, i32) {
    %c0_i32 = arith.constant 0 : i32
    return %arg0, %arg1 : i32, i32
  }
  func.func @transform_4(%arg0: i32, %arg1: i32, %arg2: i32) -> (i32, i32) {
    %c0_i32 = arith.constant 0 : i32
    return %arg0, %arg1 : i32, i32
  }
}

module attributes {stable_mosaic.version = 11 : i64} {
  func.func @kern(%arg0: i32, %arg1: i32, %arg2: i32, %arg3: memref<40x64xbf16, #tpu.memory_space<vmem>>, %arg4: memref<64x256xbf16, #tpu.memory_space<vmem>>, %arg5: memref<1x256xf32, #tpu.memory_space<vmem>>, %arg6: memref<1x64xf32, #tpu.memory_space<vmem>>, %arg7: memref<1x64xf32, #tpu.memory_space<vmem>>, %arg8: memref<40x256xbf16, #tpu.memory_space<vmem>>, %arg9: memref<40x256xf32, #tpu.memory_space<vmem>>) attributes {dimension_semantics = [#tpu.dimension_semantics<parallel>, #tpu.dimension_semantics<parallel>, #tpu.dimension_semantics<arbitrary>], iteration_bounds = array<i64: 1, 1, 1>, scalar_prefetch = 0 : i64, scratch_operands = 1 : i64, tpu.core_type = #tpu.core_type<tc>, window_params = [{transform_indices = @transform_0, window_bounds = array<i64: 40, 64>}, {transform_indices = @transform_1, window_bounds = array<i64: 64, 256>}, {transform_indices = @transform_2, window_bounds = array<i64: 1, 256>}, {transform_indices = @transform_3, window_bounds = array<i64: 1, 64>}, {transform_indices = @transform_4, window_bounds = array<i64: 1, 64>}, {transform_indices = @transform_5, window_bounds = array<i64: 40, 256>}]} {
    %c0_i32 = arith.constant 0 : i32
    %0 = arith.cmpi eq, %arg2, %c0_i32 : i32
    %1 = arith.extui %0 : i1 to i32
    %c0_i32_0 = arith.constant 0 : i32
    %2 = arith.cmpi ne, %1, %c0_i32_0 : i32
    scf.if %2 {
      %cst_19 = arith.constant 0.000000e+00 : f32
      %36 = vector.broadcast %cst_19 : f32 to vector<40x256xf32>
      %c0_20 = arith.constant 0 : index
      %c0_21 = arith.constant 0 : index
      %37 = vector.load %arg9[%c0_20, %c0_21] : memref<40x256xf32, #tpu.memory_space<vmem>>, vector<40x256xf32>
      tpu.vector_store %arg9[%c0_20, %c0_21], %36 {strides = array<i32>} : memref<40x256xf32, #tpu.memory_space<vmem>>, vector<40x256xf32>,
    } else {
    }
    %c0 = arith.constant 0 : index
    %c0_1 = arith.constant 0 : index
    %3 = vector.load %arg3[%c0, %c0_1] : memref<40x64xbf16, #tpu.memory_space<vmem>>, vector<40x64xbf16>
    %4 = arith.extf %3 : vector<40x64xbf16> to vector<40x64xf32>
    %cst = arith.constant dense<0.000000e+00> : vector<40xf32>
    %5 = vector.multi_reduction <add>, %4, %cst [1] : vector<40x64xf32> to vector<40xf32>
    %6 = vector.shape_cast %5 : vector<40xf32> to vector<40x1xf32>
    %cst_2 = arith.constant 6.400000e+01 : f32
    %7 = vector.broadcast %cst_2 : f32 to vector<40x1xf32>
    %8 = arith.divf %6, %7 : vector<40x1xf32>
    %9 = vector.broadcast %8 : vector<40x1xf32> to vector<40x64xf32>
    %10 = arith.subf %4, %9 : vector<40x64xf32>
    %11 = arith.mulf %10, %10 : vector<40x64xf32>
    %cst_3 = arith.constant dense<0.000000e+00> : vector<40xf32>
    %12 = vector.multi_reduction <add>, %11, %cst_3 [1] : vector<40x64xf32> to vector<40xf32>
    %13 = vector.shape_cast %12 : vector<40xf32> to vector<40x1xf32>
    %cst_4 = arith.constant 6.400000e+01 : f32
    %14 = vector.broadcast %cst_4 : f32 to vector<40x1xf32>
    %15 = arith.divf %13, %14 : vector<40x1xf32>
    %cst_5 = arith.constant 9.99999997E-7 : f32
    %16 = vector.broadcast %cst_5 : f32 to vector<40x1xf32>
    %17 = arith.addf %15, %16 : vector<40x1xf32>
    %18 = math.rsqrt %17 : vector<40x1xf32>
    %19 = vector.broadcast %18 : vector<40x1xf32> to vector<40x64xf32>
    %20 = arith.mulf %10, %19 : vector<40x64xf32>
    %c0_6 = arith.constant 0 : index
    %c0_7 = arith.constant 0 : index
    %21 = vector.load %arg6[%c0_6, %c0_7] : memref<1x64xf32, #tpu.memory_space<vmem>>, vector<1x64xf32>
    %22 = vector.broadcast %21 : vector<1x64xf32> to vector<40x64xf32>
    %23 = arith.mulf %20, %22 : vector<40x64xf32>
    %c0_8 = arith.constant 0 : index
    %c0_9 = arith.constant 0 : index
    %24 = vector.load %arg7[%c0_8, %c0_9] : memref<1x64xf32, #tpu.memory_space<vmem>>, vector<1x64xf32>
    %25 = vector.broadcast %24 : vector<1x64xf32> to vector<40x64xf32>
    %26 = arith.addf %23, %25 : vector<40x64xf32>
    %27 = arith.truncf %26 : vector<40x64xf32> to vector<40x64xbf16>
    %c0_10 = arith.constant 0 : index
    %c0_11 = arith.constant 0 : index
    %28 = vector.load %arg9[%c0_10, %c0_11] : memref<40x256xf32, #tpu.memory_space<vmem>>, vector<40x256xf32>
    %c0_12 = arith.constant 0 : index
    %c0_13 = arith.constant 0 : index
    %29 = vector.load %arg4[%c0_12, %c0_13] : memref<64x256xbf16, #tpu.memory_space<vmem>>, vector<64x256xbf16>
    %cst_14 = arith.constant dense<0.000000e+00> : vector<40x256xf32>
    %30 = tpu.matmul %27, %29, %cst_14 {dimension_numbers = #tpu.dot_dimension_numbers<[1], [0], [0], [1], [0, 0, 1, 1], [], []>} : vector<40x64xbf16>, vector<64x256xbf16>, vector<40x256xf32> -> vector<40x256xf32>
    %31 = arith.addf %28, %30 : vector<40x256xf32>
    %c0_15 = arith.constant 0 : index
    %c0_16 = arith.constant 0 : index
    %32 = vector.load %arg9[%c0_15, %c0_16] : memref<40x256xf32, #tpu.memory_space<vmem>>, vector<40x256xf32>
    tpu.vector_store %arg9[%c0_15, %c0_16], %31 {strides = array<i32>} : memref<40x256xf32, #tpu.memory_space<vmem>>, vector<40x256xf32>,
    %c0_i32_17 = arith.constant 0 : i32
    %33 = arith.cmpi eq, %arg2, %c0_i32_17 : i32
    %34 = arith.extui %33 : i1 to i32
    %c0_i32_18 = arith.constant 0 : i32
    %35 = arith.cmpi ne, %34, %c0_i32_18 : i32
    scf.if %35 {
      %c0_19 = arith.constant 0 : index
      %c0_20 = arith.constant 0 : index
      %36 = vector.load %arg9[%c0_19, %c0_20] : memref<40x256xf32, #tpu.memory_space<vmem>>, vector<40x256xf32>
      %c0_21 = arith.constant 0 : index
      %c0_22 = arith.constant 0 : index
      %37 = vector.load %arg5[%c0_21, %c0_22] : memref<1x256xf32, #tpu.memory_space<vmem>>, vector<1x256xf32>
      %38 = vector.broadcast %37 : vector<1x256xf32> to vector<40x256xf32>
      %39 = arith.addf %36, %38 : vector<40x256xf32>
      %cst_23 = arith.constant 5.000000e-01 : f32
      %40 = vector.broadcast %cst_23 : f32 to vector<40x256xf32>
      %41 = arith.mulf %40, %39 : vector<40x256xf32>
      %cst_24 = arith.constant 4.471500e-02 : f32
      %42 = vector.broadcast %cst_24 : f32 to vector<40x256xf32>
      %43 = arith.mulf %42, %39 : vector<40x256xf32>
      %44 = arith.mulf %43, %39 : vector<40x256xf32>
      %45 = arith.mulf %44, %39 : vector<40x256xf32>
      %46 = arith.addf %39, %45 : vector<40x256xf32>
      %cst_25 = arith.constant 0.797884583 : f32
      %47 = vector.broadcast %cst_25 : f32 to vector<40x256xf32>
      %48 = arith.mulf %47, %46 : vector<40x256xf32>
      %49 = math.tanh %48 : vector<40x256xf32>
      %cst_26 = arith.constant 1.000000e+00 : f32
      %50 = vector.broadcast %cst_26 : f32 to vector<40x256xf32>
      %51 = arith.addf %50, %49 : vector<40x256xf32>
      %52 = arith.mulf %41, %51 : vector<40x256xf32>
      %53 = arith.truncf %52 : vector<40x256xf32> to vector<40x256xbf16>
      %c0_27 = arith.constant 0 : index
      %c0_28 = arith.constant 0 : index
      %54 = vector.load %arg8[%c0_27, %c0_28] : memref<40x256xbf16, #tpu.memory_space<vmem>>, vector<40x256xbf16>
      tpu.vector_store %arg8[%c0_27, %c0_28], %53 {strides = array<i32>} : memref<40x256xbf16, #tpu.memory_space<vmem>>, vector<40x256xbf16>,
    } else {
    }
    return
  }
  func.func @transform_0(%arg0: i32, %arg1: i32, %arg2: i32) -> (i32, i32) {
    %c0_i32 = arith.constant 0 : i32
    return %arg0, %arg2 : i32, i32
  }
  func.func @transform_1(%arg0: i32, %arg1: i32, %arg2: i32) -> (i32, i32) {
    %c0_i32 = arith.constant 0 : i32
    return %arg2, %arg1 : i32, i32
  }
  func.func @transform_2(%arg0: i32, %arg1: i32, %arg2: i32) -> (i32, i32) {
    %c0_i32 = arith.constant 0 : i32
    %c0_i32_0 = arith.constant 0 : i32
    return %c0_i32, %arg1 : i32, i32
  }
  func.func @transform_3(%arg0: i32, %arg1: i32, %arg2: i32) -> (i32, i32) {
    %c0_i32 = arith.constant 0 : i32
    %c0_i32_0 = arith.constant 0 : i32
    return %c0_i32, %arg2 : i32, i32
  }
  func.func @transform_4(%arg0: i32, %arg1: i32, %arg2: i32) -> (i32, i32) {
    %c0_i32 = arith.constant 0 : i32
    %c0_i32_0 = arith.constant 0 : i32
    return %c0_i32, %arg2 : i32, i32
  }
  func.func @transform_5(%arg0: i32, %arg1: i32, %arg2: i32) -> (i32, i32) {
    %c0_i32 = arith.constant 0 : i32
    return %arg0, %arg1 : i32, i32
  }
}

module attributes {stable_mosaic.version = 11 : i64} {
  func.func @kern(%arg0: i32, %arg1: i32, %arg2: i32, %arg3: memref<40x256xbf16, #tpu.memory_space<vmem>>, %arg4: memref<256x64xbf16, #tpu.memory_space<vmem>>, %arg5: memref<1x64xf32, #tpu.memory_space<vmem>>, %arg6: memref<40x64xbf16, #tpu.memory_space<vmem>>, %arg7: memref<40x64xbf16, #tpu.memory_space<vmem>>, %arg8: memref<40x64xf32, #tpu.memory_space<vmem>>) attributes {dimension_semantics = [#tpu.dimension_semantics<parallel>, #tpu.dimension_semantics<parallel>, #tpu.dimension_semantics<arbitrary>], iteration_bounds = array<i64: 1, 1, 1>, scalar_prefetch = 0 : i64, scratch_operands = 1 : i64, tpu.core_type = #tpu.core_type<tc>, window_params = [{transform_indices = @transform_0, window_bounds = array<i64: 40, 256>}, {transform_indices = @transform_1, window_bounds = array<i64: 256, 64>}, {transform_indices = @transform_2, window_bounds = array<i64: 1, 64>}, {transform_indices = @transform_3, window_bounds = array<i64: 40, 64>}, {transform_indices = @transform_4, window_bounds = array<i64: 40, 64>}]} {
    %c0_i32 = arith.constant 0 : i32
    %0 = arith.cmpi eq, %arg2, %c0_i32 : i32
    %1 = arith.extui %0 : i1 to i32
    %c0_i32_0 = arith.constant 0 : i32
    %2 = arith.cmpi ne, %1, %c0_i32_0 : i32
    scf.if %2 {
      %cst_10 = arith.constant 0.000000e+00 : f32
      %12 = vector.broadcast %cst_10 : f32 to vector<40x64xf32>
      %c0_11 = arith.constant 0 : index
      %c0_12 = arith.constant 0 : index
      %13 = vector.load %arg8[%c0_11, %c0_12] : memref<40x64xf32, #tpu.memory_space<vmem>>, vector<40x64xf32>
      tpu.vector_store %arg8[%c0_11, %c0_12], %12 {strides = array<i32>} : memref<40x64xf32, #tpu.memory_space<vmem>>, vector<40x64xf32>,
    } else {
    }
    %c0 = arith.constant 0 : index
    %c0_1 = arith.constant 0 : index
    %3 = vector.load %arg3[%c0, %c0_1] : memref<40x256xbf16, #tpu.memory_space<vmem>>, vector<40x256xbf16>
    %c0_2 = arith.constant 0 : index
    %c0_3 = arith.constant 0 : index
    %4 = vector.load %arg8[%c0_2, %c0_3] : memref<40x64xf32, #tpu.memory_space<vmem>>, vector<40x64xf32>
    %c0_4 = arith.constant 0 : index
    %c0_5 = arith.constant 0 : index
    %5 = vector.load %arg4[%c0_4, %c0_5] : memref<256x64xbf16, #tpu.memory_space<vmem>>, vector<256x64xbf16>
    %cst = arith.constant dense<0.000000e+00> : vector<40x64xf32>
    %6 = tpu.matmul %3, %5, %cst {dimension_numbers = #tpu.dot_dimension_numbers<[1], [0], [0], [1], [0, 0, 1, 1], [], []>} : vector<40x256xbf16>, vector<256x64xbf16>, vector<40x64xf32> -> vector<40x64xf32>
    %7 = arith.addf %4, %6 : vector<40x64xf32>
    %c0_6 = arith.constant 0 : index
    %c0_7 = arith.constant 0 : index
    %8 = vector.load %arg8[%c0_6, %c0_7] : memref<40x64xf32, #tpu.memory_space<vmem>>, vector<40x64xf32>
    tpu.vector_store %arg8[%c0_6, %c0_7], %7 {strides = array<i32>} : memref<40x64xf32, #tpu.memory_space<vmem>>, vector<40x64xf32>,
    %c0_i32_8 = arith.constant 0 : i32
    %9 = arith.cmpi eq, %arg2, %c0_i32_8 : i32
    %10 = arith.extui %9 : i1 to i32
    %c0_i32_9 = arith.constant 0 : i32
    %11 = arith.cmpi ne, %10, %c0_i32_9 : i32
    scf.if %11 {
      %c0_10 = arith.constant 0 : index
      %c0_11 = arith.constant 0 : index
      %12 = vector.load %arg8[%c0_10, %c0_11] : memref<40x64xf32, #tpu.memory_space<vmem>>, vector<40x64xf32>
      %c0_12 = arith.constant 0 : index
      %c0_13 = arith.constant 0 : index
      %13 = vector.load %arg5[%c0_12, %c0_13] : memref<1x64xf32, #tpu.memory_space<vmem>>, vector<1x64xf32>
      %14 = vector.broadcast %13 : vector<1x64xf32> to vector<40x64xf32>
      %15 = arith.addf %12, %14 : vector<40x64xf32>
      %c0_14 = arith.constant 0 : index
      %c0_15 = arith.constant 0 : index
      %16 = vector.load %arg6[%c0_14, %c0_15] : memref<40x64xbf16, #tpu.memory_space<vmem>>, vector<40x64xbf16>
      %17 = arith.extf %16 : vector<40x64xbf16> to vector<40x64xf32>
      %18 = arith.addf %15, %17 : vector<40x64xf32>
      %19 = arith.truncf %18 : vector<40x64xf32> to vector<40x64xbf16>
      %c0_16 = arith.constant 0 : index
      %c0_17 = arith.constant 0 : index
      %20 = vector.load %arg7[%c0_16, %c0_17] : memref<40x64xbf16, #tpu.memory_space<vmem>>, vector<40x64xbf16>
      tpu.vector_store %arg7[%c0_16, %c0_17], %19 {strides = array<i32>} : memref<40x64xbf16, #tpu.memory_space<vmem>>, vector<40x64xbf16>,
    } else {
    }
    return
  }
  func.func @transform_0(%arg0: i32, %arg1: i32, %arg2: i32) -> (i32, i32) {
    %c0_i32 = arith.constant 0 : i32
    return %arg0, %arg2 : i32, i32
  }
  func.func @transform_1(%arg0: i32, %arg1: i32, %arg2: i32) -> (i32, i32) {
    %c0_i32 = arith.constant 0 : i32
    return %arg2, %arg1 : i32, i32
  }
  func.func @transform_2(%arg0: i32, %arg1: i32, %arg2: i32) -> (i32, i32) {
    %c0_i32 = arith.constant 0 : i32
    %c0_i32_0 = arith.constant 0 : i32
    return %c0_i32, %arg1 : i32, i32
  }
  func.func @transform_3(%arg0: i32, %arg1: i32, %arg2: i32) -> (i32, i32) {
    %c0_i32 = arith.constant 0 : i32
    return %arg0, %arg1 : i32, i32
  }
  func.func @transform_4(%arg0: i32, %arg1: i32, %arg2: i32) -> (i32, i32) {
    %c0_i32 = arith.constant 0 : i32
    return %arg0, %arg1 : i32, i32
  }
}

module attributes {stable_mosaic.version = 11 : i64} {
  func.func @kern(%arg0: i32, %arg1: i32, %arg2: i32, %arg3: memref<40x64xbf16, #tpu.memory_space<vmem>>, %arg4: memref<64x192xbf16, #tpu.memory_space<vmem>>, %arg5: memref<1x192xf32, #tpu.memory_space<vmem>>, %arg6: memref<1x64xf32, #tpu.memory_space<vmem>>, %arg7: memref<1x64xf32, #tpu.memory_space<vmem>>, %arg8: memref<40x192xbf16, #tpu.memory_space<vmem>>, %arg9: memref<40x192xf32, #tpu.memory_space<vmem>>) attributes {dimension_semantics = [#tpu.dimension_semantics<parallel>, #tpu.dimension_semantics<parallel>, #tpu.dimension_semantics<arbitrary>], iteration_bounds = array<i64: 1, 1, 1>, scalar_prefetch = 0 : i64, scratch_operands = 1 : i64, tpu.core_type = #tpu.core_type<tc>, window_params = [{transform_indices = @transform_0, window_bounds = array<i64: 40, 64>}, {transform_indices = @transform_1, window_bounds = array<i64: 64, 192>}, {transform_indices = @transform_2, window_bounds = array<i64: 1, 192>}, {transform_indices = @transform_3, window_bounds = array<i64: 1, 64>}, {transform_indices = @transform_4, window_bounds = array<i64: 1, 64>}, {transform_indices = @transform_5, window_bounds = array<i64: 40, 192>}]} {
    %c0_i32 = arith.constant 0 : i32
    %0 = arith.cmpi eq, %arg2, %c0_i32 : i32
    %1 = arith.extui %0 : i1 to i32
    %c0_i32_0 = arith.constant 0 : i32
    %2 = arith.cmpi ne, %1, %c0_i32_0 : i32
    scf.if %2 {
      %cst_19 = arith.constant 0.000000e+00 : f32
      %36 = vector.broadcast %cst_19 : f32 to vector<40x192xf32>
      %c0_20 = arith.constant 0 : index
      %c0_21 = arith.constant 0 : index
      %37 = vector.load %arg9[%c0_20, %c0_21] : memref<40x192xf32, #tpu.memory_space<vmem>>, vector<40x192xf32>
      tpu.vector_store %arg9[%c0_20, %c0_21], %36 {strides = array<i32>} : memref<40x192xf32, #tpu.memory_space<vmem>>, vector<40x192xf32>,
    } else {
    }
    %c0 = arith.constant 0 : index
    %c0_1 = arith.constant 0 : index
    %3 = vector.load %arg3[%c0, %c0_1] : memref<40x64xbf16, #tpu.memory_space<vmem>>, vector<40x64xbf16>
    %4 = arith.extf %3 : vector<40x64xbf16> to vector<40x64xf32>
    %cst = arith.constant dense<0.000000e+00> : vector<40xf32>
    %5 = vector.multi_reduction <add>, %4, %cst [1] : vector<40x64xf32> to vector<40xf32>
    %6 = vector.shape_cast %5 : vector<40xf32> to vector<40x1xf32>
    %cst_2 = arith.constant 6.400000e+01 : f32
    %7 = vector.broadcast %cst_2 : f32 to vector<40x1xf32>
    %8 = arith.divf %6, %7 : vector<40x1xf32>
    %9 = vector.broadcast %8 : vector<40x1xf32> to vector<40x64xf32>
    %10 = arith.subf %4, %9 : vector<40x64xf32>
    %11 = arith.mulf %10, %10 : vector<40x64xf32>
    %cst_3 = arith.constant dense<0.000000e+00> : vector<40xf32>
    %12 = vector.multi_reduction <add>, %11, %cst_3 [1] : vector<40x64xf32> to vector<40xf32>
    %13 = vector.shape_cast %12 : vector<40xf32> to vector<40x1xf32>
    %cst_4 = arith.constant 6.400000e+01 : f32
    %14 = vector.broadcast %cst_4 : f32 to vector<40x1xf32>
    %15 = arith.divf %13, %14 : vector<40x1xf32>
    %cst_5 = arith.constant 9.99999997E-7 : f32
    %16 = vector.broadcast %cst_5 : f32 to vector<40x1xf32>
    %17 = arith.addf %15, %16 : vector<40x1xf32>
    %18 = math.rsqrt %17 : vector<40x1xf32>
    %19 = vector.broadcast %18 : vector<40x1xf32> to vector<40x64xf32>
    %20 = arith.mulf %10, %19 : vector<40x64xf32>
    %c0_6 = arith.constant 0 : index
    %c0_7 = arith.constant 0 : index
    %21 = vector.load %arg6[%c0_6, %c0_7] : memref<1x64xf32, #tpu.memory_space<vmem>>, vector<1x64xf32>
    %22 = vector.broadcast %21 : vector<1x64xf32> to vector<40x64xf32>
    %23 = arith.mulf %20, %22 : vector<40x64xf32>
    %c0_8 = arith.constant 0 : index
    %c0_9 = arith.constant 0 : index
    %24 = vector.load %arg7[%c0_8, %c0_9] : memref<1x64xf32, #tpu.memory_space<vmem>>, vector<1x64xf32>
    %25 = vector.broadcast %24 : vector<1x64xf32> to vector<40x64xf32>
    %26 = arith.addf %23, %25 : vector<40x64xf32>
    %27 = arith.truncf %26 : vector<40x64xf32> to vector<40x64xbf16>
    %c0_10 = arith.constant 0 : index
    %c0_11 = arith.constant 0 : index
    %28 = vector.load %arg9[%c0_10, %c0_11] : memref<40x192xf32, #tpu.memory_space<vmem>>, vector<40x192xf32>
    %c0_12 = arith.constant 0 : index
    %c0_13 = arith.constant 0 : index
    %29 = vector.load %arg4[%c0_12, %c0_13] : memref<64x192xbf16, #tpu.memory_space<vmem>>, vector<64x192xbf16>
    %cst_14 = arith.constant dense<0.000000e+00> : vector<40x192xf32>
    %30 = tpu.matmul %27, %29, %cst_14 {dimension_numbers = #tpu.dot_dimension_numbers<[1], [0], [0], [1], [0, 0, 1, 1], [], []>} : vector<40x64xbf16>, vector<64x192xbf16>, vector<40x192xf32> -> vector<40x192xf32>
    %31 = arith.addf %28, %30 : vector<40x192xf32>
    %c0_15 = arith.constant 0 : index
    %c0_16 = arith.constant 0 : index
    %32 = vector.load %arg9[%c0_15, %c0_16] : memref<40x192xf32, #tpu.memory_space<vmem>>, vector<40x192xf32>
    tpu.vector_store %arg9[%c0_15, %c0_16], %31 {strides = array<i32>} : memref<40x192xf32, #tpu.memory_space<vmem>>, vector<40x192xf32>,
    %c0_i32_17 = arith.constant 0 : i32
    %33 = arith.cmpi eq, %arg2, %c0_i32_17 : i32
    %34 = arith.extui %33 : i1 to i32
    %c0_i32_18 = arith.constant 0 : i32
    %35 = arith.cmpi ne, %34, %c0_i32_18 : i32
    scf.if %35 {
      %c0_19 = arith.constant 0 : index
      %c0_20 = arith.constant 0 : index
      %36 = vector.load %arg9[%c0_19, %c0_20] : memref<40x192xf32, #tpu.memory_space<vmem>>, vector<40x192xf32>
      %c0_21 = arith.constant 0 : index
      %c0_22 = arith.constant 0 : index
      %37 = vector.load %arg5[%c0_21, %c0_22] : memref<1x192xf32, #tpu.memory_space<vmem>>, vector<1x192xf32>
      %38 = vector.broadcast %37 : vector<1x192xf32> to vector<40x192xf32>
      %39 = arith.addf %36, %38 : vector<40x192xf32>
      %40 = arith.truncf %39 : vector<40x192xf32> to vector<40x192xbf16>
      %c0_23 = arith.constant 0 : index
      %c0_24 = arith.constant 0 : index
      %41 = vector.load %arg8[%c0_23, %c0_24] : memref<40x192xbf16, #tpu.memory_space<vmem>>, vector<40x192xbf16>
      tpu.vector_store %arg8[%c0_23, %c0_24], %40 {strides = array<i32>} : memref<40x192xbf16, #tpu.memory_space<vmem>>, vector<40x192xbf16>,
    } else {
    }
    return
  }
  func.func @transform_0(%arg0: i32, %arg1: i32, %arg2: i32) -> (i32, i32) {
    %c0_i32 = arith.constant 0 : i32
    return %arg0, %arg2 : i32, i32
  }
  func.func @transform_1(%arg0: i32, %arg1: i32, %arg2: i32) -> (i32, i32) {
    %c0_i32 = arith.constant 0 : i32
    return %arg2, %arg1 : i32, i32
  }
  func.func @transform_2(%arg0: i32, %arg1: i32, %arg2: i32) -> (i32, i32) {
    %c0_i32 = arith.constant 0 : i32
    %c0_i32_0 = arith.constant 0 : i32
    return %c0_i32, %arg1 : i32, i32
  }
  func.func @transform_3(%arg0: i32, %arg1: i32, %arg2: i32) -> (i32, i32) {
    %c0_i32 = arith.constant 0 : i32
    %c0_i32_0 = arith.constant 0 : i32
    return %c0_i32, %arg2 : i32, i32
  }
  func.func @transform_4(%arg0: i32, %arg1: i32, %arg2: i32) -> (i32, i32) {
    %c0_i32 = arith.constant 0 : i32
    %c0_i32_0 = arith.constant 0 : i32
    return %c0_i32, %arg2 : i32, i32
  }
  func.func @transform_5(%arg0: i32, %arg1: i32, %arg2: i32) -> (i32, i32) {
    %c0_i32 = arith.constant 0 : i32
    return %arg0, %arg1 : i32, i32
  }
}

module attributes {stable_mosaic.version = 11 : i64} {
  func.func @kern(%arg0: i32, %arg1: memref<1x17x64xbf16, #tpu.memory_space<vmem>>, %arg2: memref<1x17x64xbf16, #tpu.memory_space<vmem>>, %arg3: memref<1x17x64xbf16, #tpu.memory_space<vmem>>, %arg4: memref<1x17x64xbf16, #tpu.memory_space<vmem>>) attributes {dimension_semantics = [#tpu.dimension_semantics<parallel>], iteration_bounds = array<i64: 2>, scalar_prefetch = 0 : i64, scratch_operands = 0 : i64, tpu.core_type = #tpu.core_type<tc>, window_params = [{transform_indices = @transform_0, window_bounds = array<i64: 1, 17, 64>}, {transform_indices = @transform_1, window_bounds = array<i64: 1, 17, 64>}, {transform_indices = @transform_2, window_bounds = array<i64: 1, 17, 64>}, {transform_indices = @transform_3, window_bounds = array<i64: 1, 17, 64>}]} {
    %c0 = arith.constant 0 : index
    %c0_0 = arith.constant 0 : index
    %c0_1 = arith.constant 0 : index
    %0 = vector.load %arg1[%c0, %c0_0, %c0_1] : memref<1x17x64xbf16, #tpu.memory_space<vmem>>, vector<1x17x32xbf16>
    %1 = vector.shape_cast %0 : vector<1x17x32xbf16> to vector<17x32xbf16>
    %2 = arith.extf %1 : vector<17x32xbf16> to vector<17x32xf32>
    %c0_2 = arith.constant 0 : index
    %c0_3 = arith.constant 0 : index
    %c0_4 = arith.constant 0 : index
    %3 = vector.load %arg2[%c0_2, %c0_3, %c0_4] : memref<1x17x64xbf16, #tpu.memory_space<vmem>>, vector<1x17x32xbf16>
    %4 = vector.shape_cast %3 : vector<1x17x32xbf16> to vector<17x32xbf16>
    %5 = arith.extf %4 : vector<17x32xbf16> to vector<17x32xf32>
    %c0_5 = arith.constant 0 : index
    %c0_6 = arith.constant 0 : index
    %c0_7 = arith.constant 0 : index
    %6 = vector.load %arg3[%c0_5, %c0_6, %c0_7] : memref<1x17x64xbf16, #tpu.memory_space<vmem>>, vector<1x17x32xbf16>
    %7 = vector.shape_cast %6 : vector<1x17x32xbf16> to vector<17x32xbf16>
    %8 = arith.extf %7 : vector<17x32xbf16> to vector<17x32xf32>
    %9 = arith.truncf %2 : vector<17x32xf32> to vector<17x32xbf16>
    %10 = arith.truncf %5 : vector<17x32xf32> to vector<17x32xbf16>
    %cst = arith.constant dense<0.000000e+00> : vector<17x17xf32>
    %11 = tpu.matmul %9, %10, %cst {dimension_numbers = #tpu.dot_dimension_numbers<[1], [1], [0], [0], [0, 0, 1, 0], [], []>} : vector<17x32xbf16>, vector<17x32xbf16>, vector<17x17xf32> -> vector<17x17xf32>
    %cst_8 = arith.constant 0.176776692 : f32
    %12 = vector.broadcast %cst_8 : f32 to vector<17x17xf32>
    %13 = arith.mulf %11, %12 : vector<17x17xf32>
    %cst_9 = arith.constant dense<0xFF800000> : vector<17xf32>
    %14 = vector.multi_reduction <maximumf>, %13, %cst_9 [1] : vector<17x17xf32> to vector<17xf32>
    %15 = vector.shape_cast %14 : vector<17xf32> to vector<17x1xf32>
    %16 = vector.broadcast %15 : vector<17x1xf32> to vector<17x17xf32>
    %17 = arith.subf %13, %16 : vector<17x17xf32>
    %18 = math.exp %17 : vector<17x17xf32>
    %cst_10 = arith.constant dense<0.000000e+00> : vector<17xf32>
    %19 = vector.multi_reduction <add>, %18, %cst_10 [1] : vector<17x17xf32> to vector<17xf32>
    %20 = vector.shape_cast %19 : vector<17xf32> to vector<17x1xf32>
    %21 = tpu.reciprocal %20 {approx = true} : vector<17x1xf32> -> vector<17x1xf32>
    %22 = vector.broadcast %21 : vector<17x1xf32> to vector<17x17xf32>
    %23 = arith.mulf %18, %22 : vector<17x17xf32>
    %24 = arith.truncf %23 : vector<17x17xf32> to vector<17x17xbf16>
    %25 = arith.truncf %8 : vector<17x32xf32> to vector<17x32xbf16>
    %cst_11 = arith.constant dense<0.000000e+00> : vector<17x32xf32>
    %26 = tpu.matmul %24, %25, %cst_11 {dimension_numbers = #tpu.dot_dimension_numbers<[1], [0], [0], [1], [0, 0, 1, 1], [], []>} : vector<17x17xbf16>, vector<17x32xbf16>, vector<17x32xf32> -> vector<17x32xf32>
    %c0_12 = arith.constant 0 : index
    %c0_13 = arith.constant 0 : index
    %c32 = arith.constant 32 : index
    %27 = vector.load %arg1[%c0_12, %c0_13, %c32] : memref<1x17x64xbf16, #tpu.memory_space<vmem>>, vector<1x17x32xbf16>
    %28 = vector.shape_cast %27 : vector<1x17x32xbf16> to vector<17x32xbf16>
    %29 = arith.extf %28 : vector<17x32xbf16> to vector<17x32xf32>
    %c0_14 = arith.constant 0 : index
    %c0_15 = arith.constant 0 : index
    %c32_16 = arith.constant 32 : index
    %30 = vector.load %arg2[%c0_14, %c0_15, %c32_16] : memref<1x17x64xbf16, #tpu.memory_space<vmem>>, vector<1x17x32xbf16>
    %31 = vector.shape_cast %30 : vector<1x17x32xbf16> to vector<17x32xbf16>
    %32 = arith.extf %31 : vector<17x32xbf16> to vector<17x32xf32>
    %c0_17 = arith.constant 0 : index
    %c0_18 = arith.constant 0 : index
    %c32_19 = arith.constant 32 : index
    %33 = vector.load %arg3[%c0_17, %c0_18, %c32_19] : memref<1x17x64xbf16, #tpu.memory_space<vmem>>, vector<1x17x32xbf16>
    %34 = vector.shape_cast %33 : vector<1x17x32xbf16> to vector<17x32xbf16>
    %35 = arith.extf %34 : vector<17x32xbf16> to vector<17x32xf32>
    %36 = arith.truncf %29 : vector<17x32xf32> to vector<17x32xbf16>
    %37 = arith.truncf %32 : vector<17x32xf32> to vector<17x32xbf16>
    %cst_20 = arith.constant dense<0.000000e+00> : vector<17x17xf32>
    %38 = tpu.matmul %36, %37, %cst_20 {dimension_numbers = #tpu.dot_dimension_numbers<[1], [1], [0], [0], [0, 0, 1, 0], [], []>} : vector<17x32xbf16>, vector<17x32xbf16>, vector<17x17xf32> -> vector<17x17xf32>
    %cst_21 = arith.constant 0.176776692 : f32
    %39 = vector.broadcast %cst_21 : f32 to vector<17x17xf32>
    %40 = arith.mulf %38, %39 : vector<17x17xf32>
    %cst_22 = arith.constant dense<0xFF800000> : vector<17xf32>
    %41 = vector.multi_reduction <maximumf>, %40, %cst_22 [1] : vector<17x17xf32> to vector<17xf32>
    %42 = vector.shape_cast %41 : vector<17xf32> to vector<17x1xf32>
    %43 = vector.broadcast %42 : vector<17x1xf32> to vector<17x17xf32>
    %44 = arith.subf %40, %43 : vector<17x17xf32>
    %45 = math.exp %44 : vector<17x17xf32>
    %cst_23 = arith.constant dense<0.000000e+00> : vector<17xf32>
    %46 = vector.multi_reduction <add>, %45, %cst_23 [1] : vector<17x17xf32> to vector<17xf32>
    %47 = vector.shape_cast %46 : vector<17xf32> to vector<17x1xf32>
    %48 = tpu.reciprocal %47 {approx = true} : vector<17x1xf32> -> vector<17x1xf32>
    %49 = vector.broadcast %48 : vector<17x1xf32> to vector<17x17xf32>
    %50 = arith.mulf %45, %49 : vector<17x17xf32>
    %51 = arith.truncf %50 : vector<17x17xf32> to vector<17x17xbf16>
    %52 = arith.truncf %35 : vector<17x32xf32> to vector<17x32xbf16>
    %cst_24 = arith.constant dense<0.000000e+00> : vector<17x32xf32>
    %53 = tpu.matmul %51, %52, %cst_24 {dimension_numbers = #tpu.dot_dimension_numbers<[1], [0], [0], [1], [0, 0, 1, 1], [], []>} : vector<17x17xbf16>, vector<17x32xbf16>, vector<17x32xf32> -> vector<17x32xf32>
    %54 = tpu.concatenate %26, %53 in 1 : vector<17x32xf32>, vector<17x32xf32> -> vector<17x64xf32>
    %55 = arith.truncf %54 : vector<17x64xf32> to vector<17x64xbf16>
    %c0_25 = arith.constant 0 : index
    %c0_26 = arith.constant 0 : index
    %c0_27 = arith.constant 0 : index
    %56 = vector.load %arg4[%c0_25, %c0_26, %c0_27] : memref<1x17x64xbf16, #tpu.memory_space<vmem>>, vector<1x17x64xbf16>
    %57 = vector.shape_cast %56 : vector<1x17x64xbf16> to vector<17x64xbf16>
    %58 = vector.shape_cast %55 : vector<17x64xbf16> to vector<1x17x64xbf16>
    tpu.vector_store %arg4[%c0_25, %c0_26, %c0_27], %58 {strides = array<i32>} : memref<1x17x64xbf16, #tpu.memory_space<vmem>>, vector<1x17x64xbf16>,
    return
  }
  func.func @transform_0(%arg0: i32) -> (i32, i32, i32) {
    %c0_i32 = arith.constant 0 : i32
    %c0_i32_0 = arith.constant 0 : i32
    %c0_i32_1 = arith.constant 0 : i32
    return %arg0, %c0_i32, %c0_i32_0 : i32, i32, i32
  }
  func.func @transform_1(%arg0: i32) -> (i32, i32, i32) {
    %c0_i32 = arith.constant 0 : i32
    %c0_i32_0 = arith.constant 0 : i32
    %c0_i32_1 = arith.constant 0 : i32
    return %arg0, %c0_i32, %c0_i32_0 : i32, i32, i32
  }
  func.func @transform_2(%arg0: i32) -> (i32, i32, i32) {
    %c0_i32 = arith.constant 0 : i32
    %c0_i32_0 = arith.constant 0 : i32
    %c0_i32_1 = arith.constant 0 : i32
    return %arg0, %c0_i32, %c0_i32_0 : i32, i32, i32
  }
  func.func @transform_3(%arg0: i32) -> (i32, i32, i32) {
    %c0_i32 = arith.constant 0 : i32
    %c0_i32_0 = arith.constant 0 : i32
    %c0_i32_1 = arith.constant 0 : i32
    return %arg0, %c0_i32, %c0_i32_0 : i32, i32, i32
  }
}

module attributes {stable_mosaic.version = 11 : i64} {
  func.func @kern(%arg0: i32, %arg1: memref<8x4x64xbf16, #tpu.memory_space<vmem>>, %arg2: memref<1x64xf32, #tpu.memory_space<vmem>>, %arg3: memref<1x64xf32, #tpu.memory_space<vmem>>, %arg4: memref<8x64xf32, #tpu.memory_space<vmem>>) attributes {dimension_semantics = [#tpu.dimension_semantics<parallel>], iteration_bounds = array<i64: 1>, scalar_prefetch = 0 : i64, scratch_operands = 0 : i64, tpu.core_type = #tpu.core_type<tc>, window_params = [{transform_indices = @transform_0, window_bounds = array<i64: 8, 4, 64>}, {pipeline_mode = #tpu.pipeline_mode<synchronous>, transform_indices = @transform_1, window_bounds = array<i64: 1, 64>}, {pipeline_mode = #tpu.pipeline_mode<synchronous>, transform_indices = @transform_2, window_bounds = array<i64: 1, 64>}, {transform_indices = @transform_3, window_bounds = array<i64: 8, 64>}]} {
    %c0 = arith.constant 0 : index
    %c0_0 = arith.constant 0 : index
    %c0_1 = arith.constant 0 : index
    %0 = vector.load %arg1[%c0, %c0_0, %c0_1] : memref<8x4x64xbf16, #tpu.memory_space<vmem>>, vector<8x4x64xbf16>
    %1 = arith.extf %0 : vector<8x4x64xbf16> to vector<8x4x64xf32>
    %cst = arith.constant dense<0.000000e+00> : vector<8x4xf32>
    %2 = vector.multi_reduction <add>, %1, %cst [2] : vector<8x4x64xf32> to vector<8x4xf32>
    %3 = vector.shape_cast %2 : vector<8x4xf32> to vector<8x4x1xf32>
    %cst_2 = arith.constant 6.400000e+01 : f32
    %4 = vector.broadcast %cst_2 : f32 to vector<8x4x1xf32>
    %5 = arith.divf %3, %4 : vector<8x4x1xf32>
    %6 = vector.broadcast %5 : vector<8x4x1xf32> to vector<8x4x64xf32>
    %7 = arith.subf %1, %6 : vector<8x4x64xf32>
    %8 = arith.mulf %7, %7 : vector<8x4x64xf32>
    %cst_3 = arith.constant dense<0.000000e+00> : vector<8x4xf32>
    %9 = vector.multi_reduction <add>, %8, %cst_3 [2] : vector<8x4x64xf32> to vector<8x4xf32>
    %10 = vector.shape_cast %9 : vector<8x4xf32> to vector<8x4x1xf32>
    %cst_4 = arith.constant 6.400000e+01 : f32
    %11 = vector.broadcast %cst_4 : f32 to vector<8x4x1xf32>
    %12 = arith.divf %10, %11 : vector<8x4x1xf32>
    %cst_5 = arith.constant 9.99999997E-7 : f32
    %13 = vector.broadcast %cst_5 : f32 to vector<8x4x1xf32>
    %14 = arith.addf %12, %13 : vector<8x4x1xf32>
    %15 = math.rsqrt %14 : vector<8x4x1xf32>
    %16 = vector.broadcast %15 : vector<8x4x1xf32> to vector<8x4x64xf32>
    %17 = arith.mulf %7, %16 : vector<8x4x64xf32>
    %c0_6 = arith.constant 0 : index
    %c0_7 = arith.constant 0 : index
    %18 = vector.load %arg2[%c0_6, %c0_7] : memref<1x64xf32, #tpu.memory_space<vmem>>, vector<1x64xf32>
    %19 = vector.shape_cast %18 : vector<1x64xf32> to vector<1x1x64xf32>
    %20 = vector.broadcast %19 : vector<1x1x64xf32> to vector<8x4x64xf32>
    %21 = arith.mulf %17, %20 : vector<8x4x64xf32>
    %c0_8 = arith.constant 0 : index
    %c0_9 = arith.constant 0 : index
    %22 = vector.load %arg3[%c0_8, %c0_9] : memref<1x64xf32, #tpu.memory_space<vmem>>, vector<1x64xf32>
    %23 = vector.shape_cast %22 : vector<1x64xf32> to vector<1x1x64xf32>
    %24 = vector.broadcast %23 : vector<1x1x64xf32> to vector<8x4x64xf32>
    %25 = arith.addf %21, %24 : vector<8x4x64xf32>
    %cst_10 = arith.constant dense<0.000000e+00> : vector<8x64xf32>
    %26 = vector.multi_reduction <add>, %25, %cst_10 [1] : vector<8x4x64xf32> to vector<8x64xf32>
    %cst_11 = arith.constant 4.000000e+00 : f32
    %27 = vector.broadcast %cst_11 : f32 to vector<8x64xf32>
    %28 = arith.divf %26, %27 : vector<8x64xf32>
    %c0_12 = arith.constant 0 : index
    %c0_13 = arith.constant 0 : index
    %29 = vector.load %arg4[%c0_12, %c0_13] : memref<8x64xf32, #tpu.memory_space<vmem>>, vector<8x64xf32>
    tpu.vector_store %arg4[%c0_12, %c0_13], %28 {strides = array<i32>} : memref<8x64xf32, #tpu.memory_space<vmem>>, vector<8x64xf32>,
    return
  }
  func.func @transform_0(%arg0: i32) -> (i32, i32, i32) {
    %c0_i32 = arith.constant 0 : i32
    %c0_i32_0 = arith.constant 0 : i32
    %c0_i32_1 = arith.constant 0 : i32
    return %arg0, %c0_i32, %c0_i32_0 : i32, i32, i32
  }
  func.func @transform_1(%arg0: i32) -> (i32, i32) {
    %c0_i32 = arith.constant 0 : i32
    %c0_i32_0 = arith.constant 0 : i32
    %c0_i32_1 = arith.constant 0 : i32
    return %c0_i32, %c0_i32_0 : i32, i32
  }
  func.func @transform_2(%arg0: i32) -> (i32, i32) {
    %c0_i32 = arith.constant 0 : i32
    %c0_i32_0 = arith.constant 0 : i32
    %c0_i32_1 = arith.constant 0 : i32
    return %c0_i32, %c0_i32_0 : i32, i32
  }
  func.func @transform_3(%arg0: i32) -> (i32, i32) {
    %c0_i32 = arith.constant 0 : i32
    %c0_i32_0 = arith.constant 0 : i32
    return %arg0, %c0_i32 : i32, i32
  }
}

</mosaic_0001>

<bundles_post_ra>
// kernel: _lambda_.28
= control target key start
LH: loop header
LB: loop body
LE: loop exit
PB: predicated region body
PF: predicated region fallthrough
CT: control target
= control target key end

     0   :  { %vm77_vm0 = vcmask 261120   ;;  %vm872_vm1 = vmmov 0   ;;  %vm25_vm2 = vcmask 785408   ;;  %vm669_vm3 = vcmask 781312   ;;  %s1366_s0 = inlined_call_operand.vmem [shape: bf16[136,32], index: 0, kind: input, shape index: {}]   ;;  %s1367_s1 = inlined_call_operand.vmem [shape: bf16[32,96], index: 1, kind: input, shape index: {}]   ;;  %s1368_s3 = inlined_call_operand.vmem [shape: f32[1,32], index: 3, kind: input, shape index: {}]   ;;  %s1369_s4 = inlined_call_operand.vmem [shape: f32[1,32], index: 4, kind: input, shape index: {}]   ;;  %s1370_s2 = inlined_call_operand.vmem [shape: f32[1,96], index: 2, kind: input, shape index: {}]   ;;  %s1371_s5 = inlined_call_operand.vmem [shape: bf16[136,96], index: 5, kind: output, shape index: {}]  }
   0x1   :  { %v906_v0 = vld [vmem:[%s1366_s0] sm:$0xff]   ;;  %v911_v1 = vld [vmem:[%s1366_s0 + $0x8] sm:$0xff]   ;;  %v935_v13 = vld [vmem:[%s1366_s0 + $0x10] sm:$0xff]  }
   0x2   :  { %v741_v2 = vunpack.c.l.bf16 %v906_v0  ;;  %v745_v3 = vunpack.c.l.bf16 %v911_v1  ;;  %v742_v4 = vunpack.c.h.bf16 %v906_v0  ;;  %v746_v5 = vunpack.c.h.bf16 %v911_v1  ;;  %v920_v6 = vld [vmem:[%s1366_s0 + $0x28] sm:$0xff]   ;;  %v948_v18 = vld [vmem:[%s1366_s0 + $0x30] sm:$0xff]   ;;  %v961_v23 = vld [vmem:[%s1366_s0 + $0x18] sm:$0xff]  }
   0x3   :  { %v761_v11 = vunpack.c.l.bf16 %v920_v6  ;;  %v762_v12 = vunpack.c.h.bf16 %v920_v6  ;;  %v749_v16 = vunpack.c.l.bf16 %v935_v13  ;;  %v750_v17 = vunpack.c.h.bf16 %v935_v13  ;;  %v974_v28 = vld [vmem:[%s1366_s0 + $0x38] sm:$0xff]   ;;  %v987_v33 = vld [vmem:[%s1366_s0 + $0x20] sm:$0xff]  }
   0x4   :  { %v78_v7 = vsel %vm77_vm0, %v741_v2, 0.0  ;;  %v84_v8 = vsel %vm77_vm0, %v745_v3, 0.0  ;;  %v81_v9 = vsel %vm77_vm0, %v742_v4, 0.0  ;;  %v87_v10 = vsel %vm77_vm0, %v746_v5, 0.0  ;;  %v1000_v38 = vld [vmem:[%s1366_s0 + $0x40] sm:$0xf] }
   0x5   :  { %79 = vadd.xlane.f32.xlu0 %v78_v7  ;;  %85 = vadd.xlane.f32.xlu1 %v84_v8  ;;  %v108_v14 = vsel %vm77_vm0, %v761_v11, 0.0  ;;  %v111_v15 = vsel %vm77_vm0, %v762_v12, 0.0  ;;  %v90_v19 = vsel %vm77_vm0, %v749_v16, 0.0  ;;  %v93_v20 = vsel %vm77_vm0, %v750_v17, 0.0 }
   0x6   :  { %v765_v21 = vunpack.c.l.bf16 %v948_v18  ;;  %v766_v22 = vunpack.c.h.bf16 %v948_v18  ;;  %v753_v26 = vunpack.c.l.bf16 %v961_v23  ;;  %v754_v27 = vunpack.c.h.bf16 %v961_v23 }
   0x7   :  { %v769_v31 = vunpack.c.l.bf16 %v974_v28  ;;  %v770_v32 = vunpack.c.h.bf16 %v974_v28  ;;  %v757_v36 = vunpack.c.l.bf16 %v987_v33  ;;  %v758_v37 = vunpack.c.h.bf16 %v987_v33 }
   0x8   :  { %v114_v24 = vsel %vm77_vm0, %v765_v21, 0.0  ;;  %v117_v25 = vsel %vm77_vm0, %v766_v22, 0.0  ;;  %v96_v29 = vsel %vm77_vm0, %v753_v26, 0.0  ;;  %v99_v30 = vsel %vm77_vm0, %v754_v27, 0.0 }
   0x9   :  { %82 = vadd.xlane.f32.xlu0 %v81_v9  ;;  %88 = vadd.xlane.f32.xlu1 %v87_v10  ;;  %v120_v34 = vsel %vm77_vm0, %v769_v31, 0.0  ;;  %v123_v35 = vsel %vm77_vm0, %v770_v32, 0.0  ;;  %v102_v39 = vsel %vm77_vm0, %v757_v36, 0.0  ;;  %v105_v40 = vsel %vm77_vm0, %v758_v37, 0.0 }
   0xa   :  { %v76_v41 = vunpack.c.l.bf16 %v1000_v38  ;;  %v871_v38 = vmov 0.0  }
   0xb   :  { %789 = vmatprep.subr.bf16.mxu0 %v871_v38  ;;  %829 = vmatprep.subr.bf16.mxu1 %v871_v38  ;;  %26 = vst.msk [vmem:[#allocation2] sm:$0xff] %vm25_vm2, %v871_v38  ;;  %27 = vst.msk [vmem:[#allocation2 + $0x8] sm:$0xff] %vm25_vm2, %v871_v38 }
   0xc   :  { %v126_v42 = vsel %vm77_vm0, %v76_v41, 0.0  ;;  %793 = vmatprep.mubr.msk.bf16.mxu0 %vm872_vm1, %v871_v38  ;;  %813 = vmatprep.mubr.msk.bf16.mxu1 %vm872_vm1, %v871_v38  ;;  %28 = vst.msk [vmem:[#allocation2 + $0x10] sm:$0xff] %vm25_vm2, %v871_v38  ;;  %29 = vst.msk [vmem:[#allocation2 + $0x18] sm:$0xff] %vm25_vm2, %v871_v38 }
   0xd   :  { %109 = vadd.xlane.f32.xlu0 %v108_v14  ;;  %112 = vadd.xlane.f32.xlu1 %v111_v15  ;;  %30 = vst.msk [vmem:[#allocation2 + $0x20] sm:$0xff] %vm25_vm2, %v871_v38  ;;  %31 = vst.msk [vmem:[#allocation2 + $0x28] sm:$0xff] %vm25_vm2, %v871_v38 }
   0xe   :  { %32 = vst.msk [vmem:[#allocation2 + $0x30] sm:$0xff] %vm25_vm2, %v871_v38  ;;  %33 = vst.msk [vmem:[#allocation2 + $0x38] sm:$0xff] %vm25_vm2, %v871_v38 }
   0xf   :  { %34 = vst.msk [vmem:[#allocation2 + $0x40] sm:$0xff] %vm25_vm2, %v871_v38  ;;  %35 = vst.msk [vmem:[#allocation2 + $0x48] sm:$0xff] %vm25_vm2, %v871_v38 }
  0x10   :  { %36 = vst.msk [vmem:[#allocation2 + $0x50] sm:$0xff] %vm25_vm2, %v871_v38  ;;  %37 = vst.msk [vmem:[#allocation2 + $0x58] sm:$0xff] %vm25_vm2, %v871_v38 }
  0x11   :  { %91 = vadd.xlane.f32.xlu0 %v90_v19  ;;  %94 = vadd.xlane.f32.xlu1 %v93_v20  ;;  %38 = vst.msk [vmem:[#allocation2 + $0x60] sm:$0xff] %vm25_vm2, %v871_v38  ;;  %39 = vst.msk [vmem:[#allocation2 + $0x68] sm:$0xff] %vm25_vm2, %v871_v38 }
  0x12   :  { %40 = vst.msk [vmem:[#allocation2 + $0x70] sm:$0xff] %vm25_vm2, %v871_v38  ;;  %41 = vst.msk [vmem:[#allocation2 + $0x78] sm:$0xff] %vm25_vm2, %v871_v38 }
  0x13   :  { %42 = vst.msk [vmem:[#allocation2 + $0x80] sm:$0xff] %vm25_vm2, %v871_v38 }
  0x15   :  { %115 = vadd.xlane.f32.xlu0 %v114_v24  ;;  %118 = vadd.xlane.f32.xlu1 %v117_v25 }
  0x19   :  { %97 = vadd.xlane.f32.xlu0 %v96_v29  ;;  %100 = vadd.xlane.f32.xlu1 %v99_v30 }
  0x1d   :  { %121 = vadd.xlane.f32.xlu0 %v120_v34  ;;  %124 = vadd.xlane.f32.xlu1 %v123_v35 }
  0x21   :  { %103 = vadd.xlane.f32.xlu0 %v102_v39  ;;  %106 = vadd.xlane.f32.xlu1 %v105_v40 }
  0x25   :  { %127 = vadd.xlane.f32.xlu0 %v126_v42 }
  0x8e   :  { %v80_v43 = vpop.xlane.xlu0 %79  ;;  %v86_v44 = vpop.xlane.xlu1 %85 }
  0x8f   :  { %v130_v45 = vmul.f32 0.03125, %v80_v43  ;;  %v132_v46 = vmul.f32 0.03125, %v86_v44 }
  0x91   :  { %v1012_v47 = vsub.f32 %v741_v2, %v130_v45  ;;  %v1014_v48 = vsub.f32 %v745_v3, %v132_v46 }
  0x92   :  { %v83_v49 = vpop.xlane.xlu0 %82  ;;  %v89_v50 = vpop.xlane.xlu1 %88 }
  0x93   :  { %v131_v51 = vmul.f32 0.03125, %v83_v49  ;;  %v133_v52 = vmul.f32 0.03125, %v89_v50  ;;  %v164_v53 = vmul.f32 %v1012_v47, %v1012_v47  ;;  %v166_v54 = vmul.f32 %v1014_v48, %v1014_v48 }
  0x95   :  { %v1022_v55 = vsub.f32 %v742_v4, %v131_v51  ;;  %v1026_v56 = vsub.f32 %v746_v5, %v133_v52  ;;  %v181_v57 = vsel %vm77_vm0, %v164_v53, 0.0  ;;  %v187_v60 = vsel %vm77_vm0, %v166_v54, 0.0 }
  0x96   :  { %182 = vadd.xlane.f32.xlu1 %v181_v57  ;;  %v110_v58 = vpop.xlane.xlu0 %109  ;;  %v113_v59 = vpop.xlane.xlu1 %112 }
  0x97   :  { %v140_v61 = vmul.f32 0.03125, %v110_v58  ;;  %v141_v62 = vmul.f32 0.03125, %v113_v59  ;;  %v165_v63 = vmul.f32 %v1022_v55, %v1022_v55  ;;  %v167_v0 = vmul.f32 %v1026_v56, %v1026_v56 }
  0x99   :  { %v1036_v1 = vsub.f32 %v761_v11, %v140_v61  ;;  %v1040_v2 = vsub.f32 %v762_v12, %v141_v62  ;;  %v184_v3 = vsel %vm77_vm0, %v165_v63, 0.0  ;;  %v190_v7 = vsel %vm77_vm0, %v167_v0, 0.0 }
  0x9a   :  { %188 = vadd.xlane.f32.xlu1 %v187_v60  ;;  %185 = vadd.xlane.f32.xlu0 %v184_v3  ;;  %v92_v4 = vpop.xlane.xlu0 %91  ;;  %v95_v5 = vpop.xlane.xlu1 %94 }
  0x9b   :  { %v134_v8 = vmul.f32 0.03125, %v92_v4  ;;  %v135_v9 = vmul.f32 0.03125, %v95_v5  ;;  %v174_v10 = vmul.f32 %v1036_v1, %v1036_v1  ;;  %v175_v11 = vmul.f32 %v1040_v2, %v1040_v2 }
  0x9d   :  { %v1050_v6 = vsub.f32 %v749_v16, %v134_v8  ;;  %v1054_v12 = vsub.f32 %v750_v17, %v135_v9  ;;  %v211_v14 = vsel %vm77_vm0, %v174_v10, 0.0  ;;  %v214_v20 = vsel %vm77_vm0, %v175_v11, 0.0  ;;  %v835_v9 = vld [vmem:[%s1367_s1 + $0x8] sm:$0xff]  }
  0x9e   :  { %191 = vadd.xlane.f32.xlu0 %v190_v7  ;;  %212 = vadd.xlane.f32.xlu1 %v211_v14  ;;  %v116_v15 = vpop.xlane.xlu0 %115  ;;  %v119_v19 = vpop.xlane.xlu1 %118 }
  0x9f   :  { %v142_v24 = vmul.f32 0.03125, %v116_v15  ;;  %v143_v25 = vmul.f32 0.03125, %v119_v19  ;;  %v168_v29 = vmul.f32 %v1050_v6, %v1050_v6  ;;  %v169_v16 = vmul.f32 %v1054_v12, %v1054_v12  ;;  %790 = vmatpush3.bf16.msra.mxu0 %v835_v9  ;;  %831 = vmatpush3.bf16.msra.mxu1 %v835_v9 }
  0xa0   :  { %791 = vmatprep.subr.bf16.mxu0 %v871_v38  ;;  %830 = vmatprep.subr.bf16.mxu1 %v871_v38 }
  0xa1   :  { %v1064_v13 = vsub.f32 %v765_v21, %v142_v24  ;;  %v1068_v17 = vsub.f32 %v766_v22, %v143_v25  ;;  %v193_v30 = vsel %vm77_vm0, %v168_v29, 0.0  ;;  %v196_v39 = vsel %vm77_vm0, %v169_v16, 0.0 }
  0xa2   :  { %215 = vadd.xlane.f32.xlu0 %v214_v20  ;;  %194 = vadd.xlane.f32.xlu1 %v193_v30  ;;  %v98_v34 = vpop.xlane.xlu0 %97  ;;  %v101_v35 = vpop.xlane.xlu1 %100 }
  0xa3   :  { %v136_v40 = vmul.f32 0.03125, %v98_v34  ;;  %v137_v42 = vmul.f32 0.03125, %v101_v35  ;;  %v176_v43 = vmul.f32 %v1064_v13, %v1064_v13  ;;  %v177_v21 = vmul.f32 %v1068_v17, %v1068_v17 }
  0xa5   :  { %v1078_v18 = vsub.f32 %v753_v26, %v136_v40  ;;  %v1082_v22 = vsub.f32 %v754_v27, %v137_v42  ;;  %v217_v44 = vsel %vm77_vm0, %v176_v43, 0.0  ;;  %v220_v49 = vsel %vm77_vm0, %v177_v21, 0.0 }
  0xa6   :  { %197 = vadd.xlane.f32.xlu0 %v196_v39  ;;  %218 = vadd.xlane.f32.xlu1 %v217_v44  ;;  %v122_v45 = vpop.xlane.xlu0 %121  ;;  %v125_v46 = vpop.xlane.xlu1 %124 }
  0xa7   :  { %v144_v50 = vmul.f32 0.03125, %v122_v45  ;;  %v145_v51 = vmul.f32 0.03125, %v125_v46  ;;  %v170_v52 = vmul.f32 %v1078_v18, %v1078_v18  ;;  %v171_v26 = vmul.f32 %v1082_v22, %v1082_v22 }
  0xa9   :  { %v1092_v23 = vsub.f32 %v769_v31, %v144_v50  ;;  %v1096_v27 = vsub.f32 %v770_v32, %v145_v51  ;;  %v199_v53 = vsel %vm77_vm0, %v170_v52, 0.0  ;;  %v202_v58 = vsel %vm77_vm0, %v171_v26, 0.0 }
  0xaa   :  { %221 = vadd.xlane.f32.xlu0 %v220_v49  ;;  %200 = vadd.xlane.f32.xlu1 %v199_v53  ;;  %v104_v54 = vpop.xlane.xlu0 %103  ;;  %v107_v57 = vpop.xlane.xlu1 %106 }
  0xab   :  { %v138_v59 = vmul.f32 0.03125, %v104_v54  ;;  %v139_v60 = vmul.f32 0.03125, %v107_v57  ;;  %v178_v61 = vmul.f32 %v1092_v23, %v1092_v23  ;;  %v179_v31 = vmul.f32 %v1096_v27, %v1096_v27 }
  0xad   :  { %v1106_v28 = vsub.f32 %v757_v36, %v138_v59  ;;  %v1110_v32 = vsub.f32 %v758_v37, %v139_v60  ;;  %v223_v62 = vsel %vm77_vm0, %v178_v61, 0.0  ;;  %v226_v3 = vsel %vm77_vm0, %v179_v31, 0.0  ;;  %v1179_v31 = vld [vmem:[%s1368_s3] ss:$0 sm:$0xff] }
  0xae   :  { %203 = vadd.xlane.f32.xlu0 %v202_v58  ;;  %224 = vadd.xlane.f32.xlu1 %v223_v62  ;;  %v128_v63 = vpop.xlane.xlu0 %127 }
  0xaf   :  { %v146_v0 = vmul.f32 0.03125, %v128_v63  ;;  %v172_v4 = vmul.f32 %v1106_v28, %v1106_v28  ;;  %v173_v5 = vmul.f32 %v1110_v32, %v1110_v32 }
  0xb1   :  { %v1120_v36 = vsub.f32 %v76_v41, %v146_v0  ;;  %v205_v33 = vsel %vm77_vm0, %v172_v4, 0.0  ;;  %v208_v37 = vsel %vm77_vm0, %v173_v5, 0.0  ;;  %v836_v41 = vld [vmem:[%s1367_s1] sm:$0xff]  }
  0xb2   :  { %227 = vadd.xlane.f32.xlu0 %v226_v3  ;;  %206 = vadd.xlane.f32.xlu1 %v205_v33 }
  0xb3   :  { %v180_v7 = vmul.f32 %v1120_v36, %v1120_v36  ;;  %792 = vmatpush3.bf16.msra.mxu0 %v836_v41  ;;  %832 = vmatpush3.bf16.msra.mxu1 %v836_v41 }
  0xb5   :  { %v229_v8 = vsel %vm77_vm0, %v180_v7, 0.0 }
  0xb6   :  { %209 = vadd.xlane.f32.xlu0 %v208_v37  ;;  %230 = vadd.xlane.f32.xlu1 %v229_v8  ;;  %v1186_v8 = vld [vmem:[%s1369_s4] ss:$0 sm:$0xff] }
 0x11f   :  { %v183_v10 = vpop.xlane.xlu1 %182 }
 0x120   :  { %v232_v11 = vmul.f32 0.03125, %v183_v10 }
 0x122   :  { %v249_v14 = vadd.f32 1e-06, %v232_v11 }
 0x123   :  { %v189_v15 = vpop.xlane.xlu1 %188  ;;  %v186_v19 = vpop.xlane.xlu0 %185 }
 0x124   :  { %837 = vrsqrt.f32 %v249_v14  ;;  %v234_v20 = vmul.f32 0.03125, %v189_v15  ;;  %v233_v24 = vmul.f32 0.03125, %v186_v19 }
 0x126   :  { %v251_v25 = vadd.f32 1e-06, %v234_v20  ;;  %v250_v29 = vadd.f32 1e-06, %v233_v24 }
 0x127   :  { %v213_v16 = vpop.xlane.xlu1 %212  ;;  %v192_v30 = vpop.xlane.xlu0 %191 }
 0x128   :  { %839 = vrsqrt.f32 %v251_v25  ;;  %v242_v34 = vmul.f32 0.03125, %v213_v16  ;;  %v235_v35 = vmul.f32 0.03125, %v192_v30 }
 0x129   :  { %841 = vrsqrt.f32 %v250_v29 }
 0x12a   :  { %v259_v39 = vadd.f32 1e-06, %v242_v34  ;;  %v252_v40 = vadd.f32 1e-06, %v235_v35 }
 0x12b   :  { %v195_v42 = vpop.xlane.xlu1 %194  ;;  %v216_v43 = vpop.xlane.xlu0 %215 }
 0x12c   :  { %843 = vrsqrt.f32 %v259_v39  ;;  %v236_v21 = vmul.f32 0.03125, %v195_v42  ;;  %v243_v44 = vmul.f32 0.03125, %v216_v43 }
 0x12d   :  { %845 = vrsqrt.f32 %v252_v40 }
 0x12e   :  { %v253_v45 = vadd.f32 1e-06, %v236_v21  ;;  %v260_v46 = vadd.f32 1e-06, %v243_v44 }
 0x12f   :  { %v219_v49 = vpop.xlane.xlu1 %218  ;;  %v198_v50 = vpop.xlane.xlu0 %197 }
 0x130   :  { %v244_v51 = vmul.f32 0.03125, %v219_v49  ;;  %v237_v52 = vmul.f32 0.03125, %v198_v50  ;;  %847 = vrsqrt.f32 %v260_v46 }
 0x131   :  { %v838_v26 = vpop.eup %837  ;;  %849 = vrsqrt.f32 %v253_v45 }
 0x132   :  { %v261_v53 = vadd.f32 1e-06, %v244_v51  ;;  %v254_v54 = vadd.f32 1e-06, %v237_v52  ;;  %v283_v59 = vmul.f32 %v838_v26, %v1012_v47 }
 0x133   :  { %v201_v57 = vpop.xlane.xlu1 %200  ;;  %v222_v58 = vpop.xlane.xlu0 %221 }
 0x134   :  { %851 = vrsqrt.f32 %v261_v53  ;;  %v238_v60 = vmul.f32 0.03125, %v201_v57  ;;  %v245_v61 = vmul.f32 0.03125, %v222_v58  ;;  %v307_v37 = vmul.f32 %v1179_v31, %v283_v59 }
 0x135   :  { %v840_v62 = vpop.eup %839  ;;  %853 = vrsqrt.f32 %v254_v54 }
 0x136   :  { %v842_v63 = vpop.eup %841  ;;  %v255_v0 = vadd.f32 1e-06, %v238_v60  ;;  %v262_v3 = vadd.f32 1e-06, %v245_v61  ;;  %v285_v10 = vmul.f32 %v840_v62, %v1014_v48  ;;  %v331_v24 = vadd.f32 %v1186_v8, %v307_v37 }
 0x137   :  { %v225_v4 = vpop.xlane.xlu1 %224  ;;  %v204_v5 = vpop.xlane.xlu0 %203  ;;  %v284_v33 = vmul.f32 %v842_v63, %v1022_v55 }
 0x138   :  { %v246_v47 = vmul.f32 0.03125, %v225_v4  ;;  %v239_v7 = vmul.f32 0.03125, %v204_v5  ;;  %855 = vrsqrt.f32 %v262_v3  ;;  %v309_v48 = vmul.f32 %v1179_v31, %v285_v10 }
 0x139   :  { %v844_v9 = vpop.eup %843  ;;  %v308_v41 = vmul.f32 %v1179_v31, %v284_v33  ;;  %857 = vrsqrt.f32 %v255_v0 }
 0x13a   :  { %v846_v11 = vpop.eup %845  ;;  %v263_v14 = vadd.f32 1e-06, %v246_v47  ;;  %v256_v15 = vadd.f32 1e-06, %v239_v7  ;;  %v293_v55 = vmul.f32 %v844_v9, %v1036_v1  ;;  %v333_v50 = vadd.f32 %v1186_v8, %v309_v48 }
 0x13b   :  { %v207_v19 = vpop.xlane.xlu1 %206  ;;  %v228_v20 = vpop.xlane.xlu0 %227  ;;  %v332_v25 = vadd.f32 %v1186_v8, %v308_v41  ;;  %v286_v29 = vmul.f32 %v846_v11, %v1026_v56 }
 0x13c   :  { %859 = vrsqrt.f32 %v263_v14  ;;  %v240_v16 = vmul.f32 0.03125, %v207_v19  ;;  %v247_v30 = vmul.f32 0.03125, %v228_v20  ;;  %v317_v1 = vmul.f32 %v1179_v31, %v293_v55 }
 0x13d   :  { %861 = vrsqrt.f32 %v256_v15  ;;  %v348_v34 = vpack.c.bf16 %v332_v25, %v331_v24  ;;  %v310_v35 = vmul.f32 %v1179_v31, %v286_v29  ;;  %v848_v39 = vpop.eup %847 }
 0x13e   :  { %v264_v40 = vadd.f32 1e-06, %v247_v30  ;;  %v850_v42 = vpop.eup %849  ;;  %v257_v43 = vadd.f32 1e-06, %v240_v16  ;;  %v294_v56 = vmul.f32 %v848_v39, %v1040_v2  ;;  %v341_v57 = vadd.f32 %v1186_v8, %v317_v1 }
 0x13f   :  { %794 = vmatmul.mubr.msk.bf16.vlgmr.msra.gmra.mxu0 %vm77_vm0, %v348_v34  ;;  %v231_v21 = vpop.xlane.xlu1 %230  ;;  %v210_v44 = vpop.xlane.xlu0 %209  ;;  %v334_v51 = vadd.f32 %v1186_v8, %v310_v35  ;;  %v287_v2 = vmul.f32 %v850_v42, %v1050_v6 }
 0x140   :  { %v248_v45 = vmul.f32 0.03125, %v231_v21  ;;  %v241_v46 = vmul.f32 0.03125, %v210_v44  ;;  %797 = vmatprep.mubr.msk.bf16.mxu0 %vm872_vm1, %v871_v38  ;;  %863 = vrsqrt.f32 %v264_v40  ;;  %v318_v52 = vmul.f32 %v1179_v31, %v294_v56  ;;  %v357_v56 = vld [vmem:[#allocation2] sm:$0xff] }
 0x141   :  { %v852_v49 = vpop.eup %851  ;;  %865 = vrsqrt.f32 %v257_v43  ;;  %v349_v61 = vpack.c.bf16 %v334_v51, %v333_v50  ;;  %v311_v3 = vmul.f32 %v1179_v31, %v287_v2 }
 0x142   :  { %v854_v26 = vpop.eup %853  ;;  %v265_v53 = vadd.f32 1e-06, %v248_v45  ;;  %v258_v54 = vadd.f32 1e-06, %v241_v46  ;;  %v342_v58 = vadd.f32 %v1186_v8, %v318_v52  ;;  %v295_v60 = vmul.f32 %v852_v49, %v1064_v13  ;;  %v358_v49 = vld [vmem:[#allocation2 + $0x8] sm:$0xff]  ;;  %v359_v52 = vld [vmem:[#allocation2 + $0x10] sm:$0xff] }
 0x143   :  { %v288_v59 = vmul.f32 %v854_v26, %v1054_v12  ;;  %v335_v47 = vadd.f32 %v1186_v8, %v311_v3  ;;  %v367_v26 = vld [vmem:[#allocation2 + $0x50] sm:$0xff] }
 0x144   :  { %867 = vrsqrt.f32 %v265_v53  ;;  %v353_v62 = vpack.c.bf16 %v342_v58, %v341_v57  ;;  %v319_v12 = vmul.f32 %v1179_v31, %v295_v60 }
 0x145   :  { %869 = vrsqrt.f32 %v258_v54  ;;  %v312_v63 = vmul.f32 %v1179_v31, %v288_v59  ;;  %v856_v0 = vpop.eup %855 }
 0x146   :  { %v858_v4 = vpop.eup %857  ;;  %814 = vmatmul.mubr.msk.bf16.vlgmr.msra.gmra.mxu1 %vm77_vm0, %v353_v62  ;;  %v296_v6 = vmul.f32 %v856_v0, %v1068_v17  ;;  %v343_v17 = vadd.f32 %v1186_v8, %v319_v12  ;;  %v368_v62 = vld [vmem:[#allocation2 + $0x58] sm:$0xff] }
 0x147   :  { %798 = vmatmul.mubr.msk.bf16.gmra.mxu0 %vm77_vm0, %v349_v61  ;;  %817 = vmatprep.mubr.msk.bf16.mxu1 %vm872_vm1, %v871_v38  ;;  %v336_v5 = vadd.f32 %v1186_v8, %v312_v63  ;;  %v289_v7 = vmul.f32 %v858_v4, %v1078_v18  ;;  %v360_v61 = vld [vmem:[#allocation2 + $0x18] sm:$0xff] }
 0x148   :  { %801 = vmatprep.mubr.msk.bf16.mxu0 %vm872_vm1, %v871_v38  ;;  %v320_v33 = vmul.f32 %v1179_v31, %v296_v6 }
 0x149   :  { %v860_v13 = vpop.eup %859  ;;  %v350_v11 = vpack.c.bf16 %v336_v5, %v335_v47  ;;  %v313_v19 = vmul.f32 %v1179_v31, %v289_v7  ;;  %v369_v47 = vld [vmem:[#allocation2 + $0x60] sm:$0xff] }
 0x14a   :  { %v862_v37 = vpop.eup %861  ;;  %v344_v9 = vadd.f32 %v1186_v8, %v320_v33  ;;  %v297_v10 = vmul.f32 %v860_v13, %v1092_v23 }
 0x14b   :  { %v290_v41 = vmul.f32 %v862_v37, %v1082_v22  ;;  %v337_v16 = vadd.f32 %v1186_v8, %v313_v19  ;;  %v361_v37 = vld [vmem:[#allocation2 + $0x20] sm:$0xff] }
 0x14c   :  { %v354_v14 = vpack.c.bf16 %v344_v9, %v343_v17  ;;  %v321_v20 = vmul.f32 %v1179_v31, %v297_v10 }
 0x14d   :  { %v314_v15 = vmul.f32 %v1179_v31, %v290_v41  ;;  %v864_v55 = vpop.eup %863 }
 0x14e   :  { %818 = vmatmul.mubr.msk.bf16.gmra.mxu1 %vm77_vm0, %v354_v14  ;;  %v298_v18 = vmul.f32 %v864_v55, %v1096_v27  ;;  %v866_v24 = vpop.eup %865  ;;  %v345_v27 = vadd.f32 %v1186_v8, %v321_v20  ;;  %v362_v14 = vld [vmem:[#allocation2 + $0x28] sm:$0xff] }
 0x14f   :  { %802 = vmatmul.mubr.msk.bf16.gmra.mxu0 %vm77_vm0, %v350_v11  ;;  %821 = vmatprep.mubr.msk.bf16.mxu1 %vm872_vm1, %v871_v38  ;;  %v338_v23 = vadd.f32 %v1186_v8, %v314_v15  ;;  %v291_v48 = vmul.f32 %v866_v24, %v1106_v28  ;;  %v370_v20 = vld [vmem:[#allocation2 + $0x68] sm:$0xff] }
 0x150   :  { %805 = vmatprep.mubr.msk.bf16.mxu0 %vm872_vm1, %v871_v38  ;;  %v322_v25 = vmul.f32 %v1179_v31, %v298_v18 }
 0x151   :  { %v868_v22 = vpop.eup %867  ;;  %v351_v39 = vpack.c.bf16 %v338_v23, %v337_v16 }
 0x152   :  { %v870_v29 = vpop.eup %869  ;;  %v299_v30 = vmul.f32 %v868_v22, %v1120_v36  ;;  %v346_v34 = vadd.f32 %v1186_v8, %v322_v25  ;;  %v315_v36 = vmul.f32 %v1179_v31, %v291_v48 }
 0x153   :  { %v292_v35 = vmul.f32 %v870_v29, %v1110_v32 }
 0x154   :  { %v355_v40 = vpack.c.bf16 %v346_v34, %v345_v27  ;;  %v323_v42 = vmul.f32 %v1179_v31, %v299_v30  ;;  %v339_v43 = vadd.f32 %v1186_v8, %v315_v36  ;;  %v363_v34 = vld [vmem:[#allocation2 + $0x30] sm:$0xff] }
 0x155   :  { %v316_v1 = vmul.f32 %v1179_v31, %v292_v35 }
 0x156   :  { %822 = vmatmul.mubr.msk.bf16.gmra.mxu1 %vm77_vm0, %v355_v40  ;;  %v347_v32 = vadd.f32 %v1186_v8, %v323_v42 }
 0x157   :  { %806 = vmatmul.mubr.msk.bf16.gmra.mxu0 %vm77_vm0, %v351_v39  ;;  %825 = vmatprep.mubr.msk.bf16.mxu1 %vm872_vm1, %v871_v38  ;;  %v340_v28 = vadd.f32 %v1186_v8, %v316_v1  ;;  %v1264_v8 = vld [vmem:[%s1370_s2] ss:$0 sm:$0xff]  ;;  %v371_v1 = vld [vmem:[#allocation2 + $0x70] sm:$0xff] }
 0x158   :  { %809 = vmatprep.mubr.msk.bf16.mxu0 %vm872_vm1, %v871_v38  ;;  %v356_v44 = vpack.c.bf16 %v347_v32, %v347_v32 }
 0x159   :  { %v352_v21 = vpack.c.bf16 %v340_v28, %v339_v43 }
 0x15e   :  { %826 = vmatmul.mubr.msk.bf16.gmra.mxu1 %vm77_vm0, %v356_v44 }
 0x15f   :  { %810 = vmatmul.mubr.msk.bf16.gmra.mxu0 %vm77_vm0, %v352_v21 }
 0x1ff   :  { %v451_v31 = vpop.f32.mrf.mxu0 }
 0x200   :  { %v521_v45 = vadd.f32 %v451_v31, %v357_v56  ;;  %v364_v31 = vld [vmem:[#allocation2 + $0x38] sm:$0xff] }
 0x201   :  { %v795_v46 = vpop.f32.mrf.mxu0 }
 0x202   :  { %539 = vst.msk [vmem:[#allocation2] sm:$0xff] %vm25_vm2, %v521_v45 }
 0x203   :  { %v454_v38 = vpop.f32.mrf.mxu0 }
 0x204   :  { %v522_v50 = vadd.f32 %v454_v38, %v358_v49 }
 0x205   :  { %v796_v51 = vpop.f32.mrf.mxu0 }
 0x206   :  { %540 = vst.msk [vmem:[#allocation2 + $0x8] sm:$0xff] %vm25_vm2, %v522_v50  ;;  %v491_v54 = vpop.f32.mrf.mxu1  ;;  %v372_v50 = vld [vmem:[#allocation2 + $0x78] sm:$0xff] }
 0x207   :  { %v459_v53 = vpop.f32.mrf.mxu0  ;;  %v531_v2 = vadd.f32 %v491_v54, %v367_v26 }
 0x208   :  { %v523_v57 = vadd.f32 %v459_v53, %v359_v52  ;;  %v815_v60 = vpop.f32.mrf.mxu1 }
 0x209   :  { %v559_v58 = vld [vmem:[#allocation2] sm:$0xff]  ;;  %v799_v59 = vpop.f32.mrf.mxu0  ;;  %549 = vst.msk [vmem:[#allocation2 + $0x50] sm:$0xff] %vm25_vm2, %v531_v2 }
 0x20a   :  { %v583_v63 = vadd.f32 %v1264_v8, %v559_v58  ;;  %541 = vst.msk [vmem:[#allocation2 + $0x10] sm:$0xff] %vm25_vm2, %v523_v57  ;;  %v494_v3 = vpop.f32.mrf.mxu1  ;;  %v365_v59 = vld [vmem:[#allocation2 + $0x40] sm:$0xff] }
 0x20b   :  { %v462_v0 = vpop.f32.mrf.mxu0  ;;  %v532_v12 = vadd.f32 %v494_v3, %v368_v62 }
 0x20c   :  { %v722_v4 = vpack.c.bf16 %v583_v63, %v583_v63  ;;  %v524_v6 = vadd.f32 %v462_v0, %v360_v61  ;;  %v816_v33 = vpop.f32.mrf.mxu1  ;;  %v373_v0 = vld [vmem:[#allocation2 + $0x80] sm:$0xff] }
 0x20d   :  { %v560_v13 = vld [vmem:[#allocation2 + $0x8] sm:$0xff]  ;;  %v800_v5 = vpop.f32.mrf.mxu0  ;;  %550 = vst.msk [vmem:[#allocation2 + $0x58] sm:$0xff] %vm25_vm2, %v532_v12 }
 0x20e   :  { %670 = vst.msk [vmem:[%s1371_s5] sm:$0xf] %vm669_vm3, %v722_v4  ;;  %v584_v7 = vadd.f32 %v1264_v8, %v560_v13  ;;  %v499_v9 = vpop.f32.mrf.mxu1 }
 0x20f   :  { %542 = vst.msk [vmem:[#allocation2 + $0x18] sm:$0xff] %vm25_vm2, %v524_v6  ;;  %v467_v17 = vpop.f32.mrf.mxu0  ;;  %v533_v11 = vadd.f32 %v499_v9, %v369_v47 }
 0x210   :  { %v723_v41 = vpack.c.bf16 %v584_v7, %v584_v7  ;;  %v525_v10 = vadd.f32 %v467_v17, %v361_v37  ;;  %v569_v55 = vld [vmem:[#allocation2 + $0x50] sm:$0xff]  ;;  %v819_v18 = vpop.f32.mrf.mxu1 }
 0x211   :  { %v561_v15 = vld [vmem:[#allocation2 + $0x10] sm:$0xff]  ;;  %v803_v19 = vpop.f32.mrf.mxu0  ;;  %v593_v22 = vadd.f32 %v1264_v8, %v569_v55  ;;  %551 = vst.msk [vmem:[#allocation2 + $0x60] sm:$0xff] %vm25_vm2, %v533_v11 }
 0x212   :  { %671 = vst.msk [vmem:[%s1371_s5 + $0x4] sm:$0xf] %vm669_vm3, %v723_v41  ;;  %v585_v24 = vadd.f32 %v1264_v8, %v561_v15  ;;  %v502_v25 = vpop.f32.mrf.mxu1  ;;  %v366_v41 = vld [vmem:[#allocation2 + $0x48] sm:$0xff] }
 0x213   :  { %543 = vst.msk [vmem:[#allocation2 + $0x20] sm:$0xff] %vm25_vm2, %v525_v10  ;;  %v470_v23 = vpop.f32.mrf.mxu0  ;;  %v732_v16 = vpack.c.bf16 %v593_v22, %v593_v22  ;;  %v534_v27 = vadd.f32 %v502_v25, %v370_v20 }
 0x214   :  { %v724_v29 = vpack.c.bf16 %v585_v24, %v585_v24  ;;  %v526_v30 = vadd.f32 %v470_v23, %v362_v14  ;;  %v570_v35 = vld [vmem:[#allocation2 + $0x58] sm:$0xff]  ;;  %v820_v40 = vpop.f32.mrf.mxu1 }
 0x215   :  { %v804_v39 = vpop.f32.mrf.mxu0  ;;  %680 = vst.msk [vmem:[%s1371_s5 + $0x28] sm:$0xf] %vm669_vm3, %v732_v16  ;;  %v594_v36 = vadd.f32 %v1264_v8, %v570_v35 }
 0x216   :  { %v562_v48 = vld [vmem:[#allocation2 + $0x18] sm:$0xff]  ;;  %672 = vst.msk [vmem:[%s1371_s5 + $0x8] sm:$0xf] %vm669_vm3, %v724_v29  ;;  %v507_v32 = vpop.f32.mrf.mxu1 }
 0x217   :  { %v586_v42 = vadd.f32 %v1264_v8, %v562_v48  ;;  %544 = vst.msk [vmem:[#allocation2 + $0x28] sm:$0xff] %vm25_vm2, %v526_v30  ;;  %552 = vst.msk [vmem:[#allocation2 + $0x68] sm:$0xff] %vm25_vm2, %v534_v27  ;;  %v475_v28 = vpop.f32.mrf.mxu0  ;;  %v733_v21 = vpack.c.bf16 %v594_v36, %v594_v36  ;;  %v535_v56 = vadd.f32 %v507_v32, %v371_v1 }
 0x218   :  { %v527_v44 = vadd.f32 %v475_v28, %v363_v34  ;;  %v571_v46 = vld [vmem:[#allocation2 + $0x60] sm:$0xff]  ;;  %v823_v38 = vpop.f32.mrf.mxu1 }
 0x219   :  { %v725_v43 = vpack.c.bf16 %v586_v42, %v586_v42  ;;  %v807_v49 = vpop.f32.mrf.mxu0  ;;  %681 = vst.msk [vmem:[%s1371_s5 + $0x2c] sm:$0xf] %vm669_vm3, %v733_v21  ;;  %v595_v52 = vadd.f32 %v1264_v8, %v571_v46 }
 0x21a   :  { %v563_v45 = vld [vmem:[#allocation2 + $0x20] sm:$0xff]  ;;  %545 = vst.msk [vmem:[#allocation2 + $0x30] sm:$0xff] %vm25_vm2, %v527_v44  ;;  %553 = vst.msk [vmem:[#allocation2 + $0x70] sm:$0xff] %vm25_vm2, %v535_v56  ;;  %v510_v53 = vpop.f32.mrf.mxu1 }
 0x21b   :  { %673 = vst.msk [vmem:[%s1371_s5 + $0xc] sm:$0xf] %vm669_vm3, %v725_v43  ;;  %v587_v51 = vadd.f32 %v1264_v8, %v563_v45  ;;  %v478_v26 = vpop.f32.mrf.mxu0  ;;  %v734_v57 = vpack.c.bf16 %v595_v52, %v595_v52  ;;  %v536_v58 = vadd.f32 %v510_v53, %v372_v50 }
 0x21c   :  { %v528_v2 = vadd.f32 %v478_v26, %v364_v31  ;;  %v824_v63 = vpop.f32.mrf.mxu1 }
 0x21d   :  { %v726_v54 = vpack.c.bf16 %v587_v51, %v587_v51  ;;  %v808_v62 = vpop.f32.mrf.mxu0  ;;  %682 = vst.msk [vmem:[%s1371_s5 + $0x30] sm:$0xf] %vm669_vm3, %v734_v57 }
 0x21e   :  { %v564_v60 = vld [vmem:[#allocation2 + $0x28] sm:$0xff]  ;;  %546 = vst.msk [vmem:[#allocation2 + $0x38] sm:$0xff] %vm25_vm2, %v528_v2  ;;  %554 = vst.msk [vmem:[#allocation2 + $0x78] sm:$0xff] %vm25_vm2, %v536_v58  ;;  %v515_v12 = vpop.f32.mrf.mxu1 }
 0x21f   :  { %v572_v61 = vld [vmem:[#allocation2 + $0x68] sm:$0xff]  ;;  %674 = vst.msk [vmem:[%s1371_s5 + $0x10] sm:$0xf] %vm669_vm3, %v726_v54  ;;  %v588_v3 = vadd.f32 %v1264_v8, %v564_v60  ;;  %v483_v6 = vpop.f32.mrf.mxu0  ;;  %v537_v37 = vadd.f32 %v515_v12, %v373_v0 }
 0x220   :  { %v596_v4 = vadd.f32 %v1264_v8, %v572_v61  ;;  %v529_v33 = vadd.f32 %v483_v6, %v365_v59  ;;  %v827_v9 = vpop.f32.mrf.mxu1 }
 0x221   :  { %v727_v13 = vpack.c.bf16 %v588_v3, %v588_v3  ;;  %v565_v47 = vld [vmem:[#allocation2 + $0x30] sm:$0xff]  ;;  %v811_v17 = vpop.f32.mrf.mxu0  ;;  %555 = vst.msk [vmem:[#allocation2 + $0x80] sm:$0xff] %vm25_vm2, %v537_v37 }
 0x222   :  { %v735_v5 = vpack.c.bf16 %v596_v4, %v596_v4  ;;  %v573_v7 = vld [vmem:[#allocation2 + $0x70] sm:$0xff]  ;;  %v589_v10 = vadd.f32 %v1264_v8, %v565_v47  ;;  %547 = vst.msk [vmem:[#allocation2 + $0x40] sm:$0xff] %vm25_vm2, %v529_v33  ;;  %v518_v15 = vpop.f32.mrf.mxu1 }
 0x223   :  { %675 = vst.msk [vmem:[%s1371_s5 + $0x14] sm:$0xf] %vm669_vm3, %v727_v13  ;;  %v597_v11 = vadd.f32 %v1264_v8, %v573_v7  ;;  %v486_v14 = vpop.f32.mrf.mxu0 }
 0x224   :  { %683 = vst.msk [vmem:[%s1371_s5 + $0x34] sm:$0xf] %vm669_vm3, %v735_v5  ;;  %v728_v55 = vpack.c.bf16 %v589_v10, %v589_v10  ;;  %v530_v18 = vadd.f32 %v486_v14, %v366_v41  ;;  %v828_v23 = vpop.f32.mrf.mxu1 }
 0x225   :  { %v736_v19 = vpack.c.bf16 %v597_v11, %v597_v11  ;;  %v566_v20 = vld [vmem:[#allocation2 + $0x38] sm:$0xff]  ;;  %v812_v22 = vpop.f32.mrf.mxu0 }
 0x226   :  { %v574_v24 = vld [vmem:[#allocation2 + $0x78] sm:$0xff]  ;;  %676 = vst.msk [vmem:[%s1371_s5 + $0x18] sm:$0xf] %vm669_vm3, %v728_v55  ;;  %v590_v25 = vadd.f32 %v1264_v8, %v566_v20 }
 0x227   :  { %684 = vst.msk [vmem:[%s1371_s5 + $0x38] sm:$0xf] %vm669_vm3, %v736_v19  ;;  %v598_v29 = vadd.f32 %v1264_v8, %v574_v24 }
 0x228   :  { %548 = vst.msk [vmem:[#allocation2 + $0x48] sm:$0xff] %vm25_vm2, %v530_v18  ;;  %v729_v16 = vpack.c.bf16 %v590_v25, %v590_v25  ;;  %v575_v34 = vld [vmem:[#allocation2 + $0x80] sm:$0xff] }
 0x229   :  { %v737_v30 = vpack.c.bf16 %v598_v29, %v598_v29  ;;  %v567_v27 = vld [vmem:[#allocation2 + $0x40] sm:$0xff]  ;;  %v599_v35 = vadd.f32 %v1264_v8, %v575_v34 }
 0x22a   :  { %677 = vst.msk [vmem:[%s1371_s5 + $0x1c] sm:$0xf] %vm669_vm3, %v729_v16  ;;  %v591_v48 = vadd.f32 %v1264_v8, %v567_v27 }
 0x22b   :  { %685 = vst.msk [vmem:[%s1371_s5 + $0x3c] sm:$0xf] %vm669_vm3, %v737_v30  ;;  %v738_v40 = vpack.c.bf16 %v599_v35, %v599_v35 }
 0x22c   :  { %v730_v39 = vpack.c.bf16 %v591_v48, %v591_v48 }
 0x22d   :  { %686 = vst.msk [vmem:[%s1371_s5 + $0x40] sm:$0xf] %vm669_vm3, %v738_v40 }
 0x22e   :  { %678 = vst.msk [vmem:[%s1371_s5 + $0x20] sm:$0xf] %vm669_vm3, %v730_v39 }
 0x22f   :  { %v568_v1 = vld [vmem:[#allocation2 + $0x48] sm:$0xff] }
 0x230   :  { %v592_v42 = vadd.f32 %v1264_v8, %v568_v1 }
 0x232   :  { %v731_v36 = vpack.c.bf16 %v592_v42, %v592_v42 }
 0x234   :  { %679 = vst.msk [vmem:[%s1371_s5 + $0x24] sm:$0xf] %vm669_vm3, %v731_v36 }

// kernel: _lambda_.27
= control target key start
LH: loop header
LB: loop body
LE: loop exit
PB: predicated region body
PF: predicated region fallthrough
CT: control target
= control target key end

     0   :  { %v1113_v0 = vmov 0   ;;  %vm484_vm0 = vcmask 1043456   ;;  %vm485_vm1 = vcmask 1044480   ;;  %v1114_v23 = vmov 65535   ;;  %s1509_s1 = inlined_call_operand.vmem [shape: bf16[441,32], index: 1, kind: input, shape index: {}]   ;;  %s1510_s0 = inlined_call_operand.vmem [shape: bf16[128,441], index: 0, kind: input, shape index: {}]   ;;  %s1511_s2 = inlined_call_operand.vmem [shape: f32[1,32], index: 2, kind: input, shape index: {}]   ;;  %s1512_s3 = inlined_call_operand.vmem [shape: bf16[128,32], index: 3, kind: output, shape index: {}]  }
   0x1   :  { %1010 = vmatprep.subr.bf16.mxu1 %v1113_v0  ;;  %v1037_v1 = vld [vmem:[%s1509_s1 + $0x78] sm:$0xff]   ;;  %v1040_v4 = vld [vmem:[%s1509_s1 + $0x70] sm:$0xff]   ;;  %v1043_v7 = vld [vmem:[%s1509_s1 + $0x68] sm:$0xff]   ;;  %v486_v24 = vsel %vm484_vm0, 4294967295, %v1114_v23  ;;  %vm459_vm2 = vcmask 465920   ;;  %vm19_vm3 = vcmask 261120  }
   0x2   :  { %v1143_v2 = vld [vmem:[%s1509_s1 + $0xb8] sm:$0xff]   ;;  %946 = vmatprep.subr.bf16.mxu0 %v1037_v1  ;;  %v1156_v5 = vld [vmem:[%s1509_s1 + $0xb0] sm:$0xff]   ;;  %v1168_v8 = vld [vmem:[%s1509_s1 + $0xa8] sm:$0xff]   ;;  %v487_v29 = vsel %vm485_vm1, %v486_v24, 0  ;;  %v1115_v1 = vmov 0.0   ;;  %vm824_vm4 = vcmask 257024  }
   0x3   :  { %v1039_v3 = vld [vmem:[%s1509_s1 + $0x38] sm:$0xff]   ;;  %1022 = vmatpush1.bf16.msra.mxu1 %v1143_v2  ;;  %v1042_v6 = vld [vmem:[%s1509_s1 + $0x30] sm:$0xff]   ;;  %v1045_v9 = vld [vmem:[%s1509_s1 + $0x28] sm:$0xff]   ;;  %22 = vst.msk [vmem:[#allocation2 + $0x10] sm:$0xff] %vm19_vm3, %v1115_v1 }
   0x4   :  { %947 = vmatpush3.bf16.msra.mxu0 %v1039_v3  ;;  %1011 = vmatprep.subr.bf16.mxu1 %v1113_v0  ;;  %v1046_v10 = vld [vmem:[%s1509_s1 + $0x60] sm:$0xff]   ;;  %v1049_v13 = vld [vmem:[%s1509_s1 + $0x58] sm:$0xff]   ;;  %v1052_v16 = vld [vmem:[%s1509_s1 + $0x50] sm:$0xff]   ;;  %20 = vst.msk [vmem:[#allocation2] sm:$0xff] %vm19_vm3, %v1115_v1 }
   0x5   :  { %948 = vmatprep.subr.bf16.mxu0 %v1040_v4  ;;  %v1181_v11 = vld [vmem:[%s1509_s1 + $0xa0] sm:$0xff]   ;;  %v1194_v14 = vld [vmem:[%s1509_s1 + $0x98] sm:$0xff]   ;;  %v1207_v17 = vld [vmem:[%s1509_s1 + $0x90] sm:$0xff]   ;;  %21 = vst.msk [vmem:[#allocation2 + $0x8] sm:$0xff] %vm19_vm3, %v1115_v1 }
   0x6   :  { %v1048_v12 = vld [vmem:[%s1509_s1 + $0x20] sm:$0xff]   ;;  %v1051_v15 = vld [vmem:[%s1509_s1 + $0x18] sm:$0xff]   ;;  %v1054_v18 = vld [vmem:[%s1509_s1 + $0x10] sm:$0xff]   ;;  %23 = vst.msk [vmem:[#allocation2 + $0x18] sm:$0xff] %vm19_vm3, %v1115_v1 }
   0x7   :  { %1023 = vmatpush1.bf16.msra.mxu1 %v1156_v5  ;;  %v1055_v19 = vld [vmem:[%s1509_s1 + $0x48] sm:$0xff]   ;;  %v1058_v22 = vld [vmem:[%s1509_s1 + $0x40] sm:$0xff]   ;;  %v1064_v27 = vld [vmem:[%s1509_s1 + $0xd8] sm:$0x1f]   ;;  %24 = vst.msk [vmem:[#allocation2 + $0x20] sm:$0xff] %vm19_vm3, %v1115_v1 }
   0x8   :  { %949 = vmatpush3.bf16.msra.mxu0 %v1042_v6  ;;  %1012 = vmatprep.subr.bf16.mxu1 %v1113_v0  ;;  %v1219_v20 = vld [vmem:[%s1509_s1 + $0x88] sm:$0xff]   ;;  %v1063_v25 = vld [vmem:[%s1510_s0 + $0x4] ss:$16 sps:$4 sm:$0xff]   ;;  %v1061_v30 = vld [vmem:[%s1510_s0] ss:$16 sps:$4 sm:$0xff]   ;;  %v489_v31 = vand.u32 %v1064_v27, %v487_v29  ;;  %25 = vst.msk [vmem:[#allocation2 + $0x28] sm:$0xff] %vm19_vm3, %v1115_v1 }
   0x9   :  { %950 = vmatprep.subr.bf16.mxu0 %v1043_v7  ;;  %v1057_v21 = vld [vmem:[%s1509_s1 + $0x8] sm:$0xff]   ;;  %v1235_v26 = vld [vmem:[%s1509_s1 + $0x80] sm:$0xff]   ;;  %523 = vmatprep.mubr.bf16.mxu0 %v1063_v25  ;;  %v1065_v34 = vld [vmem:[%s1509_s1 + $0xd0] sm:$0xff]   ;;  %26 = vst.msk [vmem:[#allocation2 + $0x30] sm:$0xff] %vm19_vm3, %v1115_v1 }
   0xa   :  { %v1060_v28 = vld [vmem:[%s1509_s1] sm:$0xff]   ;;  %v1073_v32 = vld [vmem:[%s1510_s0 + $0x2c] ss:$16 sps:$4 sm:$0xff]   ;;  %v1071_v39 = vld [vmem:[%s1510_s0 + $0x28] ss:$16 sps:$4 sm:$0xff]   ;;  %27 = vst.msk [vmem:[#allocation2 + $0x38] sm:$0xff] %vm19_vm3, %v1115_v1 }
   0xb   :  { %1024 = vmatpush1.bf16.msra.mxu1 %v1168_v8  ;;  %v1066_v33 = vld [vmem:[%s1510_s0 + $0x24] ss:$16 sps:$4 sm:$0xff]   ;;  %906 = vmatprep.mubr.msk.bf16.mxu1 %vm459_vm2, %v1073_v32  ;;  %v1068_v35 = vld [vmem:[%s1510_s0 + $0x20] ss:$16 sps:$4 sm:$0xff]   ;;  %v1069_v36 = vld [vmem:[%s1509_s1 + $0xc8] sm:$0xff]   ;;  %28 = vst.msk [vmem:[#allocation2 + $0x40] sm:$0xff] %vm19_vm3, %v1115_v1 }
   0xc   :  { %951 = vmatpush3.bf16.msra.mxu0 %v1045_v9  ;;  %1013 = vmatprep.subr.bf16.mxu1 %v1113_v0  ;;  %v1074_v37 = vld [vmem:[%s1510_s0 + $0x44] ss:$16 sps:$4 sm:$0xff]   ;;  %v1076_v40 = vld [vmem:[%s1510_s0 + $0x40] ss:$16 sps:$4 sm:$0xff]   ;;  %v1077_v41 = vld [vmem:[%s1510_s0 + $0x4c] ss:$16 sps:$4 sm:$0xff]  }
   0xd   :  { %952 = vmatprep.subr.bf16.mxu0 %v1046_v10  ;;  %v1070_v38 = vld [vmem:[%s1509_s1 + $0xc0] sm:$0xff]   ;;  %v1081_v43 = vld [vmem:[%s1510_s0 + $0x48] ss:$16 sps:$4 sm:$0xff]   ;;  %v1083_v45 = vld [vmem:[%s1510_s0 + $0x6c] ss:$16 sps:$4 sm:$0xff]   ;;  %29 = vst.msk [vmem:[#allocation2 + $0x48] sm:$0xff] %vm19_vm3, %v1115_v1 }
   0xe   :  { %v1079_v42 = vld [vmem:[%s1510_s0 + $0x64] ss:$16 sps:$4 sm:$0xff]   ;;  %v1082_v44 = vld [vmem:[%s1510_s0 + $0x60] ss:$16 sps:$4 sm:$0xff]   ;;  %v1087_v47 = vld [vmem:[%s1510_s0 + $0x68] ss:$16 sps:$4 sm:$0xff]  }
   0xf   :  { %1025 = vmatpush1.bf16.msra.mxu1 %v1181_v11  ;;  %v1085_v46 = vld [vmem:[%s1510_s0 + $0x84] ss:$16 sps:$4 sm:$0xff]   ;;  %v1088_v48 = vld [vmem:[%s1510_s0 + $0x80] ss:$16 sps:$4 sm:$0xff]   ;;  %v1089_v49 = vld [vmem:[%s1510_s0 + $0x8c] ss:$16 sps:$4 sm:$0xff]  }
  0x10   :  { %953 = vmatpush3.bf16.msra.mxu0 %v1048_v12  ;;  %1014 = vmatprep.subr.bf16.mxu1 %v1113_v0  ;;  %v1091_v50 = vld [vmem:[%s1510_s0 + $0xa4] ss:$16 sps:$4 sm:$0xff]   ;;  %v1093_v51 = vld [vmem:[%s1510_s0 + $0x88] ss:$16 sps:$4 sm:$0xff]   ;;  %v1094_v52 = vld [vmem:[%s1510_s0 + $0xa0] ss:$16 sps:$4 sm:$0xff]  }
  0x11   :  { %954 = vmatprep.subr.bf16.mxu0 %v1049_v13  ;;  %v1095_v53 = vld [vmem:[%s1510_s0 + $0xac] ss:$16 sps:$4 sm:$0xff]   ;;  %v1097_v54 = vld [vmem:[%s1510_s0 + $0xc4] ss:$16 sps:$4 sm:$0xff]   ;;  %v1099_v55 = vld [vmem:[%s1510_s0 + $0xa8] ss:$16 sps:$4 sm:$0xff]  }
  0x12   :  { %v1100_v56 = vld [vmem:[%s1510_s0 + $0xc0] ss:$16 sps:$4 sm:$0xff]   ;;  %v1101_v57 = vld [vmem:[%s1510_s0 + $0xcc] ss:$16 sps:$4 sm:$0xff]   ;;  %v1103_v58 = vld [vmem:[%s1510_s0 + $0xe4] ss:$16 sps:$4 sm:$0xff]  }
  0x13   :  { %1026 = vmatpush1.bf16.msra.mxu1 %v1194_v14  ;;  %v1105_v59 = vld [vmem:[%s1510_s0 + $0xc8] ss:$16 sps:$4 sm:$0xff]   ;;  %v1106_v60 = vld [vmem:[%s1510_s0 + $0xe0] ss:$16 sps:$4 sm:$0xff]   ;;  %v1107_v61 = vld [vmem:[%s1510_s0 + $0xec] ss:$16 sps:$4 sm:$0xff]  }
  0x14   :  { %955 = vmatpush3.bf16.msra.mxu0 %v1051_v15  ;;  %1015 = vmatprep.subr.bf16.mxu1 %v1113_v0  ;;  %v1111_v62 = vld [vmem:[%s1510_s0 + $0xc] ss:$16 sps:$4 sm:$0xff]   ;;  %v1112_v63 = vld [vmem:[%s1510_s0 + $0xe8] ss:$16 sps:$4 sm:$0xff]   ;;  %30 = vst.msk [vmem:[#allocation2 + $0x50] sm:$0xff] %vm19_vm3, %v1115_v1  ;;  %31 = vst.msk [vmem:[#allocation2 + $0x58] sm:$0xff] %vm19_vm3, %v1115_v1 }
  0x15   :  { %956 = vmatprep.subr.bf16.mxu0 %v1052_v16  ;;  %32 = vst.msk [vmem:[#allocation2 + $0x60] sm:$0xff] %vm19_vm3, %v1115_v1  ;;  %33 = vst.msk [vmem:[#allocation2 + $0x68] sm:$0xff] %vm19_vm3, %v1115_v1  ;;  %v72_v27 = vld [vmem:[#allocation2 + $0x20] sm:$0xff] }
  0x16   :  { %34 = vst.msk [vmem:[#allocation2 + $0x70] sm:$0xff] %vm19_vm3, %v1115_v1  ;;  %35 = vst.msk [vmem:[#allocation2 + $0x78] sm:$0xff] %vm19_vm3, %v1115_v1 }
  0x17   :  { %1027 = vmatpush1.bf16.msra.mxu1 %v1207_v17 }
  0x18   :  { %957 = vmatpush3.bf16.msra.mxu0 %v1054_v18  ;;  %1016 = vmatprep.subr.bf16.mxu1 %v1113_v0 }
  0x19   :  { %958 = vmatprep.subr.bf16.mxu0 %v1055_v19  ;;  %v71_v19 = vld [vmem:[#allocation2 + $0x18] sm:$0xff] }
  0x1b   :  { %1028 = vmatpush1.bf16.msra.mxu1 %v1219_v20 }
  0x1c   :  { %959 = vmatpush3.bf16.msra.mxu0 %v1057_v21  ;;  %1017 = vmatprep.subr.bf16.mxu1 %v1113_v0 }
  0x1d   :  { %960 = vmatprep.subr.bf16.mxu0 %v1058_v22 }
  0x1f   :  { %1029 = vmatpush1.bf16.msra.mxu1 %v1235_v26 }
  0x20   :  { %961 = vmatpush3.bf16.msra.mxu0 %v1060_v28  ;;  %1018 = vmatprep.subr.bf16.mxu1 %v1113_v0 }
  0x21   :  { %588 = vmatprep.subr.bf16.mxu0 %v1113_v0 }
  0x23   :  { %524 = vmatmul.mubr.bf16.vlgmr.msra.gmra.mxu0 %v1061_v30  ;;  %1030 = vmatpush2.bf16.msra.mxu1 %v489_v31 }
  0x24   :  { %589 = vmatpush1.bf16.msra.mxu0 %v1143_v2  ;;  %1019 = vmatprep.subr.bf16.mxu1 %v1113_v0 }
  0x25   :  { %590 = vmatprep.subr.bf16.mxu0 %v1113_v0  ;;  %531 = vmatprep.mubr.bf16.mxu0 %v1066_v33 }
  0x27   :  { %1031 = vmatpush2.bf16.msra.mxu1 %v1065_v34 }
  0x28   :  { %591 = vmatpush1.bf16.msra.mxu0 %v1156_v5  ;;  %1020 = vmatprep.subr.bf16.mxu1 %v1113_v0 }
  0x29   :  { %592 = vmatprep.subr.bf16.mxu0 %v1113_v0 }
  0x2b   :  { %532 = vmatmul.mubr.bf16.gmra.mxu0 %v1068_v35  ;;  %1032 = vmatpush2.bf16.msra.mxu1 %v1069_v36 }
  0x2c   :  { %1021 = vmatprep.subr.bf16.mxu1 %v1113_v0  ;;  %593 = vmatpush1.bf16.msra.mxu0 %v1168_v8 }
  0x2d   :  { %539 = vmatprep.mubr.bf16.mxu0 %v1074_v37  ;;  %594 = vmatprep.subr.bf16.mxu0 %v1113_v0  ;;  %v73_v37 = vld [vmem:[#allocation2 + $0x28] sm:$0xff] }
  0x2f   :  { %1033 = vmatpush2.bf16.msra.mxu1 %v1070_v38 }
  0x30   :  { %595 = vmatpush1.bf16.msra.mxu0 %v1181_v11  ;;  %v70_v11 = vld [vmem:[#allocation2 + $0x10] sm:$0xff] }
  0x31   :  { %596 = vmatprep.subr.bf16.mxu0 %v1113_v0 }
  0x32   :  { %629 = vmatmul.mubr.bf16.vlgmr.msra.gmra.mxu1 %v1071_v39 }
  0x33   :  { %540 = vmatmul.mubr.bf16.gmra.mxu0 %v1076_v40  ;;  %907 = vmatprep.mubr.msk.bf16.mxu1 %vm459_vm2, %v1077_v41 }
  0x34   :  { %547 = vmatprep.mubr.bf16.mxu0 %v1079_v42  ;;  %597 = vmatpush1.bf16.msra.mxu0 %v1194_v14 }
  0x35   :  { %598 = vmatprep.subr.bf16.mxu0 %v1113_v0 }
  0x38   :  { %599 = vmatpush1.bf16.msra.mxu0 %v1207_v17 }
  0x39   :  { %600 = vmatprep.subr.bf16.mxu0 %v1113_v0 }
  0x3a   :  { %637 = vmatmul.mubr.bf16.gmra.mxu1 %v1081_v43 }
  0x3b   :  { %548 = vmatmul.mubr.bf16.gmra.mxu0 %v1082_v44  ;;  %908 = vmatprep.mubr.msk.bf16.mxu1 %vm459_vm2, %v1083_v45 }
  0x3c   :  { %555 = vmatprep.mubr.bf16.mxu0 %v1085_v46  ;;  %601 = vmatpush1.bf16.msra.mxu0 %v1219_v20 }
  0x3d   :  { %602 = vmatprep.subr.bf16.mxu0 %v1113_v0 }
  0x40   :  { %603 = vmatpush1.bf16.msra.mxu0 %v1235_v26 }
  0x41   :  { %612 = vmatprep.subr.bf16.mxu0 %v1113_v0 }
  0x42   :  { %645 = vmatmul.mubr.bf16.gmra.mxu1 %v1087_v47 }
  0x43   :  { %556 = vmatmul.mubr.bf16.gmra.mxu0 %v1088_v48  ;;  %909 = vmatprep.mubr.msk.bf16.mxu1 %vm459_vm2, %v1089_v49  ;;  %v74_v48 = vld [vmem:[#allocation2 + $0x30] sm:$0xff] }
  0x44   :  { %563 = vmatprep.mubr.bf16.mxu0 %v1091_v50  ;;  %613 = vmatpush2.bf16.msra.mxu0 %v489_v31  ;;  %v1409_v31 = vld [vmem:[%s1511_s2] ss:$0 sm:$0xff] }
  0x45   :  { %614 = vmatprep.subr.bf16.mxu0 %v1113_v0 }
  0x48   :  { %615 = vmatpush2.bf16.msra.mxu0 %v1065_v34 }
  0x49   :  { %616 = vmatprep.subr.bf16.mxu0 %v1113_v0 }
  0x4a   :  { %653 = vmatmul.mubr.bf16.gmra.mxu1 %v1093_v51 }
  0x4b   :  { %564 = vmatmul.mubr.bf16.gmra.mxu0 %v1094_v52  ;;  %910 = vmatprep.mubr.msk.bf16.mxu1 %vm459_vm2, %v1095_v53 }
  0x4c   :  { %571 = vmatprep.mubr.bf16.mxu0 %v1097_v54  ;;  %617 = vmatpush2.bf16.msra.mxu0 %v1069_v36 }
  0x4d   :  { %618 = vmatprep.subr.bf16.mxu0 %v1113_v0  ;;  %v1109_v0 = vld [vmem:[%s1510_s0 + $0x8] ss:$16 sps:$4 sm:$0xff]  }
  0x50   :  { %619 = vmatpush2.bf16.msra.mxu0 %v1070_v38 }
  0x52   :  { %661 = vmatmul.mubr.bf16.gmra.mxu1 %v1099_v55 }
  0x53   :  { %572 = vmatmul.mubr.bf16.gmra.mxu0 %v1100_v56  ;;  %911 = vmatprep.mubr.msk.bf16.mxu1 %vm459_vm2, %v1101_v57 }
  0x54   :  { %579 = vmatprep.mubr.bf16.mxu0 %v1103_v58 }
  0x5a   :  { %669 = vmatmul.mubr.bf16.gmra.mxu1 %v1105_v59  ;;  %v75_v59 = vld [vmem:[#allocation2 + $0x38] sm:$0xff] }
  0x5b   :  { %580 = vmatmul.mubr.bf16.gmra.mxu0 %v1106_v60  ;;  %912 = vmatprep.mubr.msk.bf16.mxu1 %vm459_vm2, %v1107_v61 }
  0x5c   :  { %905 = vmatprep.mubr.msk.bf16.mxu0 %vm459_vm2, %v1111_v62 }
  0x62   :  { %677 = vmatmul.mubr.bf16.gmra.mxu1 %v1112_v63 }
  0x63   :  { %621 = vmatmul.mubr.bf16.vlgmr.msra.gmra.mxu0 %v1109_v0 }
  0xe3   :  { %v1396_v2 = vpop.f32.mrf.mxu0 }
  0xe5   :  { %v1398_v3 = vpop.f32.mrf.mxu0 }
  0xe7   :  { %v1400_v4 = vpop.f32.mrf.mxu0 }
  0xe9   :  { %v1402_v5 = vpop.f32.mrf.mxu0 }
  0xeb   :  { %v968_v6 = vpop.f32.mrf.mxu0 }
  0xed   :  { %v969_v7 = vpop.f32.mrf.mxu0 }
  0xee   :  { %v970_v9 = vadd.f32 %v969_v7, %v968_v6 }
  0xef   :  { %v971_v8 = vpop.f32.mrf.mxu0 }
  0xf1   :  { %v972_v10 = vpop.f32.mrf.mxu0 }
  0xf2   :  { %v630_v12 = vpop.f32.mrf.mxu1  ;;  %v973_v16 = vadd.f32 %v972_v10, %v971_v8  ;;  %v76_v10 = vld [vmem:[#allocation2 + $0x40] sm:$0xff] }
  0xf3   :  { %v631_v13 = vadd.f32 %v970_v9, %v630_v12  ;;  %v974_v14 = vpop.f32.mrf.mxu0 }
  0xf4   :  { %v632_v15 = vpop.f32.mrf.mxu1 }
  0xf5   :  { %v687_v17 = vadd.f32 %v631_v13, %v70_v11  ;;  %v975_v18 = vpop.f32.mrf.mxu0 }
  0xf6   :  { %v633_v20 = vpop.f32.mrf.mxu1  ;;  %v976_v24 = vadd.f32 %v975_v18, %v974_v14 }
  0xf7   :  { %704 = vst.msk [vmem:[#allocation2 + $0x10] sm:$0xff] %vm19_vm3, %v687_v17  ;;  %v634_v21 = vadd.f32 %v973_v16, %v633_v20  ;;  %v977_v22 = vpop.f32.mrf.mxu0 }
  0xf8   :  { %v635_v23 = vpop.f32.mrf.mxu1 }
  0xf9   :  { %v688_v25 = vadd.f32 %v634_v21, %v71_v19  ;;  %v978_v26 = vpop.f32.mrf.mxu0  ;;  %v77_v21 = vld [vmem:[#allocation2 + $0x48] sm:$0xff] }
  0xfa   :  { %v638_v28 = vpop.f32.mrf.mxu1  ;;  %v979_v33 = vadd.f32 %v978_v26, %v977_v22 }
  0xfb   :  { %705 = vst.msk [vmem:[#allocation2 + $0x18] sm:$0xff] %vm19_vm3, %v688_v25  ;;  %v639_v29 = vadd.f32 %v976_v24, %v638_v28  ;;  %v980_v30 = vpop.f32.mrf.mxu0 }
  0xfc   :  { %v640_v32 = vpop.f32.mrf.mxu1 }
  0xfd   :  { %v689_v34 = vadd.f32 %v639_v29, %v72_v27  ;;  %v981_v35 = vpop.f32.mrf.mxu0 }
  0xfe   :  { %v723_v36 = vld [vmem:[#allocation2 + $0x10] sm:$0xff]  ;;  %v641_v38 = vpop.f32.mrf.mxu1  ;;  %v982_v44 = vadd.f32 %v981_v35, %v980_v30 }
  0xff   :  { %v746_v39 = vadd.f32 %v1409_v31, %v723_v36  ;;  %706 = vst.msk [vmem:[#allocation2 + $0x20] sm:$0xff] %vm19_vm3, %v689_v34  ;;  %v642_v40 = vadd.f32 %v979_v33, %v641_v38  ;;  %v983_v41 = vpop.f32.mrf.mxu0  ;;  %v78_v33 = vld [vmem:[#allocation2 + $0x50] sm:$0xff] }
 0x100   :  { %v643_v42 = vpop.f32.mrf.mxu1 }
 0x101   :  { %v932_v43 = vpack.c.bf16 %v746_v39, %v746_v39  ;;  %v690_v45 = vadd.f32 %v642_v40, %v73_v37  ;;  %v984_v46 = vpop.f32.mrf.mxu0 }
 0x102   :  { %v724_v47 = vld [vmem:[#allocation2 + $0x18] sm:$0xff]  ;;  %v646_v49 = vpop.f32.mrf.mxu1  ;;  %v985_v55 = vadd.f32 %v984_v46, %v983_v41 }
 0x103   :  { %827 = vst.msk [vmem:[%s1512_s3 + $0x8] sm:$0xf] %vm824_vm4, %v932_v43  ;;  %v747_v50 = vadd.f32 %v1409_v31, %v724_v47  ;;  %v647_v51 = vadd.f32 %v982_v44, %v646_v49  ;;  %v986_v52 = vpop.f32.mrf.mxu0  ;;  %v79_v44 = vld [vmem:[#allocation2 + $0x58] sm:$0xff] }
 0x104   :  { %707 = vst.msk [vmem:[#allocation2 + $0x28] sm:$0xff] %vm19_vm3, %v690_v45  ;;  %v648_v53 = vpop.f32.mrf.mxu1 }
 0x105   :  { %v933_v54 = vpack.c.bf16 %v747_v50, %v747_v50  ;;  %v691_v56 = vadd.f32 %v647_v51, %v74_v48  ;;  %v987_v57 = vpop.f32.mrf.mxu0 }
 0x106   :  { %v725_v58 = vld [vmem:[#allocation2 + $0x20] sm:$0xff]  ;;  %v649_v60 = vpop.f32.mrf.mxu1  ;;  %v988_v6 = vadd.f32 %v987_v57, %v986_v52 }
 0x107   :  { %828 = vst.msk [vmem:[%s1512_s3 + $0xc] sm:$0xf] %vm824_vm4, %v933_v54  ;;  %v748_v61 = vadd.f32 %v1409_v31, %v725_v58  ;;  %v650_v62 = vadd.f32 %v985_v55, %v649_v60  ;;  %v989_v63 = vpop.f32.mrf.mxu0  ;;  %v80_v55 = vld [vmem:[#allocation2 + $0x60] sm:$0xff] }
 0x108   :  { %708 = vst.msk [vmem:[#allocation2 + $0x30] sm:$0xff] %vm19_vm3, %v691_v56  ;;  %v651_v0 = vpop.f32.mrf.mxu1 }
 0x109   :  { %v934_v1 = vpack.c.bf16 %v748_v61, %v748_v61  ;;  %v692_v7 = vadd.f32 %v650_v62, %v75_v59  ;;  %v990_v8 = vpop.f32.mrf.mxu0 }
 0x10a   :  { %v654_v11 = vpop.f32.mrf.mxu1  ;;  %v991_v17 = vadd.f32 %v990_v8, %v989_v63 }
 0x10b   :  { %v726_v9 = vld [vmem:[#allocation2 + $0x28] sm:$0xff]  ;;  %829 = vst.msk [vmem:[%s1512_s3 + $0x10] sm:$0xf] %vm824_vm4, %v934_v1  ;;  %v655_v13 = vadd.f32 %v988_v6, %v654_v11  ;;  %v992_v14 = vpop.f32.mrf.mxu0 }
 0x10c   :  { %v749_v12 = vadd.f32 %v1409_v31, %v726_v9  ;;  %709 = vst.msk [vmem:[#allocation2 + $0x38] sm:$0xff] %vm19_vm3, %v692_v7  ;;  %v656_v15 = vpop.f32.mrf.mxu1  ;;  %v81_v6 = vld [vmem:[#allocation2 + $0x68] sm:$0xff] }
 0x10d   :  { %v693_v18 = vadd.f32 %v655_v13, %v76_v10  ;;  %v993_v19 = vpop.f32.mrf.mxu0 }
 0x10e   :  { %v935_v16 = vpack.c.bf16 %v749_v12, %v749_v12  ;;  %v657_v22 = vpop.f32.mrf.mxu1  ;;  %v994_v28 = vadd.f32 %v993_v19, %v992_v14 }
 0x10f   :  { %v727_v20 = vld [vmem:[#allocation2 + $0x30] sm:$0xff]  ;;  %710 = vst.msk [vmem:[#allocation2 + $0x40] sm:$0xff] %vm19_vm3, %v693_v18  ;;  %v658_v24 = vadd.f32 %v991_v17, %v657_v22  ;;  %v995_v25 = vpop.f32.mrf.mxu0  ;;  %v68_v22 = vld [vmem:[#allocation2] sm:$0xff] }
 0x110   :  { %830 = vst.msk [vmem:[%s1512_s3 + $0x14] sm:$0xf] %vm824_vm4, %v935_v16  ;;  %v750_v23 = vadd.f32 %v1409_v31, %v727_v20  ;;  %v659_v26 = vpop.f32.mrf.mxu1  ;;  %v964_v16 = vadd.f32 %v1398_v3, %v1396_v2  ;;  %v82_v18 = vld [vmem:[#allocation2 + $0x70] sm:$0xff] }
 0x111   :  { %v694_v29 = vadd.f32 %v658_v24, %v77_v21  ;;  %v996_v30 = vpop.f32.mrf.mxu0 }
 0x112   :  { %v936_v27 = vpack.c.bf16 %v750_v23, %v750_v23  ;;  %v662_v34 = vpop.f32.mrf.mxu1  ;;  %v997_v40 = vadd.f32 %v996_v30, %v995_v25 }
 0x113   :  { %v728_v32 = vld [vmem:[#allocation2 + $0x38] sm:$0xff]  ;;  %711 = vst.msk [vmem:[#allocation2 + $0x48] sm:$0xff] %vm19_vm3, %v694_v29  ;;  %v663_v36 = vadd.f32 %v994_v28, %v662_v34  ;;  %v998_v37 = vpop.f32.mrf.mxu0  ;;  %v967_v28 = vadd.f32 %v1402_v5, %v1400_v4 }
 0x114   :  { %831 = vst.msk [vmem:[%s1512_s3 + $0x18] sm:$0xf] %vm824_vm4, %v936_v27  ;;  %v751_v35 = vadd.f32 %v1409_v31, %v728_v32  ;;  %v664_v38 = vpop.f32.mrf.mxu1  ;;  %v83_v32 = vld [vmem:[#allocation2 + $0x78] sm:$0xff] }
 0x115   :  { %v695_v41 = vadd.f32 %v663_v36, %v78_v33  ;;  %v999_v42 = vpop.f32.mrf.mxu0  ;;  %v69_v36 = vld [vmem:[#allocation2 + $0x8] sm:$0xff] }
 0x116   :  { %v937_v39 = vpack.c.bf16 %v751_v35, %v751_v35  ;;  %v729_v43 = vld [vmem:[#allocation2 + $0x40] sm:$0xff]  ;;  %v665_v45 = vpop.f32.mrf.mxu1  ;;  %v1000_v51 = vadd.f32 %v999_v42, %v998_v37 }
 0x117   :  { %v752_v46 = vadd.f32 %v1409_v31, %v729_v43  ;;  %712 = vst.msk [vmem:[#allocation2 + $0x50] sm:$0xff] %vm19_vm3, %v695_v41  ;;  %v666_v47 = vadd.f32 %v997_v40, %v665_v45  ;;  %v1001_v48 = vpop.f32.mrf.mxu0 }
 0x118   :  { %832 = vst.msk [vmem:[%s1512_s3 + $0x1c] sm:$0xf] %vm824_vm4, %v937_v39  ;;  %v667_v49 = vpop.f32.mrf.mxu1 }
 0x119   :  { %v938_v50 = vpack.c.bf16 %v752_v46, %v752_v46  ;;  %v696_v52 = vadd.f32 %v666_v47, %v79_v44  ;;  %v1002_v53 = vpop.f32.mrf.mxu0 }
 0x11a   :  { %v730_v54 = vld [vmem:[#allocation2 + $0x48] sm:$0xff]  ;;  %v670_v56 = vpop.f32.mrf.mxu1  ;;  %v1003_v62 = vadd.f32 %v1002_v53, %v1001_v48 }
 0x11b   :  { %833 = vst.msk [vmem:[%s1512_s3 + $0x20] sm:$0xf] %vm824_vm4, %v938_v50  ;;  %v753_v57 = vadd.f32 %v1409_v31, %v730_v54  ;;  %v671_v58 = vadd.f32 %v1000_v51, %v670_v56  ;;  %v1004_v59 = vpop.f32.mrf.mxu0 }
 0x11c   :  { %713 = vst.msk [vmem:[#allocation2 + $0x58] sm:$0xff] %vm19_vm3, %v696_v52  ;;  %v672_v60 = vpop.f32.mrf.mxu1 }
 0x11d   :  { %v939_v61 = vpack.c.bf16 %v753_v57, %v753_v57  ;;  %v697_v63 = vadd.f32 %v671_v58, %v80_v55  ;;  %v1005_v0 = vpop.f32.mrf.mxu0 }
 0x11e   :  { %v731_v1 = vld [vmem:[#allocation2 + $0x50] sm:$0xff]  ;;  %v673_v7 = vpop.f32.mrf.mxu1  ;;  %v1006_v13 = vadd.f32 %v1005_v0, %v1004_v59 }
 0x11f   :  { %834 = vst.msk [vmem:[%s1512_s3 + $0x24] sm:$0xf] %vm824_vm4, %v939_v61  ;;  %v754_v8 = vadd.f32 %v1409_v31, %v731_v1  ;;  %v674_v9 = vadd.f32 %v1003_v62, %v673_v7  ;;  %v1007_v10 = vpop.f32.mrf.mxu0 }
 0x120   :  { %714 = vst.msk [vmem:[#allocation2 + $0x60] sm:$0xff] %vm19_vm3, %v697_v63  ;;  %v675_v11 = vpop.f32.mrf.mxu1 }
 0x121   :  { %v940_v12 = vpack.c.bf16 %v754_v8, %v754_v8  ;;  %v698_v14 = vadd.f32 %v674_v9, %v81_v6  ;;  %v1008_v15 = vpop.f32.mrf.mxu0 }
 0x122   :  { %v678_v19 = vpop.f32.mrf.mxu1  ;;  %v1009_v27 = vadd.f32 %v1008_v15, %v1007_v10 }
 0x123   :  { %v732_v17 = vld [vmem:[#allocation2 + $0x58] sm:$0xff]  ;;  %835 = vst.msk [vmem:[%s1512_s3 + $0x28] sm:$0xf] %vm824_vm4, %v940_v12  ;;  %v679_v21 = vadd.f32 %v1006_v13, %v678_v19  ;;  %v622_v23 = vpop.f32.mrf.mxu0 }
 0x124   :  { %v755_v20 = vadd.f32 %v1409_v31, %v732_v17  ;;  %715 = vst.msk [vmem:[#allocation2 + $0x68] sm:$0xff] %vm19_vm3, %v698_v14  ;;  %v623_v24 = vadd.f32 %v964_v16, %v622_v23  ;;  %v680_v25 = vpop.f32.mrf.mxu1 }
 0x125   :  { %v699_v2 = vadd.f32 %v679_v21, %v82_v18  ;;  %v624_v3 = vpop.f32.mrf.mxu0 }
 0x126   :  { %v941_v26 = vpack.c.bf16 %v755_v20, %v755_v20  ;;  %v685_v30 = vadd.f32 %v623_v24, %v68_v22  ;;  %v681_v33 = vpop.f32.mrf.mxu1 }
 0x127   :  { %v733_v29 = vld [vmem:[#allocation2 + $0x60] sm:$0xff]  ;;  %716 = vst.msk [vmem:[#allocation2 + $0x70] sm:$0xff] %vm19_vm3, %v699_v2  ;;  %v682_v35 = vadd.f32 %v1009_v27, %v681_v33  ;;  %v625_v37 = vpop.f32.mrf.mxu0 }
 0x128   :  { %836 = vst.msk [vmem:[%s1512_s3 + $0x2c] sm:$0xf] %vm824_vm4, %v941_v26  ;;  %v756_v34 = vadd.f32 %v1409_v31, %v733_v29  ;;  %v626_v38 = vadd.f32 %v967_v28, %v625_v37  ;;  %v683_v4 = vpop.f32.mrf.mxu1 }
 0x129   :  { %702 = vst.msk [vmem:[#allocation2] sm:$0xff] %vm19_vm3, %v685_v30  ;;  %v700_v39 = vadd.f32 %v682_v35, %v83_v32  ;;  %v627_v40 = vpop.f32.mrf.mxu0 }
 0x12a   :  { %v942_v5 = vpack.c.bf16 %v756_v34, %v756_v34  ;;  %v686_v42 = vadd.f32 %v626_v38, %v69_v36 }
 0x12b   :  { %v734_v41 = vld [vmem:[#allocation2 + $0x68] sm:$0xff]  ;;  %717 = vst.msk [vmem:[#allocation2 + $0x78] sm:$0xff] %vm19_vm3, %v700_v39 }
 0x12c   :  { %837 = vst.msk [vmem:[%s1512_s3 + $0x30] sm:$0xf] %vm824_vm4, %v942_v5  ;;  %v757_v43 = vadd.f32 %v1409_v31, %v734_v41 }
 0x12d   :  { %703 = vst.msk [vmem:[#allocation2 + $0x8] sm:$0xff] %vm19_vm3, %v686_v42 }
 0x12e   :  { %v943_v44 = vpack.c.bf16 %v757_v43, %v757_v43  ;;  %v735_v45 = vld [vmem:[#allocation2 + $0x70] sm:$0xff] }
 0x12f   :  { %v758_v46 = vadd.f32 %v1409_v31, %v735_v45 }
 0x130   :  { %838 = vst.msk [vmem:[%s1512_s3 + $0x34] sm:$0xf] %vm824_vm4, %v943_v44  ;;  %v721_v47 = vld [vmem:[#allocation2] sm:$0xff] }
 0x131   :  { %v744_v48 = vadd.f32 %v1409_v31, %v721_v47  ;;  %v944_v49 = vpack.c.bf16 %v758_v46, %v758_v46 }
 0x132   :  { %v736_v51 = vld [vmem:[#allocation2 + $0x78] sm:$0xff] }
 0x133   :  { %v930_v50 = vpack.c.bf16 %v744_v48, %v744_v48  ;;  %839 = vst.msk [vmem:[%s1512_s3 + $0x38] sm:$0xf] %vm824_vm4, %v944_v49  ;;  %v759_v52 = vadd.f32 %v1409_v31, %v736_v51 }
 0x134   :  { %v722_v53 = vld [vmem:[#allocation2 + $0x8] sm:$0xff] }
 0x135   :  { %825 = vst.msk [vmem:[%s1512_s3] sm:$0xf] %vm824_vm4, %v930_v50  ;;  %v745_v54 = vadd.f32 %v1409_v31, %v722_v53  ;;  %v945_v55 = vpack.c.bf16 %v759_v52, %v759_v52 }
 0x137   :  { %v931_v56 = vpack.c.bf16 %v745_v54, %v745_v54  ;;  %840 = vst.msk [vmem:[%s1512_s3 + $0x3c] sm:$0xf] %vm824_vm4, %v945_v55 }
 0x139   :  { %826 = vst.msk [vmem:[%s1512_s3 + $0x4] sm:$0xf] %vm824_vm4, %v931_v56 }

// kernel: _lambda_.30
= control target key start
LH: loop header
LB: loop body
LE: loop exit
PB: predicated region body
PF: predicated region fallthrough
CT: control target
= control target key end

     0   :  { %s462_s9 = smov 0   ;;  %s528_s0 = inlined_call_operand.vmem [shape: bf16[2,9,16,32], index: 0, kind: input, shape index: {}]   ;;  %s529_s1 = inlined_call_operand.vmem [shape: f32[9,1,32], index: 1, kind: input, shape index: {}]   ;;  %s530_s2 = inlined_call_operand.vmem [shape: bf16[2,16,32], index: 2, kind: output, shape index: {}]  }
   0x1 LB: > { %s362_s10 = sadd.s32 4294967295, %s445_s9   ;;  %p366_p0 = scmp.ge.s32.totalorder %s445_s9, 1  ;;  %s445_s9 = sphi %s462_s9, %s12_s9  }
   0x2   : > { %p112_p1 = scmp.lt.s32.totalorder %s445_s9, 3 }
   0x4   : > { %p113_p2 = pnand %p366_p0, %p112_p1 }
   0x5   : > { %p134_p3 = scmp.lt.s32.totalorder (!%p113_p2), %s362_s10, 1 }
   0x6   : > { %116 = sbr.rel (%p113_p2) target bundleno = 45 (0x2d), region = 28 }
   0xb   : > { %s532_s10 = smov (!%p134_p3, %s362_s10), 1  ;;  %v370_v0 = vld [vmem:[%s529_s1] ss:$0 sm:$0xff]  ;;  %v371_v1 = vld [vmem:[%s529_s1 + $0x1] ss:$0 sm:$0xff]  ;;  %vm261_vm0 = vcmask 261120  }
   0xc   : > { %s430_s11 = smul.u32 72, %s532_s10  ;;  %v372_v2 = vld [vmem:[%s529_s1 + $0x2] ss:$0 sm:$0xff]  ;;  %v373_v3 = vld [vmem:[%s529_s1 + $0x3] ss:$0 sm:$0xff]  ;;  %s383_s5 = sshll.u32 %s532_s10, 3 }
   0xd   : > { %v374_v16 = vld [vmem:[%s529_s1 + $0x4] ss:$0 sm:$0xff]  ;;  %v375_v24 = vld [vmem:[%s529_s1 + $0x5] ss:$0 sm:$0xff]  ;;  %v376_v33 = vld [vmem:[%s529_s1 + $0x6] ss:$0 sm:$0xff]  ;;  %s143_s8 = scalar_lea.vmem %s530_s2, %s383_s5 }
   0xe   : > { %s138_s16 = scalar_lea.vmem %s528_s0, %s430_s11  ;;  %v377_v40 = vld [vmem:[%s529_s1 + $0x7] ss:$0 sm:$0xff]  ;;  %v378_v47 = vld [vmem:[%s529_s1 + $0x8] ss:$0 sm:$0xff]  ;;  %vm304_vm1 = vcmask 257024  }
   0xf   : > { %v387_v4 = vld [vmem:[%s138_s16] sm:$0xff]   ;;  %v422_v5 = vld [vmem:[%s138_s16 + $0x8] sm:$0xff]   ;;  %v423_v6 = vld [vmem:[%s138_s16 + $0x10] sm:$0xff]  }
  0x10   : > { %v388_v7 = vunpack.c.l.bf16 %v387_v4  ;;  %v392_v8 = vunpack.c.l.bf16 %v422_v5  ;;  %v396_v9 = vunpack.c.l.bf16 %v423_v6  ;;  %v424_v10 = vld [vmem:[%s138_s16 + $0x18] sm:$0xff]   ;;  %v425_v11 = vld [vmem:[%s138_s16 + $0x20] sm:$0xff]   ;;  %v426_v12 = vld [vmem:[%s138_s16 + $0x28] sm:$0xff]   ;;  %v389_v25 = vunpack.c.h.bf16 %v387_v4 }
  0x11   : > { %v400_v13 = vunpack.c.l.bf16 %v424_v10  ;;  %v404_v14 = vunpack.c.l.bf16 %v425_v11  ;;  %v427_v15 = vld [vmem:[%s138_s16 + $0x30] sm:$0xff]   ;;  %v408_v18 = vunpack.c.l.bf16 %v426_v12  ;;  %v428_v19 = vld [vmem:[%s138_s16 + $0x38] sm:$0xff]   ;;  %v393_v26 = vunpack.c.h.bf16 %v422_v5  ;;  %v429_v27 = vld [vmem:[%s138_s16 + $0x40] sm:$0xff]  }
  0x12   : > { %v243_v17 = vmul.f32 %v388_v7, %v370_v0  ;;  %v245_v20 = vmul.f32 %v392_v8, %v371_v1  ;;  %v247_v21 = vmul.f32 %v396_v9, %v372_v2  ;;  %v412_v23 = vunpack.c.l.bf16 %v427_v15 }
  0x13   : > { %v249_v22 = vmul.f32 %v400_v13, %v373_v3  ;;  %v251_v28 = vmul.f32 %v404_v14, %v374_v16  ;;  %v416_v32 = vunpack.c.l.bf16 %v428_v19  ;;  %v253_v35 = vmul.f32 %v408_v18, %v375_v24 }
  0x14   : > { %v262_v29 = vsel %vm261_vm0, %v243_v17, 0.0  ;;  %v263_v30 = vsel %vm261_vm0, %v245_v20, 0.0  ;;  %v265_v31 = vsel %vm261_vm0, %v247_v21, 0.0  ;;  %v397_v37 = vunpack.c.h.bf16 %v423_v6 }
  0x15   : > { %v264_v34 = vadd.f32 %v263_v30, %v262_v29  ;;  %v267_v36 = vsel %vm261_vm0, %v249_v22, 0.0  ;;  %v401_v38 = vunpack.c.h.bf16 %v424_v10  ;;  %v420_v39 = vunpack.c.l.bf16 %v429_v27 }
  0x16   : > { %v405_v42 = vunpack.c.h.bf16 %v425_v11  ;;  %v255_v43 = vmul.f32 %v412_v23, %v376_v33  ;;  %v269_v44 = vsel %vm261_vm0, %v251_v28, 0.0  ;;  %v244_v45 = vmul.f32 %v389_v25, %v370_v0 }
  0x17   : > { %v266_v41 = vadd.f32 %v265_v31, %v264_v34  ;;  %v246_v46 = vmul.f32 %v393_v26, %v371_v1  ;;  %v409_v49 = vunpack.c.h.bf16 %v426_v12  ;;  %v248_v50 = vmul.f32 %v397_v37, %v372_v2 }
  0x18   : > { %v250_v51 = vmul.f32 %v401_v38, %v373_v3  ;;  %v257_v52 = vmul.f32 %v416_v32, %v377_v40  ;;  %v271_v53 = vsel %vm261_vm0, %v253_v35, 0.0  ;;  %v413_v54 = vunpack.c.h.bf16 %v427_v15 }
  0x19   : > { %v268_v48 = vadd.f32 %v267_v36, %v266_v41  ;;  %v252_v55 = vmul.f32 %v405_v42, %v374_v16  ;;  %v279_v57 = vsel %vm261_vm0, %v244_v45, 0.0  ;;  %v280_v58 = vsel %vm261_vm0, %v246_v46, 0.0 }
  0x1a   : > { %v282_v59 = vsel %vm261_vm0, %v248_v50, 0.0  ;;  %v259_v60 = vmul.f32 %v420_v39, %v378_v47  ;;  %v273_v61 = vsel %vm261_vm0, %v255_v43, 0.0  ;;  %v281_v62 = vadd.f32 %v280_v58, %v279_v57 }
  0x1b   : > { %v270_v56 = vadd.f32 %v269_v44, %v268_v48  ;;  %v417_v0 = vunpack.c.h.bf16 %v428_v19  ;;  %v254_v1 = vmul.f32 %v409_v49, %v375_v24  ;;  %v284_v2 = vsel %vm261_vm0, %v250_v51, 0.0 }
  0x1c   : > { %v275_v3 = vsel %vm261_vm0, %v257_v52, 0.0  ;;  %v283_v4 = vadd.f32 %v282_v59, %v281_v62  ;;  %v421_v6 = vunpack.c.h.bf16 %v429_v27  ;;  %v256_v7 = vmul.f32 %v413_v54, %v376_v33 }
  0x1d   : > { %v272_v63 = vadd.f32 %v271_v53, %v270_v56  ;;  %v286_v8 = vsel %vm261_vm0, %v252_v55, 0.0  ;;  %v277_v9 = vsel %vm261_vm0, %v259_v60, 0.0  ;;  %v258_v12 = vmul.f32 %v417_v0, %v377_v40 }
  0x1e   : > { %v285_v10 = vadd.f32 %v284_v2, %v283_v4  ;;  %v288_v13 = vsel %vm261_vm0, %v254_v1, 0.0  ;;  %v260_v16 = vmul.f32 %v421_v6, %v378_v47  ;;  %v290_v17 = vsel %vm261_vm0, %v256_v7, 0.0 }
  0x1f   : > { %v274_v5 = vadd.f32 %v273_v61, %v272_v63  ;;  %v292_v20 = vsel %vm261_vm0, %v258_v12, 0.0 }
  0x20   : > { %v287_v14 = vadd.f32 %v286_v8, %v285_v10  ;;  %v294_v22 = vsel %vm261_vm0, %v260_v16, 0.0 }
  0x21   : > { %v276_v11 = vadd.f32 %v275_v3, %v274_v5 }
  0x22   : > { %v289_v18 = vadd.f32 %v288_v13, %v287_v14 }
  0x23   : > { %v278_v15 = vadd.f32 %v277_v9, %v276_v11 }
  0x24   : > { %v291_v21 = vadd.f32 %v290_v17, %v289_v18 }
  0x25   : > { %v384_v19 = vpack.c.bf16 %v278_v15, %v278_v15 }
  0x26   : > { %v293_v23 = vadd.f32 %v292_v20, %v291_v21 }
  0x27   : > { %305 = vst.msk [vmem:[%s143_s8] sm:$0xf] %vm304_vm1, %v384_v19 }
  0x28   : > { %v295_v24 = vadd.f32 %v294_v22, %v293_v23 }
  0x2a   : > { %v385_v25 = vpack.c.bf16 %v295_v24, %v295_v24 }
  0x2c   : > { %306 = vst.msk [vmem:[%s143_s8 + $0x4] sm:$0xf] %vm304_vm1, %v385_v25 }
  0x2d PF: > { %s12_s9 = sadd.s32 1, %s445_s9  }
  0x2e   : > { %p9_p4 = scmp.ge.s32.totalorder %s12_s9, 4  }
  0x30   :  { %11 = sbr.rel (!%p9_p4) target bundleno = 1 (0x1), region = 58 }

// kernel: _lambda_.32
= control target key start
LH: loop header
LB: loop body
LE: loop exit
PB: predicated region body
PF: predicated region fallthrough
CT: control target
= control target key end

     0   :  { %vm22_vm0 = vcmask 261120   ;;  %v647_v0 = vmov 0.0   ;;  %vm648_vm1 = vmmov 0   ;;  %vm463_vm2 = vcmask 257024   ;;  %s884_s1 = inlined_call_operand.vmem [shape: bf16[32,32], index: 1, kind: input, shape index: {}]   ;;  %s885_s0 = inlined_call_operand.vmem [shape: bf16[136,32], index: 0, kind: input, shape index: {}]   ;;  %s886_s3 = inlined_call_operand.vmem [shape: bf16[136,32], index: 3, kind: input, shape index: {}]   ;;  %s887_s2 = inlined_call_operand.vmem [shape: f32[1,32], index: 2, kind: input, shape index: {}]   ;;  %s888_s4 = inlined_call_operand.vmem [shape: bf16[136,32], index: 4, kind: output, shape index: {}]  }
   0x1   :  { %590 = vmatprep.subr.bf16.mxu0 %v647_v0  ;;  %v636_v1 = vld [vmem:[%s884_s1 + $0x8] sm:$0xff]   ;;  %630 = vmatprep.subr.bf16.mxu1 %v647_v0  ;;  %23 = vst.msk [vmem:[#allocation2] sm:$0xff] %vm22_vm0, %v647_v0  ;;  %24 = vst.msk [vmem:[#allocation2 + $0x8] sm:$0xff] %vm22_vm0, %v647_v0  ;;  %v637_v2 = vld [vmem:[%s884_s1] sm:$0xff]  }
   0x2   :  { %25 = vst.msk [vmem:[#allocation2 + $0x10] sm:$0xff] %vm22_vm0, %v647_v0  ;;  %26 = vst.msk [vmem:[#allocation2 + $0x18] sm:$0xff] %vm22_vm0, %v647_v0  ;;  %594 = vmatprep.mubr.msk.bf16.mxu0 %vm648_vm1, %v647_v0  ;;  %614 = vmatprep.mubr.msk.bf16.mxu1 %vm648_vm1, %v647_v0  ;;  %v638_v3 = vld [vmem:[%s885_s0] sm:$0xff]   ;;  %v639_v4 = vld [vmem:[%s885_s0 + $0x28] sm:$0xff]  }
   0x3   :  { %27 = vst.msk [vmem:[#allocation2 + $0x20] sm:$0xff] %vm22_vm0, %v647_v0  ;;  %28 = vst.msk [vmem:[#allocation2 + $0x28] sm:$0xff] %vm22_vm0, %v647_v0  ;;  %591 = vmatpush3.bf16.msra.mxu0 %v636_v1  ;;  %632 = vmatpush3.bf16.msra.mxu1 %v636_v1  ;;  %v640_v5 = vld [vmem:[%s885_s0 + $0x8] sm:$0xff]   ;;  %v641_v6 = vld [vmem:[%s885_s0 + $0x30] sm:$0xff]  }
   0x4   :  { %29 = vst.msk [vmem:[#allocation2 + $0x30] sm:$0xff] %vm22_vm0, %v647_v0  ;;  %30 = vst.msk [vmem:[#allocation2 + $0x38] sm:$0xff] %vm22_vm0, %v647_v0  ;;  %592 = vmatprep.subr.bf16.mxu0 %v647_v0  ;;  %631 = vmatprep.subr.bf16.mxu1 %v647_v0  ;;  %v642_v7 = vld [vmem:[%s885_s0 + $0x10] sm:$0xff]   ;;  %v643_v8 = vld [vmem:[%s885_s0 + $0x38] sm:$0xff]  }
   0x5   :  { %31 = vst.msk [vmem:[#allocation2 + $0x40] sm:$0xff] %vm22_vm0, %v647_v0  ;;  %32 = vst.msk [vmem:[#allocation2 + $0x48] sm:$0xff] %vm22_vm0, %v647_v0  ;;  %v644_v9 = vld [vmem:[%s885_s0 + $0x18] sm:$0xff]   ;;  %v645_v10 = vld [vmem:[%s885_s0 + $0x40] ss:$0 sps:$4 sm:$0xff]  }
   0x6   :  { %33 = vst.msk [vmem:[#allocation2 + $0x50] sm:$0xff] %vm22_vm0, %v647_v0  ;;  %34 = vst.msk [vmem:[#allocation2 + $0x58] sm:$0xff] %vm22_vm0, %v647_v0  ;;  %v646_v11 = vld [vmem:[%s885_s0 + $0x20] sm:$0xff]   ;;  %v576_v29 = vld [vmem:[%s886_s3 + $0x28] sm:$0xff]  }
   0x7   :  { %35 = vst.msk [vmem:[#allocation2 + $0x60] sm:$0xff] %vm22_vm0, %v647_v0  ;;  %36 = vst.msk [vmem:[#allocation2 + $0x68] sm:$0xff] %vm22_vm0, %v647_v0  ;;  %593 = vmatpush3.bf16.msra.mxu0 %v637_v2  ;;  %633 = vmatpush3.bf16.msra.mxu1 %v637_v2  ;;  %v541_v27 = vld [vmem:[%s886_s3] sm:$0xff]   ;;  %v562_v36 = vunpack.c.l.bf16 %v576_v29  ;;  %v563_v48 = vunpack.c.h.bf16 %v576_v29  ;;  %v764_v53 = vld [vmem:[%s886_s3 + $0x8] sm:$0xff]  }
   0x8   :  { %37 = vst.msk [vmem:[#allocation2 + $0x70] sm:$0xff] %vm22_vm0, %v647_v0  ;;  %38 = vst.msk [vmem:[#allocation2 + $0x78] sm:$0xff] %vm22_vm0, %v647_v0  ;;  %v57_v12 = vld [vmem:[#allocation2] sm:$0xff]  ;;  %v58_v19 = vld [vmem:[#allocation2 + $0x8] sm:$0xff]  ;;  %v542_v35 = vunpack.c.l.bf16 %v541_v27  ;;  %v543_v47 = vunpack.c.h.bf16 %v541_v27 }
   0x9   :  { %39 = vst.msk [vmem:[#allocation2 + $0x80] sm:$0xff] %vm22_vm0, %v647_v0  ;;  %v59_v25 = vld [vmem:[#allocation2 + $0x10] sm:$0xff]  ;;  %v755_v32 = vld [vmem:[%s887_s2] ss:$0 sm:$0xff]  ;;  %v60_v38 = vld [vmem:[#allocation2 + $0x18] sm:$0xff] }
   0xa   :  { %595 = vmatmul.mubr.msk.bf16.vlgmr.msra.gmra.mxu0 %vm22_vm0, %v638_v3  ;;  %615 = vmatmul.mubr.msk.bf16.vlgmr.msra.gmra.mxu1 %vm22_vm0, %v639_v4  ;;  %v769_v55 = vld [vmem:[%s886_s3 + $0x30] sm:$0xff]   ;;  %v61_v56 = vld [vmem:[#allocation2 + $0x20] sm:$0xff]  ;;  %v546_v3 = vunpack.c.l.bf16 %v764_v53  ;;  %v578_v29 = vld [vmem:[%s886_s3 + $0x38] sm:$0xff]  }
   0xb   :  { %598 = vmatprep.mubr.msk.bf16.mxu0 %vm648_vm1, %v647_v0  ;;  %618 = vmatprep.mubr.msk.bf16.mxu1 %vm648_vm1, %v647_v0  ;;  %v566_v4 = vunpack.c.l.bf16 %v769_v55  ;;  %v573_v27 = vld [vmem:[%s886_s3 + $0x10] sm:$0xff]  }
   0xd   :  { %v67_v13 = vld [vmem:[#allocation2 + $0x50] sm:$0xff]  ;;  %v68_v21 = vld [vmem:[#allocation2 + $0x58] sm:$0xff] }
   0xe   :  { %v69_v31 = vld [vmem:[#allocation2 + $0x60] sm:$0xff]  ;;  %v70_v44 = vld [vmem:[#allocation2 + $0x68] sm:$0xff] }
   0xf   :  { %v71_v62 = vld [vmem:[#allocation2 + $0x70] sm:$0xff] }
  0x12   :  { %599 = vmatmul.mubr.msk.bf16.gmra.mxu0 %vm22_vm0, %v640_v5  ;;  %619 = vmatmul.mubr.msk.bf16.gmra.mxu1 %vm22_vm0, %v641_v6 }
  0x13   :  { %602 = vmatprep.mubr.msk.bf16.mxu0 %vm648_vm1, %v647_v0  ;;  %622 = vmatprep.mubr.msk.bf16.mxu1 %vm648_vm1, %v647_v0 }
  0x1a   :  { %603 = vmatmul.mubr.msk.bf16.gmra.mxu0 %vm22_vm0, %v642_v7  ;;  %623 = vmatmul.mubr.msk.bf16.gmra.mxu1 %vm22_vm0, %v643_v8 }
  0x1b   :  { %606 = vmatprep.mubr.msk.bf16.mxu0 %vm648_vm1, %v647_v0  ;;  %626 = vmatprep.mubr.msk.bf16.mxu1 %vm648_vm1, %v647_v0 }
  0x22   :  { %607 = vmatmul.mubr.msk.bf16.gmra.mxu0 %vm22_vm0, %v644_v9  ;;  %627 = vmatmul.mubr.msk.bf16.gmra.mxu1 %vm22_vm0, %v645_v10  ;;  %v62_v10 = vld [vmem:[#allocation2 + $0x28] sm:$0xff] }
  0x23   :  { %610 = vmatprep.mubr.msk.bf16.mxu0 %vm648_vm1, %v647_v0 }
  0x2a   :  { %611 = vmatmul.mubr.msk.bf16.gmra.mxu0 %vm22_vm0, %v646_v11 }
  0xca   :  { %v195_v14 = vpop.f32.mrf.mxu0  ;;  %v235_v15 = vpop.f32.mrf.mxu1 }
  0xcb   :  { %v265_v16 = vadd.f32 %v195_v14, %v57_v12  ;;  %v275_v17 = vadd.f32 %v235_v15, %v67_v13 }
  0xcc   :  { %v596_v18 = vpop.f32.mrf.mxu0  ;;  %v616_v20 = vpop.f32.mrf.mxu1 }
  0xcd   :  { %282 = vst.msk [vmem:[#allocation2] sm:$0xff] %vm22_vm0, %v265_v16  ;;  %292 = vst.msk [vmem:[#allocation2 + $0x50] sm:$0xff] %vm22_vm0, %v275_v17  ;;  %v72_v16 = vld [vmem:[#allocation2 + $0x78] sm:$0xff] }
  0xce   :  { %v198_v22 = vpop.f32.mrf.mxu0  ;;  %v238_v23 = vpop.f32.mrf.mxu1 }
  0xcf   :  { %v266_v24 = vadd.f32 %v198_v22, %v58_v19  ;;  %v276_v26 = vadd.f32 %v238_v23, %v68_v21  ;;  %v547_v21 = vunpack.c.h.bf16 %v764_v53  ;;  %v567_v22 = vunpack.c.h.bf16 %v769_v55  ;;  %v64_v53 = vld [vmem:[#allocation2 + $0x38] sm:$0xff] }
  0xd0   :  { %v597_v28 = vpop.f32.mrf.mxu0  ;;  %v617_v30 = vpop.f32.mrf.mxu1 }
  0xd1   :  { %283 = vst.msk [vmem:[#allocation2 + $0x8] sm:$0xff] %vm22_vm0, %v266_v24  ;;  %293 = vst.msk [vmem:[#allocation2 + $0x58] sm:$0xff] %vm22_vm0, %v276_v26  ;;  %v63_v30 = vld [vmem:[#allocation2 + $0x30] sm:$0xff] }
  0xd2   :  { %v203_v33 = vpop.f32.mrf.mxu0  ;;  %v243_v34 = vpop.f32.mrf.mxu1 }
  0xd3   :  { %v267_v37 = vadd.f32 %v203_v33, %v59_v25  ;;  %v277_v39 = vadd.f32 %v243_v34, %v69_v31 }
  0xd4   :  { %v302_v40 = vld [vmem:[#allocation2] sm:$0xff]  ;;  %v312_v41 = vld [vmem:[#allocation2 + $0x50] sm:$0xff]  ;;  %v600_v42 = vpop.f32.mrf.mxu0  ;;  %v620_v43 = vpop.f32.mrf.mxu1 }
  0xd5   :  { %v326_v45 = vadd.f32 %v755_v32, %v302_v40  ;;  %v336_v46 = vadd.f32 %v755_v32, %v312_v41  ;;  %284 = vst.msk [vmem:[#allocation2 + $0x10] sm:$0xff] %vm22_vm0, %v267_v37  ;;  %294 = vst.msk [vmem:[#allocation2 + $0x60] sm:$0xff] %vm22_vm0, %v277_v39  ;;  %v73_v37 = vld [vmem:[#allocation2 + $0x80] sm:$0xff]  ;;  %v550_v42 = vunpack.c.l.bf16 %v573_v27  ;;  %v570_v43 = vunpack.c.l.bf16 %v578_v29 }
  0xd6   :  { %v206_v49 = vpop.f32.mrf.mxu0  ;;  %v246_v50 = vpop.f32.mrf.mxu1 }
  0xd7   :  { %v377_v51 = vadd.f32 %v542_v35, %v326_v45  ;;  %v387_v52 = vadd.f32 %v562_v36, %v336_v46  ;;  %v268_v54 = vadd.f32 %v206_v49, %v60_v38  ;;  %v278_v57 = vadd.f32 %v246_v50, %v70_v44 }
  0xd8   :  { %v303_v58 = vld [vmem:[#allocation2 + $0x8] sm:$0xff]  ;;  %v313_v59 = vld [vmem:[#allocation2 + $0x58] sm:$0xff]  ;;  %v601_v60 = vpop.f32.mrf.mxu0  ;;  %v621_v61 = vpop.f32.mrf.mxu1 }
  0xd9   :  { %v523_v63 = vpack.c.bf16 %v377_v51, %v377_v51  ;;  %v327_v0 = vadd.f32 %v755_v32, %v303_v58  ;;  %v533_v1 = vpack.c.bf16 %v387_v52, %v387_v52  ;;  %v337_v2 = vadd.f32 %v755_v32, %v313_v59  ;;  %285 = vst.msk [vmem:[#allocation2 + $0x18] sm:$0xff] %vm22_vm0, %v268_v54 }
  0xda   :  { %295 = vst.msk [vmem:[#allocation2 + $0x68] sm:$0xff] %vm22_vm0, %v278_v57  ;;  %v211_v5 = vpop.f32.mrf.mxu0  ;;  %v251_v6 = vpop.f32.mrf.mxu1  ;;  %v551_v59 = vunpack.c.h.bf16 %v573_v27 }
  0xdb   :  { %464 = vst.msk [vmem:[%s888_s4] sm:$0xf] %vm463_vm2, %v523_v63  ;;  %v378_v7 = vadd.f32 %v543_v47, %v327_v0  ;;  %474 = vst.msk [vmem:[%s888_s4 + $0x28] sm:$0xf] %vm463_vm2, %v533_v1  ;;  %v388_v8 = vadd.f32 %v563_v48, %v337_v2  ;;  %v269_v9 = vadd.f32 %v211_v5, %v61_v56  ;;  %v574_v0 = vld [vmem:[%s886_s3 + $0x18] sm:$0xff]   ;;  %v571_v1 = vunpack.c.h.bf16 %v578_v29 }
  0xdc   :  { %v279_v11 = vadd.f32 %v251_v6, %v71_v62  ;;  %v304_v12 = vld [vmem:[#allocation2 + $0x10] sm:$0xff]  ;;  %v314_v13 = vld [vmem:[#allocation2 + $0x60] sm:$0xff]  ;;  %v604_v14 = vpop.f32.mrf.mxu0  ;;  %v624_v15 = vpop.f32.mrf.mxu1  ;;  %v555_v29 = vunpack.c.h.bf16 %v574_v0 }
  0xdd   :  { %v524_v17 = vpack.c.bf16 %v378_v7, %v378_v7  ;;  %v328_v18 = vadd.f32 %v755_v32, %v304_v12  ;;  %v534_v19 = vpack.c.bf16 %v388_v8, %v388_v8  ;;  %v338_v20 = vadd.f32 %v755_v32, %v314_v13  ;;  %286 = vst.msk [vmem:[#allocation2 + $0x20] sm:$0xff] %vm22_vm0, %v269_v9  ;;  %v359_v7 = vld [vmem:[%s886_s3 + $0x40] sm:$0xf] }
  0xde   :  { %296 = vst.msk [vmem:[#allocation2 + $0x70] sm:$0xff] %vm22_vm0, %v279_v11  ;;  %v214_v23 = vpop.f32.mrf.mxu0  ;;  %v254_v24 = vpop.f32.mrf.mxu1  ;;  %v554_v13 = vunpack.c.l.bf16 %v574_v0 }
  0xdf   :  { %465 = vst.msk [vmem:[%s888_s4 + $0x4] sm:$0xf] %vm463_vm2, %v524_v17  ;;  %v379_v25 = vadd.f32 %v546_v3, %v328_v18  ;;  %475 = vst.msk [vmem:[%s888_s4 + $0x2c] sm:$0xf] %vm463_vm2, %v534_v19  ;;  %v389_v26 = vadd.f32 %v566_v4, %v338_v20  ;;  %v270_v28 = vadd.f32 %v214_v23, %v62_v10  ;;  %v65_v3 = vld [vmem:[#allocation2 + $0x40] sm:$0xff]  ;;  %v376_v17 = vunpack.c.l.bf16 %v359_v7 }
  0xe0   :  { %v280_v31 = vadd.f32 %v254_v24, %v72_v16  ;;  %v305_v33 = vld [vmem:[#allocation2 + $0x18] sm:$0xff]  ;;  %v605_v35 = vpop.f32.mrf.mxu0  ;;  %v625_v36 = vpop.f32.mrf.mxu1 }
  0xe1   :  { %v315_v34 = vld [vmem:[#allocation2 + $0x68] sm:$0xff]  ;;  %v525_v38 = vpack.c.bf16 %v379_v25, %v379_v25  ;;  %v329_v39 = vadd.f32 %v755_v32, %v305_v33  ;;  %v535_v40 = vpack.c.bf16 %v389_v26, %v389_v26  ;;  %287 = vst.msk [vmem:[#allocation2 + $0x28] sm:$0xff] %vm22_vm0, %v270_v28 }
  0xe2   :  { %v339_v41 = vadd.f32 %v755_v32, %v315_v34  ;;  %297 = vst.msk [vmem:[#allocation2 + $0x78] sm:$0xff] %vm22_vm0, %v280_v31  ;;  %v219_v44 = vpop.f32.mrf.mxu0  ;;  %v259_v45 = vpop.f32.mrf.mxu1  ;;  %v575_v34 = vld [vmem:[%s886_s3 + $0x20] sm:$0xff]  }
  0xe3   :  { %466 = vst.msk [vmem:[%s888_s4 + $0x8] sm:$0xf] %vm463_vm2, %v525_v38  ;;  %v380_v46 = vadd.f32 %v547_v21, %v329_v39  ;;  %476 = vst.msk [vmem:[%s888_s4 + $0x30] sm:$0xf] %vm463_vm2, %v535_v40  ;;  %v271_v48 = vadd.f32 %v219_v44, %v63_v30  ;;  %v281_v49 = vadd.f32 %v259_v45, %v73_v37  ;;  %v558_v40 = vunpack.c.l.bf16 %v575_v34 }
  0xe4   :  { %v390_v47 = vadd.f32 %v567_v22, %v339_v41  ;;  %v306_v50 = vld [vmem:[#allocation2 + $0x20] sm:$0xff]  ;;  %v608_v52 = vpop.f32.mrf.mxu0  ;;  %v628_v54 = vpop.f32.mrf.mxu1  ;;  %v66_v22 = vld [vmem:[#allocation2 + $0x48] sm:$0xff]  ;;  %v559_v45 = vunpack.c.h.bf16 %v575_v34 }
  0xe5   :  { %v316_v51 = vld [vmem:[#allocation2 + $0x70] sm:$0xff]  ;;  %v526_v55 = vpack.c.bf16 %v380_v46, %v380_v46  ;;  %v330_v56 = vadd.f32 %v755_v32, %v306_v50  ;;  %288 = vst.msk [vmem:[#allocation2 + $0x30] sm:$0xff] %vm22_vm0, %v271_v48  ;;  %298 = vst.msk [vmem:[#allocation2 + $0x80] sm:$0xff] %vm22_vm0, %v281_v49 }
  0xe6   :  { %v536_v57 = vpack.c.bf16 %v390_v47, %v390_v47  ;;  %v340_v58 = vadd.f32 %v755_v32, %v316_v51  ;;  %v222_v60 = vpop.f32.mrf.mxu0  ;;  %v262_v61 = vpop.f32.mrf.mxu1 }
  0xe7   :  { %467 = vst.msk [vmem:[%s888_s4 + $0xc] sm:$0xf] %vm463_vm2, %v526_v55  ;;  %v381_v62 = vadd.f32 %v550_v42, %v330_v56  ;;  %v272_v2 = vadd.f32 %v222_v60, %v64_v53 }
  0xe8   :  { %477 = vst.msk [vmem:[%s888_s4 + $0x34] sm:$0xf] %vm463_vm2, %v536_v57  ;;  %v391_v63 = vadd.f32 %v570_v43, %v340_v58  ;;  %v307_v4 = vld [vmem:[#allocation2 + $0x28] sm:$0xff]  ;;  %v609_v6 = vpop.f32.mrf.mxu0  ;;  %v629_v8 = vpop.f32.mrf.mxu1 }
  0xe9   :  { %v317_v5 = vld [vmem:[#allocation2 + $0x78] sm:$0xff]  ;;  %v527_v9 = vpack.c.bf16 %v381_v62, %v381_v62  ;;  %v331_v10 = vadd.f32 %v755_v32, %v307_v4  ;;  %289 = vst.msk [vmem:[#allocation2 + $0x38] sm:$0xff] %vm22_vm0, %v272_v2 }
  0xea   :  { %v537_v11 = vpack.c.bf16 %v391_v63, %v391_v63  ;;  %v341_v12 = vadd.f32 %v755_v32, %v317_v5  ;;  %v227_v14 = vpop.f32.mrf.mxu0 }
  0xeb   :  { %468 = vst.msk [vmem:[%s888_s4 + $0x10] sm:$0xf] %vm463_vm2, %v527_v9  ;;  %v382_v15 = vadd.f32 %v551_v59, %v331_v10  ;;  %v273_v18 = vadd.f32 %v227_v14, %v65_v3 }
  0xec   :  { %478 = vst.msk [vmem:[%s888_s4 + $0x38] sm:$0xf] %vm463_vm2, %v537_v11  ;;  %v392_v16 = vadd.f32 %v571_v1, %v341_v12  ;;  %v308_v19 = vld [vmem:[#allocation2 + $0x30] sm:$0xff]  ;;  %v318_v20 = vld [vmem:[#allocation2 + $0x80] sm:$0xff]  ;;  %v612_v21 = vpop.f32.mrf.mxu0 }
  0xed   :  { %v528_v23 = vpack.c.bf16 %v382_v15, %v382_v15  ;;  %v332_v24 = vadd.f32 %v755_v32, %v308_v19  ;;  %v342_v26 = vadd.f32 %v755_v32, %v318_v20  ;;  %290 = vst.msk [vmem:[#allocation2 + $0x40] sm:$0xff] %vm22_vm0, %v273_v18 }
  0xee   :  { %v538_v25 = vpack.c.bf16 %v392_v16, %v392_v16  ;;  %v230_v27 = vpop.f32.mrf.mxu0 }
  0xef   :  { %469 = vst.msk [vmem:[%s888_s4 + $0x14] sm:$0xf] %vm463_vm2, %v528_v23  ;;  %v383_v28 = vadd.f32 %v554_v13, %v332_v24  ;;  %v393_v30 = vadd.f32 %v376_v17, %v342_v26  ;;  %v274_v31 = vadd.f32 %v230_v27, %v66_v22 }
  0xf0   :  { %479 = vst.msk [vmem:[%s888_s4 + $0x3c] sm:$0xf] %vm463_vm2, %v538_v25  ;;  %v309_v33 = vld [vmem:[#allocation2 + $0x38] sm:$0xff]  ;;  %v613_v35 = vpop.f32.mrf.mxu0 }
  0xf1   :  { %v529_v36 = vpack.c.bf16 %v383_v28, %v383_v28  ;;  %v333_v37 = vadd.f32 %v755_v32, %v309_v33  ;;  %v539_v38 = vpack.c.bf16 %v393_v30, %v393_v30  ;;  %291 = vst.msk [vmem:[#allocation2 + $0x48] sm:$0xff] %vm22_vm0, %v274_v31 }
  0xf3   :  { %470 = vst.msk [vmem:[%s888_s4 + $0x18] sm:$0xf] %vm463_vm2, %v529_v36  ;;  %v384_v39 = vadd.f32 %v555_v29, %v333_v37  ;;  %480 = vst.msk [vmem:[%s888_s4 + $0x40] sm:$0xf] %vm463_vm2, %v539_v38 }
  0xf4   :  { %v310_v41 = vld [vmem:[#allocation2 + $0x40] sm:$0xff] }
  0xf5   :  { %v530_v42 = vpack.c.bf16 %v384_v39, %v384_v39  ;;  %v334_v43 = vadd.f32 %v755_v32, %v310_v41 }
  0xf7   :  { %471 = vst.msk [vmem:[%s888_s4 + $0x1c] sm:$0xf] %vm463_vm2, %v530_v42  ;;  %v385_v44 = vadd.f32 %v558_v40, %v334_v43 }
  0xf8   :  { %v311_v46 = vld [vmem:[#allocation2 + $0x48] sm:$0xff] }
  0xf9   :  { %v531_v47 = vpack.c.bf16 %v385_v44, %v385_v44  ;;  %v335_v48 = vadd.f32 %v755_v32, %v311_v46 }
  0xfb   :  { %472 = vst.msk [vmem:[%s888_s4 + $0x20] sm:$0xf] %vm463_vm2, %v531_v47  ;;  %v386_v49 = vadd.f32 %v559_v45, %v335_v48 }
  0xfd   :  { %v532_v50 = vpack.c.bf16 %v386_v49, %v386_v49 }
  0xff   :  { %473 = vst.msk [vmem:[%s888_s4 + $0x24] sm:$0xf] %vm463_vm2, %v532_v50 }

// kernel: _lambda_.31
= control target key start
LH: loop header
LB: loop body
LE: loop exit
PB: predicated region body
PF: predicated region fallthrough
CT: control target
= control target key end

     0   :  { %s1156_s24 = smov 0   ;;  %s1391_s0 = inlined_call_operand.vmem [shape: bf16[2,65,32], index: 0, kind: input, shape index: {}]   ;;  %s1392_s1 = inlined_call_operand.vmem [shape: bf16[2,17,32], index: 1, kind: input, shape index: {}]   ;;  %s1393_s2 = inlined_call_operand.vmem [shape: bf16[2,17,32], index: 2, kind: input, shape index: {}]   ;;  %s1394_s3 = inlined_call_operand.vmem [shape: f32[1,32], index: 3, kind: input, shape index: {}]   ;;  %s1395_s4 = inlined_call_operand.vmem [shape: f32[1,32], index: 4, kind: input, shape index: {}]   ;;  %s1396_s5 = inlined_call_operand.vmem [shape: f32[1,32], index: 5, kind: input, shape index: {}]   ;;  %s1397_s6 = inlined_call_operand.vmem [shape: f32[1,32], index: 6, kind: input, shape index: {}]   ;;  %s1398_s7 = inlined_call_operand.vmem [shape: bf16[2,65,32], index: 7, kind: output, shape index: {}]  }
   0x1 LB: > { %s921_s25 = sadd.s32 4294967295, %s1111_s24   ;;  %p925_p0 = scmp.ge.s32.totalorder %s1111_s24, 1  ;;  %s1111_s24 = sphi %s1156_s24, %s17_s24  }
   0x2   : > { %p257_p1 = scmp.lt.s32.totalorder %s1111_s24, 3 }
   0x4   : > { %p258_p2 = pnand %p925_p0, %p257_p1 }
   0x5   : > { %p299_p3 = scmp.lt.s32.totalorder (!%p258_p2), %s921_s25, 1 }
   0x6   : > { %261 = sbr.rel (%p258_p2) target bundleno = 1091 (0x443), region = 48 }
   0xb   : > { %s1400_s25 = smov (!%p299_p3, %s921_s25), 1  ;;  %vm350_vm0 = vcmask 253952   ;;  %vm343_vm1 = vcmask 261120   ;;  %v1113_v23 = vmov 0.0   ;;  %vm1114_vm2 = vmmov 0  }
   0xc   : > { %s1040_s26 = smul.u32 12, %s1400_s25  ;;  %991 = vmatprep.subr.bf16.mxu0 %v1113_v23  ;;  %1015 = vmatprep.subr.bf16.mxu1 %v1113_v23  ;;  %v930_v37 = vld [vmem:[%s1394_s3] ss:$0 sm:$0xff]  ;;  %vm589_vm3 = vcmask 138240   ;;  %vm614_vm4 = vcmask 131072   ;;  %vm712_vm5 = vcmask 1040384  }
   0xd   : > { %s1039_s27 = smul.u32 36, %s1400_s25  ;;  %995 = vmatprep.mubr.msk.bf16.mxu0 %vm1114_vm2, %v1113_v23  ;;  %1019 = vmatprep.mubr.msk.bf16.mxu1 %vm1114_vm2, %v1113_v23  ;;  %v931_v39 = vld [vmem:[%s1395_s4] ss:$0 sm:$0xff]  ;;  %vm827_vm6 = vcmask 257024   ;;  %vm837_vm7 = vsmask.f32 256 }
   0xe   : > { %s308_s30 = scalar_lea.vmem %s1392_s1, %s1040_s26  ;;  %s1197_s13 = scalar_lea.vmem %s1393_s2, %s1040_s26  ;;  %vm838_vm8 = vmand %vm350_vm0, %vm837_vm7 }
   0xf   : > { %v331_v0 = vld [vmem:[%s308_s30 + $0x8] sm:$0x1]  ;;  %s1178_s10 = scalar_lea.vmem %s1391_s0, %s1039_s27  ;;  %v970_v1 = vld [vmem:[%s308_s30] sm:$0xff]   ;;  %s1367_s26 = scalar_lea.vmem %s1398_s7, %s1039_s27 }
  0x10   : > { %v334_v2 = vunpack.c.l.bf16 %v331_v0  ;;  %v972_v3 = vunpack.c.h.bf16 %v970_v1  ;;  %v971_v4 = vunpack.c.l.bf16 %v970_v1  ;;  %v1200_v24 = vld [vmem:[%s1197_s13 + $0x8] sm:$0x1]  ;;  %v1052_v54 = vld [vmem:[%s1178_s10] sm:$0xff]   ;;  %v1054_v56 = vld [vmem:[%s1178_s10 + $0x10] sm:$0xff]  }
  0x11   : > { %v340_v25 = vunpack.c.l.bf16 %v1200_v24  ;;  %v1053_v55 = vld [vmem:[%s1178_s10 + $0x8] sm:$0xff]   ;;  %v1055_v57 = vld [vmem:[%s1178_s10 + $0x18] sm:$0xff]   ;;  %v1056_v58 = vld [vmem:[%s1178_s10 + $0x20] ss:$0 sps:$4 sm:$0x11]  }
  0x12   : > { %v351_v5 = vsel %vm350_vm0, %v334_v2, 0.0  ;;  %v347_v6 = vsel %vm343_vm1, %v972_v3, 0.0  ;;  %v344_v7 = vsel %vm343_vm1, %v971_v4, 0.0  ;;  %v1234_v59 = vld [vmem:[%s1197_s13] sm:$0xff]  }
  0x13   : > { %352 = vadd.xlane.f32.xlu0 %v351_v5  ;;  %348 = vadd.xlane.f32.xlu1 %v347_v6  ;;  %v411_v26 = vsel %vm350_vm0, %v340_v25, 0.0  ;;  %v975_v62 = vunpack.c.l.bf16 %v1234_v59 }
  0x17   : > { %345 = vadd.xlane.f32.xlu0 %v344_v7 }
  0x9c   : > { %v353_v8 = vpop.xlane.xlu0 %352  ;;  %v349_v9 = vpop.xlane.xlu1 %348 }
  0x9d   : > { %v357_v10 = vmul.f32 0.03125, %v353_v8  ;;  %v356_v11 = vmul.f32 0.03125, %v349_v9 }
  0x9f   : > { %v360_v12 = vsub.f32 %v334_v2, %v357_v10  ;;  %v359_v13 = vsub.f32 %v972_v3, %v356_v11  ;;  %v405_v3 = vsel %vm343_vm1, %v975_v62, 0.0 }
  0xa0   : > { %v346_v14 = vpop.xlane.xlu0 %345 }
  0xa1   : > { %v355_v15 = vmul.f32 0.03125, %v346_v14  ;;  %v363_v16 = vmul.f32 %v360_v12, %v360_v12  ;;  %v362_v17 = vmul.f32 %v359_v13, %v359_v13 }
  0xa3   : > { %v358_v18 = vsub.f32 %v971_v4, %v355_v15  ;;  %v370_v19 = vsel %vm350_vm0, %v363_v16, 0.0  ;;  %v367_v20 = vsel %vm343_vm1, %v362_v17, 0.0  ;;  %v976_v4 = vunpack.c.h.bf16 %v1234_v59 }
  0xa4   : > { %371 = vadd.xlane.f32.xlu1 %v370_v19 }
  0xa5   : > { %v361_v21 = vmul.f32 %v358_v18, %v358_v18  ;;  %v408_v9 = vsel %vm343_vm1, %v976_v4, 0.0 }
  0xa7   : > { %v364_v22 = vsel %vm343_vm1, %v361_v21, 0.0 }
  0xa8   : > { %368 = vadd.xlane.f32.xlu1 %v367_v20  ;;  %365 = vadd.xlane.f32.xlu0 %v364_v22 }
  0xac   : > { %412 = vadd.xlane.f32.xlu0 %v411_v26 }
 0x12d   : > { %v372_v27 = vpop.xlane.xlu1 %371 }
 0x12e   : > { %v375_v28 = vmul.f32 0.03125, %v372_v27 }
 0x130   : > { %v378_v29 = vadd.f32 1e-05, %v375_v28 }
 0x131   : > { %v369_v30 = vpop.xlane.xlu1 %368  ;;  %v366_v31 = vpop.xlane.xlu0 %365 }
 0x132   : > { %1057 = vrsqrt.f32 %v378_v29  ;;  %v374_v32 = vmul.f32 0.03125, %v369_v30  ;;  %v373_v33 = vmul.f32 0.03125, %v366_v31 }
 0x134   : > { %v377_v34 = vadd.f32 1e-05, %v374_v32  ;;  %v376_v35 = vadd.f32 1e-05, %v373_v33 }
 0x135   : > { %v413_v19 = vpop.xlane.xlu0 %412 }
 0x136   : > { %1059 = vrsqrt.f32 %v377_v34  ;;  %v416_v26 = vmul.f32 0.03125, %v413_v19 }
 0x137   : > { %1061 = vrsqrt.f32 %v376_v35 }
 0x138   : > { %v1260_v31 = vsub.f32 %v340_v25, %v416_v26 }
 0x13f   : > { %v1058_v36 = vpop.eup %1057 }
 0x140   : > { %v384_v38 = vmul.f32 %v1058_v36, %v360_v12  ;;  %v422_v36 = vmul.f32 %v1260_v31, %v1260_v31 }
 0x142   : > { %v393_v40 = vmul.f32 %v930_v37, %v384_v38  ;;  %v429_v25 = vsel %vm350_vm0, %v422_v36, 0.0 }
 0x143   : > { %v1060_v41 = vpop.eup %1059 }
 0x144   : > { %v1062_v42 = vpop.eup %1061  ;;  %v402_v43 = vadd.f32 %v931_v39, %v393_v40  ;;  %v383_v44 = vmul.f32 %v1060_v41, %v359_v13 }
 0x145   : > { %v382_v45 = vmul.f32 %v1062_v42, %v358_v18 }
 0x146   : > { %v463_v46 = vpack.c.bf16 %v402_v43, %v402_v43  ;;  %v392_v47 = vmul.f32 %v930_v37, %v383_v44 }
 0x147   : > { %v391_v48 = vmul.f32 %v930_v37, %v382_v45 }
 0x148   : > { %v506_v49 = vsel %vm343_vm1, %v463_v46, 0  ;;  %v401_v50 = vadd.f32 %v931_v39, %v392_v47 }
 0x149   : > { %992 = vmatpush3.bf16.xpose.msra.mxu0 %v506_v49  ;;  %v400_v51 = vadd.f32 %v931_v39, %v391_v48 }
 0x14a   : > { %993 = vmatprep.subr.bf16.mxu0 %v1113_v23 }
 0x14b   : > { %v462_v52 = vpack.c.bf16 %v401_v50, %v400_v51 }
 0x14d   : > { %v503_v53 = vsel %vm343_vm1, %v462_v52, 0 }
 0x151   : > { %994 = vmatpush3.bf16.xpose.msra.mxu0 %v503_v53 }
 0x158   : > { %996 = vmatmul.mubr.msk.bf16.vlgmr.msra.gmra.mxu0 %vm343_vm1, %v1052_v54 }
 0x159   : > { %999 = vmatprep.mubr.msk.bf16.mxu0 %vm1114_vm2, %v1113_v23 }
 0x160   : > { %1000 = vmatmul.mubr.msk.bf16.gmra.mxu0 %vm343_vm1, %v1053_v55 }
 0x161   : > { %1003 = vmatprep.mubr.msk.bf16.mxu0 %vm1114_vm2, %v1113_v23 }
 0x168   : > { %1004 = vmatmul.mubr.msk.bf16.gmra.mxu0 %vm343_vm1, %v1054_v56 }
 0x169   : > { %1007 = vmatprep.mubr.msk.bf16.mxu0 %vm1114_vm2, %v1113_v23 }
 0x170   : > { %1008 = vmatmul.mubr.msk.bf16.gmra.mxu0 %vm343_vm1, %v1055_v57 }
 0x171   : > { %1011 = vmatprep.mubr.msk.bf16.mxu0 %vm1114_vm2, %v1113_v23 }
 0x178   : > { %1012 = vmatmul.mubr.msk.bf16.gmra.mxu0 %vm343_vm1, %v1056_v58 }
 0x218   : > { %v542_v60 = vpop.f32.mrf.mxu0 }
 0x219   : > { %v580_v61 = vmul.f32 0.17677669, %v542_v60 }
 0x21a   : > { %v997_v63 = vpop.f32.mrf.mxu0 }
 0x21b   : > { %v590_v0 = vsel %vm589_vm3, %v580_v61, -inf }
 0x21c   : > { %591 = vmax.xlane.f32.xlu1 %v590_v0  ;;  %v545_v1 = vpop.f32.mrf.mxu0 }
 0x21d   : > { %v581_v2 = vmul.f32 0.17677669, %v545_v1 }
 0x21e   : > { %v998_v5 = vpop.f32.mrf.mxu0 }
 0x21f   : > { %v593_v6 = vsel %vm589_vm3, %v581_v2, -inf }
 0x220   : > { %406 = vadd.xlane.f32.xlu1 %v405_v3  ;;  %594 = vmax.xlane.f32.xlu0 %v593_v6  ;;  %v550_v7 = vpop.f32.mrf.mxu0 }
 0x221   : > { %v582_v8 = vmul.f32 0.17677669, %v550_v7 }
 0x222   : > { %v1001_v10 = vpop.f32.mrf.mxu0 }
 0x223   : > { %v596_v11 = vsel %vm589_vm3, %v582_v8, -inf }
 0x224   : > { %409 = vadd.xlane.f32.xlu0 %v408_v9  ;;  %597 = vmax.xlane.f32.xlu1 %v596_v11  ;;  %v553_v12 = vpop.f32.mrf.mxu0 }
 0x225   : > { %v583_v13 = vmul.f32 0.17677669, %v553_v12 }
 0x226   : > { %v1002_v14 = vpop.f32.mrf.mxu0 }
 0x227   : > { %v599_v15 = vsel %vm589_vm3, %v583_v13, -inf }
 0x228   : > { %600 = vmax.xlane.f32.xlu0 %v599_v15  ;;  %v558_v16 = vpop.f32.mrf.mxu0 }
 0x229   : > { %v1248_v17 = vmul.f32 0.17677669, %v558_v16 }
 0x22a   : > { %v1005_v18 = vpop.f32.mrf.mxu0 }
 0x22b   : > { %v602_v20 = vsel %vm589_vm3, %v1248_v17, -inf }
 0x22c   : > { %603 = vmax.xlane.f32.xlu1 %v602_v20  ;;  %v561_v21 = vpop.f32.mrf.mxu0 }
 0x22d   : > { %v1252_v22 = vmul.f32 0.17677669, %v561_v21 }
 0x22e   : > { %v1006_v27 = vpop.f32.mrf.mxu0 }
 0x22f   : > { %v605_v28 = vsel %vm589_vm3, %v1252_v22, -inf }
 0x230   : > { %606 = vmax.xlane.f32.xlu0 %v605_v28  ;;  %v566_v29 = vpop.f32.mrf.mxu0 }
 0x231   : > { %v1256_v30 = vmul.f32 0.17677669, %v566_v29 }
 0x232   : > { %v1009_v32 = vpop.f32.mrf.mxu0 }
 0x233   : > { %v608_v33 = vsel %vm589_vm3, %v1256_v30, -inf }
 0x234   : > { %609 = vmax.xlane.f32.xlu1 %v608_v33  ;;  %v569_v34 = vpop.f32.mrf.mxu0 }
 0x235   : > { %v1264_v35 = vmul.f32 0.17677669, %v569_v34 }
 0x236   : > { %v1010_v37 = vpop.f32.mrf.mxu0 }
 0x237   : > { %v611_v38 = vsel %vm589_vm3, %v1264_v35, -inf }
 0x238   : > { %612 = vmax.xlane.f32.xlu0 %v611_v38  ;;  %v574_v39 = vpop.f32.mrf.mxu0 }
 0x239   : > { %v1270_v24 = vmul.f32 0.17677669, %v574_v39 }
 0x23a   : > { %v1013_v40 = vpop.f32.mrf.mxu0 }
 0x23b   : > { %v615_v41 = vsel %vm614_vm4, %v1270_v24, -inf }
 0x23c   : > { %430 = vadd.xlane.f32.xlu0 %v429_v25  ;;  %616 = vmax.xlane.f32.xlu1 %v615_v41  ;;  %v577_v42 = vpop.f32.mrf.mxu0  ;;  %v932_v25 = vld [vmem:[%s1396_s5] ss:$0 sm:$0xff] }
 0x23e   : > { %v1014_v43 = vpop.f32.mrf.mxu0 }
 0x23f   : > { %v933_v43 = vld [vmem:[%s1397_s6] ss:$0 sm:$0xff] }
 0x2a5   : > { %v592_v44 = vpop.xlane.xlu1 %591 }
 0x2a6   : > { %v618_v45 = vsub.f32 %v580_v61, %v592_v44 }
 0x2a8   : > { %v627_v46 = vmul.f32 1.442695, %v618_v45 }
 0x2a9   : > { %v407_v47 = vpop.xlane.xlu1 %406  ;;  %v595_v48 = vpop.xlane.xlu0 %594 }
 0x2aa   : > { %1063 = vpow2.f32 %v627_v46  ;;  %v414_v49 = vmul.f32 0.03125, %v407_v47  ;;  %v619_v50 = vsub.f32 %v581_v2, %v595_v48  ;;  %v1115_v46 = vmov 0  }
 0x2ab   : > { %v714_v47 = vsel %vm712_vm5, 65535, %v1115_v46 }
 0x2ac   : > { %v1277_v51 = vsub.f32 %v975_v62, %v414_v49  ;;  %v629_v52 = vmul.f32 1.442695, %v619_v50 }
 0x2ad   : > { %v410_v53 = vpop.xlane.xlu0 %409  ;;  %v598_v54 = vpop.xlane.xlu1 %597 }
 0x2ae   : > { %1065 = vpow2.f32 %v629_v52  ;;  %v415_v55 = vmul.f32 0.03125, %v410_v53  ;;  %v620_v56 = vsub.f32 %v582_v8, %v598_v54  ;;  %v420_v57 = vmul.f32 %v1277_v51, %v1277_v51 }
 0x2b0   : > { %v1283_v58 = vsub.f32 %v976_v4, %v415_v55  ;;  %v631_v60 = vmul.f32 1.442695, %v620_v56  ;;  %v423_v61 = vsel %vm343_vm1, %v420_v57, 0.0 }
 0x2b1   : > { %v601_v63 = vpop.xlane.xlu0 %600  ;;  %424 = vadd.xlane.f32.xlu1 %v423_v61 }
 0x2b2   : > { %1067 = vpow2.f32 %v631_v60  ;;  %v621_v62 = vsub.f32 %v583_v13, %v601_v63  ;;  %v421_v0 = vmul.f32 %v1283_v58, %v1283_v58 }
 0x2b4   : > { %v633_v1 = vmul.f32 1.442695, %v621_v62  ;;  %v426_v2 = vsel %vm343_vm1, %v421_v0, 0.0 }
 0x2b5   : > { %v604_v3 = vpop.xlane.xlu1 %603  ;;  %427 = vadd.xlane.f32.xlu0 %v426_v2 }
 0x2b6   : > { %1069 = vpow2.f32 %v633_v1  ;;  %v622_v59 = vsub.f32 %v1248_v17, %v604_v3 }
 0x2b7   : > { %v1290_v4 = vpop.eup %1063 }
 0x2b8   : > { %v635_v5 = vmul.f32 1.442695, %v622_v59  ;;  %v645_v6 = vsel %vm589_vm3, %v1290_v4, 0.0 }
 0x2b9   : > { %v607_v7 = vpop.xlane.xlu0 %606  ;;  %646 = vadd.xlane.f32.xlu1 %v645_v6 }
 0x2ba   : > { %1071 = vpow2.f32 %v635_v5  ;;  %v623_v8 = vsub.f32 %v1252_v22, %v607_v7 }
 0x2bb   : > { %v1295_v9 = vpop.eup %1065 }
 0x2bc   : > { %v637_v10 = vmul.f32 1.442695, %v623_v8  ;;  %v648_v11 = vsel %vm589_vm3, %v1295_v9, 0.0 }
 0x2bd   : > { %v610_v12 = vpop.xlane.xlu1 %609  ;;  %649 = vadd.xlane.f32.xlu0 %v648_v11 }
 0x2be   : > { %1073 = vpow2.f32 %v637_v10  ;;  %v624_v13 = vsub.f32 %v1256_v30, %v610_v12 }
 0x2bf   : > { %v1300_v14 = vpop.eup %1067 }
 0x2c0   : > { %v639_v15 = vmul.f32 1.442695, %v624_v13  ;;  %v651_v16 = vsel %vm589_vm3, %v1300_v14, 0.0 }
 0x2c1   : > { %v613_v17 = vpop.xlane.xlu0 %612  ;;  %652 = vadd.xlane.f32.xlu1 %v651_v16 }
 0x2c2   : > { %1075 = vpow2.f32 %v639_v15  ;;  %v625_v18 = vsub.f32 %v1264_v35, %v613_v17 }
 0x2c3   : > { %v1305_v19 = vpop.eup %1069 }
 0x2c4   : > { %v641_v20 = vmul.f32 1.442695, %v625_v18  ;;  %v654_v21 = vsel %vm589_vm3, %v1305_v19, 0.0 }
 0x2c5   : > { %655 = vadd.xlane.f32.xlu0 %v654_v21  ;;  %v431_v22 = vpop.xlane.xlu0 %430  ;;  %v617_v26 = vpop.xlane.xlu1 %616 }
 0x2c6   : > { %1077 = vpow2.f32 %v641_v20  ;;  %v434_v27 = vmul.f32 0.03125, %v431_v22  ;;  %v626_v28 = vsub.f32 %v1270_v24, %v617_v26 }
 0x2c7   : > { %v1310_v29 = vpop.eup %1071 }
 0x2c8   : > { %v437_v30 = vadd.f32 1e-05, %v434_v27  ;;  %v643_v32 = vmul.f32 1.442695, %v626_v28  ;;  %v657_v33 = vsel %vm589_vm3, %v1310_v29, 0.0 }
 0x2c9   : > { %658 = vadd.xlane.f32.xlu1 %v657_v33 }
 0x2ca   : > { %1079 = vrsqrt.f32 %v437_v30 }
 0x2cb   : > { %v1314_v34 = vpop.eup %1073  ;;  %1081 = vpow2.f32 %v643_v32 }
 0x2cc   : > { %v660_v35 = vsel %vm589_vm3, %v1314_v34, 0.0 }
 0x2cd   : > { %661 = vadd.xlane.f32.xlu0 %v660_v35 }
 0x2cf   : > { %v1318_v36 = vpop.eup %1075 }
 0x2d0   : > { %v663_v37 = vsel %vm589_vm3, %v1318_v36, 0.0 }
 0x2d1   : > { %664 = vadd.xlane.f32.xlu1 %v663_v37 }
 0x2d3   : > { %v1322_v38 = vpop.eup %1077 }
 0x2d4   : > { %v666_v39 = vsel %vm589_vm3, %v1322_v38, 0.0 }
 0x2d5   : > { %667 = vadd.xlane.f32.xlu0 %v666_v39 }
 0x2d7   : > { %v1080_v24 = vpop.eup %1079 }
 0x2d8   : > { %v1329_v40 = vpop.eup %1081  ;;  %v443_v41 = vmul.f32 %v1080_v24, %v1260_v31 }
 0x2d9   : > { %v669_v42 = vsel %vm614_vm4, %v1329_v40, 0.0 }
 0x2da   : > { %670 = vadd.xlane.f32.xlu1 %v669_v42  ;;  %v452_v44 = vmul.f32 %v932_v25, %v443_v41 }
 0x2dc   : > { %v461_v45 = vadd.f32 %v933_v43, %v452_v44 }
 0x2de   : > { %v696_v48 = vpack.c.bf16 %v461_v45, %v461_v45 }
 0x2e0   : > { %v716_v49 = vand.u32 %v714_v47, %v696_v48 }
 0x2e2   : > { %1016 = vmatpush3.bf16.msra.mxu1 %v716_v49 }
 0x2e3   : > { %1017 = vmatprep.subr.bf16.mxu1 %v1113_v23 }
 0x33a   : > { %v425_v50 = vpop.xlane.xlu1 %424 }
 0x33b   : > { %v432_v31 = vmul.f32 0.03125, %v425_v50 }
 0x33d   : > { %v435_v52 = vadd.f32 1e-05, %v432_v31 }
 0x33e   : > { %v428_v53 = vpop.xlane.xlu0 %427 }
 0x33f   : > { %1083 = vrsqrt.f32 %v435_v52  ;;  %v433_v54 = vmul.f32 0.03125, %v428_v53 }
 0x341   : > { %v436_v55 = vadd.f32 1e-05, %v433_v54 }
 0x342   : > { %v647_v56 = vpop.xlane.xlu1 %646 }
 0x343   : > { %1085 = vrsqrt.f32 %v436_v55 }
 0x346   : > { %v650_v57 = vpop.xlane.xlu0 %649 }
 0x347   : > { %1087 = vrcp.f32 %v650_v57 }
 0x348   : > { %1089 = vrcp.f32 %v647_v56 }
 0x34a   : > { %v653_v61 = vpop.xlane.xlu1 %652 }
 0x34c   : > { %v1084_v60 = vpop.eup %1083 }
 0x34d   : > { %v441_v63 = vmul.f32 %v1084_v60, %v1277_v51  ;;  %v839_v60 = vld [vmem:[%s1367_s26 + $0x20] sm:$0x1] }
 0x34e   : > { %v656_v62 = vpop.xlane.xlu0 %655 }
 0x34f   : > { %1091 = vrcp.f32 %v656_v62  ;;  %v450_v2 = vmul.f32 %v932_v25, %v441_v63 }
 0x350   : > { %v1086_v0 = vpop.eup %1085  ;;  %1093 = vrcp.f32 %v653_v61 }
 0x351   : > { %v442_v1 = vmul.f32 %v1086_v0, %v1283_v58  ;;  %v459_v7 = vadd.f32 %v933_v43, %v450_v2 }
 0x352   : > { %v659_v6 = vpop.xlane.xlu1 %658 }
 0x353   : > { %v451_v3 = vmul.f32 %v932_v25, %v442_v1 }
 0x354   : > { %v1088_v59 = vpop.eup %1087 }
 0x355   : > { %v1090_v5 = vpop.eup %1089  ;;  %v460_v8 = vadd.f32 %v933_v43, %v451_v3  ;;  %v682_v11 = vmul.f32 %v1088_v59, %v1295_v9 }
 0x356   : > { %v662_v10 = vpop.xlane.xlu0 %661  ;;  %v681_v51 = vmul.f32 %v1090_v5, %v1290_v4 }
 0x357   : > { %1095 = vrcp.f32 %v662_v10  ;;  %v695_v12 = vpack.c.bf16 %v460_v8, %v459_v7 }
 0x358   : > { %1097 = vrcp.f32 %v659_v6  ;;  %v690_v13 = vpack.c.bf16 %v682_v11, %v681_v51 }
 0x359   : > { %1018 = vmatpush3.bf16.msra.mxu1 %v695_v12 }
 0x35a   : > { %v665_v16 = vpop.xlane.xlu1 %664 }
 0x35c   : > { %v1092_v15 = vpop.eup %1091  ;;  %1020 = vmatmul.mubr.msk.bf16.vlgmr.msra.gmra.mxu1 %vm589_vm3, %v690_v13 }
 0x35d   : > { %v1094_v58 = vpop.eup %1093  ;;  %1023 = vmatprep.mubr.msk.bf16.mxu1 %vm1114_vm2, %v1113_v23  ;;  %v684_v18 = vmul.f32 %v1092_v15, %v1305_v19 }
 0x35e   : > { %v668_v17 = vpop.xlane.xlu0 %667  ;;  %v683_v9 = vmul.f32 %v1094_v58, %v1300_v14 }
 0x35f   : > { %1099 = vrcp.f32 %v668_v17 }
 0x360   : > { %1101 = vrcp.f32 %v665_v16  ;;  %v691_v20 = vpack.c.bf16 %v684_v18, %v683_v9 }
 0x363   : > { %v671_v21 = vpop.xlane.xlu1 %670 }
 0x364   : > { %v1096_v4 = vpop.eup %1095  ;;  %1024 = vmatmul.mubr.msk.bf16.gmra.mxu1 %vm589_vm3, %v691_v20  ;;  %1103 = vrcp.f32 %v671_v21 }
 0x365   : > { %v1098_v22 = vpop.eup %1097  ;;  %1027 = vmatprep.mubr.msk.bf16.mxu1 %vm1114_vm2, %v1113_v23  ;;  %v686_v26 = vmul.f32 %v1096_v4, %v1314_v34 }
 0x366   : > { %v685_v27 = vmul.f32 %v1098_v22, %v1310_v29 }
 0x368   : > { %v692_v19 = vpack.c.bf16 %v686_v26, %v685_v27 }
 0x36c   : > { %v1100_v28 = vpop.eup %1099  ;;  %1028 = vmatmul.mubr.msk.bf16.gmra.mxu1 %vm589_vm3, %v692_v19 }
 0x36d   : > { %v1102_v14 = vpop.eup %1101  ;;  %1031 = vmatprep.mubr.msk.bf16.mxu1 %vm1114_vm2, %v1113_v23  ;;  %v688_v30 = vmul.f32 %v1100_v28, %v1322_v38 }
 0x36e   : > { %v687_v32 = vmul.f32 %v1102_v14, %v1318_v36 }
 0x370   : > { %v693_v33 = vpack.c.bf16 %v688_v30, %v687_v32 }
 0x371   : > { %v1104_v35 = vpop.eup %1103 }
 0x372   : > { %v689_v29 = vmul.f32 %v1104_v35, %v1329_v40 }
 0x374   : > { %1032 = vmatmul.mubr.msk.bf16.gmra.mxu1 %vm589_vm3, %v693_v33  ;;  %v694_v34 = vpack.c.bf16 %v689_v29, %v689_v29 }
 0x375   : > { %1035 = vmatprep.mubr.msk.bf16.mxu1 %vm1114_vm2, %v1113_v23 }
 0x37c   : > { %1036 = vmatmul.mubr.msk.bf16.gmra.mxu1 %vm589_vm3, %v694_v34 }
 0x41c   : > { %v752_v36 = vpop.f32.mrf.mxu1 }
 0x41d   : > { %v960_v37 = vpack.c.bf16 %v752_v36, %v752_v36 }
 0x41e   : > { %v1021_v38 = vpop.f32.mrf.mxu1 }
 0x41f   : > { %828 = vst.msk [vmem:[%s1367_s26] sm:$0xf] %vm827_vm6, %v960_v37 }
 0x420   : > { %v755_v23 = vpop.f32.mrf.mxu1 }
 0x421   : > { %v961_v39 = vpack.c.bf16 %v755_v23, %v755_v23 }
 0x422   : > { %v1022_v24 = vpop.f32.mrf.mxu1 }
 0x423   : > { %829 = vst.msk [vmem:[%s1367_s26 + $0x4] sm:$0xf] %vm827_vm6, %v961_v39 }
 0x424   : > { %v760_v25 = vpop.f32.mrf.mxu1 }
 0x425   : > { %v962_v40 = vpack.c.bf16 %v760_v25, %v760_v25 }
 0x426   : > { %v1025_v41 = vpop.f32.mrf.mxu1 }
 0x427   : > { %830 = vst.msk [vmem:[%s1367_s26 + $0x8] sm:$0xf] %vm827_vm6, %v962_v40 }
 0x428   : > { %v763_v42 = vpop.f32.mrf.mxu1 }
 0x429   : > { %v963_v43 = vpack.c.bf16 %v763_v42, %v763_v42 }
 0x42a   : > { %v1026_v44 = vpop.f32.mrf.mxu1 }
 0x42b   : > { %831 = vst.msk [vmem:[%s1367_s26 + $0xc] sm:$0xf] %vm827_vm6, %v963_v43 }
 0x42c   : > { %v768_v45 = vpop.f32.mrf.mxu1 }
 0x42d   : > { %v964_v46 = vpack.c.bf16 %v768_v45, %v768_v45 }
 0x42e   : > { %v1029_v47 = vpop.f32.mrf.mxu1 }
 0x42f   : > { %832 = vst.msk [vmem:[%s1367_s26 + $0x10] sm:$0xf] %vm827_vm6, %v964_v46 }
 0x430   : > { %v771_v48 = vpop.f32.mrf.mxu1 }
 0x431   : > { %v965_v49 = vpack.c.bf16 %v771_v48, %v771_v48 }
 0x432   : > { %v1030_v50 = vpop.f32.mrf.mxu1 }
 0x433   : > { %833 = vst.msk [vmem:[%s1367_s26 + $0x14] sm:$0xf] %vm827_vm6, %v965_v49 }
 0x434   : > { %v776_v31 = vpop.f32.mrf.mxu1 }
 0x435   : > { %v966_v52 = vpack.c.bf16 %v776_v31, %v776_v31 }
 0x436   : > { %v1033_v53 = vpop.f32.mrf.mxu1 }
 0x437   : > { %834 = vst.msk [vmem:[%s1367_s26 + $0x18] sm:$0xf] %vm827_vm6, %v966_v52 }
 0x438   : > { %v779_v54 = vpop.f32.mrf.mxu1 }
 0x439   : > { %v967_v55 = vpack.c.bf16 %v779_v54, %v779_v54 }
 0x43a   : > { %v1034_v56 = vpop.f32.mrf.mxu1 }
 0x43b   : > { %835 = vst.msk [vmem:[%s1367_s26 + $0x1c] sm:$0xf] %vm827_vm6, %v967_v55 }
 0x43c   : > { %v784_v57 = vpop.f32.mrf.mxu1 }
 0x43d   : > { %v968_v61 = vpack.c.bf16 %v784_v57, %v784_v57 }
 0x43e   : > { %v1037_v63 = vpop.f32.mrf.mxu1 }
 0x43f   : > { %v840_v62 = vsel %vm838_vm8, %v968_v61, %v839_v60 }
 0x440   : > { %841 = vst [vmem:[%s1367_s26 + $0x20] sm:$0x1] %v840_v62  ;;  %v787_v0 = vpop.f32.mrf.mxu1 }
 0x442   : > { %v1038_v1 = vpop.f32.mrf.mxu1 }
 0x443 PF: > { %s17_s24 = sadd.s32 1, %s1111_s24  }
 0x444   : > { %p14_p4 = scmp.ge.s32.totalorder %s17_s24, 4  }
 0x446   :  { %16 = sbr.rel (!%p14_p4) target bundleno = 1 (0x1), region = 84 }

// kernel: _lambda_.34
= control target key start
LH: loop header
LB: loop body
LE: loop exit
PB: predicated region body
PF: predicated region fallthrough
CT: control target
= control target key end

     0   :  { %vm77_vm0 = vcmask 261120   ;;  %vm872_vm1 = vmmov 0   ;;  %vm25_vm2 = vcmask 523264   ;;  %vm669_vm3 = vcmask 519168   ;;  %s1366_s0 = inlined_call_operand.vmem [shape: bf16[136,32], index: 0, kind: input, shape index: {}]   ;;  %s1367_s1 = inlined_call_operand.vmem [shape: bf16[32,64], index: 1, kind: input, shape index: {}]   ;;  %s1368_s3 = inlined_call_operand.vmem [shape: f32[1,32], index: 3, kind: input, shape index: {}]   ;;  %s1369_s4 = inlined_call_operand.vmem [shape: f32[1,32], index: 4, kind: input, shape index: {}]   ;;  %s1370_s2 = inlined_call_operand.vmem [shape: f32[1,64], index: 2, kind: input, shape index: {}]   ;;  %s1371_s5 = inlined_call_operand.vmem [shape: bf16[136,64], index: 5, kind: output, shape index: {}]  }
   0x1   :  { %v906_v0 = vld [vmem:[%s1366_s0] sm:$0xff]   ;;  %v911_v1 = vld [vmem:[%s1366_s0 + $0x8] sm:$0xff]   ;;  %v935_v13 = vld [vmem:[%s1366_s0 + $0x10] sm:$0xff]  }
   0x2   :  { %v741_v2 = vunpack.c.l.bf16 %v906_v0  ;;  %v745_v3 = vunpack.c.l.bf16 %v911_v1  ;;  %v742_v4 = vunpack.c.h.bf16 %v906_v0  ;;  %v746_v5 = vunpack.c.h.bf16 %v911_v1  ;;  %v920_v6 = vld [vmem:[%s1366_s0 + $0x28] sm:$0xff]   ;;  %v948_v18 = vld [vmem:[%s1366_s0 + $0x30] sm:$0xff]   ;;  %v961_v23 = vld [vmem:[%s1366_s0 + $0x18] sm:$0xff]  }
   0x3   :  { %v761_v11 = vunpack.c.l.bf16 %v920_v6  ;;  %v762_v12 = vunpack.c.h.bf16 %v920_v6  ;;  %v749_v16 = vunpack.c.l.bf16 %v935_v13  ;;  %v750_v17 = vunpack.c.h.bf16 %v935_v13  ;;  %v974_v28 = vld [vmem:[%s1366_s0 + $0x38] sm:$0xff]   ;;  %v987_v33 = vld [vmem:[%s1366_s0 + $0x20] sm:$0xff]  }
   0x4   :  { %v78_v7 = vsel %vm77_vm0, %v741_v2, 0.0  ;;  %v84_v8 = vsel %vm77_vm0, %v745_v3, 0.0  ;;  %v81_v9 = vsel %vm77_vm0, %v742_v4, 0.0  ;;  %v87_v10 = vsel %vm77_vm0, %v746_v5, 0.0  ;;  %v1000_v38 = vld [vmem:[%s1366_s0 + $0x40] sm:$0xf] }
   0x5   :  { %79 = vadd.xlane.f32.xlu0 %v78_v7  ;;  %85 = vadd.xlane.f32.xlu1 %v84_v8  ;;  %v108_v14 = vsel %vm77_vm0, %v761_v11, 0.0  ;;  %v111_v15 = vsel %vm77_vm0, %v762_v12, 0.0  ;;  %v90_v19 = vsel %vm77_vm0, %v749_v16, 0.0  ;;  %v93_v20 = vsel %vm77_vm0, %v750_v17, 0.0 }
   0x6   :  { %v765_v21 = vunpack.c.l.bf16 %v948_v18  ;;  %v766_v22 = vunpack.c.h.bf16 %v948_v18  ;;  %v753_v26 = vunpack.c.l.bf16 %v961_v23  ;;  %v754_v27 = vunpack.c.h.bf16 %v961_v23 }
   0x7   :  { %v769_v31 = vunpack.c.l.bf16 %v974_v28  ;;  %v770_v32 = vunpack.c.h.bf16 %v974_v28  ;;  %v757_v36 = vunpack.c.l.bf16 %v987_v33  ;;  %v758_v37 = vunpack.c.h.bf16 %v987_v33 }
   0x8   :  { %v114_v24 = vsel %vm77_vm0, %v765_v21, 0.0  ;;  %v117_v25 = vsel %vm77_vm0, %v766_v22, 0.0  ;;  %v96_v29 = vsel %vm77_vm0, %v753_v26, 0.0  ;;  %v99_v30 = vsel %vm77_vm0, %v754_v27, 0.0 }
   0x9   :  { %82 = vadd.xlane.f32.xlu0 %v81_v9  ;;  %88 = vadd.xlane.f32.xlu1 %v87_v10  ;;  %v120_v34 = vsel %vm77_vm0, %v769_v31, 0.0  ;;  %v123_v35 = vsel %vm77_vm0, %v770_v32, 0.0  ;;  %v102_v39 = vsel %vm77_vm0, %v757_v36, 0.0  ;;  %v105_v40 = vsel %vm77_vm0, %v758_v37, 0.0 }
   0xa   :  { %v76_v41 = vunpack.c.l.bf16 %v1000_v38  ;;  %v871_v38 = vmov 0.0  }
   0xb   :  { %789 = vmatprep.subr.bf16.mxu0 %v871_v38  ;;  %829 = vmatprep.subr.bf16.mxu1 %v871_v38  ;;  %26 = vst.msk [vmem:[#allocation2] sm:$0xff] %vm25_vm2, %v871_v38  ;;  %27 = vst.msk [vmem:[#allocation2 + $0x8] sm:$0xff] %vm25_vm2, %v871_v38 }
   0xc   :  { %v126_v42 = vsel %vm77_vm0, %v76_v41, 0.0  ;;  %793 = vmatprep.mubr.msk.bf16.mxu0 %vm872_vm1, %v871_v38  ;;  %813 = vmatprep.mubr.msk.bf16.mxu1 %vm872_vm1, %v871_v38  ;;  %28 = vst.msk [vmem:[#allocation2 + $0x10] sm:$0xff] %vm25_vm2, %v871_v38  ;;  %29 = vst.msk [vmem:[#allocation2 + $0x18] sm:$0xff] %vm25_vm2, %v871_v38 }
   0xd   :  { %109 = vadd.xlane.f32.xlu0 %v108_v14  ;;  %112 = vadd.xlane.f32.xlu1 %v111_v15  ;;  %30 = vst.msk [vmem:[#allocation2 + $0x20] sm:$0xff] %vm25_vm2, %v871_v38  ;;  %31 = vst.msk [vmem:[#allocation2 + $0x28] sm:$0xff] %vm25_vm2, %v871_v38 }
   0xe   :  { %32 = vst.msk [vmem:[#allocation2 + $0x30] sm:$0xff] %vm25_vm2, %v871_v38  ;;  %33 = vst.msk [vmem:[#allocation2 + $0x38] sm:$0xff] %vm25_vm2, %v871_v38 }
   0xf   :  { %34 = vst.msk [vmem:[#allocation2 + $0x40] sm:$0xff] %vm25_vm2, %v871_v38  ;;  %35 = vst.msk [vmem:[#allocation2 + $0x48] sm:$0xff] %vm25_vm2, %v871_v38 }
  0x10   :  { %36 = vst.msk [vmem:[#allocation2 + $0x50] sm:$0xff] %vm25_vm2, %v871_v38  ;;  %37 = vst.msk [vmem:[#allocation2 + $0x58] sm:$0xff] %vm25_vm2, %v871_v38 }
  0x11   :  { %91 = vadd.xlane.f32.xlu0 %v90_v19  ;;  %94 = vadd.xlane.f32.xlu1 %v93_v20  ;;  %38 = vst.msk [vmem:[#allocation2 + $0x60] sm:$0xff] %vm25_vm2, %v871_v38  ;;  %39 = vst.msk [vmem:[#allocation2 + $0x68] sm:$0xff] %vm25_vm2, %v871_v38 }
  0x12   :  { %40 = vst.msk [vmem:[#allocation2 + $0x70] sm:$0xff] %vm25_vm2, %v871_v38  ;;  %41 = vst.msk [vmem:[#allocation2 + $0x78] sm:$0xff] %vm25_vm2, %v871_v38 }
  0x13   :  { %42 = vst.msk [vmem:[#allocation2 + $0x80] sm:$0xff] %vm25_vm2, %v871_v38 }
  0x15   :  { %115 = vadd.xlane.f32.xlu0 %v114_v24  ;;  %118 = vadd.xlane.f32.xlu1 %v117_v25 }
  0x19   :  { %97 = vadd.xlane.f32.xlu0 %v96_v29  ;;  %100 = vadd.xlane.f32.xlu1 %v99_v30 }
  0x1d   :  { %121 = vadd.xlane.f32.xlu0 %v120_v34  ;;  %124 = vadd.xlane.f32.xlu1 %v123_v35 }
  0x21   :  { %103 = vadd.xlane.f32.xlu0 %v102_v39  ;;  %106 = vadd.xlane.f32.xlu1 %v105_v40 }
  0x25   :  { %127 = vadd.xlane.f32.xlu0 %v126_v42 }
  0x8e   :  { %v80_v43 = vpop.xlane.xlu0 %79  ;;  %v86_v44 = vpop.xlane.xlu1 %85 }
  0x8f   :  { %v130_v45 = vmul.f32 0.03125, %v80_v43  ;;  %v132_v46 = vmul.f32 0.03125, %v86_v44 }
  0x91   :  { %v1012_v47 = vsub.f32 %v741_v2, %v130_v45  ;;  %v1014_v48 = vsub.f32 %v745_v3, %v132_v46 }
  0x92   :  { %v83_v49 = vpop.xlane.xlu0 %82  ;;  %v89_v50 = vpop.xlane.xlu1 %88 }
  0x93   :  { %v131_v51 = vmul.f32 0.03125, %v83_v49  ;;  %v133_v52 = vmul.f32 0.03125, %v89_v50  ;;  %v164_v53 = vmul.f32 %v1012_v47, %v1012_v47  ;;  %v166_v54 = vmul.f32 %v1014_v48, %v1014_v48 }
  0x95   :  { %v1022_v55 = vsub.f32 %v742_v4, %v131_v51  ;;  %v1026_v56 = vsub.f32 %v746_v5, %v133_v52  ;;  %v181_v57 = vsel %vm77_vm0, %v164_v53, 0.0  ;;  %v187_v60 = vsel %vm77_vm0, %v166_v54, 0.0 }
  0x96   :  { %182 = vadd.xlane.f32.xlu1 %v181_v57  ;;  %v110_v58 = vpop.xlane.xlu0 %109  ;;  %v113_v59 = vpop.xlane.xlu1 %112 }
  0x97   :  { %v140_v61 = vmul.f32 0.03125, %v110_v58  ;;  %v141_v62 = vmul.f32 0.03125, %v113_v59  ;;  %v165_v63 = vmul.f32 %v1022_v55, %v1022_v55  ;;  %v167_v0 = vmul.f32 %v1026_v56, %v1026_v56 }
  0x99   :  { %v1036_v1 = vsub.f32 %v761_v11, %v140_v61  ;;  %v1040_v2 = vsub.f32 %v762_v12, %v141_v62  ;;  %v184_v3 = vsel %vm77_vm0, %v165_v63, 0.0  ;;  %v190_v7 = vsel %vm77_vm0, %v167_v0, 0.0 }
  0x9a   :  { %188 = vadd.xlane.f32.xlu1 %v187_v60  ;;  %185 = vadd.xlane.f32.xlu0 %v184_v3  ;;  %v92_v4 = vpop.xlane.xlu0 %91  ;;  %v95_v5 = vpop.xlane.xlu1 %94 }
  0x9b   :  { %v134_v8 = vmul.f32 0.03125, %v92_v4  ;;  %v135_v9 = vmul.f32 0.03125, %v95_v5  ;;  %v174_v10 = vmul.f32 %v1036_v1, %v1036_v1  ;;  %v175_v11 = vmul.f32 %v1040_v2, %v1040_v2 }
  0x9d   :  { %v1050_v6 = vsub.f32 %v749_v16, %v134_v8  ;;  %v1054_v12 = vsub.f32 %v750_v17, %v135_v9  ;;  %v211_v14 = vsel %vm77_vm0, %v174_v10, 0.0  ;;  %v214_v20 = vsel %vm77_vm0, %v175_v11, 0.0  ;;  %v835_v9 = vld [vmem:[%s1367_s1 + $0x8] sm:$0xff]  }
  0x9e   :  { %191 = vadd.xlane.f32.xlu0 %v190_v7  ;;  %212 = vadd.xlane.f32.xlu1 %v211_v14  ;;  %v116_v15 = vpop.xlane.xlu0 %115  ;;  %v119_v19 = vpop.xlane.xlu1 %118 }
  0x9f   :  { %v142_v24 = vmul.f32 0.03125, %v116_v15  ;;  %v143_v25 = vmul.f32 0.03125, %v119_v19  ;;  %v168_v29 = vmul.f32 %v1050_v6, %v1050_v6  ;;  %v169_v16 = vmul.f32 %v1054_v12, %v1054_v12  ;;  %790 = vmatpush3.bf16.msra.mxu0 %v835_v9  ;;  %831 = vmatpush3.bf16.msra.mxu1 %v835_v9 }
  0xa0   :  { %791 = vmatprep.subr.bf16.mxu0 %v871_v38  ;;  %830 = vmatprep.subr.bf16.mxu1 %v871_v38 }
  0xa1   :  { %v1064_v13 = vsub.f32 %v765_v21, %v142_v24  ;;  %v1068_v17 = vsub.f32 %v766_v22, %v143_v25  ;;  %v193_v30 = vsel %vm77_vm0, %v168_v29, 0.0  ;;  %v196_v39 = vsel %vm77_vm0, %v169_v16, 0.0 }
  0xa2   :  { %215 = vadd.xlane.f32.xlu0 %v214_v20  ;;  %194 = vadd.xlane.f32.xlu1 %v193_v30  ;;  %v98_v34 = vpop.xlane.xlu0 %97  ;;  %v101_v35 = vpop.xlane.xlu1 %100 }
  0xa3   :  { %v136_v40 = vmul.f32 0.03125, %v98_v34  ;;  %v137_v42 = vmul.f32 0.03125, %v101_v35  ;;  %v176_v43 = vmul.f32 %v1064_v13, %v1064_v13  ;;  %v177_v21 = vmul.f32 %v1068_v17, %v1068_v17 }
  0xa5   :  { %v1078_v18 = vsub.f32 %v753_v26, %v136_v40  ;;  %v1082_v22 = vsub.f32 %v754_v27, %v137_v42  ;;  %v217_v44 = vsel %vm77_vm0, %v176_v43, 0.0  ;;  %v220_v49 = vsel %vm77_vm0, %v177_v21, 0.0 }
  0xa6   :  { %197 = vadd.xlane.f32.xlu0 %v196_v39  ;;  %218 = vadd.xlane.f32.xlu1 %v217_v44  ;;  %v122_v45 = vpop.xlane.xlu0 %121  ;;  %v125_v46 = vpop.xlane.xlu1 %124 }
  0xa7   :  { %v144_v50 = vmul.f32 0.03125, %v122_v45  ;;  %v145_v51 = vmul.f32 0.03125, %v125_v46  ;;  %v170_v52 = vmul.f32 %v1078_v18, %v1078_v18  ;;  %v171_v26 = vmul.f32 %v1082_v22, %v1082_v22 }
  0xa9   :  { %v1092_v23 = vsub.f32 %v769_v31, %v144_v50  ;;  %v1096_v27 = vsub.f32 %v770_v32, %v145_v51  ;;  %v199_v53 = vsel %vm77_vm0, %v170_v52, 0.0  ;;  %v202_v58 = vsel %vm77_vm0, %v171_v26, 0.0 }
  0xaa   :  { %221 = vadd.xlane.f32.xlu0 %v220_v49  ;;  %200 = vadd.xlane.f32.xlu1 %v199_v53  ;;  %v104_v54 = vpop.xlane.xlu0 %103  ;;  %v107_v57 = vpop.xlane.xlu1 %106 }
  0xab   :  { %v138_v59 = vmul.f32 0.03125, %v104_v54  ;;  %v139_v60 = vmul.f32 0.03125, %v107_v57  ;;  %v178_v61 = vmul.f32 %v1092_v23, %v1092_v23  ;;  %v179_v31 = vmul.f32 %v1096_v27, %v1096_v27 }
  0xad   :  { %v1106_v28 = vsub.f32 %v757_v36, %v138_v59  ;;  %v1110_v32 = vsub.f32 %v758_v37, %v139_v60  ;;  %v223_v62 = vsel %vm77_vm0, %v178_v61, 0.0  ;;  %v226_v3 = vsel %vm77_vm0, %v179_v31, 0.0  ;;  %v1179_v31 = vld [vmem:[%s1368_s3] ss:$0 sm:$0xff] }
  0xae   :  { %203 = vadd.xlane.f32.xlu0 %v202_v58  ;;  %224 = vadd.xlane.f32.xlu1 %v223_v62  ;;  %v128_v63 = vpop.xlane.xlu0 %127 }
  0xaf   :  { %v146_v0 = vmul.f32 0.03125, %v128_v63  ;;  %v172_v4 = vmul.f32 %v1106_v28, %v1106_v28  ;;  %v173_v5 = vmul.f32 %v1110_v32, %v1110_v32 }
  0xb1   :  { %v1120_v36 = vsub.f32 %v76_v41, %v146_v0  ;;  %v205_v33 = vsel %vm77_vm0, %v172_v4, 0.0  ;;  %v208_v37 = vsel %vm77_vm0, %v173_v5, 0.0  ;;  %v836_v41 = vld [vmem:[%s1367_s1] sm:$0xff]  }
  0xb2   :  { %227 = vadd.xlane.f32.xlu0 %v226_v3  ;;  %206 = vadd.xlane.f32.xlu1 %v205_v33 }
  0xb3   :  { %v180_v7 = vmul.f32 %v1120_v36, %v1120_v36  ;;  %792 = vmatpush3.bf16.msra.mxu0 %v836_v41  ;;  %832 = vmatpush3.bf16.msra.mxu1 %v836_v41 }
  0xb5   :  { %v229_v8 = vsel %vm77_vm0, %v180_v7, 0.0 }
  0xb6   :  { %209 = vadd.xlane.f32.xlu0 %v208_v37  ;;  %230 = vadd.xlane.f32.xlu1 %v229_v8  ;;  %v1186_v8 = vld [vmem:[%s1369_s4] ss:$0 sm:$0xff] }
 0x11f   :  { %v183_v10 = vpop.xlane.xlu1 %182 }
 0x120   :  { %v232_v11 = vmul.f32 0.03125, %v183_v10 }
 0x122   :  { %v249_v14 = vadd.f32 1e-06, %v232_v11 }
 0x123   :  { %v189_v15 = vpop.xlane.xlu1 %188  ;;  %v186_v19 = vpop.xlane.xlu0 %185 }
 0x124   :  { %837 = vrsqrt.f32 %v249_v14  ;;  %v234_v20 = vmul.f32 0.03125, %v189_v15  ;;  %v233_v24 = vmul.f32 0.03125, %v186_v19 }
 0x126   :  { %v251_v25 = vadd.f32 1e-06, %v234_v20  ;;  %v250_v29 = vadd.f32 1e-06, %v233_v24 }
 0x127   :  { %v213_v16 = vpop.xlane.xlu1 %212  ;;  %v192_v30 = vpop.xlane.xlu0 %191 }
 0x128   :  { %839 = vrsqrt.f32 %v251_v25  ;;  %v242_v34 = vmul.f32 0.03125, %v213_v16  ;;  %v235_v35 = vmul.f32 0.03125, %v192_v30 }
 0x129   :  { %841 = vrsqrt.f32 %v250_v29 }
 0x12a   :  { %v259_v39 = vadd.f32 1e-06, %v242_v34  ;;  %v252_v40 = vadd.f32 1e-06, %v235_v35 }
 0x12b   :  { %v195_v42 = vpop.xlane.xlu1 %194  ;;  %v216_v43 = vpop.xlane.xlu0 %215 }
 0x12c   :  { %843 = vrsqrt.f32 %v259_v39  ;;  %v236_v21 = vmul.f32 0.03125, %v195_v42  ;;  %v243_v44 = vmul.f32 0.03125, %v216_v43 }
 0x12d   :  { %845 = vrsqrt.f32 %v252_v40 }
 0x12e   :  { %v253_v45 = vadd.f32 1e-06, %v236_v21  ;;  %v260_v46 = vadd.f32 1e-06, %v243_v44 }
 0x12f   :  { %v219_v49 = vpop.xlane.xlu1 %218  ;;  %v198_v50 = vpop.xlane.xlu0 %197 }
 0x130   :  { %v244_v51 = vmul.f32 0.03125, %v219_v49  ;;  %v237_v52 = vmul.f32 0.03125, %v198_v50  ;;  %847 = vrsqrt.f32 %v260_v46 }
 0x131   :  { %v838_v26 = vpop.eup %837  ;;  %849 = vrsqrt.f32 %v253_v45 }
 0x132   :  { %v261_v53 = vadd.f32 1e-06, %v244_v51  ;;  %v254_v54 = vadd.f32 1e-06, %v237_v52  ;;  %v283_v59 = vmul.f32 %v838_v26, %v1012_v47 }
 0x133   :  { %v201_v57 = vpop.xlane.xlu1 %200  ;;  %v222_v58 = vpop.xlane.xlu0 %221 }
 0x134   :  { %851 = vrsqrt.f32 %v261_v53  ;;  %v238_v60 = vmul.f32 0.03125, %v201_v57  ;;  %v245_v61 = vmul.f32 0.03125, %v222_v58  ;;  %v307_v37 = vmul.f32 %v1179_v31, %v283_v59 }
 0x135   :  { %v840_v62 = vpop.eup %839  ;;  %853 = vrsqrt.f32 %v254_v54 }
 0x136   :  { %v842_v63 = vpop.eup %841  ;;  %v255_v0 = vadd.f32 1e-06, %v238_v60  ;;  %v262_v3 = vadd.f32 1e-06, %v245_v61  ;;  %v285_v10 = vmul.f32 %v840_v62, %v1014_v48  ;;  %v331_v24 = vadd.f32 %v1186_v8, %v307_v37 }
 0x137   :  { %v225_v4 = vpop.xlane.xlu1 %224  ;;  %v204_v5 = vpop.xlane.xlu0 %203  ;;  %v284_v33 = vmul.f32 %v842_v63, %v1022_v55 }
 0x138   :  { %v246_v47 = vmul.f32 0.03125, %v225_v4  ;;  %v239_v7 = vmul.f32 0.03125, %v204_v5  ;;  %855 = vrsqrt.f32 %v262_v3  ;;  %v309_v48 = vmul.f32 %v1179_v31, %v285_v10 }
 0x139   :  { %v844_v9 = vpop.eup %843  ;;  %v308_v41 = vmul.f32 %v1179_v31, %v284_v33  ;;  %857 = vrsqrt.f32 %v255_v0 }
 0x13a   :  { %v846_v11 = vpop.eup %845  ;;  %v263_v14 = vadd.f32 1e-06, %v246_v47  ;;  %v256_v15 = vadd.f32 1e-06, %v239_v7  ;;  %v293_v55 = vmul.f32 %v844_v9, %v1036_v1  ;;  %v333_v50 = vadd.f32 %v1186_v8, %v309_v48 }
 0x13b   :  { %v207_v19 = vpop.xlane.xlu1 %206  ;;  %v228_v20 = vpop.xlane.xlu0 %227  ;;  %v332_v25 = vadd.f32 %v1186_v8, %v308_v41  ;;  %v286_v29 = vmul.f32 %v846_v11, %v1026_v56 }
 0x13c   :  { %859 = vrsqrt.f32 %v263_v14  ;;  %v240_v16 = vmul.f32 0.03125, %v207_v19  ;;  %v247_v30 = vmul.f32 0.03125, %v228_v20  ;;  %v317_v1 = vmul.f32 %v1179_v31, %v293_v55 }
 0x13d   :  { %861 = vrsqrt.f32 %v256_v15  ;;  %v348_v34 = vpack.c.bf16 %v332_v25, %v331_v24  ;;  %v310_v35 = vmul.f32 %v1179_v31, %v286_v29  ;;  %v848_v39 = vpop.eup %847 }
 0x13e   :  { %v264_v40 = vadd.f32 1e-06, %v247_v30  ;;  %v850_v42 = vpop.eup %849  ;;  %v257_v43 = vadd.f32 1e-06, %v240_v16  ;;  %v294_v56 = vmul.f32 %v848_v39, %v1040_v2  ;;  %v341_v57 = vadd.f32 %v1186_v8, %v317_v1 }
 0x13f   :  { %794 = vmatmul.mubr.msk.bf16.vlgmr.msra.gmra.mxu0 %vm77_vm0, %v348_v34  ;;  %v231_v21 = vpop.xlane.xlu1 %230  ;;  %v210_v44 = vpop.xlane.xlu0 %209  ;;  %v334_v51 = vadd.f32 %v1186_v8, %v310_v35  ;;  %v287_v2 = vmul.f32 %v850_v42, %v1050_v6 }
 0x140   :  { %v248_v45 = vmul.f32 0.03125, %v231_v21  ;;  %v241_v46 = vmul.f32 0.03125, %v210_v44  ;;  %797 = vmatprep.mubr.msk.bf16.mxu0 %vm872_vm1, %v871_v38  ;;  %863 = vrsqrt.f32 %v264_v40  ;;  %v318_v52 = vmul.f32 %v1179_v31, %v294_v56  ;;  %v357_v56 = vld [vmem:[#allocation2] sm:$0xff] }
 0x141   :  { %v852_v49 = vpop.eup %851  ;;  %865 = vrsqrt.f32 %v257_v43  ;;  %v349_v61 = vpack.c.bf16 %v334_v51, %v333_v50  ;;  %v311_v3 = vmul.f32 %v1179_v31, %v287_v2 }
 0x142   :  { %v854_v26 = vpop.eup %853  ;;  %v265_v53 = vadd.f32 1e-06, %v248_v45  ;;  %v258_v54 = vadd.f32 1e-06, %v241_v46  ;;  %v342_v58 = vadd.f32 %v1186_v8, %v318_v52  ;;  %v295_v60 = vmul.f32 %v852_v49, %v1064_v13  ;;  %v358_v49 = vld [vmem:[#allocation2 + $0x8] sm:$0xff]  ;;  %v359_v52 = vld [vmem:[#allocation2 + $0x10] sm:$0xff] }
 0x143   :  { %v288_v59 = vmul.f32 %v854_v26, %v1054_v12  ;;  %v335_v47 = vadd.f32 %v1186_v8, %v311_v3  ;;  %v367_v26 = vld [vmem:[#allocation2 + $0x50] sm:$0xff] }
 0x144   :  { %867 = vrsqrt.f32 %v265_v53  ;;  %v353_v62 = vpack.c.bf16 %v342_v58, %v341_v57  ;;  %v319_v12 = vmul.f32 %v1179_v31, %v295_v60 }
 0x145   :  { %869 = vrsqrt.f32 %v258_v54  ;;  %v312_v63 = vmul.f32 %v1179_v31, %v288_v59  ;;  %v856_v0 = vpop.eup %855 }
 0x146   :  { %v858_v4 = vpop.eup %857  ;;  %814 = vmatmul.mubr.msk.bf16.vlgmr.msra.gmra.mxu1 %vm77_vm0, %v353_v62  ;;  %v296_v6 = vmul.f32 %v856_v0, %v1068_v17  ;;  %v343_v17 = vadd.f32 %v1186_v8, %v319_v12  ;;  %v368_v62 = vld [vmem:[#allocation2 + $0x58] sm:$0xff] }
 0x147   :  { %798 = vmatmul.mubr.msk.bf16.gmra.mxu0 %vm77_vm0, %v349_v61  ;;  %817 = vmatprep.mubr.msk.bf16.mxu1 %vm872_vm1, %v871_v38  ;;  %v336_v5 = vadd.f32 %v1186_v8, %v312_v63  ;;  %v289_v7 = vmul.f32 %v858_v4, %v1078_v18  ;;  %v360_v61 = vld [vmem:[#allocation2 + $0x18] sm:$0xff] }
 0x148   :  { %801 = vmatprep.mubr.msk.bf16.mxu0 %vm872_vm1, %v871_v38  ;;  %v320_v33 = vmul.f32 %v1179_v31, %v296_v6 }
 0x149   :  { %v860_v13 = vpop.eup %859  ;;  %v350_v11 = vpack.c.bf16 %v336_v5, %v335_v47  ;;  %v313_v19 = vmul.f32 %v1179_v31, %v289_v7  ;;  %v369_v47 = vld [vmem:[#allocation2 + $0x60] sm:$0xff] }
 0x14a   :  { %v862_v37 = vpop.eup %861  ;;  %v344_v9 = vadd.f32 %v1186_v8, %v320_v33  ;;  %v297_v10 = vmul.f32 %v860_v13, %v1092_v23 }
 0x14b   :  { %v290_v41 = vmul.f32 %v862_v37, %v1082_v22  ;;  %v337_v16 = vadd.f32 %v1186_v8, %v313_v19  ;;  %v361_v37 = vld [vmem:[#allocation2 + $0x20] sm:$0xff] }
 0x14c   :  { %v354_v14 = vpack.c.bf16 %v344_v9, %v343_v17  ;;  %v321_v20 = vmul.f32 %v1179_v31, %v297_v10 }
 0x14d   :  { %v314_v15 = vmul.f32 %v1179_v31, %v290_v41  ;;  %v864_v55 = vpop.eup %863 }
 0x14e   :  { %818 = vmatmul.mubr.msk.bf16.gmra.mxu1 %vm77_vm0, %v354_v14  ;;  %v298_v18 = vmul.f32 %v864_v55, %v1096_v27  ;;  %v866_v24 = vpop.eup %865  ;;  %v345_v27 = vadd.f32 %v1186_v8, %v321_v20  ;;  %v362_v14 = vld [vmem:[#allocation2 + $0x28] sm:$0xff] }
 0x14f   :  { %802 = vmatmul.mubr.msk.bf16.gmra.mxu0 %vm77_vm0, %v350_v11  ;;  %821 = vmatprep.mubr.msk.bf16.mxu1 %vm872_vm1, %v871_v38  ;;  %v338_v23 = vadd.f32 %v1186_v8, %v314_v15  ;;  %v291_v48 = vmul.f32 %v866_v24, %v1106_v28  ;;  %v370_v20 = vld [vmem:[#allocation2 + $0x68] sm:$0xff] }
 0x150   :  { %805 = vmatprep.mubr.msk.bf16.mxu0 %vm872_vm1, %v871_v38  ;;  %v322_v25 = vmul.f32 %v1179_v31, %v298_v18 }
 0x151   :  { %v868_v22 = vpop.eup %867  ;;  %v351_v39 = vpack.c.bf16 %v338_v23, %v337_v16 }
 0x152   :  { %v870_v29 = vpop.eup %869  ;;  %v299_v30 = vmul.f32 %v868_v22, %v1120_v36  ;;  %v346_v34 = vadd.f32 %v1186_v8, %v322_v25  ;;  %v315_v36 = vmul.f32 %v1179_v31, %v291_v48 }
 0x153   :  { %v292_v35 = vmul.f32 %v870_v29, %v1110_v32 }
 0x154   :  { %v355_v40 = vpack.c.bf16 %v346_v34, %v345_v27  ;;  %v323_v42 = vmul.f32 %v1179_v31, %v299_v30  ;;  %v339_v43 = vadd.f32 %v1186_v8, %v315_v36  ;;  %v363_v34 = vld [vmem:[#allocation2 + $0x30] sm:$0xff] }
 0x155   :  { %v316_v1 = vmul.f32 %v1179_v31, %v292_v35 }
 0x156   :  { %822 = vmatmul.mubr.msk.bf16.gmra.mxu1 %vm77_vm0, %v355_v40  ;;  %v347_v32 = vadd.f32 %v1186_v8, %v323_v42 }
 0x157   :  { %806 = vmatmul.mubr.msk.bf16.gmra.mxu0 %vm77_vm0, %v351_v39  ;;  %825 = vmatprep.mubr.msk.bf16.mxu1 %vm872_vm1, %v871_v38  ;;  %v340_v28 = vadd.f32 %v1186_v8, %v316_v1  ;;  %v1264_v8 = vld [vmem:[%s1370_s2] ss:$0 sm:$0xff]  ;;  %v371_v1 = vld [vmem:[#allocation2 + $0x70] sm:$0xff] }
 0x158   :  { %809 = vmatprep.mubr.msk.bf16.mxu0 %vm872_vm1, %v871_v38  ;;  %v356_v44 = vpack.c.bf16 %v347_v32, %v347_v32 }
 0x159   :  { %v352_v21 = vpack.c.bf16 %v340_v28, %v339_v43 }
 0x15e   :  { %826 = vmatmul.mubr.msk.bf16.gmra.mxu1 %vm77_vm0, %v356_v44 }
 0x15f   :  { %810 = vmatmul.mubr.msk.bf16.gmra.mxu0 %vm77_vm0, %v352_v21 }
 0x1ff   :  { %v451_v31 = vpop.f32.mrf.mxu0 }
 0x200   :  { %v521_v45 = vadd.f32 %v451_v31, %v357_v56  ;;  %v364_v31 = vld [vmem:[#allocation2 + $0x38] sm:$0xff] }
 0x201   :  { %v795_v46 = vpop.f32.mrf.mxu0 }
 0x202   :  { %539 = vst.msk [vmem:[#allocation2] sm:$0xff] %vm25_vm2, %v521_v45 }
 0x203   :  { %v454_v38 = vpop.f32.mrf.mxu0 }
 0x204   :  { %v522_v50 = vadd.f32 %v454_v38, %v358_v49 }
 0x205   :  { %v796_v51 = vpop.f32.mrf.mxu0 }
 0x206   :  { %540 = vst.msk [vmem:[#allocation2 + $0x8] sm:$0xff] %vm25_vm2, %v522_v50  ;;  %v491_v54 = vpop.f32.mrf.mxu1  ;;  %v372_v50 = vld [vmem:[#allocation2 + $0x78] sm:$0xff] }
 0x207   :  { %v459_v53 = vpop.f32.mrf.mxu0  ;;  %v531_v2 = vadd.f32 %v491_v54, %v367_v26 }
 0x208   :  { %v523_v57 = vadd.f32 %v459_v53, %v359_v52  ;;  %v815_v60 = vpop.f32.mrf.mxu1 }
 0x209   :  { %v559_v58 = vld [vmem:[#allocation2] sm:$0xff]  ;;  %v799_v59 = vpop.f32.mrf.mxu0  ;;  %549 = vst.msk [vmem:[#allocation2 + $0x50] sm:$0xff] %vm25_vm2, %v531_v2 }
 0x20a   :  { %v583_v63 = vadd.f32 %v1264_v8, %v559_v58  ;;  %541 = vst.msk [vmem:[#allocation2 + $0x10] sm:$0xff] %vm25_vm2, %v523_v57  ;;  %v494_v3 = vpop.f32.mrf.mxu1  ;;  %v365_v59 = vld [vmem:[#allocation2 + $0x40] sm:$0xff] }
 0x20b   :  { %v462_v0 = vpop.f32.mrf.mxu0  ;;  %v532_v12 = vadd.f32 %v494_v3, %v368_v62 }
 0x20c   :  { %v722_v4 = vpack.c.bf16 %v583_v63, %v583_v63  ;;  %v524_v6 = vadd.f32 %v462_v0, %v360_v61  ;;  %v816_v33 = vpop.f32.mrf.mxu1  ;;  %v373_v0 = vld [vmem:[#allocation2 + $0x80] sm:$0xff] }
 0x20d   :  { %v560_v13 = vld [vmem:[#allocation2 + $0x8] sm:$0xff]  ;;  %v800_v5 = vpop.f32.mrf.mxu0  ;;  %550 = vst.msk [vmem:[#allocation2 + $0x58] sm:$0xff] %vm25_vm2, %v532_v12 }
 0x20e   :  { %670 = vst.msk [vmem:[%s1371_s5] sm:$0xf] %vm669_vm3, %v722_v4  ;;  %v584_v7 = vadd.f32 %v1264_v8, %v560_v13  ;;  %v499_v9 = vpop.f32.mrf.mxu1 }
 0x20f   :  { %542 = vst.msk [vmem:[#allocation2 + $0x18] sm:$0xff] %vm25_vm2, %v524_v6  ;;  %v467_v17 = vpop.f32.mrf.mxu0  ;;  %v533_v11 = vadd.f32 %v499_v9, %v369_v47 }
 0x210   :  { %v723_v41 = vpack.c.bf16 %v584_v7, %v584_v7  ;;  %v525_v10 = vadd.f32 %v467_v17, %v361_v37  ;;  %v569_v55 = vld [vmem:[#allocation2 + $0x50] sm:$0xff]  ;;  %v819_v18 = vpop.f32.mrf.mxu1 }
 0x211   :  { %v561_v15 = vld [vmem:[#allocation2 + $0x10] sm:$0xff]  ;;  %v803_v19 = vpop.f32.mrf.mxu0  ;;  %v593_v22 = vadd.f32 %v1264_v8, %v569_v55  ;;  %551 = vst.msk [vmem:[#allocation2 + $0x60] sm:$0xff] %vm25_vm2, %v533_v11 }
 0x212   :  { %671 = vst.msk [vmem:[%s1371_s5 + $0x4] sm:$0xf] %vm669_vm3, %v723_v41  ;;  %v585_v24 = vadd.f32 %v1264_v8, %v561_v15  ;;  %v502_v25 = vpop.f32.mrf.mxu1  ;;  %v366_v41 = vld [vmem:[#allocation2 + $0x48] sm:$0xff] }
 0x213   :  { %543 = vst.msk [vmem:[#allocation2 + $0x20] sm:$0xff] %vm25_vm2, %v525_v10  ;;  %v470_v23 = vpop.f32.mrf.mxu0  ;;  %v732_v16 = vpack.c.bf16 %v593_v22, %v593_v22  ;;  %v534_v27 = vadd.f32 %v502_v25, %v370_v20 }
 0x214   :  { %v724_v29 = vpack.c.bf16 %v585_v24, %v585_v24  ;;  %v526_v30 = vadd.f32 %v470_v23, %v362_v14  ;;  %v570_v35 = vld [vmem:[#allocation2 + $0x58] sm:$0xff]  ;;  %v820_v40 = vpop.f32.mrf.mxu1 }
 0x215   :  { %v804_v39 = vpop.f32.mrf.mxu0  ;;  %680 = vst.msk [vmem:[%s1371_s5 + $0x28] sm:$0xf] %vm669_vm3, %v732_v16  ;;  %v594_v36 = vadd.f32 %v1264_v8, %v570_v35 }
 0x216   :  { %v562_v48 = vld [vmem:[#allocation2 + $0x18] sm:$0xff]  ;;  %672 = vst.msk [vmem:[%s1371_s5 + $0x8] sm:$0xf] %vm669_vm3, %v724_v29  ;;  %v507_v32 = vpop.f32.mrf.mxu1 }
 0x217   :  { %v586_v42 = vadd.f32 %v1264_v8, %v562_v48  ;;  %544 = vst.msk [vmem:[#allocation2 + $0x28] sm:$0xff] %vm25_vm2, %v526_v30  ;;  %552 = vst.msk [vmem:[#allocation2 + $0x68] sm:$0xff] %vm25_vm2, %v534_v27  ;;  %v475_v28 = vpop.f32.mrf.mxu0  ;;  %v733_v21 = vpack.c.bf16 %v594_v36, %v594_v36  ;;  %v535_v56 = vadd.f32 %v507_v32, %v371_v1 }
 0x218   :  { %v527_v44 = vadd.f32 %v475_v28, %v363_v34  ;;  %v571_v46 = vld [vmem:[#allocation2 + $0x60] sm:$0xff]  ;;  %v823_v38 = vpop.f32.mrf.mxu1 }
 0x219   :  { %v725_v43 = vpack.c.bf16 %v586_v42, %v586_v42  ;;  %v807_v49 = vpop.f32.mrf.mxu0  ;;  %681 = vst.msk [vmem:[%s1371_s5 + $0x2c] sm:$0xf] %vm669_vm3, %v733_v21  ;;  %v595_v52 = vadd.f32 %v1264_v8, %v571_v46 }
 0x21a   :  { %v563_v45 = vld [vmem:[#allocation2 + $0x20] sm:$0xff]  ;;  %545 = vst.msk [vmem:[#allocation2 + $0x30] sm:$0xff] %vm25_vm2, %v527_v44  ;;  %553 = vst.msk [vmem:[#allocation2 + $0x70] sm:$0xff] %vm25_vm2, %v535_v56  ;;  %v510_v53 = vpop.f32.mrf.mxu1 }
 0x21b   :  { %673 = vst.msk [vmem:[%s1371_s5 + $0xc] sm:$0xf] %vm669_vm3, %v725_v43  ;;  %v587_v51 = vadd.f32 %v1264_v8, %v563_v45  ;;  %v478_v26 = vpop.f32.mrf.mxu0  ;;  %v734_v57 = vpack.c.bf16 %v595_v52, %v595_v52  ;;  %v536_v58 = vadd.f32 %v510_v53, %v372_v50 }
 0x21c   :  { %v528_v2 = vadd.f32 %v478_v26, %v364_v31  ;;  %v824_v63 = vpop.f32.mrf.mxu1 }
 0x21d   :  { %v726_v54 = vpack.c.bf16 %v587_v51, %v587_v51  ;;  %v808_v62 = vpop.f32.mrf.mxu0  ;;  %682 = vst.msk [vmem:[%s1371_s5 + $0x30] sm:$0xf] %vm669_vm3, %v734_v57 }
 0x21e   :  { %v564_v60 = vld [vmem:[#allocation2 + $0x28] sm:$0xff]  ;;  %546 = vst.msk [vmem:[#allocation2 + $0x38] sm:$0xff] %vm25_vm2, %v528_v2  ;;  %554 = vst.msk [vmem:[#allocation2 + $0x78] sm:$0xff] %vm25_vm2, %v536_v58  ;;  %v515_v12 = vpop.f32.mrf.mxu1 }
 0x21f   :  { %v572_v61 = vld [vmem:[#allocation2 + $0x68] sm:$0xff]  ;;  %674 = vst.msk [vmem:[%s1371_s5 + $0x10] sm:$0xf] %vm669_vm3, %v726_v54  ;;  %v588_v3 = vadd.f32 %v1264_v8, %v564_v60  ;;  %v483_v6 = vpop.f32.mrf.mxu0  ;;  %v537_v37 = vadd.f32 %v515_v12, %v373_v0 }
 0x220   :  { %v596_v4 = vadd.f32 %v1264_v8, %v572_v61  ;;  %v529_v33 = vadd.f32 %v483_v6, %v365_v59  ;;  %v827_v9 = vpop.f32.mrf.mxu1 }
 0x221   :  { %v727_v13 = vpack.c.bf16 %v588_v3, %v588_v3  ;;  %v565_v47 = vld [vmem:[#allocation2 + $0x30] sm:$0xff]  ;;  %v811_v17 = vpop.f32.mrf.mxu0  ;;  %555 = vst.msk [vmem:[#allocation2 + $0x80] sm:$0xff] %vm25_vm2, %v537_v37 }
 0x222   :  { %v735_v5 = vpack.c.bf16 %v596_v4, %v596_v4  ;;  %v573_v7 = vld [vmem:[#allocation2 + $0x70] sm:$0xff]  ;;  %v589_v10 = vadd.f32 %v1264_v8, %v565_v47  ;;  %547 = vst.msk [vmem:[#allocation2 + $0x40] sm:$0xff] %vm25_vm2, %v529_v33  ;;  %v518_v15 = vpop.f32.mrf.mxu1 }
 0x223   :  { %675 = vst.msk [vmem:[%s1371_s5 + $0x14] sm:$0xf] %vm669_vm3, %v727_v13  ;;  %v597_v11 = vadd.f32 %v1264_v8, %v573_v7  ;;  %v486_v14 = vpop.f32.mrf.mxu0 }
 0x224   :  { %683 = vst.msk [vmem:[%s1371_s5 + $0x34] sm:$0xf] %vm669_vm3, %v735_v5  ;;  %v728_v55 = vpack.c.bf16 %v589_v10, %v589_v10  ;;  %v530_v18 = vadd.f32 %v486_v14, %v366_v41  ;;  %v828_v23 = vpop.f32.mrf.mxu1 }
 0x225   :  { %v736_v19 = vpack.c.bf16 %v597_v11, %v597_v11  ;;  %v566_v20 = vld [vmem:[#allocation2 + $0x38] sm:$0xff]  ;;  %v812_v22 = vpop.f32.mrf.mxu0 }
 0x226   :  { %v574_v24 = vld [vmem:[#allocation2 + $0x78] sm:$0xff]  ;;  %676 = vst.msk [vmem:[%s1371_s5 + $0x18] sm:$0xf] %vm669_vm3, %v728_v55  ;;  %v590_v25 = vadd.f32 %v1264_v8, %v566_v20 }
 0x227   :  { %684 = vst.msk [vmem:[%s1371_s5 + $0x38] sm:$0xf] %vm669_vm3, %v736_v19  ;;  %v598_v29 = vadd.f32 %v1264_v8, %v574_v24 }
 0x228   :  { %548 = vst.msk [vmem:[#allocation2 + $0x48] sm:$0xff] %vm25_vm2, %v530_v18  ;;  %v729_v16 = vpack.c.bf16 %v590_v25, %v590_v25  ;;  %v575_v34 = vld [vmem:[#allocation2 + $0x80] sm:$0xff] }
 0x229   :  { %v737_v30 = vpack.c.bf16 %v598_v29, %v598_v29  ;;  %v567_v27 = vld [vmem:[#allocation2 + $0x40] sm:$0xff]  ;;  %v599_v35 = vadd.f32 %v1264_v8, %v575_v34 }
 0x22a   :  { %677 = vst.msk [vmem:[%s1371_s5 + $0x1c] sm:$0xf] %vm669_vm3, %v729_v16  ;;  %v591_v48 = vadd.f32 %v1264_v8, %v567_v27 }
 0x22b   :  { %685 = vst.msk [vmem:[%s1371_s5 + $0x3c] sm:$0xf] %vm669_vm3, %v737_v30  ;;  %v738_v40 = vpack.c.bf16 %v599_v35, %v599_v35 }
 0x22c   :  { %v730_v39 = vpack.c.bf16 %v591_v48, %v591_v48 }
 0x22d   :  { %686 = vst.msk [vmem:[%s1371_s5 + $0x40] sm:$0xf] %vm669_vm3, %v738_v40 }
 0x22e   :  { %678 = vst.msk [vmem:[%s1371_s5 + $0x20] sm:$0xf] %vm669_vm3, %v730_v39 }
 0x22f   :  { %v568_v1 = vld [vmem:[#allocation2 + $0x48] sm:$0xff] }
 0x230   :  { %v592_v42 = vadd.f32 %v1264_v8, %v568_v1 }
 0x232   :  { %v731_v36 = vpack.c.bf16 %v592_v42, %v592_v42 }
 0x234   :  { %679 = vst.msk [vmem:[%s1371_s5 + $0x24] sm:$0xf] %vm669_vm3, %v731_v36 }

// kernel: _lambda_.33
= control target key start
LH: loop header
LB: loop body
LE: loop exit
PB: predicated region body
PF: predicated region fallthrough
CT: control target
= control target key end

     0   :  { %vm76_vm0 = vcmask 261120   ;;  %vm1103_vm1 = vmmov 0   ;;  %s1624_s0 = inlined_call_operand.vmem [shape: bf16[136,32], index: 0, kind: input, shape index: {}]   ;;  %s1625_s1 = inlined_call_operand.vmem [shape: bf16[32,128], index: 1, kind: input, shape index: {}]   ;;  %s1626_s3 = inlined_call_operand.vmem [shape: f32[1,32], index: 3, kind: input, shape index: {}]   ;;  %s1627_s4 = inlined_call_operand.vmem [shape: f32[1,32], index: 4, kind: input, shape index: {}]   ;;  %s1628_s2 = inlined_call_operand.vmem [shape: f32[1,128], index: 2, kind: input, shape index: {}]   ;;  %s1629_s5 = inlined_call_operand.vmem [shape: bf16[136,128], index: 5, kind: output, shape index: {}]  }
   0x1   :  { %v1137_v0 = vld [vmem:[%s1624_s0] sm:$0xff]   ;;  %v1142_v1 = vld [vmem:[%s1624_s0 + $0x8] sm:$0xff]   ;;  %v1166_v13 = vld [vmem:[%s1624_s0 + $0x10] sm:$0xff]  }
   0x2   :  { %v891_v2 = vunpack.c.l.bf16 %v1137_v0  ;;  %v895_v3 = vunpack.c.l.bf16 %v1142_v1  ;;  %v892_v4 = vunpack.c.h.bf16 %v1137_v0  ;;  %v896_v5 = vunpack.c.h.bf16 %v1142_v1  ;;  %v1151_v6 = vld [vmem:[%s1624_s0 + $0x28] sm:$0xff]   ;;  %v1179_v18 = vld [vmem:[%s1624_s0 + $0x30] sm:$0xff]   ;;  %v1192_v23 = vld [vmem:[%s1624_s0 + $0x18] sm:$0xff]  }
   0x3   :  { %v911_v11 = vunpack.c.l.bf16 %v1151_v6  ;;  %v912_v12 = vunpack.c.h.bf16 %v1151_v6  ;;  %v899_v16 = vunpack.c.l.bf16 %v1166_v13  ;;  %v900_v17 = vunpack.c.h.bf16 %v1166_v13  ;;  %v1205_v28 = vld [vmem:[%s1624_s0 + $0x38] sm:$0xff]   ;;  %v1218_v33 = vld [vmem:[%s1624_s0 + $0x20] sm:$0xff]  }
   0x4   :  { %v77_v7 = vsel %vm76_vm0, %v891_v2, 0.0  ;;  %v83_v8 = vsel %vm76_vm0, %v895_v3, 0.0  ;;  %v80_v9 = vsel %vm76_vm0, %v892_v4, 0.0  ;;  %v86_v10 = vsel %vm76_vm0, %v896_v5, 0.0  ;;  %v1231_v38 = vld [vmem:[%s1624_s0 + $0x40] sm:$0xf] }
   0x5   :  { %78 = vadd.xlane.f32.xlu0 %v77_v7  ;;  %84 = vadd.xlane.f32.xlu1 %v83_v8  ;;  %v107_v14 = vsel %vm76_vm0, %v911_v11, 0.0  ;;  %v110_v15 = vsel %vm76_vm0, %v912_v12, 0.0  ;;  %v89_v19 = vsel %vm76_vm0, %v899_v16, 0.0  ;;  %v92_v20 = vsel %vm76_vm0, %v900_v17, 0.0 }
   0x6   :  { %v915_v21 = vunpack.c.l.bf16 %v1179_v18  ;;  %v916_v22 = vunpack.c.h.bf16 %v1179_v18  ;;  %v903_v26 = vunpack.c.l.bf16 %v1192_v23  ;;  %v904_v27 = vunpack.c.h.bf16 %v1192_v23 }
   0x7   :  { %v919_v31 = vunpack.c.l.bf16 %v1205_v28  ;;  %v920_v32 = vunpack.c.h.bf16 %v1205_v28  ;;  %v907_v36 = vunpack.c.l.bf16 %v1218_v33  ;;  %v908_v37 = vunpack.c.h.bf16 %v1218_v33 }
   0x8   :  { %v113_v24 = vsel %vm76_vm0, %v915_v21, 0.0  ;;  %v116_v25 = vsel %vm76_vm0, %v916_v22, 0.0  ;;  %v95_v29 = vsel %vm76_vm0, %v903_v26, 0.0  ;;  %v98_v30 = vsel %vm76_vm0, %v904_v27, 0.0 }
   0x9   :  { %81 = vadd.xlane.f32.xlu0 %v80_v9  ;;  %87 = vadd.xlane.f32.xlu1 %v86_v10  ;;  %v119_v34 = vsel %vm76_vm0, %v919_v31, 0.0  ;;  %v122_v35 = vsel %vm76_vm0, %v920_v32, 0.0  ;;  %v101_v39 = vsel %vm76_vm0, %v907_v36, 0.0  ;;  %v104_v40 = vsel %vm76_vm0, %v908_v37, 0.0 }
   0xa   :  { %v75_v41 = vunpack.c.l.bf16 %v1231_v38  ;;  %v1102_v38 = vmov 0.0  }
   0xb   :  { %986 = vmatprep.subr.bf16.mxu0 %v1102_v38  ;;  %1026 = vmatprep.subr.bf16.mxu1 %v1102_v38 }
   0xc   :  { %v125_v42 = vsel %vm76_vm0, %v75_v41, 0.0  ;;  %990 = vmatprep.mubr.msk.bf16.mxu0 %vm1103_vm1, %v1102_v38  ;;  %1010 = vmatprep.mubr.msk.bf16.mxu1 %vm1103_vm1, %v1102_v38 }
   0xd   :  { %108 = vadd.xlane.f32.xlu0 %v107_v14  ;;  %111 = vadd.xlane.f32.xlu1 %v110_v15 }
  0x11   :  { %90 = vadd.xlane.f32.xlu0 %v89_v19  ;;  %93 = vadd.xlane.f32.xlu1 %v92_v20 }
  0x15   :  { %114 = vadd.xlane.f32.xlu0 %v113_v24  ;;  %117 = vadd.xlane.f32.xlu1 %v116_v25 }
  0x19   :  { %96 = vadd.xlane.f32.xlu0 %v95_v29  ;;  %99 = vadd.xlane.f32.xlu1 %v98_v30 }
  0x1d   :  { %120 = vadd.xlane.f32.xlu0 %v119_v34  ;;  %123 = vadd.xlane.f32.xlu1 %v122_v35 }
  0x21   :  { %102 = vadd.xlane.f32.xlu0 %v101_v39  ;;  %105 = vadd.xlane.f32.xlu1 %v104_v40 }
  0x25   :  { %126 = vadd.xlane.f32.xlu0 %v125_v42 }
  0x8e   :  { %v79_v43 = vpop.xlane.xlu0 %78  ;;  %v85_v44 = vpop.xlane.xlu1 %84 }
  0x8f   :  { %v129_v45 = vmul.f32 0.03125, %v79_v43  ;;  %v131_v46 = vmul.f32 0.03125, %v85_v44 }
  0x91   :  { %v1243_v47 = vsub.f32 %v891_v2, %v129_v45  ;;  %v1245_v48 = vsub.f32 %v895_v3, %v131_v46 }
  0x92   :  { %v82_v49 = vpop.xlane.xlu0 %81  ;;  %v88_v50 = vpop.xlane.xlu1 %87 }
  0x93   :  { %v130_v51 = vmul.f32 0.03125, %v82_v49  ;;  %v132_v52 = vmul.f32 0.03125, %v88_v50  ;;  %v163_v53 = vmul.f32 %v1243_v47, %v1243_v47  ;;  %v165_v54 = vmul.f32 %v1245_v48, %v1245_v48 }
  0x95   :  { %v1253_v55 = vsub.f32 %v892_v4, %v130_v51  ;;  %v1257_v56 = vsub.f32 %v896_v5, %v132_v52  ;;  %v180_v57 = vsel %vm76_vm0, %v163_v53, 0.0  ;;  %v186_v60 = vsel %vm76_vm0, %v165_v54, 0.0 }
  0x96   :  { %181 = vadd.xlane.f32.xlu1 %v180_v57  ;;  %v109_v58 = vpop.xlane.xlu0 %108  ;;  %v112_v59 = vpop.xlane.xlu1 %111 }
  0x97   :  { %v139_v61 = vmul.f32 0.03125, %v109_v58  ;;  %v140_v62 = vmul.f32 0.03125, %v112_v59  ;;  %v164_v63 = vmul.f32 %v1253_v55, %v1253_v55  ;;  %v166_v0 = vmul.f32 %v1257_v56, %v1257_v56 }
  0x99   :  { %v1267_v1 = vsub.f32 %v911_v11, %v139_v61  ;;  %v1271_v2 = vsub.f32 %v912_v12, %v140_v62  ;;  %v183_v3 = vsel %vm76_vm0, %v164_v63, 0.0  ;;  %v189_v7 = vsel %vm76_vm0, %v166_v0, 0.0 }
  0x9a   :  { %187 = vadd.xlane.f32.xlu1 %v186_v60  ;;  %184 = vadd.xlane.f32.xlu0 %v183_v3  ;;  %v91_v4 = vpop.xlane.xlu0 %90  ;;  %v94_v5 = vpop.xlane.xlu1 %93 }
  0x9b   :  { %v133_v8 = vmul.f32 0.03125, %v91_v4  ;;  %v134_v9 = vmul.f32 0.03125, %v94_v5  ;;  %v173_v10 = vmul.f32 %v1267_v1, %v1267_v1  ;;  %v174_v11 = vmul.f32 %v1271_v2, %v1271_v2 }
  0x9d   :  { %v1281_v6 = vsub.f32 %v899_v16, %v133_v8  ;;  %v1285_v12 = vsub.f32 %v900_v17, %v134_v9  ;;  %v210_v14 = vsel %vm76_vm0, %v173_v10, 0.0  ;;  %v213_v20 = vsel %vm76_vm0, %v174_v11, 0.0  ;;  %v1032_v9 = vld [vmem:[%s1625_s1 + $0x8] sm:$0xff]  }
  0x9e   :  { %190 = vadd.xlane.f32.xlu0 %v189_v7  ;;  %211 = vadd.xlane.f32.xlu1 %v210_v14  ;;  %v115_v15 = vpop.xlane.xlu0 %114  ;;  %v118_v19 = vpop.xlane.xlu1 %117 }
  0x9f   :  { %v141_v24 = vmul.f32 0.03125, %v115_v15  ;;  %v142_v25 = vmul.f32 0.03125, %v118_v19  ;;  %v167_v29 = vmul.f32 %v1281_v6, %v1281_v6  ;;  %v168_v16 = vmul.f32 %v1285_v12, %v1285_v12  ;;  %987 = vmatpush3.bf16.msra.mxu0 %v1032_v9  ;;  %1028 = vmatpush3.bf16.msra.mxu1 %v1032_v9 }
  0xa0   :  { %988 = vmatprep.subr.bf16.mxu0 %v1102_v38  ;;  %1027 = vmatprep.subr.bf16.mxu1 %v1102_v38 }
  0xa1   :  { %v1295_v13 = vsub.f32 %v915_v21, %v141_v24  ;;  %v1299_v17 = vsub.f32 %v916_v22, %v142_v25  ;;  %v192_v30 = vsel %vm76_vm0, %v167_v29, 0.0  ;;  %v195_v39 = vsel %vm76_vm0, %v168_v16, 0.0 }
  0xa2   :  { %214 = vadd.xlane.f32.xlu0 %v213_v20  ;;  %193 = vadd.xlane.f32.xlu1 %v192_v30  ;;  %v97_v34 = vpop.xlane.xlu0 %96  ;;  %v100_v35 = vpop.xlane.xlu1 %99 }
  0xa3   :  { %v135_v40 = vmul.f32 0.03125, %v97_v34  ;;  %v136_v42 = vmul.f32 0.03125, %v100_v35  ;;  %v175_v43 = vmul.f32 %v1295_v13, %v1295_v13  ;;  %v176_v21 = vmul.f32 %v1299_v17, %v1299_v17 }
  0xa5   :  { %v1309_v18 = vsub.f32 %v903_v26, %v135_v40  ;;  %v1313_v22 = vsub.f32 %v904_v27, %v136_v42  ;;  %v216_v44 = vsel %vm76_vm0, %v175_v43, 0.0  ;;  %v219_v49 = vsel %vm76_vm0, %v176_v21, 0.0 }
  0xa6   :  { %196 = vadd.xlane.f32.xlu0 %v195_v39  ;;  %217 = vadd.xlane.f32.xlu1 %v216_v44  ;;  %v121_v45 = vpop.xlane.xlu0 %120  ;;  %v124_v46 = vpop.xlane.xlu1 %123 }
  0xa7   :  { %v143_v50 = vmul.f32 0.03125, %v121_v45  ;;  %v144_v51 = vmul.f32 0.03125, %v124_v46  ;;  %v169_v52 = vmul.f32 %v1309_v18, %v1309_v18  ;;  %v170_v26 = vmul.f32 %v1313_v22, %v1313_v22 }
  0xa9   :  { %v1323_v23 = vsub.f32 %v919_v31, %v143_v50  ;;  %v1327_v27 = vsub.f32 %v920_v32, %v144_v51  ;;  %v198_v53 = vsel %vm76_vm0, %v169_v52, 0.0  ;;  %v201_v58 = vsel %vm76_vm0, %v170_v26, 0.0 }
  0xaa   :  { %220 = vadd.xlane.f32.xlu0 %v219_v49  ;;  %199 = vadd.xlane.f32.xlu1 %v198_v53  ;;  %v103_v54 = vpop.xlane.xlu0 %102  ;;  %v106_v57 = vpop.xlane.xlu1 %105 }
  0xab   :  { %v137_v59 = vmul.f32 0.03125, %v103_v54  ;;  %v138_v60 = vmul.f32 0.03125, %v106_v57  ;;  %v177_v61 = vmul.f32 %v1323_v23, %v1323_v23  ;;  %v178_v31 = vmul.f32 %v1327_v27, %v1327_v27 }
  0xad   :  { %v1337_v28 = vsub.f32 %v907_v36, %v137_v59  ;;  %v1341_v32 = vsub.f32 %v908_v37, %v138_v60  ;;  %v222_v62 = vsel %vm76_vm0, %v177_v61, 0.0  ;;  %v225_v3 = vsel %vm76_vm0, %v178_v31, 0.0  ;;  %v1376_v31 = vld [vmem:[%s1626_s3] ss:$0 sm:$0xff] }
  0xae   :  { %202 = vadd.xlane.f32.xlu0 %v201_v58  ;;  %223 = vadd.xlane.f32.xlu1 %v222_v62  ;;  %v127_v63 = vpop.xlane.xlu0 %126 }
  0xaf   :  { %v145_v0 = vmul.f32 0.03125, %v127_v63  ;;  %v171_v4 = vmul.f32 %v1337_v28, %v1337_v28  ;;  %v172_v5 = vmul.f32 %v1341_v32, %v1341_v32 }
  0xb1   :  { %v1351_v36 = vsub.f32 %v75_v41, %v145_v0  ;;  %v204_v33 = vsel %vm76_vm0, %v171_v4, 0.0  ;;  %v207_v37 = vsel %vm76_vm0, %v172_v5, 0.0  ;;  %v1033_v41 = vld [vmem:[%s1625_s1] sm:$0xff]  }
  0xb2   :  { %226 = vadd.xlane.f32.xlu0 %v225_v3  ;;  %205 = vadd.xlane.f32.xlu1 %v204_v33 }
  0xb3   :  { %v179_v7 = vmul.f32 %v1351_v36, %v1351_v36  ;;  %989 = vmatpush3.bf16.msra.mxu0 %v1033_v41  ;;  %1029 = vmatpush3.bf16.msra.mxu1 %v1033_v41 }
  0xb5   :  { %v228_v8 = vsel %vm76_vm0, %v179_v7, 0.0 }
  0xb6   :  { %208 = vadd.xlane.f32.xlu0 %v207_v37  ;;  %229 = vadd.xlane.f32.xlu1 %v228_v8  ;;  %v1383_v8 = vld [vmem:[%s1627_s4] ss:$0 sm:$0xff] }
 0x11f   :  { %v182_v10 = vpop.xlane.xlu1 %181 }
 0x120   :  { %v231_v11 = vmul.f32 0.03125, %v182_v10 }
 0x122   :  { %v248_v14 = vadd.f32 1e-06, %v231_v11 }
 0x123   :  { %v188_v15 = vpop.xlane.xlu1 %187  ;;  %v185_v19 = vpop.xlane.xlu0 %184 }
 0x124   :  { %1034 = vrsqrt.f32 %v248_v14  ;;  %v233_v20 = vmul.f32 0.03125, %v188_v15  ;;  %v232_v24 = vmul.f32 0.03125, %v185_v19 }
 0x126   :  { %v250_v25 = vadd.f32 1e-06, %v233_v20  ;;  %v249_v29 = vadd.f32 1e-06, %v232_v24 }
 0x127   :  { %v212_v16 = vpop.xlane.xlu1 %211  ;;  %v191_v30 = vpop.xlane.xlu0 %190 }
 0x128   :  { %1036 = vrsqrt.f32 %v250_v25  ;;  %v241_v34 = vmul.f32 0.03125, %v212_v16  ;;  %v234_v35 = vmul.f32 0.03125, %v191_v30 }
 0x129   :  { %1038 = vrsqrt.f32 %v249_v29 }
 0x12a   :  { %v258_v39 = vadd.f32 1e-06, %v241_v34  ;;  %v251_v40 = vadd.f32 1e-06, %v234_v35 }
 0x12b   :  { %v194_v42 = vpop.xlane.xlu1 %193  ;;  %v215_v43 = vpop.xlane.xlu0 %214 }
 0x12c   :  { %1040 = vrsqrt.f32 %v258_v39  ;;  %v235_v21 = vmul.f32 0.03125, %v194_v42  ;;  %v242_v44 = vmul.f32 0.03125, %v215_v43 }
 0x12d   :  { %1042 = vrsqrt.f32 %v251_v40 }
 0x12e   :  { %v252_v45 = vadd.f32 1e-06, %v235_v21  ;;  %v259_v46 = vadd.f32 1e-06, %v242_v44 }
 0x12f   :  { %v218_v49 = vpop.xlane.xlu1 %217  ;;  %v197_v50 = vpop.xlane.xlu0 %196 }
 0x130   :  { %v243_v51 = vmul.f32 0.03125, %v218_v49  ;;  %v236_v52 = vmul.f32 0.03125, %v197_v50  ;;  %1044 = vrsqrt.f32 %v259_v46 }
 0x131   :  { %v1035_v26 = vpop.eup %1034  ;;  %1046 = vrsqrt.f32 %v252_v45 }
 0x132   :  { %v260_v53 = vadd.f32 1e-06, %v243_v51  ;;  %v253_v54 = vadd.f32 1e-06, %v236_v52  ;;  %v282_v59 = vmul.f32 %v1035_v26, %v1243_v47 }
 0x133   :  { %v200_v57 = vpop.xlane.xlu1 %199  ;;  %v221_v58 = vpop.xlane.xlu0 %220 }
 0x134   :  { %1048 = vrsqrt.f32 %v260_v53  ;;  %v237_v60 = vmul.f32 0.03125, %v200_v57  ;;  %v244_v61 = vmul.f32 0.03125, %v221_v58  ;;  %v306_v37 = vmul.f32 %v1376_v31, %v282_v59 }
 0x135   :  { %v1037_v62 = vpop.eup %1036  ;;  %1050 = vrsqrt.f32 %v253_v54 }
 0x136   :  { %v1039_v63 = vpop.eup %1038  ;;  %v254_v0 = vadd.f32 1e-06, %v237_v60  ;;  %v261_v3 = vadd.f32 1e-06, %v244_v61  ;;  %v284_v10 = vmul.f32 %v1037_v62, %v1245_v48  ;;  %v330_v24 = vadd.f32 %v1383_v8, %v306_v37 }
 0x137   :  { %v224_v4 = vpop.xlane.xlu1 %223  ;;  %v203_v5 = vpop.xlane.xlu0 %202  ;;  %v283_v33 = vmul.f32 %v1039_v63, %v1253_v55 }
 0x138   :  { %v245_v47 = vmul.f32 0.03125, %v224_v4  ;;  %v238_v7 = vmul.f32 0.03125, %v203_v5  ;;  %1052 = vrsqrt.f32 %v261_v3  ;;  %v308_v48 = vmul.f32 %v1376_v31, %v284_v10 }
 0x139   :  { %v1041_v9 = vpop.eup %1040  ;;  %v307_v41 = vmul.f32 %v1376_v31, %v283_v33  ;;  %1054 = vrsqrt.f32 %v254_v0 }
 0x13a   :  { %v1043_v11 = vpop.eup %1042  ;;  %v262_v14 = vadd.f32 1e-06, %v245_v47  ;;  %v255_v15 = vadd.f32 1e-06, %v238_v7  ;;  %v292_v55 = vmul.f32 %v1041_v9, %v1267_v1  ;;  %v332_v50 = vadd.f32 %v1383_v8, %v308_v48 }
 0x13b   :  { %v206_v19 = vpop.xlane.xlu1 %205  ;;  %v227_v20 = vpop.xlane.xlu0 %226  ;;  %v331_v25 = vadd.f32 %v1383_v8, %v307_v41  ;;  %v285_v29 = vmul.f32 %v1043_v11, %v1257_v56 }
 0x13c   :  { %1056 = vrsqrt.f32 %v262_v14  ;;  %v239_v16 = vmul.f32 0.03125, %v206_v19  ;;  %v246_v30 = vmul.f32 0.03125, %v227_v20  ;;  %v316_v1 = vmul.f32 %v1376_v31, %v292_v55 }
 0x13d   :  { %1058 = vrsqrt.f32 %v255_v15  ;;  %v347_v34 = vpack.c.bf16 %v331_v25, %v330_v24  ;;  %v309_v35 = vmul.f32 %v1376_v31, %v285_v29  ;;  %v1045_v39 = vpop.eup %1044 }
 0x13e   :  { %v263_v40 = vadd.f32 1e-06, %v246_v30  ;;  %v1047_v42 = vpop.eup %1046  ;;  %v256_v43 = vadd.f32 1e-06, %v239_v16  ;;  %v293_v56 = vmul.f32 %v1045_v39, %v1271_v2  ;;  %v340_v57 = vadd.f32 %v1383_v8, %v316_v1 }
 0x13f   :  { %991 = vmatmul.mubr.msk.bf16.vlgmr.msra.gmra.mxu0 %vm76_vm0, %v347_v34  ;;  %v230_v21 = vpop.xlane.xlu1 %229  ;;  %v209_v44 = vpop.xlane.xlu0 %208  ;;  %v333_v51 = vadd.f32 %v1383_v8, %v309_v35  ;;  %v286_v2 = vmul.f32 %v1047_v42, %v1281_v6 }
 0x140   :  { %v247_v45 = vmul.f32 0.03125, %v230_v21  ;;  %v240_v46 = vmul.f32 0.03125, %v209_v44  ;;  %994 = vmatprep.mubr.msk.bf16.mxu0 %vm1103_vm1, %v1102_v38  ;;  %1060 = vrsqrt.f32 %v263_v40  ;;  %v317_v52 = vmul.f32 %v1376_v31, %v293_v56 }
 0x141   :  { %v1049_v49 = vpop.eup %1048  ;;  %1062 = vrsqrt.f32 %v256_v43  ;;  %v348_v61 = vpack.c.bf16 %v333_v51, %v332_v50  ;;  %v310_v3 = vmul.f32 %v1376_v31, %v286_v2 }
 0x142   :  { %v1051_v26 = vpop.eup %1050  ;;  %v264_v53 = vadd.f32 1e-06, %v247_v45  ;;  %v257_v54 = vadd.f32 1e-06, %v240_v46  ;;  %v341_v58 = vadd.f32 %v1383_v8, %v317_v52  ;;  %v294_v60 = vmul.f32 %v1049_v49, %v1295_v13 }
 0x143   :  { %v287_v59 = vmul.f32 %v1051_v26, %v1285_v12  ;;  %v334_v47 = vadd.f32 %v1383_v8, %v310_v3 }
 0x144   :  { %1064 = vrsqrt.f32 %v264_v53  ;;  %v352_v62 = vpack.c.bf16 %v341_v58, %v340_v57  ;;  %v318_v12 = vmul.f32 %v1376_v31, %v294_v60 }
 0x145   :  { %1066 = vrsqrt.f32 %v257_v54  ;;  %v311_v63 = vmul.f32 %v1376_v31, %v287_v59  ;;  %v1053_v0 = vpop.eup %1052 }
 0x146   :  { %v1055_v4 = vpop.eup %1054  ;;  %1011 = vmatmul.mubr.msk.bf16.vlgmr.msra.gmra.mxu1 %vm76_vm0, %v352_v62  ;;  %v295_v6 = vmul.f32 %v1053_v0, %v1299_v17  ;;  %v342_v17 = vadd.f32 %v1383_v8, %v318_v12 }
 0x147   :  { %995 = vmatmul.mubr.msk.bf16.gmra.mxu0 %vm76_vm0, %v348_v61  ;;  %1014 = vmatprep.mubr.msk.bf16.mxu1 %vm1103_vm1, %v1102_v38  ;;  %v335_v5 = vadd.f32 %v1383_v8, %v311_v63  ;;  %v288_v7 = vmul.f32 %v1055_v4, %v1309_v18 }
 0x148   :  { %998 = vmatprep.mubr.msk.bf16.mxu0 %vm1103_vm1, %v1102_v38  ;;  %v319_v33 = vmul.f32 %v1376_v31, %v295_v6 }
 0x149   :  { %v1057_v13 = vpop.eup %1056  ;;  %v349_v11 = vpack.c.bf16 %v335_v5, %v334_v47  ;;  %v312_v19 = vmul.f32 %v1376_v31, %v288_v7 }
 0x14a   :  { %v1059_v37 = vpop.eup %1058  ;;  %v343_v9 = vadd.f32 %v1383_v8, %v319_v33  ;;  %v296_v10 = vmul.f32 %v1057_v13, %v1323_v23 }
 0x14b   :  { %v289_v41 = vmul.f32 %v1059_v37, %v1313_v22  ;;  %v336_v16 = vadd.f32 %v1383_v8, %v312_v19 }
 0x14c   :  { %v353_v14 = vpack.c.bf16 %v343_v9, %v342_v17  ;;  %v320_v20 = vmul.f32 %v1376_v31, %v296_v10 }
 0x14d   :  { %v313_v15 = vmul.f32 %v1376_v31, %v289_v41  ;;  %v1061_v55 = vpop.eup %1060 }
 0x14e   :  { %1015 = vmatmul.mubr.msk.bf16.gmra.mxu1 %vm76_vm0, %v353_v14  ;;  %v297_v18 = vmul.f32 %v1061_v55, %v1327_v27  ;;  %v1063_v24 = vpop.eup %1062  ;;  %v344_v27 = vadd.f32 %v1383_v8, %v320_v20 }
 0x14f   :  { %999 = vmatmul.mubr.msk.bf16.gmra.mxu0 %vm76_vm0, %v349_v11  ;;  %1018 = vmatprep.mubr.msk.bf16.mxu1 %vm1103_vm1, %v1102_v38  ;;  %v337_v23 = vadd.f32 %v1383_v8, %v313_v15  ;;  %v290_v48 = vmul.f32 %v1063_v24, %v1337_v28 }
 0x150   :  { %1002 = vmatprep.mubr.msk.bf16.mxu0 %vm1103_vm1, %v1102_v38  ;;  %v321_v25 = vmul.f32 %v1376_v31, %v297_v18 }
 0x151   :  { %v1065_v22 = vpop.eup %1064  ;;  %v350_v39 = vpack.c.bf16 %v337_v23, %v336_v16 }
 0x152   :  { %v1067_v29 = vpop.eup %1066  ;;  %v298_v30 = vmul.f32 %v1065_v22, %v1351_v36  ;;  %v345_v34 = vadd.f32 %v1383_v8, %v321_v25  ;;  %v314_v36 = vmul.f32 %v1376_v31, %v290_v48 }
 0x153   :  { %v291_v35 = vmul.f32 %v1067_v29, %v1341_v32 }
 0x154   :  { %v354_v40 = vpack.c.bf16 %v345_v34, %v344_v27  ;;  %v322_v42 = vmul.f32 %v1376_v31, %v298_v30  ;;  %v338_v43 = vadd.f32 %v1383_v8, %v314_v36 }
 0x155   :  { %v315_v1 = vmul.f32 %v1376_v31, %v291_v35  ;;  %v1459_v31 = vld [vmem:[%s1628_s2] ss:$0 sm:$0xff] }
 0x156   :  { %1019 = vmatmul.mubr.msk.bf16.gmra.mxu1 %vm76_vm0, %v354_v40  ;;  %v346_v32 = vadd.f32 %v1383_v8, %v322_v42 }
 0x157   :  { %1003 = vmatmul.mubr.msk.bf16.gmra.mxu0 %vm76_vm0, %v350_v39  ;;  %1022 = vmatprep.mubr.msk.bf16.mxu1 %vm1103_vm1, %v1102_v38  ;;  %v339_v28 = vadd.f32 %v1383_v8, %v315_v1 }
 0x158   :  { %1006 = vmatprep.mubr.msk.bf16.mxu0 %vm1103_vm1, %v1102_v38  ;;  %v355_v44 = vpack.c.bf16 %v346_v32, %v346_v32 }
 0x159   :  { %v351_v21 = vpack.c.bf16 %v339_v28, %v338_v43 }
 0x15e   :  { %1023 = vmatmul.mubr.msk.bf16.gmra.mxu1 %vm76_vm0, %v355_v44 }
 0x15f   :  { %1007 = vmatmul.mubr.msk.bf16.gmra.mxu0 %vm76_vm0, %v351_v21 }
 0x1ff   :  { %v450_v56 = vpop.f32.mrf.mxu0 }
 0x200   :  { %v1462_v38 = vadd.f32 %v1459_v31, %v450_v56 }
 0x201   :  { %v992_v45 = vpop.f32.mrf.mxu0 }
 0x202   :  { %v615_v46 = vmul.f32 0.044715, %v1462_v38 }
 0x203   :  { %v453_v49 = vpop.f32.mrf.mxu0 }
 0x204   :  { %v632_v8 = vmul.f32 %v615_v46, %v1462_v38  ;;  %v1467_v50 = vadd.f32 %v1459_v31, %v453_v49 }
 0x205   :  { %v993_v51 = vpop.f32.mrf.mxu0 }
 0x206   :  { %v649_v52 = vmul.f32 %v632_v8, %v1462_v38  ;;  %v616_v26 = vmul.f32 0.044715, %v1467_v50  ;;  %v490_v54 = vpop.f32.mrf.mxu1 }
 0x207   :  { %v458_v53 = vpop.f32.mrf.mxu0  ;;  %v1477_v59 = vadd.f32 %v1459_v31, %v490_v54 }
 0x208   :  { %v666_v57 = vadd.f32 %v649_v52, %v1462_v38  ;;  %v633_v2 = vmul.f32 %v616_v26, %v1467_v50  ;;  %v1474_v58 = vadd.f32 %v1459_v31, %v458_v53  ;;  %v1012_v61 = vpop.f32.mrf.mxu1 }
 0x209   :  { %v996_v60 = vpop.f32.mrf.mxu0  ;;  %v625_v3 = vmul.f32 0.044715, %v1477_v59 }
 0x20a   :  { %v683_v62 = vmul.f32 0.7978846, %v666_v57  ;;  %v650_v63 = vmul.f32 %v633_v2, %v1467_v50  ;;  %v617_v0 = vmul.f32 0.044715, %v1474_v58  ;;  %v493_v6 = vpop.f32.mrf.mxu1 }
 0x20b   :  { %v461_v4 = vpop.f32.mrf.mxu0  ;;  %v642_v33 = vmul.f32 %v625_v3, %v1477_v59  ;;  %v1489_v37 = vadd.f32 %v1459_v31, %v493_v6  ;;  %v599_v6 = vmul.f32 0.5, %v1467_v50 }
 0x20c   :  { %1068 = vtanh.f32 %v683_v62  ;;  %v667_v12 = vadd.f32 %v650_v63, %v1467_v50  ;;  %v634_v13 = vmul.f32 %v617_v0, %v1474_v58  ;;  %v1485_v5 = vadd.f32 %v1459_v31, %v461_v4  ;;  %v1013_v7 = vpop.f32.mrf.mxu1 }
 0x20d   :  { %v997_v47 = vpop.f32.mrf.mxu0  ;;  %v659_v10 = vmul.f32 %v642_v33, %v1477_v59  ;;  %v626_v11 = vmul.f32 0.044715, %v1489_v37  ;;  %v598_v0 = vmul.f32 0.5, %v1462_v38 }
 0x20e   :  { %v684_v17 = vmul.f32 0.7978846, %v667_v12  ;;  %v651_v9 = vmul.f32 %v634_v13, %v1474_v58  ;;  %v618_v41 = vmul.f32 0.044715, %v1485_v5  ;;  %v498_v15 = vpop.f32.mrf.mxu1 }
 0x20f   :  { %v466_v14 = vpop.f32.mrf.mxu0  ;;  %v676_v20 = vadd.f32 %v659_v10, %v1477_v59  ;;  %v643_v24 = vmul.f32 %v626_v11, %v1489_v37  ;;  %v1503_v22 = vadd.f32 %v1459_v31, %v498_v15 }
 0x210   :  { %1070 = vtanh.f32 %v684_v17  ;;  %v668_v55 = vadd.f32 %v651_v9, %v1474_v58  ;;  %v635_v19 = vmul.f32 %v618_v41, %v1485_v5  ;;  %v1498_v18 = vadd.f32 %v1459_v31, %v466_v14  ;;  %v1016_v25 = vpop.f32.mrf.mxu1 }
 0x211   :  { %v1000_v23 = vpop.f32.mrf.mxu0  ;;  %v693_v27 = vmul.f32 0.7978846, %v676_v20  ;;  %v660_v34 = vmul.f32 %v643_v24, %v1489_v37  ;;  %v627_v48 = vmul.f32 0.044715, %v1503_v22 }
 0x212   :  { %v685_v29 = vmul.f32 0.7978846, %v668_v55  ;;  %v652_v16 = vmul.f32 %v635_v19, %v1485_v5  ;;  %v619_v30 = vmul.f32 0.044715, %v1498_v18  ;;  %v501_v39 = vpop.f32.mrf.mxu1  ;;  %v600_v23 = vmul.f32 0.5, %v1474_v58 }
 0x213   :  { %v469_v35 = vpop.f32.mrf.mxu0  ;;  %v677_v36 = vadd.f32 %v660_v34, %v1489_v37  ;;  %v644_v28 = vmul.f32 %v627_v48, %v1503_v22  ;;  %v1517_v32 = vadd.f32 %v1459_v31, %v501_v39 }
 0x214   :  { %1072 = vtanh.f32 %v685_v29  ;;  %v669_v40 = vadd.f32 %v652_v16, %v1485_v5  ;;  %v636_v1 = vmul.f32 %v619_v30, %v1498_v18  ;;  %v1512_v42 = vadd.f32 %v1459_v31, %v469_v35  ;;  %v1017_v21 = vpop.f32.mrf.mxu1 }
 0x215   :  { %1074 = vtanh.f32 %v693_v27  ;;  %v1001_v43 = vpop.f32.mrf.mxu0  ;;  %v694_v46 = vmul.f32 0.7978846, %v677_v36  ;;  %v661_v49 = vmul.f32 %v644_v28, %v1503_v22  ;;  %v628_v8 = vmul.f32 0.044715, %v1517_v32 }
 0x216   :  { %v686_v44 = vmul.f32 0.7978846, %v669_v40  ;;  %v653_v56 = vmul.f32 %v636_v1, %v1498_v18  ;;  %v620_v45 = vmul.f32 0.044715, %v1512_v42  ;;  %v506_v52 = vpop.f32.mrf.mxu1 }
 0x217   :  { %v474_v51 = vpop.f32.mrf.mxu0  ;;  %v678_v2 = vadd.f32 %v661_v49, %v1503_v22  ;;  %v645_v60 = vmul.f32 %v628_v8, %v1517_v32  ;;  %v1531_v61 = vadd.f32 %v1459_v31, %v506_v52 }
 0x218   :  { %1076 = vtanh.f32 %v686_v44  ;;  %v670_v26 = vadd.f32 %v653_v56, %v1498_v18  ;;  %v637_v53 = vmul.f32 %v620_v45, %v1512_v42  ;;  %v1526_v54 = vadd.f32 %v1459_v31, %v474_v51  ;;  %v1020_v63 = vpop.f32.mrf.mxu1 }
 0x219   :  { %v1069_v57 = vpop.eup %1068  ;;  %1078 = vtanh.f32 %v694_v46  ;;  %v1004_v62 = vpop.f32.mrf.mxu0  ;;  %v695_v12 = vmul.f32 0.7978846, %v678_v2  ;;  %v662_v13 = vmul.f32 %v645_v60, %v1517_v32  ;;  %v629_v41 = vmul.f32 0.044715, %v1531_v61 }
 0x21a   :  { %v687_v3 = vmul.f32 0.7978846, %v670_v26  ;;  %v654_v4 = vmul.f32 %v637_v53, %v1512_v42  ;;  %v621_v33 = vmul.f32 0.044715, %v1526_v54  ;;  %v509_v7 = vpop.f32.mrf.mxu1  ;;  %v717_v17 = vadd.f32 1.0, %v1069_v57 }
 0x21b   :  { %v477_v47 = vpop.f32.mrf.mxu0  ;;  %v679_v38 = vadd.f32 %v662_v13, %v1517_v32  ;;  %v646_v20 = vmul.f32 %v629_v41, %v1531_v61  ;;  %v1547_v24 = vadd.f32 %v1459_v31, %v509_v7  ;;  %v608_v44 = vmul.f32 0.5, %v1477_v59 }
 0x21c   :  { %1080 = vtanh.f32 %v687_v3  ;;  %v671_v9 = vadd.f32 %v654_v4, %v1512_v42  ;;  %v638_v11 = vmul.f32 %v621_v33, %v1526_v54  ;;  %v1543_v50 = vadd.f32 %v1459_v31, %v477_v47  ;;  %v1021_v15 = vpop.f32.mrf.mxu1 }
 0x21d   :  { %v1071_v10 = vpop.eup %1070  ;;  %1082 = vtanh.f32 %v695_v12  ;;  %v1005_v14 = vpop.f32.mrf.mxu0  ;;  %v696_v25 = vmul.f32 0.7978846, %v679_v38  ;;  %v734_v34 = vmul.f32 %v717_v17, %v598_v0  ;;  %v663_v35 = vmul.f32 %v646_v20, %v1531_v61 }
 0x21e   :  { %v718_v55 = vadd.f32 1.0, %v1071_v10  ;;  %v688_v19 = vmul.f32 0.7978846, %v671_v9  ;;  %v655_v29 = vmul.f32 %v638_v11, %v1526_v54  ;;  %v622_v16 = vmul.f32 0.044715, %v1543_v50  ;;  %v514_v27 = vpop.f32.mrf.mxu1 }
 0x21f   :  { %v482_v30 = vpop.f32.mrf.mxu0  ;;  %v630_v58 = vmul.f32 0.044715, %v1547_v24  ;;  %v680_v56 = vadd.f32 %v663_v35, %v1531_v61  ;;  %v601_v46 = vmul.f32 0.5, %v1485_v5  ;;  %v609_v59 = vmul.f32 0.5, %v1489_v37 }
 0x220   :  { %v735_v48 = vmul.f32 %v718_v55, %v599_v6  ;;  %1084 = vtanh.f32 %v688_v19  ;;  %v672_v40 = vadd.f32 %v655_v29, %v1526_v54  ;;  %v639_v1 = vmul.f32 %v622_v16, %v1543_v50  ;;  %v1024_v28 = vpop.f32.mrf.mxu1 }
 0x221   :  { %v1073_v39 = vpop.eup %1072  ;;  %1086 = vtanh.f32 %v696_v25  ;;  %v1008_v36 = vpop.f32.mrf.mxu0  ;;  %v1559_v45 = vadd.f32 %v1459_v31, %v482_v30  ;;  %v647_v51 = vmul.f32 %v630_v58, %v1547_v24  ;;  %v697_v57 = vmul.f32 0.7978846, %v680_v56 }
 0x222   :  { %v1075_v43 = vpop.eup %1074  ;;  %v924_v21 = vpack.c.bf16 %v735_v48, %v734_v34  ;;  %v689_v49 = vmul.f32 0.7978846, %v672_v40  ;;  %v656_v8 = vmul.f32 %v639_v1, %v1543_v50  ;;  %v517_v26 = vpop.f32.mrf.mxu1  ;;  %v719_v53 = vadd.f32 1.0, %v1073_v39 }
 0x223   :  { %v485_v52 = vpop.f32.mrf.mxu0  ;;  %v623_v2 = vmul.f32 0.044715, %v1559_v45  ;;  %v727_v62 = vadd.f32 1.0, %v1075_v43  ;;  %v664_v63 = vmul.f32 %v647_v51, %v1547_v24  ;;  %v1573_v13 = vadd.f32 %v1459_v31, %v514_v27 }
 0x224   :  { %925 = vst [vmem:[%s1629_s5] sm:$0xff] %v924_v21   ;;  %1088 = vtanh.f32 %v689_v49  ;;  %v673_v5 = vadd.f32 %v656_v8, %v1543_v50  ;;  %v1025_v3 = vpop.f32.mrf.mxu1  ;;  %v1577_v7 = vadd.f32 %v1459_v31, %v485_v52  ;;  %v736_v17 = vmul.f32 %v719_v53, %v600_v23 }
 0x225   :  { %v1077_v60 = vpop.eup %1076  ;;  %v1009_v0 = vpop.f32.mrf.mxu0  ;;  %1090 = vtanh.f32 %v697_v57  ;;  %v640_v12 = vmul.f32 %v623_v2, %v1559_v45  ;;  %v681_v47 = vadd.f32 %v664_v63, %v1547_v24  ;;  %v631_v10 = vmul.f32 0.044715, %v1573_v13 }
 0x226   :  { %v1079_v4 = vpop.eup %1078  ;;  %v720_v6 = vadd.f32 1.0, %v1077_v60  ;;  %v690_v33 = vmul.f32 0.7978846, %v673_v5  ;;  %v744_v11 = vmul.f32 %v727_v62, %v608_v44  ;;  %v624_v31 = vmul.f32 0.044715, %v1577_v7 }
 0x227   :  { %v728_v37 = vadd.f32 1.0, %v1079_v4  ;;  %v657_v41 = vmul.f32 %v640_v12, %v1559_v45  ;;  %v698_v15 = vmul.f32 0.7978846, %v681_v47  ;;  %v648_v25 = vmul.f32 %v631_v10, %v1573_v13 }
 0x228   :  { %v737_v9 = vmul.f32 %v720_v6, %v601_v46  ;;  %1092 = vtanh.f32 %v690_v33  ;;  %v641_v48 = vmul.f32 %v624_v31, %v1577_v7  ;;  %v602_v39 = vmul.f32 0.5, %v1498_v18 }
 0x229   :  { %v1081_v38 = vpop.eup %1080  ;;  %v745_v14 = vmul.f32 %v728_v37, %v609_v59  ;;  %v674_v20 = vadd.f32 %v657_v41, %v1559_v45  ;;  %1094 = vtanh.f32 %v698_v15  ;;  %v665_v16 = vmul.f32 %v648_v25, %v1573_v13 }
 0x22a   :  { %v1083_v55 = vpop.eup %1082  ;;  %v929_v19 = vpack.c.bf16 %v737_v9, %v736_v17  ;;  %v721_v23 = vadd.f32 1.0, %v1081_v38  ;;  %v603_v40 = vmul.f32 0.5, %v1512_v42  ;;  %v610_v36 = vmul.f32 0.5, %v1503_v22 }
 0x22b   :  { %v949_v29 = vpack.c.bf16 %v745_v14, %v744_v11  ;;  %v729_v27 = vadd.f32 1.0, %v1083_v55  ;;  %v691_v34 = vmul.f32 0.7978846, %v674_v20  ;;  %v682_v58 = vadd.f32 %v665_v16, %v1573_v13 }
 0x22c   :  { %968 = vst [vmem:[%s1629_s5 + $0x8] sm:$0xff] %v929_v19   ;;  %v611_v28 = vmul.f32 0.5, %v1517_v32  ;;  %v658_v21 = vmul.f32 %v641_v48, %v1577_v7  ;;  %v738_v44 = vmul.f32 %v721_v23, %v602_v39  ;;  %v604_v59 = vmul.f32 0.5, %v1526_v54 }
 0x22d   :  { %v1085_v30 = vpop.eup %1084  ;;  %972 = vst [vmem:[%s1629_s5 + $0x28] sm:$0xff] %v949_v29   ;;  %v699_v46 = vmul.f32 0.7978846, %v682_v58  ;;  %v746_v49 = vmul.f32 %v729_v27, %v610_v36  ;;  %1096 = vtanh.f32 %v691_v34  ;;  %v605_v2 = vmul.f32 0.5, %v1543_v50 }
 0x22e   :  { %v1087_v35 = vpop.eup %1086  ;;  %v722_v1 = vadd.f32 1.0, %v1085_v30  ;;  %v675_v18 = vadd.f32 %v658_v21, %v1577_v7  ;;  %v612_v5 = vmul.f32 0.5, %v1531_v61  ;;  %v613_v3 = vmul.f32 0.5, %v1547_v24 }
 0x22f   :  { %v730_v43 = vadd.f32 1.0, %v1087_v35  ;;  %1098 = vtanh.f32 %v699_v46  ;;  %v614_v61 = vmul.f32 0.5, %v1573_v13  ;;  %v606_v41 = vmul.f32 0.5, %v1559_v45 }
 0x230   :  { %v739_v56 = vmul.f32 %v722_v1, %v603_v40  ;;  %v692_v53 = vmul.f32 0.7978846, %v675_v18  ;;  %v607_v10 = vmul.f32 0.5, %v1577_v7 }
 0x231   :  { %v747_v8 = vmul.f32 %v730_v43, %v611_v28  ;;  %v1089_v51 = vpop.eup %1088 }
 0x232   :  { %v934_v42 = vpack.c.bf16 %v739_v56, %v738_v44  ;;  %v1091_v52 = vpop.eup %1090  ;;  %v723_v22 = vadd.f32 1.0, %v1089_v51  ;;  %1100 = vtanh.f32 %v692_v53 }
 0x233   :  { %v954_v26 = vpack.c.bf16 %v747_v8, %v746_v49  ;;  %v731_v57 = vadd.f32 1.0, %v1091_v52 }
 0x234   :  { %969 = vst [vmem:[%s1629_s5 + $0x10] sm:$0xff] %v934_v42   ;;  %v740_v63 = vmul.f32 %v723_v22, %v604_v59 }
 0x235   :  { %973 = vst [vmem:[%s1629_s5 + $0x30] sm:$0xff] %v954_v26   ;;  %v1093_v32 = vpop.eup %1092  ;;  %v748_v6 = vmul.f32 %v731_v57, %v612_v5 }
 0x236   :  { %v724_v60 = vadd.f32 1.0, %v1093_v32  ;;  %v1095_v62 = vpop.eup %1094 }
 0x237   :  { %v732_v4 = vadd.f32 1.0, %v1095_v62 }
 0x238   :  { %v741_v0 = vmul.f32 %v724_v60, %v605_v2 }
 0x239   :  { %v749_v37 = vmul.f32 %v732_v4, %v613_v3 }
 0x23a   :  { %v939_v12 = vpack.c.bf16 %v741_v0, %v740_v63  ;;  %v1097_v33 = vpop.eup %1096 }
 0x23b   :  { %v959_v54 = vpack.c.bf16 %v749_v37, %v748_v6  ;;  %v725_v17 = vadd.f32 1.0, %v1097_v33 }
 0x23c   :  { %970 = vst [vmem:[%s1629_s5 + $0x18] sm:$0xff] %v939_v12   ;;  %v1099_v47 = vpop.eup %1098 }
 0x23d   :  { %974 = vst [vmem:[%s1629_s5 + $0x38] sm:$0xff] %v959_v54   ;;  %v733_v50 = vadd.f32 1.0, %v1099_v47  ;;  %v742_v14 = vmul.f32 %v725_v17, %v606_v41 }
 0x23f   :  { %v1101_v24 = vpop.eup %1100  ;;  %v750_v9 = vmul.f32 %v733_v50, %v614_v61 }
 0x240   :  { %v726_v38 = vadd.f32 1.0, %v1101_v24 }
 0x241   :  { %v888_v11 = vpack.c.bf16 %v750_v9, %v750_v9 }
 0x242   :  { %v743_v15 = vmul.f32 %v726_v38, %v607_v10 }
 0x243   :  { %836 = vst [vmem:[%s1629_s5 + $0x40] sm:$0xf] %v888_v11 }
 0x244   :  { %v944_v55 = vpack.c.bf16 %v743_v15, %v742_v14 }
 0x246   :  { %971 = vst [vmem:[%s1629_s5 + $0x20] sm:$0xff] %v944_v55  }

// kernel: _lambda_.35
= control target key start
LH: loop header
LB: loop body
LE: loop exit
PB: predicated region body
PF: predicated region fallthrough
CT: control target
= control target key end

     0   :  { %vm22_vm0 = vcmask 523264   ;;  %v710_v0 = vmov 0.0   ;;  %vm711_vm1 = vmmov 0   ;;  %vm493_vm2 = vcmask 519168   ;;  %s998_s1 = inlined_call_operand.vmem [shape: bf16[128,64], index: 1, kind: input, shape index: {}]   ;;  %s999_s0 = inlined_call_operand.vmem [shape: bf16[136,128], index: 0, kind: input, shape index: {}]   ;;  %s1000_s3 = inlined_call_operand.vmem [shape: bf16[136,64], index: 3, kind: input, shape index: {}]   ;;  %s1001_s2 = inlined_call_operand.vmem [shape: f32[1,64], index: 2, kind: input, shape index: {}]   ;;  %s1002_s4 = inlined_call_operand.vmem [shape: bf16[136,64], index: 4, kind: output, shape index: {}]  }
   0x1   :  { %623 = vmatprep.subr.bf16.mxu0 %v710_v0  ;;  %v693_v1 = vld [vmem:[%s998_s1 + $0x38] sm:$0xff]   ;;  %675 = vmatprep.subr.bf16.mxu1 %v710_v0  ;;  %23 = vst.msk [vmem:[#allocation2] sm:$0xff] %vm22_vm0, %v710_v0  ;;  %24 = vst.msk [vmem:[#allocation2 + $0x8] sm:$0xff] %vm22_vm0, %v710_v0  ;;  %v694_v2 = vld [vmem:[%s998_s1 + $0x30] sm:$0xff]  }
   0x2   :  { %25 = vst.msk [vmem:[#allocation2 + $0x10] sm:$0xff] %vm22_vm0, %v710_v0  ;;  %26 = vst.msk [vmem:[#allocation2 + $0x18] sm:$0xff] %vm22_vm0, %v710_v0  ;;  %639 = vmatprep.mubr.msk.bf16.mxu0 %vm711_vm1, %v710_v0  ;;  %659 = vmatprep.mubr.msk.bf16.mxu1 %vm711_vm1, %v710_v0  ;;  %v695_v3 = vld [vmem:[%s998_s1 + $0x28] sm:$0xff]   ;;  %v696_v4 = vld [vmem:[%s998_s1 + $0x20] sm:$0xff]  }
   0x3   :  { %27 = vst.msk [vmem:[#allocation2 + $0x20] sm:$0xff] %vm22_vm0, %v710_v0  ;;  %28 = vst.msk [vmem:[#allocation2 + $0x28] sm:$0xff] %vm22_vm0, %v710_v0  ;;  %624 = vmatpush3.bf16.msra.mxu0 %v693_v1  ;;  %683 = vmatpush3.bf16.msra.mxu1 %v693_v1  ;;  %v697_v5 = vld [vmem:[%s998_s1 + $0x18] sm:$0xff]   ;;  %v698_v6 = vld [vmem:[%s998_s1 + $0x10] sm:$0xff]  }
   0x4   :  { %29 = vst.msk [vmem:[#allocation2 + $0x30] sm:$0xff] %vm22_vm0, %v710_v0  ;;  %30 = vst.msk [vmem:[#allocation2 + $0x38] sm:$0xff] %vm22_vm0, %v710_v0  ;;  %625 = vmatprep.subr.bf16.mxu0 %v710_v0  ;;  %676 = vmatprep.subr.bf16.mxu1 %v710_v0  ;;  %v699_v7 = vld [vmem:[%s998_s1 + $0x8] sm:$0xff]   ;;  %v700_v8 = vld [vmem:[%s998_s1] sm:$0xff]  }
   0x5   :  { %31 = vst.msk [vmem:[#allocation2 + $0x40] sm:$0xff] %vm22_vm0, %v710_v0  ;;  %32 = vst.msk [vmem:[#allocation2 + $0x48] sm:$0xff] %vm22_vm0, %v710_v0  ;;  %v701_v9 = vld [vmem:[%s999_s0] sm:$0xff]   ;;  %v702_v10 = vld [vmem:[%s999_s0 + $0x28] sm:$0xff]  }
   0x6   :  { %33 = vst.msk [vmem:[#allocation2 + $0x50] sm:$0xff] %vm22_vm0, %v710_v0  ;;  %34 = vst.msk [vmem:[#allocation2 + $0x58] sm:$0xff] %vm22_vm0, %v710_v0  ;;  %v703_v11 = vld [vmem:[%s999_s0 + $0x8] sm:$0xff]   ;;  %v704_v12 = vld [vmem:[%s999_s0 + $0x30] sm:$0xff]  }
   0x7   :  { %35 = vst.msk [vmem:[#allocation2 + $0x60] sm:$0xff] %vm22_vm0, %v710_v0  ;;  %36 = vst.msk [vmem:[#allocation2 + $0x68] sm:$0xff] %vm22_vm0, %v710_v0  ;;  %626 = vmatpush3.bf16.msra.mxu0 %v694_v2  ;;  %684 = vmatpush3.bf16.msra.mxu1 %v694_v2  ;;  %v705_v13 = vld [vmem:[%s999_s0 + $0x10] sm:$0xff]   ;;  %v706_v14 = vld [vmem:[%s999_s0 + $0x38] sm:$0xff]  }
   0x8   :  { %37 = vst.msk [vmem:[#allocation2 + $0x70] sm:$0xff] %vm22_vm0, %v710_v0  ;;  %38 = vst.msk [vmem:[#allocation2 + $0x78] sm:$0xff] %vm22_vm0, %v710_v0  ;;  %627 = vmatprep.subr.bf16.mxu0 %v710_v0  ;;  %677 = vmatprep.subr.bf16.mxu1 %v710_v0  ;;  %v707_v15 = vld [vmem:[%s999_s0 + $0x18] sm:$0xff]   ;;  %v708_v16 = vld [vmem:[%s999_s0 + $0x40] ss:$0 sps:$4 sm:$0xff]  }
   0x9   :  { %39 = vst.msk [vmem:[#allocation2 + $0x80] sm:$0xff] %vm22_vm0, %v710_v0  ;;  %v709_v17 = vld [vmem:[%s999_s0 + $0x20] sm:$0xff]   ;;  %v58_v25 = vld [vmem:[#allocation2 + $0x8] sm:$0xff]  ;;  %v59_v31 = vld [vmem:[#allocation2 + $0x10] sm:$0xff] }
   0xa   :  { %v57_v18 = vld [vmem:[#allocation2] sm:$0xff]  ;;  %v603_v35 = vld [vmem:[%s1000_s3 + $0x28] sm:$0xff]   ;;  %v60_v44 = vld [vmem:[#allocation2 + $0x18] sm:$0xff] }
   0xb   :  { %628 = vmatpush3.bf16.msra.mxu0 %v695_v3  ;;  %685 = vmatpush3.bf16.msra.mxu1 %v695_v3  ;;  %v568_v33 = vld [vmem:[%s1000_s3] sm:$0xff]   ;;  %v589_v42 = vunpack.c.l.bf16 %v603_v35  ;;  %v590_v54 = vunpack.c.h.bf16 %v603_v35  ;;  %v878_v59 = vld [vmem:[%s1000_s3 + $0x8] sm:$0xff]   ;;  %v883_v61 = vld [vmem:[%s1000_s3 + $0x30] sm:$0xff]  }
   0xc   :  { %629 = vmatprep.subr.bf16.mxu0 %v710_v0  ;;  %678 = vmatprep.subr.bf16.mxu1 %v710_v0  ;;  %v869_v38 = vld [vmem:[%s1001_s2] ss:$0 sm:$0xff]  ;;  %v569_v41 = vunpack.c.l.bf16 %v568_v33  ;;  %v570_v53 = vunpack.c.h.bf16 %v568_v33  ;;  %v600_v33 = vld [vmem:[%s1000_s3 + $0x10] sm:$0xff]   ;;  %v605_v35 = vld [vmem:[%s1000_s3 + $0x38] sm:$0xff]  }
   0xd   :  { %v67_v19 = vld [vmem:[#allocation2 + $0x50] sm:$0xff]  ;;  %v68_v27 = vld [vmem:[#allocation2 + $0x58] sm:$0xff]  ;;  %v61_v62 = vld [vmem:[#allocation2 + $0x20] sm:$0xff] }
   0xe   :  { %v69_v37 = vld [vmem:[#allocation2 + $0x60] sm:$0xff]  ;;  %v70_v50 = vld [vmem:[#allocation2 + $0x68] sm:$0xff] }
   0xf   :  { %630 = vmatpush3.bf16.msra.mxu0 %v696_v4  ;;  %686 = vmatpush3.bf16.msra.mxu1 %v696_v4  ;;  %v71_v4 = vld [vmem:[#allocation2 + $0x70] sm:$0xff] }
  0x10   :  { %631 = vmatprep.subr.bf16.mxu0 %v710_v0  ;;  %679 = vmatprep.subr.bf16.mxu1 %v710_v0 }
  0x13   :  { %632 = vmatpush3.bf16.msra.mxu0 %v697_v5  ;;  %687 = vmatpush3.bf16.msra.mxu1 %v697_v5 }
  0x14   :  { %633 = vmatprep.subr.bf16.mxu0 %v710_v0  ;;  %680 = vmatprep.subr.bf16.mxu1 %v710_v0 }
  0x17   :  { %634 = vmatpush3.bf16.msra.mxu0 %v698_v6  ;;  %688 = vmatpush3.bf16.msra.mxu1 %v698_v6 }
  0x18   :  { %635 = vmatprep.subr.bf16.mxu0 %v710_v0  ;;  %681 = vmatprep.subr.bf16.mxu1 %v710_v0 }
  0x1b   :  { %636 = vmatpush3.bf16.msra.mxu0 %v699_v7  ;;  %689 = vmatpush3.bf16.msra.mxu1 %v699_v7 }
  0x1c   :  { %637 = vmatprep.subr.bf16.mxu0 %v710_v0  ;;  %682 = vmatprep.subr.bf16.mxu1 %v710_v0 }
  0x1f   :  { %638 = vmatpush3.bf16.msra.mxu0 %v700_v8  ;;  %690 = vmatpush3.bf16.msra.mxu1 %v700_v8 }
  0x22   :  { %640 = vmatmul.mubr.bf16.vlgmr.msra.gmra.mxu0 %v701_v9  ;;  %660 = vmatmul.mubr.bf16.vlgmr.msra.gmra.mxu1 %v702_v10  ;;  %v573_v9 = vunpack.c.l.bf16 %v878_v59  ;;  %v593_v10 = vunpack.c.l.bf16 %v883_v61 }
  0x23   :  { %643 = vmatprep.mubr.msk.bf16.mxu0 %vm711_vm1, %v710_v0  ;;  %663 = vmatprep.mubr.msk.bf16.mxu1 %vm711_vm1, %v710_v0 }
  0x2a   :  { %644 = vmatmul.mubr.bf16.gmra.mxu0 %v703_v11  ;;  %664 = vmatmul.mubr.bf16.gmra.mxu1 %v704_v12 }
  0x2b   :  { %647 = vmatprep.mubr.msk.bf16.mxu0 %vm711_vm1, %v710_v0  ;;  %667 = vmatprep.mubr.msk.bf16.mxu1 %vm711_vm1, %v710_v0 }
  0x32   :  { %648 = vmatmul.mubr.bf16.gmra.mxu0 %v705_v13  ;;  %668 = vmatmul.mubr.bf16.gmra.mxu1 %v706_v14 }
  0x33   :  { %651 = vmatprep.mubr.msk.bf16.mxu0 %vm711_vm1, %v710_v0  ;;  %671 = vmatprep.mubr.msk.bf16.mxu1 %vm711_vm1, %v710_v0 }
  0x3a   :  { %652 = vmatmul.mubr.bf16.gmra.mxu0 %v707_v15  ;;  %672 = vmatmul.mubr.bf16.gmra.mxu1 %v708_v16  ;;  %v62_v16 = vld [vmem:[#allocation2 + $0x28] sm:$0xff] }
  0x3b   :  { %655 = vmatprep.mubr.msk.bf16.mxu0 %vm711_vm1, %v710_v0 }
  0x42   :  { %656 = vmatmul.mubr.bf16.gmra.mxu0 %v709_v17 }
  0xe2   :  { %v224_v20 = vpop.f32.mrf.mxu0  ;;  %v264_v21 = vpop.f32.mrf.mxu1 }
  0xe3   :  { %v294_v22 = vadd.f32 %v224_v20, %v57_v18  ;;  %v304_v23 = vadd.f32 %v264_v21, %v67_v19 }
  0xe4   :  { %v641_v24 = vpop.f32.mrf.mxu0  ;;  %v661_v26 = vpop.f32.mrf.mxu1 }
  0xe5   :  { %312 = vst.msk [vmem:[#allocation2] sm:$0xff] %vm22_vm0, %v294_v22  ;;  %322 = vst.msk [vmem:[#allocation2 + $0x50] sm:$0xff] %vm22_vm0, %v304_v23  ;;  %v72_v22 = vld [vmem:[#allocation2 + $0x78] sm:$0xff] }
  0xe6   :  { %v227_v28 = vpop.f32.mrf.mxu0  ;;  %v267_v29 = vpop.f32.mrf.mxu1 }
  0xe7   :  { %v295_v30 = vadd.f32 %v227_v28, %v58_v25  ;;  %v305_v32 = vadd.f32 %v267_v29, %v68_v27  ;;  %v574_v27 = vunpack.c.h.bf16 %v878_v59  ;;  %v594_v28 = vunpack.c.h.bf16 %v883_v61  ;;  %v64_v59 = vld [vmem:[#allocation2 + $0x38] sm:$0xff] }
  0xe8   :  { %v642_v34 = vpop.f32.mrf.mxu0  ;;  %v662_v36 = vpop.f32.mrf.mxu1 }
  0xe9   :  { %313 = vst.msk [vmem:[#allocation2 + $0x8] sm:$0xff] %vm22_vm0, %v295_v30  ;;  %323 = vst.msk [vmem:[#allocation2 + $0x58] sm:$0xff] %vm22_vm0, %v305_v32  ;;  %v63_v36 = vld [vmem:[#allocation2 + $0x30] sm:$0xff] }
  0xea   :  { %v232_v39 = vpop.f32.mrf.mxu0  ;;  %v272_v40 = vpop.f32.mrf.mxu1 }
  0xeb   :  { %v296_v43 = vadd.f32 %v232_v39, %v59_v31  ;;  %v306_v45 = vadd.f32 %v272_v40, %v69_v37 }
  0xec   :  { %v332_v46 = vld [vmem:[#allocation2] sm:$0xff]  ;;  %v342_v47 = vld [vmem:[#allocation2 + $0x50] sm:$0xff]  ;;  %v645_v48 = vpop.f32.mrf.mxu0  ;;  %v665_v49 = vpop.f32.mrf.mxu1 }
  0xed   :  { %v356_v51 = vadd.f32 %v869_v38, %v332_v46  ;;  %v366_v52 = vadd.f32 %v869_v38, %v342_v47  ;;  %314 = vst.msk [vmem:[#allocation2 + $0x10] sm:$0xff] %vm22_vm0, %v296_v43  ;;  %324 = vst.msk [vmem:[#allocation2 + $0x60] sm:$0xff] %vm22_vm0, %v306_v45  ;;  %v73_v43 = vld [vmem:[#allocation2 + $0x80] sm:$0xff]  ;;  %v577_v48 = vunpack.c.l.bf16 %v600_v33  ;;  %v597_v49 = vunpack.c.l.bf16 %v605_v35 }
  0xee   :  { %v235_v55 = vpop.f32.mrf.mxu0  ;;  %v275_v56 = vpop.f32.mrf.mxu1 }
  0xef   :  { %v407_v57 = vadd.f32 %v569_v41, %v356_v51  ;;  %v417_v58 = vadd.f32 %v589_v42, %v366_v52  ;;  %v297_v60 = vadd.f32 %v235_v55, %v60_v44  ;;  %v307_v63 = vadd.f32 %v275_v56, %v70_v50 }
  0xf0   :  { %v333_v0 = vld [vmem:[#allocation2 + $0x8] sm:$0xff]  ;;  %v343_v1 = vld [vmem:[#allocation2 + $0x58] sm:$0xff]  ;;  %v646_v2 = vpop.f32.mrf.mxu0  ;;  %v666_v3 = vpop.f32.mrf.mxu1 }
  0xf1   :  { %v550_v5 = vpack.c.bf16 %v407_v57, %v407_v57  ;;  %v357_v6 = vadd.f32 %v869_v38, %v333_v0  ;;  %v560_v7 = vpack.c.bf16 %v417_v58, %v417_v58  ;;  %v367_v8 = vadd.f32 %v869_v38, %v343_v1  ;;  %315 = vst.msk [vmem:[#allocation2 + $0x18] sm:$0xff] %vm22_vm0, %v297_v60 }
  0xf2   :  { %325 = vst.msk [vmem:[#allocation2 + $0x68] sm:$0xff] %vm22_vm0, %v307_v63  ;;  %v240_v11 = vpop.f32.mrf.mxu0  ;;  %v280_v12 = vpop.f32.mrf.mxu1  ;;  %v578_v1 = vunpack.c.h.bf16 %v600_v33 }
  0xf3   :  { %494 = vst.msk [vmem:[%s1002_s4] sm:$0xf] %vm493_vm2, %v550_v5  ;;  %v408_v13 = vadd.f32 %v570_v53, %v357_v6  ;;  %504 = vst.msk [vmem:[%s1002_s4 + $0x28] sm:$0xf] %vm493_vm2, %v560_v7  ;;  %v418_v14 = vadd.f32 %v590_v54, %v367_v8  ;;  %v298_v15 = vadd.f32 %v240_v11, %v61_v62  ;;  %v601_v6 = vld [vmem:[%s1000_s3 + $0x18] sm:$0xff]   ;;  %v598_v7 = vunpack.c.h.bf16 %v605_v35 }
  0xf4   :  { %v308_v17 = vadd.f32 %v280_v12, %v71_v4  ;;  %v334_v18 = vld [vmem:[#allocation2 + $0x10] sm:$0xff]  ;;  %v344_v19 = vld [vmem:[#allocation2 + $0x60] sm:$0xff]  ;;  %v649_v20 = vpop.f32.mrf.mxu0  ;;  %v669_v21 = vpop.f32.mrf.mxu1  ;;  %v582_v35 = vunpack.c.h.bf16 %v601_v6 }
  0xf5   :  { %v551_v23 = vpack.c.bf16 %v408_v13, %v408_v13  ;;  %v358_v24 = vadd.f32 %v869_v38, %v334_v18  ;;  %v561_v25 = vpack.c.bf16 %v418_v14, %v418_v14  ;;  %v368_v26 = vadd.f32 %v869_v38, %v344_v19  ;;  %316 = vst.msk [vmem:[#allocation2 + $0x20] sm:$0xff] %vm22_vm0, %v298_v15  ;;  %v389_v13 = vld [vmem:[%s1000_s3 + $0x40] sm:$0xf] }
  0xf6   :  { %326 = vst.msk [vmem:[#allocation2 + $0x70] sm:$0xff] %vm22_vm0, %v308_v17  ;;  %v243_v29 = vpop.f32.mrf.mxu0  ;;  %v283_v30 = vpop.f32.mrf.mxu1  ;;  %v581_v19 = vunpack.c.l.bf16 %v601_v6 }
  0xf7   :  { %495 = vst.msk [vmem:[%s1002_s4 + $0x4] sm:$0xf] %vm493_vm2, %v551_v23  ;;  %v409_v31 = vadd.f32 %v573_v9, %v358_v24  ;;  %505 = vst.msk [vmem:[%s1002_s4 + $0x2c] sm:$0xf] %vm493_vm2, %v561_v25  ;;  %v419_v32 = vadd.f32 %v593_v10, %v368_v26  ;;  %v299_v34 = vadd.f32 %v243_v29, %v62_v16  ;;  %v65_v9 = vld [vmem:[#allocation2 + $0x40] sm:$0xff]  ;;  %v406_v23 = vunpack.c.l.bf16 %v389_v13 }
  0xf8   :  { %v309_v37 = vadd.f32 %v283_v30, %v72_v22  ;;  %v335_v39 = vld [vmem:[#allocation2 + $0x18] sm:$0xff]  ;;  %v650_v41 = vpop.f32.mrf.mxu0  ;;  %v670_v42 = vpop.f32.mrf.mxu1 }
  0xf9   :  { %v345_v40 = vld [vmem:[#allocation2 + $0x68] sm:$0xff]  ;;  %v552_v44 = vpack.c.bf16 %v409_v31, %v409_v31  ;;  %v359_v45 = vadd.f32 %v869_v38, %v335_v39  ;;  %v562_v46 = vpack.c.bf16 %v419_v32, %v419_v32  ;;  %317 = vst.msk [vmem:[#allocation2 + $0x28] sm:$0xff] %vm22_vm0, %v299_v34 }
  0xfa   :  { %v369_v47 = vadd.f32 %v869_v38, %v345_v40  ;;  %327 = vst.msk [vmem:[#allocation2 + $0x78] sm:$0xff] %vm22_vm0, %v309_v37  ;;  %v248_v50 = vpop.f32.mrf.mxu0  ;;  %v288_v51 = vpop.f32.mrf.mxu1  ;;  %v602_v40 = vld [vmem:[%s1000_s3 + $0x20] sm:$0xff]  }
  0xfb   :  { %496 = vst.msk [vmem:[%s1002_s4 + $0x8] sm:$0xf] %vm493_vm2, %v552_v44  ;;  %v410_v52 = vadd.f32 %v574_v27, %v359_v45  ;;  %506 = vst.msk [vmem:[%s1002_s4 + $0x30] sm:$0xf] %vm493_vm2, %v562_v46  ;;  %v300_v54 = vadd.f32 %v248_v50, %v63_v36  ;;  %v310_v55 = vadd.f32 %v288_v51, %v73_v43  ;;  %v585_v46 = vunpack.c.l.bf16 %v602_v40 }
  0xfc   :  { %v420_v53 = vadd.f32 %v594_v28, %v369_v47  ;;  %v336_v56 = vld [vmem:[#allocation2 + $0x20] sm:$0xff]  ;;  %v653_v58 = vpop.f32.mrf.mxu0  ;;  %v673_v60 = vpop.f32.mrf.mxu1  ;;  %v66_v28 = vld [vmem:[#allocation2 + $0x48] sm:$0xff]  ;;  %v586_v51 = vunpack.c.h.bf16 %v602_v40 }
  0xfd   :  { %v346_v57 = vld [vmem:[#allocation2 + $0x70] sm:$0xff]  ;;  %v553_v61 = vpack.c.bf16 %v410_v52, %v410_v52  ;;  %v360_v62 = vadd.f32 %v869_v38, %v336_v56  ;;  %318 = vst.msk [vmem:[#allocation2 + $0x30] sm:$0xff] %vm22_vm0, %v300_v54  ;;  %328 = vst.msk [vmem:[#allocation2 + $0x80] sm:$0xff] %vm22_vm0, %v310_v55 }
  0xfe   :  { %v563_v63 = vpack.c.bf16 %v420_v53, %v420_v53  ;;  %v370_v0 = vadd.f32 %v869_v38, %v346_v57  ;;  %v251_v2 = vpop.f32.mrf.mxu0  ;;  %v291_v3 = vpop.f32.mrf.mxu1 }
  0xff   :  { %497 = vst.msk [vmem:[%s1002_s4 + $0xc] sm:$0xf] %vm493_vm2, %v553_v61  ;;  %v411_v4 = vadd.f32 %v577_v48, %v360_v62  ;;  %v301_v8 = vadd.f32 %v251_v2, %v64_v59 }
 0x100   :  { %507 = vst.msk [vmem:[%s1002_s4 + $0x34] sm:$0xf] %vm493_vm2, %v563_v63  ;;  %v421_v5 = vadd.f32 %v597_v49, %v370_v0  ;;  %v337_v10 = vld [vmem:[#allocation2 + $0x28] sm:$0xff]  ;;  %v654_v12 = vpop.f32.mrf.mxu0  ;;  %v674_v14 = vpop.f32.mrf.mxu1 }
 0x101   :  { %v347_v11 = vld [vmem:[#allocation2 + $0x78] sm:$0xff]  ;;  %v554_v15 = vpack.c.bf16 %v411_v4, %v411_v4  ;;  %v361_v16 = vadd.f32 %v869_v38, %v337_v10  ;;  %319 = vst.msk [vmem:[#allocation2 + $0x38] sm:$0xff] %vm22_vm0, %v301_v8 }
 0x102   :  { %v564_v17 = vpack.c.bf16 %v421_v5, %v421_v5  ;;  %v371_v18 = vadd.f32 %v869_v38, %v347_v11  ;;  %v256_v20 = vpop.f32.mrf.mxu0 }
 0x103   :  { %498 = vst.msk [vmem:[%s1002_s4 + $0x10] sm:$0xf] %vm493_vm2, %v554_v15  ;;  %v412_v21 = vadd.f32 %v578_v1, %v361_v16  ;;  %v302_v24 = vadd.f32 %v256_v20, %v65_v9 }
 0x104   :  { %508 = vst.msk [vmem:[%s1002_s4 + $0x38] sm:$0xf] %vm493_vm2, %v564_v17  ;;  %v422_v22 = vadd.f32 %v598_v7, %v371_v18  ;;  %v338_v25 = vld [vmem:[#allocation2 + $0x30] sm:$0xff]  ;;  %v348_v26 = vld [vmem:[#allocation2 + $0x80] sm:$0xff]  ;;  %v657_v27 = vpop.f32.mrf.mxu0 }
 0x105   :  { %v555_v29 = vpack.c.bf16 %v412_v21, %v412_v21  ;;  %v362_v30 = vadd.f32 %v869_v38, %v338_v25  ;;  %v372_v32 = vadd.f32 %v869_v38, %v348_v26  ;;  %320 = vst.msk [vmem:[#allocation2 + $0x40] sm:$0xff] %vm22_vm0, %v302_v24 }
 0x106   :  { %v565_v31 = vpack.c.bf16 %v422_v22, %v422_v22  ;;  %v259_v33 = vpop.f32.mrf.mxu0 }
 0x107   :  { %499 = vst.msk [vmem:[%s1002_s4 + $0x14] sm:$0xf] %vm493_vm2, %v555_v29  ;;  %v413_v34 = vadd.f32 %v581_v19, %v362_v30  ;;  %v423_v36 = vadd.f32 %v406_v23, %v372_v32  ;;  %v303_v37 = vadd.f32 %v259_v33, %v66_v28 }
 0x108   :  { %509 = vst.msk [vmem:[%s1002_s4 + $0x3c] sm:$0xf] %vm493_vm2, %v565_v31  ;;  %v339_v39 = vld [vmem:[#allocation2 + $0x38] sm:$0xff]  ;;  %v658_v41 = vpop.f32.mrf.mxu0 }
 0x109   :  { %v556_v42 = vpack.c.bf16 %v413_v34, %v413_v34  ;;  %v363_v43 = vadd.f32 %v869_v38, %v339_v39  ;;  %v566_v44 = vpack.c.bf16 %v423_v36, %v423_v36  ;;  %321 = vst.msk [vmem:[#allocation2 + $0x48] sm:$0xff] %vm22_vm0, %v303_v37 }
 0x10b   :  { %500 = vst.msk [vmem:[%s1002_s4 + $0x18] sm:$0xf] %vm493_vm2, %v556_v42  ;;  %v414_v45 = vadd.f32 %v582_v35, %v363_v43  ;;  %510 = vst.msk [vmem:[%s1002_s4 + $0x40] sm:$0xf] %vm493_vm2, %v566_v44 }
 0x10c   :  { %v340_v47 = vld [vmem:[#allocation2 + $0x40] sm:$0xff] }
 0x10d   :  { %v557_v48 = vpack.c.bf16 %v414_v45, %v414_v45  ;;  %v364_v49 = vadd.f32 %v869_v38, %v340_v47 }
 0x10f   :  { %501 = vst.msk [vmem:[%s1002_s4 + $0x1c] sm:$0xf] %vm493_vm2, %v557_v48  ;;  %v415_v50 = vadd.f32 %v585_v46, %v364_v49 }
 0x110   :  { %v341_v52 = vld [vmem:[#allocation2 + $0x48] sm:$0xff] }
 0x111   :  { %v558_v53 = vpack.c.bf16 %v415_v50, %v415_v50  ;;  %v365_v54 = vadd.f32 %v869_v38, %v341_v52 }
 0x113   :  { %502 = vst.msk [vmem:[%s1002_s4 + $0x20] sm:$0xf] %vm493_vm2, %v558_v53  ;;  %v416_v55 = vadd.f32 %v586_v51, %v365_v54 }
 0x115   :  { %v559_v56 = vpack.c.bf16 %v416_v55, %v416_v55 }
 0x117   :  { %503 = vst.msk [vmem:[%s1002_s4 + $0x24] sm:$0xf] %vm493_vm2, %v559_v56 }

// kernel: _lambda_.36
= control target key start
LH: loop header
LB: loop body
LE: loop exit
PB: predicated region body
PF: predicated region fallthrough
CT: control target
= control target key end

     0   :  { %s340_s6 = smov 0   ;;  %s379_s0 = inlined_call_operand.vmem [shape: bf16[2,9,16,64], index: 0, kind: input, shape index: {}]   ;;  %s380_s1 = inlined_call_operand.vmem [shape: bf16[2,16,64], index: 1, kind: output, shape index: {}]  }
   0x1 LB: > { %s254_s7 = sadd.s32 4294967295, %s328_s6   ;;  %p258_p0 = scmp.ge.s32.totalorder %s328_s6, 1  ;;  %s328_s6 = sphi %s340_s6, %s11_s6  }
   0x2   : > { %p87_p1 = scmp.lt.s32.totalorder %s328_s6, 3 }
   0x4   : > { %p88_p2 = pnand %p258_p0, %p87_p1 }
   0x5   : > { %p107_p3 = scmp.lt.s32.totalorder (!%p88_p2), %s254_s7, 1 }
   0x6   : > { %91 = sbr.rel (%p88_p2) target bundleno = 38 (0x26), region = 24 }
   0xb   : > { %s382_s7 = smov (!%p107_p3, %s254_s7), 1  ;;  %vm153_vm0 = vcmask 523264   ;;  %vm196_vm1 = vcmask 519168  }
   0xc   : > { %s313_s8 = smul.u32 72, %s382_s7  ;;  %s266_s12 = sshll.u32 %s382_s7, 3 }
   0xd   : > { %s116_s15 = scalar_lea.vmem %s380_s1, %s266_s12 }
   0xe   : > { %s111_s11 = scalar_lea.vmem %s379_s0, %s313_s8 }
   0xf   : > { %v270_v0 = vld [vmem:[%s111_s11] sm:$0xff]   ;;  %v305_v1 = vld [vmem:[%s111_s11 + $0x8] sm:$0xff]   ;;  %v306_v2 = vld [vmem:[%s111_s11 + $0x10] sm:$0xff]  }
  0x10   : > { %v271_v3 = vunpack.c.l.bf16 %v270_v0  ;;  %v275_v4 = vunpack.c.l.bf16 %v305_v1  ;;  %v279_v5 = vunpack.c.l.bf16 %v306_v2  ;;  %v307_v6 = vld [vmem:[%s111_s11 + $0x18] sm:$0xff]   ;;  %v308_v7 = vld [vmem:[%s111_s11 + $0x20] sm:$0xff]   ;;  %v309_v8 = vld [vmem:[%s111_s11 + $0x28] sm:$0xff]   ;;  %v272_v9 = vunpack.c.h.bf16 %v270_v0 }
  0x11   : > { %v283_v10 = vunpack.c.l.bf16 %v307_v6  ;;  %v287_v11 = vunpack.c.l.bf16 %v308_v7  ;;  %v291_v12 = vunpack.c.l.bf16 %v309_v8  ;;  %v310_v13 = vld [vmem:[%s111_s11 + $0x30] sm:$0xff]   ;;  %v311_v14 = vld [vmem:[%s111_s11 + $0x38] sm:$0xff]   ;;  %v312_v15 = vld [vmem:[%s111_s11 + $0x40] sm:$0xff]   ;;  %v276_v16 = vunpack.c.h.bf16 %v305_v1 }
  0x12   : > { %v295_v17 = vunpack.c.l.bf16 %v310_v13  ;;  %v299_v18 = vunpack.c.l.bf16 %v311_v14  ;;  %v303_v19 = vunpack.c.l.bf16 %v312_v15  ;;  %v154_v20 = vsel %vm153_vm0, %v271_v3, -inf }
  0x13   : > { %v155_v21 = vsel %vm153_vm0, %v275_v4, -inf  ;;  %v156_v22 = vsel %vm153_vm0, %v279_v5, -inf  ;;  %v158_v23 = vsel %vm153_vm0, %v283_v10, -inf  ;;  %v160_v24 = vsel %vm153_vm0, %v287_v11, -inf }
  0x14   : > { %v157_v25 = vmax.f32 %v154_v20, %v156_v22  ;;  %v159_v26 = vmax.f32 %v155_v21, %v158_v23  ;;  %v162_v27 = vsel %vm153_vm0, %v291_v12, -inf  ;;  %v164_v28 = vsel %vm153_vm0, %v295_v17, -inf }
  0x15   : > { %v166_v29 = vsel %vm153_vm0, %v299_v18, -inf  ;;  %v168_v30 = vsel %vm153_vm0, %v303_v19, -inf  ;;  %v280_v31 = vunpack.c.h.bf16 %v306_v2  ;;  %v284_v32 = vunpack.c.h.bf16 %v307_v6 }
  0x16   : > { %v161_v33 = vmax.f32 %v157_v25, %v160_v24  ;;  %v163_v34 = vmax.f32 %v159_v26, %v162_v27  ;;  %v288_v35 = vunpack.c.h.bf16 %v308_v7  ;;  %v292_v36 = vunpack.c.h.bf16 %v309_v8 }
  0x17   : > { %v296_v37 = vunpack.c.h.bf16 %v310_v13  ;;  %v300_v38 = vunpack.c.h.bf16 %v311_v14  ;;  %v304_v39 = vunpack.c.h.bf16 %v312_v15  ;;  %v171_v40 = vsel %vm153_vm0, %v272_v9, -inf }
  0x18   : > { %v165_v41 = vmax.f32 %v161_v33, %v164_v28  ;;  %v167_v42 = vmax.f32 %v163_v34, %v166_v29  ;;  %v172_v43 = vsel %vm153_vm0, %v276_v16, -inf  ;;  %v173_v44 = vsel %vm153_vm0, %v280_v31, -inf }
  0x19   : > { %v174_v45 = vmax.f32 %v171_v40, %v173_v44  ;;  %v175_v46 = vsel %vm153_vm0, %v284_v32, -inf  ;;  %v177_v47 = vsel %vm153_vm0, %v288_v35, -inf  ;;  %v179_v48 = vsel %vm153_vm0, %v292_v36, -inf }
  0x1a   : > { %v169_v49 = vmax.f32 %v165_v41, %v168_v30  ;;  %v176_v50 = vmax.f32 %v172_v43, %v175_v46  ;;  %v181_v51 = vsel %vm153_vm0, %v296_v37, -inf  ;;  %v183_v53 = vsel %vm153_vm0, %v300_v38, -inf }
  0x1b   : > { %v178_v52 = vmax.f32 %v174_v45, %v177_v47  ;;  %v185_v56 = vsel %vm153_vm0, %v304_v39, -inf }
  0x1c   : > { %v170_v54 = vmax.f32 %v169_v49, %v167_v42  ;;  %v180_v55 = vmax.f32 %v176_v50, %v179_v48 }
  0x1d   : > { %v182_v57 = vmax.f32 %v178_v52, %v181_v51 }
  0x1e   : > { %v267_v58 = vpack.c.bf16 %v170_v54, %v170_v54  ;;  %v184_v59 = vmax.f32 %v180_v55, %v183_v53 }
  0x1f   : > { %v186_v60 = vmax.f32 %v182_v57, %v185_v56 }
  0x20   : > { %197 = vst.msk [vmem:[%s116_s15] sm:$0xf] %vm196_vm1, %v267_v58 }
  0x21   : > { %v187_v61 = vmax.f32 %v186_v60, %v184_v59 }
  0x23   : > { %v268_v62 = vpack.c.bf16 %v187_v61, %v187_v61 }
  0x25   : > { %198 = vst.msk [vmem:[%s116_s15 + $0x4] sm:$0xf] %vm196_vm1, %v268_v62 }
  0x26 PF: > { %s11_s6 = sadd.s32 1, %s328_s6  }
  0x27   : > { %p8_p4 = scmp.ge.s32.totalorder %s11_s6, 4  }
  0x29   :  { %10 = sbr.rel (!%p8_p4) target bundleno = 1 (0x1), region = 54 }

// kernel: _lambda_.38
= control target key start
LH: loop header
LB: loop body
LE: loop exit
PB: predicated region body
PF: predicated region fallthrough
CT: control target
= control target key end

     0   :  { %s462_s9 = smov 0   ;;  %s528_s0 = inlined_call_operand.vmem [shape: bf16[2,9,16,64], index: 0, kind: input, shape index: {}]   ;;  %s529_s1 = inlined_call_operand.vmem [shape: f32[9,1,64], index: 1, kind: input, shape index: {}]   ;;  %s530_s2 = inlined_call_operand.vmem [shape: bf16[2,16,64], index: 2, kind: output, shape index: {}]  }
   0x1 LB: > { %s362_s10 = sadd.s32 4294967295, %s445_s9   ;;  %p366_p0 = scmp.ge.s32.totalorder %s445_s9, 1  ;;  %s445_s9 = sphi %s462_s9, %s12_s9  }
   0x2   : > { %p112_p1 = scmp.lt.s32.totalorder %s445_s9, 3 }
   0x4   : > { %p113_p2 = pnand %p366_p0, %p112_p1 }
   0x5   : > { %p134_p3 = scmp.lt.s32.totalorder (!%p113_p2), %s362_s10, 1 }
   0x6   : > { %116 = sbr.rel (%p113_p2) target bundleno = 45 (0x2d), region = 28 }
   0xb   : > { %s532_s10 = smov (!%p134_p3, %s362_s10), 1  ;;  %v370_v0 = vld [vmem:[%s529_s1] ss:$0 sm:$0xff]  ;;  %v371_v1 = vld [vmem:[%s529_s1 + $0x1] ss:$0 sm:$0xff]  ;;  %vm261_vm0 = vcmask 523264  }
   0xc   : > { %s430_s11 = smul.u32 72, %s532_s10  ;;  %v372_v2 = vld [vmem:[%s529_s1 + $0x2] ss:$0 sm:$0xff]  ;;  %v373_v3 = vld [vmem:[%s529_s1 + $0x3] ss:$0 sm:$0xff]  ;;  %s383_s5 = sshll.u32 %s532_s10, 3 }
   0xd   : > { %v374_v16 = vld [vmem:[%s529_s1 + $0x4] ss:$0 sm:$0xff]  ;;  %v375_v24 = vld [vmem:[%s529_s1 + $0x5] ss:$0 sm:$0xff]  ;;  %v376_v33 = vld [vmem:[%s529_s1 + $0x6] ss:$0 sm:$0xff]  ;;  %s143_s8 = scalar_lea.vmem %s530_s2, %s383_s5 }
   0xe   : > { %s138_s16 = scalar_lea.vmem %s528_s0, %s430_s11  ;;  %v377_v40 = vld [vmem:[%s529_s1 + $0x7] ss:$0 sm:$0xff]  ;;  %v378_v47 = vld [vmem:[%s529_s1 + $0x8] ss:$0 sm:$0xff]  ;;  %vm304_vm1 = vcmask 519168  }
   0xf   : > { %v387_v4 = vld [vmem:[%s138_s16] sm:$0xff]   ;;  %v422_v5 = vld [vmem:[%s138_s16 + $0x8] sm:$0xff]   ;;  %v423_v6 = vld [vmem:[%s138_s16 + $0x10] sm:$0xff]  }
  0x10   : > { %v388_v7 = vunpack.c.l.bf16 %v387_v4  ;;  %v392_v8 = vunpack.c.l.bf16 %v422_v5  ;;  %v396_v9 = vunpack.c.l.bf16 %v423_v6  ;;  %v424_v10 = vld [vmem:[%s138_s16 + $0x18] sm:$0xff]   ;;  %v425_v11 = vld [vmem:[%s138_s16 + $0x20] sm:$0xff]   ;;  %v426_v12 = vld [vmem:[%s138_s16 + $0x28] sm:$0xff]   ;;  %v389_v25 = vunpack.c.h.bf16 %v387_v4 }
  0x11   : > { %v400_v13 = vunpack.c.l.bf16 %v424_v10  ;;  %v404_v14 = vunpack.c.l.bf16 %v425_v11  ;;  %v427_v15 = vld [vmem:[%s138_s16 + $0x30] sm:$0xff]   ;;  %v408_v18 = vunpack.c.l.bf16 %v426_v12  ;;  %v428_v19 = vld [vmem:[%s138_s16 + $0x38] sm:$0xff]   ;;  %v393_v26 = vunpack.c.h.bf16 %v422_v5  ;;  %v429_v27 = vld [vmem:[%s138_s16 + $0x40] sm:$0xff]  }
  0x12   : > { %v243_v17 = vmul.f32 %v388_v7, %v370_v0  ;;  %v245_v20 = vmul.f32 %v392_v8, %v371_v1  ;;  %v247_v21 = vmul.f32 %v396_v9, %v372_v2  ;;  %v412_v23 = vunpack.c.l.bf16 %v427_v15 }
  0x13   : > { %v249_v22 = vmul.f32 %v400_v13, %v373_v3  ;;  %v251_v28 = vmul.f32 %v404_v14, %v374_v16  ;;  %v416_v32 = vunpack.c.l.bf16 %v428_v19  ;;  %v253_v35 = vmul.f32 %v408_v18, %v375_v24 }
  0x14   : > { %v262_v29 = vsel %vm261_vm0, %v243_v17, 0.0  ;;  %v263_v30 = vsel %vm261_vm0, %v245_v20, 0.0  ;;  %v265_v31 = vsel %vm261_vm0, %v247_v21, 0.0  ;;  %v397_v37 = vunpack.c.h.bf16 %v423_v6 }
  0x15   : > { %v264_v34 = vadd.f32 %v263_v30, %v262_v29  ;;  %v267_v36 = vsel %vm261_vm0, %v249_v22, 0.0  ;;  %v401_v38 = vunpack.c.h.bf16 %v424_v10  ;;  %v420_v39 = vunpack.c.l.bf16 %v429_v27 }
  0x16   : > { %v405_v42 = vunpack.c.h.bf16 %v425_v11  ;;  %v255_v43 = vmul.f32 %v412_v23, %v376_v33  ;;  %v269_v44 = vsel %vm261_vm0, %v251_v28, 0.0  ;;  %v244_v45 = vmul.f32 %v389_v25, %v370_v0 }
  0x17   : > { %v266_v41 = vadd.f32 %v265_v31, %v264_v34  ;;  %v246_v46 = vmul.f32 %v393_v26, %v371_v1  ;;  %v409_v49 = vunpack.c.h.bf16 %v426_v12  ;;  %v248_v50 = vmul.f32 %v397_v37, %v372_v2 }
  0x18   : > { %v250_v51 = vmul.f32 %v401_v38, %v373_v3  ;;  %v257_v52 = vmul.f32 %v416_v32, %v377_v40  ;;  %v271_v53 = vsel %vm261_vm0, %v253_v35, 0.0  ;;  %v413_v54 = vunpack.c.h.bf16 %v427_v15 }
  0x19   : > { %v268_v48 = vadd.f32 %v267_v36, %v266_v41  ;;  %v252_v55 = vmul.f32 %v405_v42, %v374_v16  ;;  %v279_v57 = vsel %vm261_vm0, %v244_v45, 0.0  ;;  %v280_v58 = vsel %vm261_vm0, %v246_v46, 0.0 }
  0x1a   : > { %v282_v59 = vsel %vm261_vm0, %v248_v50, 0.0  ;;  %v259_v60 = vmul.f32 %v420_v39, %v378_v47  ;;  %v273_v61 = vsel %vm261_vm0, %v255_v43, 0.0  ;;  %v281_v62 = vadd.f32 %v280_v58, %v279_v57 }
  0x1b   : > { %v270_v56 = vadd.f32 %v269_v44, %v268_v48  ;;  %v417_v0 = vunpack.c.h.bf16 %v428_v19  ;;  %v254_v1 = vmul.f32 %v409_v49, %v375_v24  ;;  %v284_v2 = vsel %vm261_vm0, %v250_v51, 0.0 }
  0x1c   : > { %v275_v3 = vsel %vm261_vm0, %v257_v52, 0.0  ;;  %v283_v4 = vadd.f32 %v282_v59, %v281_v62  ;;  %v421_v6 = vunpack.c.h.bf16 %v429_v27  ;;  %v256_v7 = vmul.f32 %v413_v54, %v376_v33 }
  0x1d   : > { %v272_v63 = vadd.f32 %v271_v53, %v270_v56  ;;  %v286_v8 = vsel %vm261_vm0, %v252_v55, 0.0  ;;  %v277_v9 = vsel %vm261_vm0, %v259_v60, 0.0  ;;  %v258_v12 = vmul.f32 %v417_v0, %v377_v40 }
  0x1e   : > { %v285_v10 = vadd.f32 %v284_v2, %v283_v4  ;;  %v288_v13 = vsel %vm261_vm0, %v254_v1, 0.0  ;;  %v260_v16 = vmul.f32 %v421_v6, %v378_v47  ;;  %v290_v17 = vsel %vm261_vm0, %v256_v7, 0.0 }
  0x1f   : > { %v274_v5 = vadd.f32 %v273_v61, %v272_v63  ;;  %v292_v20 = vsel %vm261_vm0, %v258_v12, 0.0 }
  0x20   : > { %v287_v14 = vadd.f32 %v286_v8, %v285_v10  ;;  %v294_v22 = vsel %vm261_vm0, %v260_v16, 0.0 }
  0x21   : > { %v276_v11 = vadd.f32 %v275_v3, %v274_v5 }
  0x22   : > { %v289_v18 = vadd.f32 %v288_v13, %v287_v14 }
  0x23   : > { %v278_v15 = vadd.f32 %v277_v9, %v276_v11 }
  0x24   : > { %v291_v21 = vadd.f32 %v290_v17, %v289_v18 }
  0x25   : > { %v384_v19 = vpack.c.bf16 %v278_v15, %v278_v15 }
  0x26   : > { %v293_v23 = vadd.f32 %v292_v20, %v291_v21 }
  0x27   : > { %305 = vst.msk [vmem:[%s143_s8] sm:$0xf] %vm304_vm1, %v384_v19 }
  0x28   : > { %v295_v24 = vadd.f32 %v294_v22, %v293_v23 }
  0x2a   : > { %v385_v25 = vpack.c.bf16 %v295_v24, %v295_v24 }
  0x2c   : > { %306 = vst.msk [vmem:[%s143_s8 + $0x4] sm:$0xf] %vm304_vm1, %v385_v25 }
  0x2d PF: > { %s12_s9 = sadd.s32 1, %s445_s9  }
  0x2e   : > { %p9_p4 = scmp.ge.s32.totalorder %s12_s9, 4  }
  0x30   :  { %11 = sbr.rel (!%p9_p4) target bundleno = 1 (0x1), region = 58 }

// kernel: _lambda_.37
= control target key start
LH: loop header
LB: loop body
LE: loop exit
PB: predicated region body
PF: predicated region fallthrough
CT: control target
= control target key end

     0   :  { %vm26_vm0 = vcmask 523264   ;;  %vm859_vm1 = vcmask 1043456   ;;  %vm860_vm2 = vcmask 523268   ;;  %s1572_s0 = inlined_call_operand.vmem [shape: bf16[136,64], index: 0, kind: input, shape index: {}]   ;;  %s1573_s1 = inlined_call_operand.vmem [shape: bf16[64,192], index: 1, kind: input, shape index: {}]   ;;  %s1574_s3 = inlined_call_operand.vmem [shape: f32[1,64], index: 3, kind: input, shape index: {}]   ;;  %s1575_s4 = inlined_call_operand.vmem [shape: f32[1,64], index: 4, kind: input, shape index: {}]   ;;  %s1576_s2 = inlined_call_operand.vmem [shape: f32[1,192], index: 2, kind: input, shape index: {}]   ;;  %s1577_s5 = inlined_call_operand.vmem [shape: bf16[136,192], index: 5, kind: output, shape index: {}]  }
   0x1   :  { %v1066_v0 = vld [vmem:[%s1572_s0] sm:$0xff]   ;;  %v1071_v1 = vld [vmem:[%s1572_s0 + $0x8] sm:$0xff]   ;;  %v1095_v13 = vld [vmem:[%s1572_s0 + $0x10] sm:$0xff]  }
   0x2   :  { %v938_v2 = vunpack.c.l.bf16 %v1066_v0  ;;  %v942_v3 = vunpack.c.l.bf16 %v1071_v1  ;;  %v939_v4 = vunpack.c.h.bf16 %v1066_v0  ;;  %v943_v5 = vunpack.c.h.bf16 %v1071_v1  ;;  %v1080_v6 = vld [vmem:[%s1572_s0 + $0x28] sm:$0xff]   ;;  %v1108_v18 = vld [vmem:[%s1572_s0 + $0x30] sm:$0xff]   ;;  %v1121_v23 = vld [vmem:[%s1572_s0 + $0x18] sm:$0xff]  }
   0x3   :  { %v958_v11 = vunpack.c.l.bf16 %v1080_v6  ;;  %v959_v12 = vunpack.c.h.bf16 %v1080_v6  ;;  %v946_v16 = vunpack.c.l.bf16 %v1095_v13  ;;  %v947_v17 = vunpack.c.h.bf16 %v1095_v13  ;;  %v1134_v28 = vld [vmem:[%s1572_s0 + $0x38] sm:$0xff]   ;;  %v1147_v33 = vld [vmem:[%s1572_s0 + $0x20] sm:$0xff]   ;;  %vm1420_vm3 = vmor %vm860_vm2, %vm859_vm1 }
   0x4   :  { %v95_v7 = vsel %vm26_vm0, %v938_v2, 0.0  ;;  %v101_v8 = vsel %vm26_vm0, %v942_v3, 0.0  ;;  %v98_v9 = vsel %vm26_vm0, %v939_v4, 0.0  ;;  %v104_v10 = vsel %vm26_vm0, %v943_v5, 0.0  ;;  %v1160_v38 = vld [vmem:[%s1572_s0 + $0x40] sm:$0xf] }
   0x5   :  { %96 = vadd.xlane.f32.xlu0 %v95_v7  ;;  %102 = vadd.xlane.f32.xlu1 %v101_v8  ;;  %v125_v14 = vsel %vm26_vm0, %v958_v11, 0.0  ;;  %v128_v15 = vsel %vm26_vm0, %v959_v12, 0.0  ;;  %v107_v19 = vsel %vm26_vm0, %v946_v16, 0.0  ;;  %v110_v20 = vsel %vm26_vm0, %v947_v17, 0.0 }
   0x6   :  { %v962_v21 = vunpack.c.l.bf16 %v1108_v18  ;;  %v963_v22 = vunpack.c.h.bf16 %v1108_v18  ;;  %v950_v26 = vunpack.c.l.bf16 %v1121_v23  ;;  %v951_v27 = vunpack.c.h.bf16 %v1121_v23 }
   0x7   :  { %v966_v31 = vunpack.c.l.bf16 %v1134_v28  ;;  %v967_v32 = vunpack.c.h.bf16 %v1134_v28  ;;  %v954_v36 = vunpack.c.l.bf16 %v1147_v33  ;;  %v955_v37 = vunpack.c.h.bf16 %v1147_v33 }
   0x8   :  { %v131_v24 = vsel %vm26_vm0, %v962_v21, 0.0  ;;  %v134_v25 = vsel %vm26_vm0, %v963_v22, 0.0  ;;  %v113_v29 = vsel %vm26_vm0, %v950_v26, 0.0  ;;  %v116_v30 = vsel %vm26_vm0, %v951_v27, 0.0 }
   0x9   :  { %99 = vadd.xlane.f32.xlu0 %v98_v9  ;;  %105 = vadd.xlane.f32.xlu1 %v104_v10  ;;  %v137_v34 = vsel %vm26_vm0, %v966_v31, 0.0  ;;  %v140_v35 = vsel %vm26_vm0, %v967_v32, 0.0  ;;  %v119_v39 = vsel %vm26_vm0, %v954_v36, 0.0  ;;  %v122_v40 = vsel %vm26_vm0, %v955_v37, 0.0 }
   0xa   :  { %v93_v41 = vunpack.c.l.bf16 %v1160_v38 }
   0xc   :  { %v143_v42 = vsel %vm26_vm0, %v93_v41, 0.0 }
   0xd   :  { %126 = vadd.xlane.f32.xlu0 %v125_v14  ;;  %129 = vadd.xlane.f32.xlu1 %v128_v15 }
  0x11   :  { %108 = vadd.xlane.f32.xlu0 %v107_v19  ;;  %111 = vadd.xlane.f32.xlu1 %v110_v20 }
  0x15   :  { %132 = vadd.xlane.f32.xlu0 %v131_v24  ;;  %135 = vadd.xlane.f32.xlu1 %v134_v25 }
  0x19   :  { %114 = vadd.xlane.f32.xlu0 %v113_v29  ;;  %117 = vadd.xlane.f32.xlu1 %v116_v30 }
  0x1d   :  { %138 = vadd.xlane.f32.xlu0 %v137_v34  ;;  %141 = vadd.xlane.f32.xlu1 %v140_v35 }
  0x21   :  { %120 = vadd.xlane.f32.xlu0 %v119_v39  ;;  %123 = vadd.xlane.f32.xlu1 %v122_v40 }
  0x25   :  { %144 = vadd.xlane.f32.xlu0 %v143_v42 }
  0x8e   :  { %v97_v43 = vpop.xlane.xlu0 %96  ;;  %v103_v44 = vpop.xlane.xlu1 %102 }
  0x8f   :  { %v147_v45 = vmul.f32 0.015625, %v97_v43  ;;  %v149_v46 = vmul.f32 0.015625, %v103_v44 }
  0x91   :  { %v1172_v47 = vsub.f32 %v938_v2, %v147_v45  ;;  %v1174_v48 = vsub.f32 %v942_v3, %v149_v46 }
  0x92   :  { %v100_v49 = vpop.xlane.xlu0 %99  ;;  %v106_v50 = vpop.xlane.xlu1 %105 }
  0x93   :  { %v148_v51 = vmul.f32 0.015625, %v100_v49  ;;  %v150_v52 = vmul.f32 0.015625, %v106_v50  ;;  %v181_v53 = vmul.f32 %v1172_v47, %v1172_v47  ;;  %v183_v54 = vmul.f32 %v1174_v48, %v1174_v48 }
  0x95   :  { %v1182_v55 = vsub.f32 %v939_v4, %v148_v51  ;;  %v1186_v56 = vsub.f32 %v943_v5, %v150_v52  ;;  %v198_v57 = vsel %vm26_vm0, %v181_v53, 0.0  ;;  %v204_v60 = vsel %vm26_vm0, %v183_v54, 0.0 }
  0x96   :  { %199 = vadd.xlane.f32.xlu1 %v198_v57  ;;  %v127_v58 = vpop.xlane.xlu0 %126  ;;  %v130_v59 = vpop.xlane.xlu1 %129 }
  0x97   :  { %v157_v61 = vmul.f32 0.015625, %v127_v58  ;;  %v158_v62 = vmul.f32 0.015625, %v130_v59  ;;  %v182_v63 = vmul.f32 %v1182_v55, %v1182_v55  ;;  %v184_v0 = vmul.f32 %v1186_v56, %v1186_v56 }
  0x99   :  { %v1196_v1 = vsub.f32 %v958_v11, %v157_v61  ;;  %v1200_v2 = vsub.f32 %v959_v12, %v158_v62  ;;  %v201_v3 = vsel %vm26_vm0, %v182_v63, 0.0  ;;  %v207_v7 = vsel %vm26_vm0, %v184_v0, 0.0  ;;  %v985_v63 = vld [vmem:[%s1573_s1 + $0x34] ss:$8 sps:$4 sm:$0xff]  }
  0x9a   :  { %205 = vadd.xlane.f32.xlu1 %v204_v60  ;;  %202 = vadd.xlane.f32.xlu0 %v201_v3  ;;  %v109_v4 = vpop.xlane.xlu0 %108  ;;  %v112_v5 = vpop.xlane.xlu1 %111  ;;  %v987_v3 = vld [vmem:[%s1573_s1 + $0x30] ss:$8 sps:$4 sm:$0xff]  }
  0x9b   :  { %v151_v8 = vmul.f32 0.015625, %v109_v4  ;;  %v152_v9 = vmul.f32 0.015625, %v112_v5  ;;  %v191_v10 = vmul.f32 %v1196_v1, %v1196_v1  ;;  %v192_v11 = vmul.f32 %v1200_v2, %v1200_v2  ;;  %491 = vmatprep.subr.bf16.mxu0 %v985_v63  ;;  %975 = vmatprep.subr.bf16.mxu1 %v985_v63 }
  0x9c   :  { %492 = vmatpush1.bf16.msra.mxu0 %v987_v3  ;;  %979 = vmatpush1.bf16.msra.mxu1 %v987_v3 }
  0x9d   :  { %v1210_v6 = vsub.f32 %v946_v16, %v151_v8  ;;  %v1214_v12 = vsub.f32 %v947_v17, %v152_v9  ;;  %v228_v14 = vsel %vm26_vm0, %v191_v10, 0.0  ;;  %v231_v20 = vsel %vm26_vm0, %v192_v11, 0.0  ;;  %v988_v8 = vld [vmem:[%s1573_s1 + $0x24] ss:$8 sps:$4 sm:$0xff]   ;;  %v990_v9 = vld [vmem:[%s1573_s1 + $0x20] ss:$8 sps:$4 sm:$0xff]  }
  0x9e   :  { %208 = vadd.xlane.f32.xlu0 %v207_v7  ;;  %229 = vadd.xlane.f32.xlu1 %v228_v14  ;;  %v133_v15 = vpop.xlane.xlu0 %132  ;;  %v136_v19 = vpop.xlane.xlu1 %135  ;;  %v993_v14 = vld [vmem:[%s1573_s1 + $0x10] ss:$8 sps:$4 sm:$0xff]  }
  0x9f   :  { %v159_v24 = vmul.f32 0.015625, %v133_v15  ;;  %v160_v25 = vmul.f32 0.015625, %v136_v19  ;;  %v185_v29 = vmul.f32 %v1210_v6, %v1210_v6  ;;  %v186_v16 = vmul.f32 %v1214_v12, %v1214_v12  ;;  %493 = vmatprep.subr.bf16.mxu0 %v988_v8  ;;  %976 = vmatprep.subr.bf16.mxu1 %v988_v8  ;;  %v994_v15 = vld [vmem:[%s1573_s1 + $0x4] ss:$8 sps:$4 sm:$0xff]   ;;  %v996_v19 = vld [vmem:[%s1573_s1] ss:$8 sps:$4 sm:$0xff]  }
  0xa0   :  { %494 = vmatpush1.bf16.msra.mxu0 %v990_v9  ;;  %980 = vmatpush1.bf16.msra.mxu1 %v990_v9 }
  0xa1   :  { %v1224_v13 = vsub.f32 %v962_v21, %v159_v24  ;;  %v1228_v17 = vsub.f32 %v963_v22, %v160_v25  ;;  %v210_v30 = vsel %vm26_vm0, %v185_v29, 0.0  ;;  %v213_v39 = vsel %vm26_vm0, %v186_v16, 0.0 }
  0xa2   :  { %232 = vadd.xlane.f32.xlu0 %v231_v20  ;;  %211 = vadd.xlane.f32.xlu1 %v210_v30  ;;  %v115_v34 = vpop.xlane.xlu0 %114  ;;  %v118_v35 = vpop.xlane.xlu1 %117  ;;  %v1031_v20 = vmov 0   ;;  %v1032_v24 = vmov 0.0  }
  0xa3   :  { %v153_v40 = vmul.f32 0.015625, %v115_v34  ;;  %v154_v42 = vmul.f32 0.015625, %v118_v35  ;;  %v193_v43 = vmul.f32 %v1224_v13, %v1224_v13  ;;  %v194_v21 = vmul.f32 %v1228_v17, %v1228_v17  ;;  %515 = vmatprep.mubr.bf16.mxu0 %v1031_v20  ;;  %565 = vmatprep.mubr.bf16.mxu1 %v1031_v20  ;;  %27 = vst.msk [vmem:[#allocation2 + $0x8] sm:$0xff] %vm26_vm0, %v1032_v24 }
  0xa4   :  { %29 = vst.msk [vmem:[#allocation2 + $0x18] sm:$0xff] %vm26_vm0, %v1032_v24  ;;  %31 = vst.msk [vmem:[#allocation2 + $0x28] sm:$0xff] %vm26_vm0, %v1032_v24 }
  0xa5   :  { %v1238_v18 = vsub.f32 %v950_v26, %v153_v40  ;;  %v1242_v22 = vsub.f32 %v951_v27, %v154_v42  ;;  %v234_v44 = vsel %vm26_vm0, %v193_v43, 0.0  ;;  %v237_v49 = vsel %vm26_vm0, %v194_v21, 0.0  ;;  %33 = vst.msk [vmem:[#allocation2 + $0x38] sm:$0xff] %vm26_vm0, %v1032_v24  ;;  %35 = vst.msk [vmem:[#allocation2 + $0x48] sm:$0xff] %vm26_vm0, %v1032_v24 }
  0xa6   :  { %214 = vadd.xlane.f32.xlu0 %v213_v39  ;;  %235 = vadd.xlane.f32.xlu1 %v234_v44  ;;  %v139_v45 = vpop.xlane.xlu0 %138  ;;  %v142_v46 = vpop.xlane.xlu1 %141  ;;  %37 = vst.msk [vmem:[#allocation2 + $0x58] sm:$0xff] %vm26_vm0, %v1032_v24  ;;  %39 = vst.msk [vmem:[#allocation2 + $0x68] sm:$0xff] %vm26_vm0, %v1032_v24 }
  0xa7   :  { %v161_v50 = vmul.f32 0.015625, %v139_v45  ;;  %v162_v51 = vmul.f32 0.015625, %v142_v46  ;;  %v187_v52 = vmul.f32 %v1238_v18, %v1238_v18  ;;  %v188_v26 = vmul.f32 %v1242_v22, %v1242_v22  ;;  %41 = vst.msk [vmem:[#allocation2 + $0x78] sm:$0xff] %vm26_vm0, %v1032_v24  ;;  %43 = vst.msk [vmem:[#allocation2 + $0x88] sm:$0xff] %vm26_vm0, %v1032_v24 }
  0xa8   :  { %45 = vst.msk [vmem:[#allocation2 + $0x98] sm:$0xff] %vm26_vm0, %v1032_v24  ;;  %47 = vst.msk [vmem:[#allocation2 + $0xa8] sm:$0xff] %vm26_vm0, %v1032_v24 }
  0xa9   :  { %v1252_v23 = vsub.f32 %v966_v31, %v161_v50  ;;  %v1256_v27 = vsub.f32 %v967_v32, %v162_v51  ;;  %v216_v53 = vsel %vm26_vm0, %v187_v52, 0.0  ;;  %v219_v58 = vsel %vm26_vm0, %v188_v26, 0.0  ;;  %49 = vst.msk [vmem:[#allocation2 + $0xb8] sm:$0xff] %vm26_vm0, %v1032_v24  ;;  %51 = vst.msk [vmem:[#allocation2 + $0xc8] sm:$0xff] %vm26_vm0, %v1032_v24 }
  0xaa   :  { %238 = vadd.xlane.f32.xlu0 %v237_v49  ;;  %217 = vadd.xlane.f32.xlu1 %v216_v53  ;;  %v121_v54 = vpop.xlane.xlu0 %120  ;;  %v124_v57 = vpop.xlane.xlu1 %123  ;;  %53 = vst.msk [vmem:[#allocation2 + $0xd8] sm:$0xff] %vm26_vm0, %v1032_v24  ;;  %55 = vst.msk [vmem:[#allocation2 + $0xe8] sm:$0xff] %vm26_vm0, %v1032_v24 }
  0xab   :  { %v155_v59 = vmul.f32 0.015625, %v121_v54  ;;  %v156_v60 = vmul.f32 0.015625, %v124_v57  ;;  %v195_v61 = vmul.f32 %v1252_v23, %v1252_v23  ;;  %v196_v31 = vmul.f32 %v1256_v27, %v1256_v27  ;;  %57 = vst.msk [vmem:[#allocation2 + $0xf8] sm:$0xff] %vm26_vm0, %v1032_v24  ;;  %59 = vst.msk [vmem:[#allocation2 + $0x108] sm:$0xff] %vm26_vm0, %v1032_v24 }
  0xad   :  { %v1266_v28 = vsub.f32 %v954_v36, %v155_v59  ;;  %v1270_v32 = vsub.f32 %v955_v37, %v156_v60  ;;  %v240_v62 = vsel %vm26_vm0, %v195_v61, 0.0  ;;  %v243_v36 = vsel %vm26_vm0, %v196_v31, 0.0 }
  0xae   :  { %220 = vadd.xlane.f32.xlu0 %v219_v58  ;;  %241 = vadd.xlane.f32.xlu1 %v240_v62  ;;  %v145_v0 = vpop.xlane.xlu0 %144 }
  0xaf   :  { %v163_v4 = vmul.f32 0.015625, %v145_v0  ;;  %v189_v33 = vmul.f32 %v1266_v28, %v1266_v28  ;;  %v190_v37 = vmul.f32 %v1270_v32, %v1270_v32 }
  0xb1   :  { %v1286_v5 = vsub.f32 %v93_v41, %v163_v4  ;;  %v222_v7 = vsel %vm26_vm0, %v189_v33, 0.0  ;;  %v225_v10 = vsel %vm26_vm0, %v190_v37, 0.0  ;;  %v991_v41 = vld [vmem:[%s1573_s1 + $0x14] ss:$8 sps:$4 sm:$0xff]   ;;  %v1334_v33 = vld [vmem:[%s1574_s3] ss:$0 sm:$0xff] }
  0xb2   :  { %244 = vadd.xlane.f32.xlu0 %v243_v36  ;;  %223 = vadd.xlane.f32.xlu1 %v222_v7 }
  0xb3   :  { %v197_v11 = vmul.f32 %v1286_v5, %v1286_v5  ;;  %495 = vmatprep.subr.bf16.mxu0 %v991_v41  ;;  %977 = vmatprep.subr.bf16.mxu1 %v991_v41 }
  0xb4   :  { %496 = vmatpush1.bf16.msra.mxu0 %v993_v14  ;;  %981 = vmatpush1.bf16.msra.mxu1 %v993_v14 }
  0xb5   :  { %v246_v38 = vsel %vm26_vm0, %v197_v11, 0.0  ;;  %497 = vmatprep.subr.bf16.mxu0 %v994_v15  ;;  %978 = vmatprep.subr.bf16.mxu1 %v994_v15  ;;  %v1341_v15 = vld [vmem:[%s1575_s4] ss:$0 sm:$0xff] }
  0xb6   :  { %226 = vadd.xlane.f32.xlu0 %v225_v10  ;;  %247 = vadd.xlane.f32.xlu1 %v246_v38 }
  0xb8   :  { %498 = vmatpush1.bf16.msra.mxu0 %v996_v19  ;;  %982 = vmatpush1.bf16.msra.mxu1 %v996_v19 }
 0x11f   :  { %v200_v25 = vpop.xlane.xlu1 %199 }
 0x120   :  { %v249_v29 = vmul.f32 0.015625, %v200_v25 }
 0x122   :  { %v266_v16 = vadd.f32 1e-06, %v249_v29 }
 0x123   :  { %v206_v30 = vpop.xlane.xlu1 %205  ;;  %v203_v34 = vpop.xlane.xlu0 %202 }
 0x124   :  { %997 = vrsqrt.f32 %v266_v16  ;;  %v251_v35 = vmul.f32 0.015625, %v206_v30  ;;  %v250_v39 = vmul.f32 0.015625, %v203_v34 }
 0x126   :  { %v268_v40 = vadd.f32 1e-06, %v251_v35  ;;  %v267_v42 = vadd.f32 1e-06, %v250_v39 }
 0x127   :  { %v230_v43 = vpop.xlane.xlu1 %229  ;;  %v209_v21 = vpop.xlane.xlu0 %208 }
 0x128   :  { %999 = vrsqrt.f32 %v268_v40  ;;  %v259_v44 = vmul.f32 0.015625, %v230_v43  ;;  %v252_v45 = vmul.f32 0.015625, %v209_v21 }
 0x129   :  { %1001 = vrsqrt.f32 %v267_v42 }
 0x12a   :  { %v276_v46 = vadd.f32 1e-06, %v259_v44  ;;  %v269_v49 = vadd.f32 1e-06, %v252_v45 }
 0x12b   :  { %v212_v50 = vpop.xlane.xlu1 %211  ;;  %v233_v51 = vpop.xlane.xlu0 %232 }
 0x12c   :  { %1003 = vrsqrt.f32 %v276_v46  ;;  %v253_v52 = vmul.f32 0.015625, %v212_v50  ;;  %v260_v26 = vmul.f32 0.015625, %v233_v51 }
 0x12d   :  { %1005 = vrsqrt.f32 %v269_v49 }
 0x12e   :  { %v270_v53 = vadd.f32 1e-06, %v253_v52  ;;  %v277_v54 = vadd.f32 1e-06, %v260_v26 }
 0x12f   :  { %v236_v57 = vpop.xlane.xlu1 %235  ;;  %v215_v58 = vpop.xlane.xlu0 %214 }
 0x130   :  { %v261_v59 = vmul.f32 0.015625, %v236_v57  ;;  %v254_v60 = vmul.f32 0.015625, %v215_v58  ;;  %1007 = vrsqrt.f32 %v277_v54 }
 0x131   :  { %v998_v61 = vpop.eup %997  ;;  %1009 = vrsqrt.f32 %v270_v53 }
 0x132   :  { %v278_v31 = vadd.f32 1e-06, %v261_v59  ;;  %v271_v62 = vadd.f32 1e-06, %v254_v60  ;;  %v300_v3 = vmul.f32 %v998_v61, %v1172_v47 }
 0x133   :  { %v218_v63 = vpop.xlane.xlu1 %217  ;;  %v239_v0 = vpop.xlane.xlu0 %238 }
 0x134   :  { %1011 = vrsqrt.f32 %v278_v31  ;;  %v255_v4 = vmul.f32 0.015625, %v218_v63  ;;  %v262_v36 = vmul.f32 0.015625, %v239_v0  ;;  %v324_v41 = vmul.f32 %v1334_v33, %v300_v3 }
 0x135   :  { %v1000_v37 = vpop.eup %999  ;;  %1013 = vrsqrt.f32 %v271_v62 }
 0x136   :  { %v1002_v7 = vpop.eup %1001  ;;  %v272_v8 = vadd.f32 1e-06, %v255_v4  ;;  %v279_v9 = vadd.f32 1e-06, %v262_v36  ;;  %v302_v25 = vmul.f32 %v1000_v37, %v1174_v48  ;;  %v348_v39 = vadd.f32 %v1341_v15, %v324_v41 }
 0x137   :  { %v242_v10 = vpop.xlane.xlu1 %241  ;;  %v221_v11 = vpop.xlane.xlu0 %220  ;;  %v301_v38 = vmul.f32 %v1002_v7, %v1182_v55 }
 0x138   :  { %v263_v47 = vmul.f32 0.015625, %v242_v10  ;;  %v256_v14 = vmul.f32 0.015625, %v221_v11  ;;  %1015 = vrsqrt.f32 %v279_v9  ;;  %v326_v48 = vmul.f32 %v1334_v33, %v302_v25 }
 0x139   :  { %v1004_v19 = vpop.eup %1003  ;;  %v325_v24 = vmul.f32 %v1334_v33, %v301_v38  ;;  %1017 = vrsqrt.f32 %v272_v8 }
 0x13a   :  { %v1006_v29 = vpop.eup %1005  ;;  %v280_v16 = vadd.f32 1e-06, %v263_v47  ;;  %v273_v30 = vadd.f32 1e-06, %v256_v14  ;;  %v310_v55 = vmul.f32 %v1004_v19, %v1196_v1  ;;  %v350_v58 = vadd.f32 %v1341_v15, %v326_v48 }
 0x13b   :  { %v224_v34 = vpop.xlane.xlu1 %223  ;;  %v245_v35 = vpop.xlane.xlu0 %244  ;;  %v349_v40 = vadd.f32 %v1341_v15, %v325_v24  ;;  %v303_v42 = vmul.f32 %v1006_v29, %v1186_v56 }
 0x13c   :  { %1019 = vrsqrt.f32 %v280_v16  ;;  %v257_v43 = vmul.f32 0.015625, %v224_v34  ;;  %v264_v21 = vmul.f32 0.015625, %v245_v35  ;;  %v334_v1 = vmul.f32 %v1334_v33, %v310_v55 }
 0x13d   :  { %1021 = vrsqrt.f32 %v273_v30  ;;  %v365_v44 = vpack.c.bf16 %v349_v40, %v348_v39  ;;  %v327_v45 = vmul.f32 %v1334_v33, %v303_v42  ;;  %v1008_v46 = vpop.eup %1007 }
 0x13e   :  { %v281_v49 = vadd.f32 1e-06, %v264_v21  ;;  %v1010_v50 = vpop.eup %1009  ;;  %v274_v51 = vadd.f32 1e-06, %v257_v43  ;;  %v311_v56 = vmul.f32 %v1008_v46, %v1200_v2  ;;  %v358_v63 = vadd.f32 %v1341_v15, %v334_v1 }
 0x13f   :  { %893 = vmatmul.mubr.msk.bf16.vlgmr.msra.gmra.mxu0 %vm26_vm0, %v365_v44  ;;  %v248_v52 = vpop.xlane.xlu1 %247  ;;  %v227_v26 = vpop.xlane.xlu0 %226  ;;  %v351_v59 = vadd.f32 %v1341_v15, %v327_v45  ;;  %v304_v0 = vmul.f32 %v1010_v50, %v1210_v6 }
 0x140   :  { %v265_v53 = vmul.f32 0.015625, %v248_v52  ;;  %v258_v54 = vmul.f32 0.015625, %v227_v26  ;;  %525 = vmatprep.mubr.bf16.mxu0 %v1031_v20  ;;  %1023 = vrsqrt.f32 %v281_v49  ;;  %v335_v60 = vmul.f32 %v1334_v33, %v311_v56 }
 0x141   :  { %v1012_v57 = vpop.eup %1011  ;;  %1025 = vrsqrt.f32 %v274_v51  ;;  %v366_v36 = vpack.c.bf16 %v351_v59, %v350_v58  ;;  %v328_v9 = vmul.f32 %v1334_v33, %v304_v0  ;;  %v711_v56 = vlaneseq }
 0x142   :  { %v1014_v61 = vpop.eup %1013  ;;  %v282_v31 = vadd.f32 1e-06, %v265_v53  ;;  %v275_v62 = vadd.f32 1e-06, %v258_v54  ;;  %v359_v2 = vadd.f32 %v1341_v15, %v335_v60  ;;  %v312_v4 = vmul.f32 %v1012_v57, %v1224_v13  ;;  %v375_v54 = vld [vmem:[#allocation2 + $0x8] sm:$0xff] }
 0x143   :  { %v305_v3 = vmul.f32 %v1014_v61, %v1214_v12  ;;  %v352_v47 = vadd.f32 %v1341_v15, %v328_v9 }
 0x144   :  { %1027 = vrsqrt.f32 %v282_v31  ;;  %v370_v37 = vpack.c.bf16 %v359_v2, %v358_v63  ;;  %v336_v12 = vmul.f32 %v1334_v33, %v312_v4  ;;  %v379_v2 = vld [vmem:[#allocation2 + $0x28] sm:$0xff] }
 0x145   :  { %1029 = vrsqrt.f32 %v275_v62  ;;  %v329_v7 = vmul.f32 %v1334_v33, %v305_v3  ;;  %v1016_v8 = vpop.eup %1015  ;;  %v395_v3 = vld [vmem:[#allocation2 + $0xa8] sm:$0xff] }
 0x146   :  { %v1018_v10 = vpop.eup %1017  ;;  %898 = vmatmul.mubr.msk.bf16.vlgmr.msra.gmra.mxu1 %vm26_vm0, %v370_v37  ;;  %v313_v6 = vmul.f32 %v1016_v8, %v1228_v17  ;;  %v360_v19 = vadd.f32 %v1341_v15, %v336_v12 }
 0x147   :  { %894 = vmatmul.mubr.msk.bf16.gmra.mxu0 %vm26_vm0, %v366_v36  ;;  %575 = vmatprep.mubr.bf16.mxu1 %v1031_v20  ;;  %v353_v11 = vadd.f32 %v1341_v15, %v329_v7  ;;  %v306_v14 = vmul.f32 %v1018_v10, %v1238_v18 }
 0x148   :  { %535 = vmatprep.mubr.bf16.mxu0 %v1031_v20  ;;  %v337_v38 = vmul.f32 %v1334_v33, %v313_v6 }
 0x149   :  { %v1020_v13 = vpop.eup %1019  ;;  %v367_v29 = vpack.c.bf16 %v353_v11, %v352_v47  ;;  %v330_v34 = vmul.f32 %v1334_v33, %v306_v14 }
 0x14a   :  { %v1022_v41 = vpop.eup %1021  ;;  %v361_v17 = vadd.f32 %v1341_v15, %v337_v38  ;;  %v314_v25 = vmul.f32 %v1020_v13, %v1252_v23  ;;  %v381_v13 = vld [vmem:[#allocation2 + $0x38] sm:$0xff] }
 0x14b   :  { %v307_v24 = vmul.f32 %v1022_v41, %v1242_v22  ;;  %v354_v43 = vadd.f32 %v1341_v15, %v330_v34  ;;  %v397_v41 = vld [vmem:[#allocation2 + $0xb8] sm:$0xff] }
 0x14c   :  { %v371_v16 = vpack.c.bf16 %v361_v17, %v360_v19  ;;  %v338_v35 = vmul.f32 %v1334_v33, %v314_v25 }
 0x14d   :  { %v331_v30 = vmul.f32 %v1334_v33, %v307_v24  ;;  %v1024_v55 = vpop.eup %1023 }
 0x14e   :  { %899 = vmatmul.mubr.msk.bf16.gmra.mxu1 %vm26_vm0, %v371_v16  ;;  %v315_v18 = vmul.f32 %v1024_v55, %v1256_v27  ;;  %v1026_v39 = vpop.eup %1025  ;;  %v362_v44 = vadd.f32 %v1341_v15, %v338_v35  ;;  %v383_v55 = vld [vmem:[#allocation2 + $0x48] sm:$0xff] }
 0x14f   :  { %895 = vmatmul.mubr.msk.bf16.gmra.mxu0 %vm26_vm0, %v367_v29  ;;  %585 = vmatprep.mubr.bf16.mxu1 %v1031_v20  ;;  %v355_v23 = vadd.f32 %v1341_v15, %v331_v30  ;;  %v308_v48 = vmul.f32 %v1026_v39, %v1266_v28  ;;  %v399_v35 = vld [vmem:[#allocation2 + $0xc8] sm:$0xff] }
 0x150   :  { %545 = vmatprep.mubr.bf16.mxu0 %v1031_v20  ;;  %v339_v40 = vmul.f32 %v1334_v33, %v315_v18 }
 0x151   :  { %v1028_v22 = vpop.eup %1027  ;;  %v368_v46 = vpack.c.bf16 %v355_v23, %v354_v43 }
 0x152   :  { %v1030_v42 = vpop.eup %1029  ;;  %v316_v21 = vmul.f32 %v1028_v22, %v1286_v5  ;;  %v363_v27 = vadd.f32 %v1341_v15, %v339_v40  ;;  %v332_v5 = vmul.f32 %v1334_v33, %v308_v48 }
 0x153   :  { %v309_v45 = vmul.f32 %v1030_v42, %v1270_v32 }
 0x154   :  { %v372_v49 = vpack.c.bf16 %v363_v27, %v362_v44  ;;  %v340_v50 = vmul.f32 %v1334_v33, %v316_v21  ;;  %v356_v51 = vadd.f32 %v1341_v15, %v332_v5 }
 0x155   :  { %v333_v1 = vmul.f32 %v1334_v33, %v309_v45  ;;  %v712_v33 = vshrl.u32 %v711_v56, 7 }
 0x156   :  { %900 = vmatmul.mubr.msk.bf16.gmra.mxu1 %vm26_vm0, %v372_v49  ;;  %v364_v32 = vadd.f32 %v1341_v15, %v340_v50  ;;  %v401_v50 = vld [vmem:[#allocation2 + $0xd8] sm:$0xff] }
 0x157   :  { %896 = vmatmul.mubr.msk.bf16.gmra.mxu0 %vm26_vm0, %v368_v46  ;;  %595 = vmatprep.mubr.bf16.mxu1 %v1031_v20  ;;  %v357_v28 = vadd.f32 %v1341_v15, %v333_v1  ;;  %v713_v60 = vsub.s32 0, %v712_v33  ;;  %v717_v61 = vsub.s32 1, %v712_v33  ;;  %v709_v15 = vld [vmem:[%s1576_s2] sm:$0x3]  ;;  %v385_v1 = vld [vmem:[#allocation2 + $0x58] sm:$0xff]  ;;  %v387_v33 = vld [vmem:[#allocation2 + $0x68] sm:$0xff] }
 0x158   :  { %555 = vmatprep.mubr.bf16.mxu0 %v1031_v20  ;;  %v373_v26 = vpack.c.bf16 %v364_v32, %v364_v32  ;;  %v377_v20 = vld [vmem:[#allocation2 + $0x18] sm:$0xff] }
 0x159   :  { %v369_v52 = vpack.c.bf16 %v357_v28, %v356_v51  ;;  %v1411_v4 = vrot.slane %v709_v15, %v713_v60  ;;  %v1413_v36 = vrot.slane %v709_v15, %v717_v61 }
 0x15e   :  { %901 = vmatmul.mubr.msk.bf16.gmra.mxu1 %vm26_vm0, %v373_v26 }
 0x15f   :  { %897 = vmatmul.mubr.msk.bf16.gmra.mxu0 %vm26_vm0, %v369_v52 }
 0x1ff   :  { %v517_v53 = vpop.f32.mrf.mxu0 }
 0x200   :  { %v721_v11 = vadd.f32 %v1411_v4, %v517_v53 }
 0x201   :  { %v519_v57 = vpop.f32.mrf.mxu0 }
 0x202   :  { %v605_v58 = vadd.f32 %v519_v57, %v375_v54 }
 0x203   :  { %v521_v59 = vpop.f32.mrf.mxu0 }
 0x204   :  { %639 = vst.msk [vmem:[#allocation2 + $0x8] sm:$0xff] %vm26_vm0, %v605_v58  ;;  %v723_v34 = vadd.f32 %v1411_v4, %v521_v59 }
 0x205   :  { %v523_v31 = vpop.f32.mrf.mxu0 }
 0x206   :  { %v607_v62 = vadd.f32 %v523_v31, %v377_v20  ;;  %v567_v0 = vpop.f32.mrf.mxu1  ;;  %v403_v20 = vld [vmem:[#allocation2 + $0xe8] sm:$0xff] }
 0x207   :  { %v527_v63 = vpop.f32.mrf.mxu0  ;;  %v741_v43 = vadd.f32 %v1411_v4, %v567_v0 }
 0x208   :  { %641 = vst.msk [vmem:[#allocation2 + $0x18] sm:$0xff] %vm26_vm0, %v607_v62  ;;  %v569_v7 = vpop.f32.mrf.mxu1  ;;  %v725_v42 = vadd.f32 %v1411_v4, %v527_v63 }
 0x209   :  { %v529_v37 = vpop.f32.mrf.mxu0  ;;  %v625_v9 = vadd.f32 %v569_v7, %v395_v3 }
 0x20a   :  { %v609_v8 = vadd.f32 %v529_v37, %v379_v2  ;;  %v571_v12 = vpop.f32.mrf.mxu1 }
 0x20b   :  { %v676_v10 = vld [vmem:[#allocation2 + $0x8] sm:$0xff]  ;;  %v531_v6 = vpop.f32.mrf.mxu0  ;;  %659 = vst.msk [vmem:[#allocation2 + $0xa8] sm:$0xff] %vm26_vm0, %v625_v9  ;;  %v743_v60 = vadd.f32 %v1411_v4, %v571_v12  ;;  %v405_v12 = vld [vmem:[#allocation2 + $0xf8] sm:$0xff] }
 0x20c   :  { %v722_v38 = vadd.f32 %v1413_v36, %v676_v10  ;;  %643 = vst.msk [vmem:[#allocation2 + $0x28] sm:$0xff] %vm26_vm0, %v609_v8  ;;  %v573_v19 = vpop.f32.mrf.mxu1  ;;  %v727_v57 = vadd.f32 %v1411_v4, %v531_v6  ;;  %v389_v8 = vld [vmem:[#allocation2 + $0x78] sm:$0xff] }
 0x20d   :  { %v533_v14 = vpop.f32.mrf.mxu0  ;;  %v627_v29 = vadd.f32 %v573_v19, %v397_v41 }
 0x20e   :  { %v919_v17 = vpack.c.bf16 %v722_v38, %v721_v11  ;;  %v611_v24 = vadd.f32 %v533_v14, %v381_v13  ;;  %v1424_v30 = vpop.f32.mrf.mxu1 }
 0x20f   :  { %v678_v25 = vld [vmem:[#allocation2 + $0x18] sm:$0xff]  ;;  %v537_v16 = vpop.f32.mrf.mxu0  ;;  %661 = vst.msk [vmem:[#allocation2 + $0xb8] sm:$0xff] %vm26_vm0, %v627_v29  ;;  %v745_v13 = vadd.f32 %v1411_v4, %v1424_v30 }
 0x210   :  { %862 = vst.msk [vmem:[%s1577_s5] sm:$0xff] %vm1420_vm3, %v919_v17  ;;  %v724_v18 = vadd.f32 %v1413_v36, %v678_v25  ;;  %v579_v22 = vpop.f32.mrf.mxu1  ;;  %v729_v9 = vadd.f32 %v1411_v4, %v537_v16  ;;  %v391_v16 = vld [vmem:[#allocation2 + $0x88] sm:$0xff] }
 0x211   :  { %645 = vst.msk [vmem:[#allocation2 + $0x38] sm:$0xff] %vm26_vm0, %v611_v24  ;;  %v539_v39 = vpop.f32.mrf.mxu0  ;;  %v629_v27 = vadd.f32 %v579_v22, %v399_v35 }
 0x212   :  { %v920_v23 = vpack.c.bf16 %v724_v18, %v723_v34  ;;  %v613_v40 = vadd.f32 %v539_v39, %v383_v55  ;;  %v696_v44 = vld [vmem:[#allocation2 + $0xa8] sm:$0xff]  ;;  %v1439_v45 = vpop.f32.mrf.mxu1 }
 0x213   :  { %v680_v21 = vld [vmem:[#allocation2 + $0x28] sm:$0xff]  ;;  %v1437_v48 = vpop.f32.mrf.mxu0  ;;  %v742_v49 = vadd.f32 %v1413_v36, %v696_v44  ;;  %663 = vst.msk [vmem:[#allocation2 + $0xc8] sm:$0xff] %vm26_vm0, %v629_v27  ;;  %v747_v35 = vadd.f32 %v1411_v4, %v1439_v45 }
 0x214   :  { %863 = vst.msk [vmem:[%s1577_s5 + $0x8] sm:$0xff] %vm1420_vm3, %v920_v23  ;;  %v726_v46 = vadd.f32 %v1413_v36, %v680_v21  ;;  %v583_v28 = vpop.f32.mrf.mxu1  ;;  %v407_v55 = vld [vmem:[#allocation2 + $0x108] sm:$0xff]  ;;  %v731_v18 = vadd.f32 %v1411_v4, %v1437_v48 }
 0x215   :  { %647 = vst.msk [vmem:[#allocation2 + $0x48] sm:$0xff] %vm26_vm0, %v613_v40  ;;  %v543_v5 = vpop.f32.mrf.mxu0  ;;  %v929_v51 = vpack.c.bf16 %v742_v49, %v741_v43  ;;  %v631_v56 = vadd.f32 %v583_v28, %v401_v50 }
 0x216   :  { %v921_v32 = vpack.c.bf16 %v726_v46, %v725_v42  ;;  %v615_v26 = vadd.f32 %v543_v5, %v385_v1  ;;  %v1452_v54 = vpop.f32.mrf.mxu1  ;;  %v698_v59 = vld [vmem:[#allocation2 + $0xb8] sm:$0xff] }
 0x217   :  { %v1450_v53 = vpop.f32.mrf.mxu0  ;;  %872 = vst.msk [vmem:[%s1577_s5 + $0x50] sm:$0xff] %vm1420_vm3, %v929_v51  ;;  %v744_v61 = vadd.f32 %v1413_v36, %v698_v59  ;;  %v393_v1 = vld [vmem:[#allocation2 + $0x98] sm:$0xff]  ;;  %v749_v5 = vadd.f32 %v1411_v4, %v1452_v54 }
 0x218   :  { %v682_v52 = vld [vmem:[#allocation2 + $0x38] sm:$0xff]  ;;  %864 = vst.msk [vmem:[%s1577_s5 + $0x10] sm:$0xff] %vm1420_vm3, %v921_v32  ;;  %v589_v31 = vpop.f32.mrf.mxu1  ;;  %v733_v48 = vadd.f32 %v1411_v4, %v1450_v53 }
 0x219   :  { %v728_v58 = vadd.f32 %v1413_v36, %v682_v52  ;;  %649 = vst.msk [vmem:[#allocation2 + $0x58] sm:$0xff] %vm26_vm0, %v615_v26  ;;  %665 = vst.msk [vmem:[#allocation2 + $0xd8] sm:$0xff] %vm26_vm0, %v631_v56  ;;  %v549_v15 = vpop.f32.mrf.mxu0  ;;  %v930_v0 = vpack.c.bf16 %v744_v61, %v743_v60  ;;  %v633_v3 = vadd.f32 %v589_v31, %v403_v20 }
 0x21a   :  { %v617_v63 = vadd.f32 %v549_v15, %v387_v33  ;;  %v1470_v7 = vpop.f32.mrf.mxu1  ;;  %v700_v6 = vld [vmem:[#allocation2 + $0xc8] sm:$0xff] }
 0x21b   :  { %v922_v62 = vpack.c.bf16 %v728_v58, %v727_v57  ;;  %v551_v37 = vpop.f32.mrf.mxu0  ;;  %873 = vst.msk [vmem:[%s1577_s5 + $0x58] sm:$0xff] %vm1420_vm3, %v930_v0  ;;  %v746_v11 = vadd.f32 %v1413_v36, %v700_v6  ;;  %v751_v54 = vadd.f32 %v1411_v4, %v1470_v7 }
 0x21c   :  { %v684_v2 = vld [vmem:[#allocation2 + $0x48] sm:$0xff]  ;;  %651 = vst.msk [vmem:[#allocation2 + $0x68] sm:$0xff] %vm26_vm0, %v617_v63  ;;  %667 = vst.msk [vmem:[#allocation2 + $0xe8] sm:$0xff] %vm26_vm0, %v633_v3  ;;  %v593_v41 = vpop.f32.mrf.mxu1  ;;  %v735_v33 = vadd.f32 %v1411_v4, %v551_v37 }
 0x21d   :  { %865 = vst.msk [vmem:[%s1577_s5 + $0x18] sm:$0xff] %vm1420_vm3, %v922_v62  ;;  %v730_v10 = vadd.f32 %v1413_v36, %v684_v2  ;;  %v553_v38 = vpop.f32.mrf.mxu0  ;;  %v931_v17 = vpack.c.bf16 %v746_v11, %v745_v13  ;;  %v635_v24 = vadd.f32 %v593_v41, %v405_v12 }
 0x21e   :  { %v619_v19 = vadd.f32 %v553_v38, %v389_v8  ;;  %v597_v29 = vpop.f32.mrf.mxu1 }
 0x21f   :  { %v923_v14 = vpack.c.bf16 %v730_v10, %v729_v9  ;;  %v557_v25 = vpop.f32.mrf.mxu0  ;;  %874 = vst.msk [vmem:[%s1577_s5 + $0x60] sm:$0xff] %vm1420_vm3, %v931_v17  ;;  %v753_v62 = vadd.f32 %v1411_v4, %v597_v29 }
 0x220   :  { %v686_v30 = vld [vmem:[#allocation2 + $0x58] sm:$0xff]  ;;  %653 = vst.msk [vmem:[#allocation2 + $0x78] sm:$0xff] %vm26_vm0, %v619_v19  ;;  %669 = vst.msk [vmem:[#allocation2 + $0xf8] sm:$0xff] %vm26_vm0, %v635_v24  ;;  %v599_v40 = vpop.f32.mrf.mxu1  ;;  %v737_v31 = vadd.f32 %v1411_v4, %v557_v25 }
 0x221   :  { %866 = vst.msk [vmem:[%s1577_s5 + $0x20] sm:$0xff] %vm1420_vm3, %v923_v14  ;;  %v702_v34 = vld [vmem:[#allocation2 + $0xd8] sm:$0xff]  ;;  %v732_v39 = vadd.f32 %v1413_v36, %v686_v30  ;;  %v559_v23 = vpop.f32.mrf.mxu0  ;;  %v637_v43 = vadd.f32 %v599_v40, %v407_v55 }
 0x222   :  { %v748_v22 = vadd.f32 %v1413_v36, %v702_v34  ;;  %v621_v42 = vadd.f32 %v559_v23, %v391_v16  ;;  %v601_v49 = vpop.f32.mrf.mxu1 }
 0x223   :  { %v924_v21 = vpack.c.bf16 %v732_v39, %v731_v18  ;;  %v688_v27 = vld [vmem:[#allocation2 + $0x68] sm:$0xff]  ;;  %v561_v46 = vpop.f32.mrf.mxu0  ;;  %671 = vst.msk [vmem:[#allocation2 + $0x108] sm:$0xff] %vm26_vm0, %v637_v43 }
 0x224   :  { %v932_v44 = vpack.c.bf16 %v748_v22, %v747_v35  ;;  %v734_v45 = vadd.f32 %v1413_v36, %v688_v27  ;;  %v704_v50 = vld [vmem:[#allocation2 + $0xe8] sm:$0xff]  ;;  %655 = vst.msk [vmem:[#allocation2 + $0x88] sm:$0xff] %vm26_vm0, %v621_v42  ;;  %v602_v51 = vpop.f32.mrf.mxu1  ;;  %v739_v7 = vadd.f32 %v1411_v4, %v561_v46 }
 0x225   :  { %867 = vst.msk [vmem:[%s1577_s5 + $0x28] sm:$0xff] %vm1420_vm3, %v924_v21  ;;  %v750_v28 = vadd.f32 %v1413_v36, %v704_v50  ;;  %v563_v32 = vpop.f32.mrf.mxu0 }
 0x226   :  { %875 = vst.msk [vmem:[%s1577_s5 + $0x68] sm:$0xff] %vm1420_vm3, %v932_v44  ;;  %v925_v52 = vpack.c.bf16 %v734_v45, %v733_v48  ;;  %v623_v26 = vadd.f32 %v563_v32, %v393_v1 }
 0x227   :  { %v933_v56 = vpack.c.bf16 %v750_v28, %v749_v5  ;;  %v690_v53 = vld [vmem:[#allocation2 + $0x78] sm:$0xff] }
 0x228   :  { %868 = vst.msk [vmem:[%s1577_s5 + $0x30] sm:$0xff] %vm1420_vm3, %v925_v52  ;;  %v736_v57 = vadd.f32 %v1413_v36, %v690_v53  ;;  %v706_v58 = vld [vmem:[#allocation2 + $0xf8] sm:$0xff] }
 0x229   :  { %657 = vst.msk [vmem:[#allocation2 + $0x98] sm:$0xff] %vm26_vm0, %v623_v26  ;;  %v752_v59 = vadd.f32 %v1413_v36, %v706_v58 }
 0x22a   :  { %876 = vst.msk [vmem:[%s1577_s5 + $0x70] sm:$0xff] %vm1420_vm3, %v933_v56  ;;  %v926_v20 = vpack.c.bf16 %v736_v57, %v735_v33  ;;  %v708_v15 = vld [vmem:[#allocation2 + $0x108] sm:$0xff] }
 0x22b   :  { %v934_v60 = vpack.c.bf16 %v752_v59, %v751_v54  ;;  %v692_v61 = vld [vmem:[#allocation2 + $0x88] sm:$0xff]  ;;  %v754_v0 = vadd.f32 %v1413_v36, %v708_v15 }
 0x22c   :  { %869 = vst.msk [vmem:[%s1577_s5 + $0x38] sm:$0xff] %vm1420_vm3, %v926_v20  ;;  %v738_v63 = vadd.f32 %v1413_v36, %v692_v61 }
 0x22d   :  { %877 = vst.msk [vmem:[%s1577_s5 + $0x78] sm:$0xff] %vm1420_vm3, %v934_v60  ;;  %v935_v3 = vpack.c.bf16 %v754_v0, %v753_v62 }
 0x22e   :  { %v927_v2 = vpack.c.bf16 %v738_v63, %v737_v31 }
 0x22f   :  { %878 = vst.msk [vmem:[%s1577_s5 + $0x80] sm:$0xff] %vm1420_vm3, %v935_v3 }
 0x230   :  { %v694_v37 = vld [vmem:[#allocation2 + $0x98] sm:$0xff]  ;;  %870 = vst.msk [vmem:[%s1577_s5 + $0x40] sm:$0xff] %vm1420_vm3, %v927_v2 }
 0x231   :  { %v740_v8 = vadd.f32 %v1413_v36, %v694_v37 }
 0x233   :  { %v928_v9 = vpack.c.bf16 %v740_v8, %v739_v7 }
 0x235   :  { %871 = vst.msk [vmem:[%s1577_s5 + $0x48] sm:$0xff] %vm1420_vm3, %v928_v9 }

// kernel: _lambda_.40
= control target key start
LH: loop header
LB: loop body
LE: loop exit
PB: predicated region body
PF: predicated region fallthrough
CT: control target
= control target key end

     0   :  { %vm22_vm0 = vcmask 523264   ;;  %v299_v0 = vmov 0.0   ;;  %vm300_vm1 = vmmov 0   ;;  %vm215_vm2 = vcmask 519168   ;;  %s395_s1 = inlined_call_operand.vmem [shape: bf16[64,64], index: 1, kind: input, shape index: {}]   ;;  %s396_s0 = inlined_call_operand.vmem [shape: bf16[40,64], index: 0, kind: input, shape index: {}]   ;;  %s397_s3 = inlined_call_operand.vmem [shape: bf16[40,64], index: 3, kind: input, shape index: {}]   ;;  %s398_s2 = inlined_call_operand.vmem [shape: f32[1,64], index: 2, kind: input, shape index: {}]   ;;  %s399_s4 = inlined_call_operand.vmem [shape: bf16[40,64], index: 4, kind: output, shape index: {}]  }
   0x1   :  { %262 = vmatprep.subr.bf16.mxu0 %v299_v0  ;;  %282 = vmatprep.subr.bf16.mxu1 %v299_v0  ;;  %v292_v1 = vld [vmem:[%s395_s1 + $0x18] sm:$0xff]   ;;  %23 = vst.msk [vmem:[#allocation2] sm:$0xff] %vm22_vm0, %v299_v0  ;;  %24 = vst.msk [vmem:[#allocation2 + $0x8] sm:$0xff] %vm22_vm0, %v299_v0  ;;  %v293_v2 = vld [vmem:[%s395_s1 + $0x10] sm:$0xff]  }
   0x2   :  { %25 = vst.msk [vmem:[#allocation2 + $0x10] sm:$0xff] %vm22_vm0, %v299_v0  ;;  %26 = vst.msk [vmem:[#allocation2 + $0x18] sm:$0xff] %vm22_vm0, %v299_v0  ;;  %270 = vmatprep.mubr.msk.bf16.mxu0 %vm300_vm1, %v299_v0  ;;  %274 = vmatprep.mubr.msk.bf16.mxu1 %vm300_vm1, %v299_v0  ;;  %v294_v3 = vld [vmem:[%s395_s1 + $0x8] sm:$0xff]   ;;  %v295_v4 = vld [vmem:[%s395_s1] sm:$0xff]  }
   0x3   :  { %27 = vst.msk [vmem:[#allocation2 + $0x20] sm:$0xff] %vm22_vm0, %v299_v0  ;;  %263 = vmatpush3.bf16.msra.mxu0 %v292_v1  ;;  %286 = vmatpush3.bf16.msra.mxu1 %v292_v1  ;;  %v296_v5 = vld [vmem:[%s396_s0] sm:$0xff]   ;;  %v297_v6 = vld [vmem:[%s396_s0 + $0x8] sm:$0xff]   ;;  %v298_v7 = vld [vmem:[%s396_s0 + $0x10] ss:$0 sps:$4 sm:$0xff]  }
   0x4   :  { %264 = vmatprep.subr.bf16.mxu0 %v299_v0  ;;  %283 = vmatprep.subr.bf16.mxu1 %v299_v0  ;;  %v247_v22 = vld [vmem:[%s397_s3] sm:$0xff]   ;;  %v254_v23 = vld [vmem:[%s397_s3 + $0x8] sm:$0xff]   ;;  %v183_v44 = vld [vmem:[%s397_s3 + $0x10] sm:$0xf] }
   0x5   :  { %v235_v27 = vld [vmem:[%s398_s2] ss:$0 sm:$0xff]  ;;  %v248_v29 = vunpack.c.l.bf16 %v247_v22  ;;  %v252_v30 = vunpack.c.l.bf16 %v254_v23  ;;  %v249_v40 = vunpack.c.h.bf16 %v247_v22  ;;  %v253_v41 = vunpack.c.h.bf16 %v254_v23 }
   0x6   :  { %v188_v52 = vunpack.c.l.bf16 %v183_v44 }
   0x7   :  { %265 = vmatpush3.bf16.msra.mxu0 %v293_v2  ;;  %287 = vmatpush3.bf16.msra.mxu1 %v293_v2 }
   0x8   :  { %266 = vmatprep.subr.bf16.mxu0 %v299_v0  ;;  %284 = vmatprep.subr.bf16.mxu1 %v299_v0  ;;  %v33_v8 = vld [vmem:[#allocation2] sm:$0xff]  ;;  %v34_v16 = vld [vmem:[#allocation2 + $0x8] sm:$0xff] }
   0x9   :  { %v35_v9 = vld [vmem:[#allocation2 + $0x10] sm:$0xff]  ;;  %v36_v17 = vld [vmem:[#allocation2 + $0x18] sm:$0xff] }
   0xa   :  { %v37_v26 = vld [vmem:[#allocation2 + $0x20] sm:$0xff] }
   0xb   :  { %267 = vmatpush3.bf16.msra.mxu0 %v294_v3  ;;  %288 = vmatpush3.bf16.msra.mxu1 %v294_v3 }
   0xc   :  { %268 = vmatprep.subr.bf16.mxu0 %v299_v0  ;;  %285 = vmatprep.subr.bf16.mxu1 %v299_v0 }
   0xf   :  { %269 = vmatpush3.bf16.msra.mxu0 %v295_v4  ;;  %289 = vmatpush3.bf16.msra.mxu1 %v295_v4 }
  0x12   :  { %271 = vmatmul.mubr.msk.bf16.vlgmr.msra.gmra.mxu0 %vm22_vm0, %v296_v5  ;;  %275 = vmatmul.mubr.msk.bf16.vlgmr.msra.gmra.mxu1 %vm22_vm0, %v297_v6 }
  0x13   :  { %278 = vmatprep.mubr.msk.bf16.mxu1 %vm300_vm1, %v299_v0 }
  0x1a   :  { %279 = vmatmul.mubr.msk.bf16.gmra.mxu1 %vm22_vm0, %v298_v7 }
  0xd2   :  { %v127_v10 = vpop.f32.mrf.mxu0  ;;  %v135_v11 = vpop.f32.mrf.mxu1 }
  0xd3   :  { %v149_v12 = vadd.f32 %v127_v10, %v33_v8  ;;  %v151_v13 = vadd.f32 %v135_v11, %v35_v9 }
  0xd4   :  { %v272_v14 = vpop.f32.mrf.mxu0  ;;  %v276_v15 = vpop.f32.mrf.mxu1 }
  0xd5   :  { %154 = vst.msk [vmem:[#allocation2] sm:$0xff] %vm22_vm0, %v149_v12  ;;  %156 = vst.msk [vmem:[#allocation2 + $0x10] sm:$0xff] %vm22_vm0, %v151_v13 }
  0xd6   :  { %v130_v18 = vpop.f32.mrf.mxu0  ;;  %v138_v19 = vpop.f32.mrf.mxu1 }
  0xd7   :  { %v150_v20 = vadd.f32 %v130_v18, %v34_v16  ;;  %v152_v21 = vadd.f32 %v138_v19, %v36_v17 }
  0xd8   :  { %v273_v24 = vpop.f32.mrf.mxu0  ;;  %v277_v25 = vpop.f32.mrf.mxu1 }
  0xd9   :  { %155 = vst.msk [vmem:[#allocation2 + $0x8] sm:$0xff] %vm22_vm0, %v150_v20  ;;  %157 = vst.msk [vmem:[#allocation2 + $0x18] sm:$0xff] %vm22_vm0, %v152_v21 }
  0xda   :  { %v143_v28 = vpop.f32.mrf.mxu1 }
  0xdb   :  { %v153_v31 = vadd.f32 %v143_v28, %v37_v26 }
  0xdc   :  { %v162_v32 = vld [vmem:[#allocation2] sm:$0xff]  ;;  %v164_v33 = vld [vmem:[#allocation2 + $0x10] sm:$0xff]  ;;  %v280_v34 = vpop.f32.mrf.mxu1 }
  0xdd   :  { %v174_v35 = vadd.f32 %v235_v27, %v162_v32  ;;  %v176_v36 = vadd.f32 %v235_v27, %v164_v33  ;;  %158 = vst.msk [vmem:[#allocation2 + $0x20] sm:$0xff] %vm22_vm0, %v153_v31 }
  0xde   :  { %v146_v37 = vpop.f32.mrf.mxu1 }
  0xdf   :  { %v189_v38 = vadd.f32 %v248_v29, %v174_v35  ;;  %v191_v39 = vadd.f32 %v252_v30, %v176_v36 }
  0xe0   :  { %v163_v42 = vld [vmem:[#allocation2 + $0x8] sm:$0xff]  ;;  %v165_v43 = vld [vmem:[#allocation2 + $0x18] sm:$0xff]  ;;  %v281_v45 = vpop.f32.mrf.mxu1 }
  0xe1   :  { %v241_v46 = vpack.c.bf16 %v189_v38, %v189_v38  ;;  %v243_v47 = vpack.c.bf16 %v191_v39, %v191_v39  ;;  %v175_v48 = vadd.f32 %v235_v27, %v163_v42  ;;  %v177_v49 = vadd.f32 %v235_v27, %v165_v43 }
  0xe3   :  { %216 = vst.msk [vmem:[%s399_s4] sm:$0xf] %vm215_vm2, %v241_v46  ;;  %218 = vst.msk [vmem:[%s399_s4 + $0x8] sm:$0xf] %vm215_vm2, %v243_v47  ;;  %v190_v50 = vadd.f32 %v249_v40, %v175_v48  ;;  %v192_v51 = vadd.f32 %v253_v41, %v177_v49 }
  0xe4   :  { %v166_v53 = vld [vmem:[#allocation2 + $0x20] sm:$0xff] }
  0xe5   :  { %v242_v54 = vpack.c.bf16 %v190_v50, %v190_v50  ;;  %v244_v55 = vpack.c.bf16 %v192_v51, %v192_v51  ;;  %v178_v56 = vadd.f32 %v235_v27, %v166_v53 }
  0xe7   :  { %217 = vst.msk [vmem:[%s399_s4 + $0x4] sm:$0xf] %vm215_vm2, %v242_v54  ;;  %219 = vst.msk [vmem:[%s399_s4 + $0xc] sm:$0xf] %vm215_vm2, %v244_v55  ;;  %v193_v57 = vadd.f32 %v188_v52, %v178_v56 }
  0xe9   :  { %v245_v58 = vpack.c.bf16 %v193_v57, %v193_v57 }
  0xeb   :  { %220 = vst.msk [vmem:[%s399_s4 + $0x10] sm:$0xf] %vm215_vm2, %v245_v58 }

// kernel: _lambda_.39
= control target key start
LH: loop header
LB: loop body
LE: loop exit
PB: predicated region body
PF: predicated region fallthrough
CT: control target
= control target key end

     0   :  { %s1205_s18 = smov 0   ;;  %s1447_s0 = inlined_call_operand.vmem [shape: bf16[2,17,64], index: 0, kind: input, shape index: {}]   ;;  %s1448_s1 = inlined_call_operand.vmem [shape: bf16[2,65,64], index: 1, kind: input, shape index: {}]   ;;  %s1449_s2 = inlined_call_operand.vmem [shape: bf16[2,65,64], index: 2, kind: input, shape index: {}]   ;;  %s1450_s3 = inlined_call_operand.vmem [shape: f32[1,32], index: 3, kind: input, shape index: {}]   ;;  %s1451_s4 = inlined_call_operand.vmem [shape: f32[1,32], index: 4, kind: input, shape index: {}]   ;;  %s1452_s5 = inlined_call_operand.vmem [shape: bf16[2,17,64], index: 5, kind: output, shape index: {}]  }
   0x1 LB: > { %s960_s19 = sadd.s32 4294967295, %s1170_s18   ;;  %p964_p0 = scmp.ge.s32.totalorder %s1170_s18, 1  ;;  %s1170_s18 = sphi %s1205_s18, %s15_s18  }
   0x2   : > { %p207_p1 = scmp.lt.s32.totalorder %s1170_s18, 3 }
   0x4   : > { %p208_p2 = pnand %p964_p0, %p207_p1 }
   0x5   : > { %p245_p3 = scmp.lt.s32.totalorder (!%p208_p2), %s960_s19, 1  ;;  %s1172_s6 = smov (!%p208_p2), 96  }
   0x6   : > { %211 = sbr.rel (%p208_p2) target bundleno = 1796 (0x704), region = 40  ;;  %s1173_s11 = smov (!%p208_p2), 32  }
   0xb   : > { %s1454_s19 = smov (!%p245_p3, %s960_s19), 1  ;;  %vm292_vm0 = vcmask 261120   ;;  %vm299_vm1 = vcmask 253952   ;;  %v1296_v52 = vld [vmem:[%s1450_s3] ss:$0 sm:$0xff]  ;;  %vm456_vm2 = vcmask 524288  }
   0xc   : > { %s1095_s20 = smul.u32 12, %s1454_s19  ;;  %v1302_v58 = vld [vmem:[%s1451_s4] ss:$0 sm:$0xff]  ;;  %vm449_vm3 = vcmask 531456   ;;  %vm519_vm4 = vcmask 1040384   ;;  %vm875_vm5 = vcmask 516096  }
   0xd   : > { %s1096_s21 = smul.u32 36, %s1454_s19  ;;  %vm876_vm6 = vsmask.f32 256  ;;  %vm872_vm8 = vcmask 519168  }
   0xe   : > { %s249_s24 = scalar_lea.vmem %s1447_s0, %s1095_s20  ;;  %s264_s14 = scalar_lea.vmem %s1452_s5, %s1095_s20  ;;  %vm877_vm7 = vmand %vm875_vm5, %vm876_vm6 }
   0xf   : > { %s1225_s27 = scalar_lea.vmem %s1448_s1, %s1096_s21  ;;  %v998_v0 = vld [vmem:[%s249_s24] sm:$0xff]   ;;  %v268_v1 = vld [vmem:[%s249_s24 + $0x8] sm:$0x1]  ;;  %s1236_s30 = scalar_lea.vmem %s1449_s2, %s1096_s21 }
  0x10   : > { %v1227_v2 = vunpack.c.l.bf16 %v998_v0  ;;  %v1229_v3 = vunpack.c.l.bf16 %v268_v1  ;;  %v1231_v4 = vunpack.c.h.bf16 %v998_v0  ;;  %v1245_v8 = vld [vmem:[%s1225_s27 + $0x20] ss:$0 sps:$4 sm:$0x11]   ;;  %v1252_v10 = vld [vmem:[%s1225_s27 + $0x18] sm:$0xff]   ;;  %v1265_v27 = vld [vmem:[%s1225_s27 + $0x10] sm:$0xff]  }
  0x11   : > { %1085 = vmatprep.subr.msk.bf16.mxu0 %vm292_vm0, %v1245_v8  ;;  %v396_v9 = vsel %vm292_vm0, %v1245_v8, 0  ;;  %v393_v26 = vsel %vm292_vm0, %v1252_v10, 0  ;;  %v390_v28 = vsel %vm292_vm0, %v1265_v27, 0  ;;  %v1272_v29 = vld [vmem:[%s1225_s27 + $0x8] sm:$0xff]   ;;  %v1283_v32 = vld [vmem:[%s1225_s27] sm:$0xff]  }
  0x12   : > { %v293_v5 = vsel %vm292_vm0, %v1227_v2, 0.0  ;;  %v300_v6 = vsel %vm299_vm1, %v1229_v3, 0.0  ;;  %v296_v7 = vsel %vm292_vm0, %v1231_v4, 0.0  ;;  %1030 = vmatpush3.bf16.xpose.msra.mxu0 %v396_v9  ;;  %v1108_v30 = vpack.i.bf16 %v1231_v4, %v1227_v2 }
  0x13   : > { %294 = vadd.xlane.f32.xlu0 %v293_v5  ;;  %301 = vadd.xlane.f32.xlu1 %v300_v6  ;;  %v387_v31 = vsel %vm292_vm0, %v1272_v29, 0  ;;  %v384_v33 = vsel %vm292_vm0, %v1283_v32, 0 }
  0x14   : > { %1086 = vmatprep.subr.msk.bf16.mxu0 %vm292_vm0, %v1252_v10 }
  0x17   : > { %297 = vadd.xlane.f32.xlu0 %v296_v7 }
  0x1a   : > { %1032 = vmatpush3.bf16.xpose.msra.mxu0 %v393_v26 }
  0x1b   : > { %1087 = vmatprep.subr.msk.bf16.mxu0 %vm292_vm0, %v1265_v27 }
  0x22   : > { %1034 = vmatpush3.bf16.xpose.msra.mxu0 %v390_v28 }
  0x23   : > { %1088 = vmatprep.subr.msk.bf16.mxu0 %vm292_vm0, %v1272_v29 }
  0x2a   : > { %1036 = vmatpush3.bf16.xpose.msra.mxu0 %v387_v31 }
  0x2b   : > { %1089 = vmatprep.subr.msk.bf16.mxu0 %vm292_vm0, %v1283_v32 }
  0x32   : > { %1038 = vmatpush3.bf16.xpose.msra.mxu0 %v384_v33 }
  0x9c   : > { %v295_v11 = vpop.xlane.xlu0 %294  ;;  %v302_v12 = vpop.xlane.xlu1 %301 }
  0x9d   : > { %v304_v13 = vmul.f32 0.03125, %v295_v11  ;;  %v306_v14 = vmul.f32 0.03125, %v302_v12 }
  0x9f   : > { %v307_v15 = vsub.f32 %v1227_v2, %v304_v13  ;;  %v309_v16 = vsub.f32 %v1229_v3, %v306_v14 }
  0xa0   : > { %v298_v17 = vpop.xlane.xlu0 %297 }
  0xa1   : > { %v305_v18 = vmul.f32 0.03125, %v298_v17  ;;  %v310_v19 = vmul.f32 %v307_v15, %v307_v15  ;;  %v312_v20 = vmul.f32 %v309_v16, %v309_v16 }
  0xa3   : > { %v308_v21 = vsub.f32 %v1231_v4, %v305_v18  ;;  %v313_v22 = vsel %vm292_vm0, %v310_v19, 0.0  ;;  %v319_v23 = vsel %vm299_vm1, %v312_v20, 0.0 }
  0xa4   : > { %314 = vadd.xlane.f32.xlu1 %v313_v22 }
  0xa5   : > { %v311_v24 = vmul.f32 %v308_v21, %v308_v21 }
  0xa7   : > { %v316_v25 = vsel %vm292_vm0, %v311_v24, 0.0 }
  0xa8   : > { %320 = vadd.xlane.f32.xlu1 %v319_v23  ;;  %317 = vadd.xlane.f32.xlu0 %v316_v25 }
  0xb9   : > { %580 = vrot.lane.b32.xlu1 %v1229_v3, %s1172_s6 }
  0xbe   : > { %1109 = vrot.lane.b32.xlu0 %v1108_v30, %s1172_s6 }
 0x12d   : > { %v315_v34 = vpop.xlane.xlu1 %314 }
 0x12e   : > { %v322_v35 = vmul.f32 0.03125, %v315_v34 }
 0x130   : > { %v325_v36 = vadd.f32 1e-05, %v322_v35 }
 0x131   : > { %v321_v37 = vpop.xlane.xlu1 %320  ;;  %v318_v38 = vpop.xlane.xlu0 %317 }
 0x132   : > { %1128 = vrsqrt.f32 %v325_v36  ;;  %v324_v39 = vmul.f32 0.03125, %v321_v37  ;;  %v323_v40 = vmul.f32 0.03125, %v318_v38 }
 0x134   : > { %v327_v41 = vadd.f32 1e-05, %v324_v39  ;;  %v326_v42 = vadd.f32 1e-05, %v323_v40 }
 0x135   : > { %v1110_v43 = vpop.permute.xlu0 %1109  ;;  %v581_v46 = vpop.permute.xlu1 %580 }
 0x136   : > { %1130 = vrsqrt.f32 %v327_v41  ;;  %v1112_v44 = vunpack.i.h.bf16 %v1110_v43  ;;  %v1111_v45 = vunpack.i.l.bf16 %v1110_v43  ;;  %v591_v49 = vsel %vm299_vm1, %v581_v46, 0.0 }
 0x137   : > { %1132 = vrsqrt.f32 %v326_v42 }
 0x138   : > { %v588_v47 = vsel %vm292_vm0, %v1112_v44, 0.0  ;;  %v585_v48 = vsel %vm292_vm0, %v1111_v45, 0.0 }
 0x139   : > { %589 = vadd.xlane.f32.xlu0 %v588_v47  ;;  %586 = vadd.xlane.f32.xlu1 %v585_v48  ;;  %v1350_v48 = vld [vmem:[%s1236_s30 + $0x20] ss:$0 sps:$4 sm:$0x11]  }
 0x13d   : > { %592 = vadd.xlane.f32.xlu0 %v591_v49  ;;  %v1174_v49 = vmov 0  }
 0x13f   : > { %v1129_v50 = vpop.eup %1128 }
 0x140   : > { %v331_v51 = vmul.f32 %v1129_v50, %v307_v15  ;;  %v1352_v50 = vsel %vm519_vm4, 65535, %v1174_v49 }
 0x142   : > { %v340_v57 = vmul.f32 %v1296_v52, %v331_v51  ;;  %v523_v51 = vand.u32 %v1350_v48, %v1352_v50 }
 0x143   : > { %v1131_v53 = vpop.eup %1130 }
 0x144   : > { %v1133_v54 = vpop.eup %1132  ;;  %v333_v55 = vmul.f32 %v1131_v53, %v309_v16  ;;  %v349_v62 = vadd.f32 %v1302_v58, %v340_v57  ;;  %1043 = vmatprep.subr.bf16.mxu1 %v523_v51 }
 0x145   : > { %v332_v56 = vmul.f32 %v1133_v54, %v308_v21  ;;  %1044 = vmatpush3.bf16.msra.mxu1 %v523_v51  ;;  %v1358_v54 = vld [vmem:[%s1236_s30 + $0x18] sm:$0xff]  }
 0x146   : > { %v342_v59 = vmul.f32 %v1296_v52, %v333_v55  ;;  %1045 = vmatprep.subr.bf16.mxu1 %v1358_v54  ;;  %v1367_v55 = vld [vmem:[%s1236_s30 + $0x8] sm:$0xff]  }
 0x147   : > { %v341_v60 = vmul.f32 %v1296_v52, %v332_v56  ;;  %v1374_v56 = vld [vmem:[%s1236_s30] sm:$0xff]  }
 0x148   : > { %v351_v61 = vadd.f32 %v1302_v58, %v342_v59 }
 0x149   : > { %v350_v63 = vadd.f32 %v1302_v58, %v341_v60  ;;  %1046 = vmatpush3.bf16.msra.mxu1 %v1358_v54 }
 0x14a   : > { %v353_v0 = vpack.c.bf16 %v351_v61, %v351_v61 }
 0x14b   : > { %v352_v1 = vpack.c.bf16 %v350_v63, %v349_v62 }
 0x14d   : > { %1039 = vmatprep.mubr.msk.bf16.mxu0 %vm292_vm0, %v352_v1 }
 0x14e   : > { %1040 = vmatmul.mubr.msk.bf16.vlgmr.msra.gmra.mxu0 %vm292_vm0, %v353_v0 }
 0x1c2   : > { %v590_v16 = vpop.xlane.xlu0 %589  ;;  %v587_v21 = vpop.xlane.xlu1 %586 }
 0x1c3   : > { %v595_v18 = vmul.f32 0.03125, %v590_v16  ;;  %v594_v23 = vmul.f32 0.03125, %v587_v21 }
 0x1c5   : > { %v1315_v20 = vsub.f32 %v1231_v4, %v595_v18  ;;  %v1323_v26 = vsub.f32 %v1227_v2, %v594_v23 }
 0x1c6   : > { %v593_v19 = vpop.xlane.xlu0 %592 }
 0x1c7   : > { %v596_v22 = vmul.f32 0.03125, %v593_v19  ;;  %v601_v25 = vmul.f32 %v1315_v20, %v1315_v20  ;;  %v600_v4 = vmul.f32 %v1323_v26, %v1323_v26 }
 0x1c9   : > { %v1318_v24 = vsub.f32 %v1229_v3, %v596_v22 }
 0x1cb   : > { %v602_v28 = vmul.f32 %v1318_v24, %v1318_v24 }
 0x20e   : > { %v1041_v5 = vpop.f32.mrf.mxu0 }
 0x20f   : > { %v448_v6 = vmul.f32 0.17677669, %v1041_v5 }
 0x210   : > { %v432_v7 = vpop.f32.mrf.mxu0 }
 0x211   : > { %v446_v9 = vmul.f32 0.17677669, %v432_v7  ;;  %v457_v11 = vsel %vm456_vm2, %v448_v6, -inf }
 0x212   : > { %v1042_v12 = vpop.f32.mrf.mxu0  ;;  %458 = vmax.xlane.f32.xlu1 %v457_v11 }
 0x213   : > { %v450_v15 = vsel %vm449_vm3, %v446_v9, -inf }
 0x214   : > { %v435_v13 = vpop.f32.mrf.mxu0 }
 0x215   : > { %v447_v14 = vmul.f32 0.17677669, %v435_v13 }
 0x216   : > { %451 = vmax.xlane.f32.xlu1 %v450_v15 }
 0x217   : > { %v453_v17 = vsel %vm449_vm3, %v447_v14, -inf }
 0x218   : > { %454 = vmax.xlane.f32.xlu0 %v453_v17 }
 0x227   : > { %608 = vrot.lane.b32.xlu1 %v601_v25, %s1172_s6 }
 0x22b   : > { %610 = vrot.lane.b32.xlu1 %v602_v28, %s1172_s6 }
 0x22e   : > { %606 = vrot.lane.b32.xlu0 %v600_v4, %s1172_s6 }
 0x29b   : > { %v459_v3 = vpop.xlane.xlu1 %458 }
 0x29c   : > { %v462_v30 = vsub.f32 %v448_v6, %v459_v3 }
 0x29e   : > { %v467_v31 = vmul.f32 1.442695, %v462_v30 }
 0x29f   : > { %v452_v33 = vpop.xlane.xlu1 %451 }
 0x2a0   : > { %1134 = vpow2.f32 %v467_v31  ;;  %v460_v34 = vsub.f32 %v446_v9, %v452_v33 }
 0x2a1   : > { %v455_v2 = vpop.xlane.xlu0 %454 }
 0x2a2   : > { %v463_v35 = vmul.f32 1.442695, %v460_v34  ;;  %v461_v46 = vsub.f32 %v447_v14, %v455_v2 }
 0x2a3   : > { %v609_v36 = vpop.permute.xlu1 %608 }
 0x2a4   : > { %1136 = vpow2.f32 %v463_v35  ;;  %v618_v37 = vsel %vm292_vm0, %v609_v36, 0.0  ;;  %v465_v47 = vmul.f32 1.442695, %v461_v46 }
 0x2a5   : > { %v607_v38 = vpop.permute.xlu0 %606  ;;  %619 = vadd.xlane.f32.xlu0 %v618_v37 }
 0x2a6   : > { %v615_v39 = vsel %vm292_vm0, %v607_v38, 0.0  ;;  %1138 = vpow2.f32 %v465_v47 }
 0x2a7   : > { %616 = vadd.xlane.f32.xlu1 %v615_v39  ;;  %v611_v40 = vpop.permute.xlu1 %610 }
 0x2a8   : > { %v621_v41 = vsel %vm299_vm1, %v611_v40, 0.0 }
 0x2a9   : > { %622 = vadd.xlane.f32.xlu0 %v621_v41 }
 0x2ad   : > { %v1335_v42 = vpop.eup %1134 }
 0x2ae   : > { %v475_v43 = vsel %vm456_vm2, %v1335_v42, 0.0 }
 0x2af   : > { %476 = vadd.xlane.f32.xlu0 %v475_v43 }
 0x2b1   : > { %v1339_v44 = vpop.eup %1136 }
 0x2b2   : > { %v469_v45 = vsel %vm449_vm3, %v1339_v44, 0.0 }
 0x2b3   : > { %470 = vadd.xlane.f32.xlu0 %v469_v45 }
 0x2b8   : > { %636 = vrot.lane.b32.xlu1 %v1296_v52, %s1173_s11  ;;  %v1139_v52 = vpop.eup %1138 }
 0x2b9   : > { %v472_v53 = vsel %vm449_vm3, %v1139_v52, 0.0 }
 0x2c9   : > { %642 = vrot.lane.b32.xlu0 %v1302_v58, %s1173_s11 }
 0x2cd   : > { %658 = vrot.lane.b32.xlu0 %v1272_v29, %s1172_s6  ;;  %v1361_v29 = vld [vmem:[%s1236_s30 + $0x10] sm:$0xff]  }
 0x2ce   : > { %1047 = vmatprep.subr.bf16.mxu1 %v1361_v29 }
 0x2cf   : > { %1048 = vmatpush3.bf16.msra.mxu1 %v1361_v29 }
 0x2d0   : > { %1049 = vmatprep.subr.bf16.mxu1 %v1367_v55 }
 0x2d3   : > { %1050 = vmatpush3.bf16.msra.mxu1 %v1367_v55 }
 0x2d4   : > { %1051 = vmatprep.subr.bf16.mxu1 %v1374_v56 }
 0x2d7   : > { %1052 = vmatpush3.bf16.msra.mxu1 %v1374_v56 }
 0x2dc   : > { %473 = vadd.xlane.f32.xlu1 %v472_v53 }
 0x2ed   : > { %664 = vrot.lane.b32.xlu1 %v1245_v8, %s1172_s6 }
 0x2f1   : > { %662 = vrot.lane.b32.xlu1 %v1252_v10, %s1172_s6 }
 0x2f5   : > { %660 = vrot.lane.b32.xlu1 %v1265_v27, %s1172_s6 }
 0x2f9   : > { %656 = vrot.lane.b32.xlu1 %v1283_v32, %s1172_s6 }
 0x32e   : > { %v620_v8 = vpop.xlane.xlu0 %619 }
 0x32f   : > { %v625_v57 = vmul.f32 0.03125, %v620_v8 }
 0x330   : > { %v617_v58 = vpop.xlane.xlu1 %616 }
 0x331   : > { %v628_v59 = vadd.f32 1e-05, %v625_v57  ;;  %v624_v60 = vmul.f32 0.03125, %v617_v58 }
 0x332   : > { %v623_v61 = vpop.xlane.xlu0 %622 }
 0x333   : > { %1140 = vrsqrt.f32 %v628_v59  ;;  %v627_v10 = vadd.f32 1e-05, %v624_v60  ;;  %v626_v62 = vmul.f32 0.03125, %v623_v61 }
 0x334   : > { %v637_v5 = vpop.permute.xlu1 %636 }
 0x335   : > { %1142 = vrsqrt.f32 %v627_v10  ;;  %v629_v63 = vadd.f32 1e-05, %v626_v62 }
 0x337   : > { %1144 = vrsqrt.f32 %v629_v63 }
 0x338   : > { %v477_v0 = vpop.xlane.xlu0 %476 }
 0x339   : > { %1146 = vrcp.f32 %v477_v0 }
 0x33c   : > { %v471_v27 = vpop.xlane.xlu0 %470 }
 0x33d   : > { %1148 = vrcp.f32 %v471_v27 }
 0x340   : > { %v1141_v1 = vpop.eup %1140  ;;  %v643_v12 = vpop.permute.xlu0 %642 }
 0x341   : > { %v634_v6 = vmul.f32 %v1141_v1, %v1315_v20 }
 0x342   : > { %v1143_v7 = vpop.eup %1142 }
 0x343   : > { %v633_v32 = vmul.f32 %v1143_v7, %v1323_v26  ;;  %v640_v9 = vmul.f32 %v637_v5, %v634_v6 }
 0x344   : > { %v1145_v11 = vpop.eup %1144  ;;  %v659_v36 = vpop.permute.xlu0 %658 }
 0x345   : > { %v635_v13 = vmul.f32 %v1145_v11, %v1318_v24  ;;  %v639_v14 = vmul.f32 %v637_v5, %v633_v32  ;;  %v646_v17 = vadd.f32 %v643_v12, %v640_v9  ;;  %v676_v37 = vsel %vm292_vm0, %v659_v36, 0 }
 0x346   : > { %v1147_v23 = vpop.eup %1146 }
 0x347   : > { %v641_v15 = vmul.f32 %v637_v5, %v635_v13  ;;  %v645_v16 = vadd.f32 %v643_v12, %v639_v14  ;;  %v483_v26 = vmul.f32 %v1147_v23, %v1335_v42 }
 0x349   : > { %v647_v18 = vadd.f32 %v643_v12, %v641_v15  ;;  %v648_v19 = vpack.c.bf16 %v646_v17, %v645_v16  ;;  %v485_v30 = vpack.c.bf16 %v483_v26, %v483_v26 }
 0x34a   : > { %v1149_v24 = vpop.eup %1148 }
 0x34b   : > { %652 = vrot.lane.b32.xlu0 %v648_v19, %s1172_s6  ;;  %v649_v21 = vpack.c.bf16 %v647_v18, %v647_v18  ;;  %v481_v28 = vmul.f32 %v1149_v24, %v1339_v44 }
 0x34d   : > { %654 = vrot.lane.b32.xlu1 %v649_v21, %s1172_s6 }
 0x365   : > { %v474_v20 = vpop.xlane.xlu1 %473 }
 0x366   : > { %1150 = vrcp.f32 %v474_v20 }
 0x369   : > { %v665_v22 = vpop.permute.xlu1 %664 }
 0x36a   : > { %1090 = vmatprep.subr.msk.bf16.mxu1 %vm292_vm0, %v665_v22  ;;  %v685_v31 = vsel %vm292_vm0, %v665_v22, 0 }
 0x36d   : > { %v663_v33 = vpop.permute.xlu1 %662 }
 0x36e   : > { %v682_v34 = vsel %vm292_vm0, %v663_v33, 0 }
 0x371   : > { %v661_v2 = vpop.permute.xlu1 %660 }
 0x372   : > { %v679_v35 = vsel %vm292_vm0, %v661_v2, 0 }
 0x373   : > { %v1151_v25 = vpop.eup %1150 }
 0x374   : > { %v482_v4 = vmul.f32 %v1151_v25, %v1139_v52 }
 0x375   : > { %v657_v38 = vpop.permute.xlu1 %656 }
 0x376   : > { %v484_v3 = vpack.c.bf16 %v482_v4, %v481_v28  ;;  %v673_v39 = vsel %vm292_vm0, %v657_v38, 0 }
 0x378   : > { %1053 = vmatprep.mubr.msk.bf16.mxu1 %vm449_vm3, %v484_v3 }
 0x379   : > { %1054 = vmatmul.mubr.msk.bf16.vlgmr.msra.gmra.mxu1 %vm449_vm3, %v485_v30 }
 0x37a   : > { %1058 = vmatpush3.bf16.xpose.msra.mxu1 %v685_v31 }
 0x37b   : > { %1091 = vmatprep.subr.msk.bf16.mxu1 %vm292_vm0, %v663_v33 }
 0x382   : > { %1060 = vmatpush3.bf16.xpose.msra.mxu1 %v682_v34  ;;  %v878_v34 = vld [vmem:[%s264_s14 + $0x8] sm:$0x1] }
 0x383   : > { %1092 = vmatprep.subr.msk.bf16.mxu1 %vm292_vm0, %v661_v2 }
 0x38a   : > { %1062 = vmatpush3.bf16.xpose.msra.mxu1 %v679_v35 }
 0x38b   : > { %1093 = vmatprep.subr.msk.bf16.mxu1 %vm292_vm0, %v659_v36 }
 0x392   : > { %1064 = vmatpush3.bf16.xpose.msra.mxu1 %v676_v37 }
 0x393   : > { %1094 = vmatprep.subr.msk.bf16.mxu1 %vm292_vm0, %v657_v38 }
 0x39a   : > { %1066 = vmatpush3.bf16.xpose.msra.mxu1 %v673_v39 }
 0x3bd   : > { %v653_v40 = vpop.permute.xlu0 %652 }
 0x3be   : > { %1067 = vmatprep.mubr.msk.bf16.mxu1 %vm292_vm0, %v653_v40 }
 0x3bf   : > { %v655_v41 = vpop.permute.xlu1 %654 }
 0x3c0   : > { %1068 = vmatmul.mubr.msk.bf16.vlgmr.msra.gmra.mxu1 %vm292_vm0, %v655_v41 }
 0x439   : > { %v1406_v42 = vpop.f32.mrf.mxu1 }
 0x43b   : > { %v1408_v43 = vpop.f32.mrf.mxu1 }
 0x43d   : > { %v1056_v44 = vpop.f32.mrf.mxu1 }
 0x43f   : > { %v1410_v45 = vpop.f32.mrf.mxu1 }
 0x480   : > { %v1069_v46 = vpop.f32.mrf.mxu1 }
 0x481   : > { %v737_v52 = vmul.f32 0.17677669, %v1069_v46 }
 0x482   : > { %v721_v47 = vpop.f32.mrf.mxu1 }
 0x483   : > { %v735_v49 = vmul.f32 0.17677669, %v721_v47  ;;  %v744_v58 = vsel %vm456_vm2, %v737_v52, -inf }
 0x484   : > { %v1070_v51 = vpop.f32.mrf.mxu1 }
 0x485   : > { %v738_v53 = vsel %vm449_vm3, %v735_v49, -inf }
 0x486   : > { %739 = vmax.xlane.f32.xlu0 %v738_v53  ;;  %v724_v8 = vpop.f32.mrf.mxu1 }
 0x487   : > { %v736_v57 = vmul.f32 0.17677669, %v724_v8 }
 0x489   : > { %v741_v59 = vsel %vm449_vm3, %v736_v57, -inf }
 0x48a   : > { %745 = vmax.xlane.f32.xlu0 %v744_v58  ;;  %742 = vmax.xlane.f32.xlu1 %v741_v59 }
 0x49b   : > { %779 = vrot.lane.b32.xlu1 %v1358_v54, %s1172_s6 }
 0x49f   : > { %777 = vrot.lane.b32.xlu1 %v1361_v29, %s1172_s6 }
 0x4a0   : > { %781 = vrot.lane.b32.xlu0 %v1350_v48, %s1172_s6 }
 0x50f   : > { %v740_v60 = vpop.xlane.xlu0 %739 }
 0x510   : > { %v747_v61 = vsub.f32 %v735_v49, %v740_v60 }
 0x512   : > { %v750_v10 = vmul.f32 1.442695, %v747_v61 }
 0x513   : > { %v746_v62 = vpop.xlane.xlu0 %745  ;;  %v743_v63 = vpop.xlane.xlu1 %742 }
 0x514   : > { %1152 = vpow2.f32 %v750_v10  ;;  %v749_v0 = vsub.f32 %v737_v52, %v746_v62  ;;  %v748_v1 = vsub.f32 %v736_v57, %v743_v63 }
 0x516   : > { %v754_v27 = vmul.f32 1.442695, %v749_v0  ;;  %v752_v5 = vmul.f32 1.442695, %v748_v1 }
 0x517   : > { %v782_v6 = vpop.permute.xlu0 %781  ;;  %v780_v7 = vpop.permute.xlu1 %779 }
 0x518   : > { %1154 = vpow2.f32 %v754_v27  ;;  %v794_v54 = vand.u32 %v782_v6, %v1352_v50 }
 0x519   : > { %1156 = vpow2.f32 %v752_v5 }
 0x51a   : > { %1071 = vmatprep.subr.bf16.mxu0 %v794_v54 }
 0x51b   : > { %1072 = vmatpush3.bf16.msra.mxu0 %v794_v54  ;;  %v778_v48 = vpop.permute.xlu1 %777 }
 0x51c   : > { %1073 = vmatprep.subr.bf16.mxu0 %v780_v7 }
 0x51f   : > { %1074 = vmatpush3.bf16.msra.mxu0 %v780_v7 }
 0x520   : > { %1075 = vmatprep.subr.bf16.mxu0 %v778_v48 }
 0x521   : > { %v1153_v29 = vpop.eup %1152 }
 0x522   : > { %v756_v32 = vsel %vm449_vm3, %v1153_v29, 0.0 }
 0x523   : > { %757 = vadd.xlane.f32.xlu0 %v756_v32  ;;  %1076 = vmatpush3.bf16.msra.mxu0 %v778_v48 }
 0x525   : > { %v1155_v9 = vpop.eup %1154 }
 0x526   : > { %v1157_v11 = vpop.eup %1156  ;;  %v762_v12 = vsel %vm456_vm2, %v1155_v9, 0.0 }
 0x527   : > { %763 = vadd.xlane.f32.xlu1 %v762_v12  ;;  %v759_v13 = vsel %vm449_vm3, %v1157_v11, 0.0 }
 0x528   : > { %760 = vadd.xlane.f32.xlu0 %v759_v13 }
 0x538   : > { %775 = vrot.lane.b32.xlu1 %v1367_v55, %s1172_s6 }
 0x53e   : > { %773 = vrot.lane.b32.xlu0 %v1374_v56, %s1172_s6 }
 0x5ac   : > { %v758_v50 = vpop.xlane.xlu0 %757 }
 0x5ad   : > { %1158 = vrcp.f32 %v758_v50 }
 0x5b0   : > { %v764_v14 = vpop.xlane.xlu1 %763 }
 0x5b1   : > { %v761_v15 = vpop.xlane.xlu0 %760  ;;  %1160 = vrcp.f32 %v764_v14 }
 0x5b2   : > { %1162 = vrcp.f32 %v761_v15 }
 0x5b4   : > { %v776_v16 = vpop.permute.xlu1 %775 }
 0x5b5   : > { %1077 = vmatprep.subr.bf16.mxu0 %v776_v16  ;;  %v774_v17 = vpop.permute.xlu0 %773 }
 0x5b6   : > { %1078 = vmatpush3.bf16.msra.mxu0 %v776_v16 }
 0x5b7   : > { %1079 = vmatprep.subr.bf16.mxu0 %v774_v17 }
 0x5ba   : > { %1080 = vmatpush3.bf16.msra.mxu0 %v774_v17  ;;  %v1159_v18 = vpop.eup %1158 }
 0x5bb   : > { %v768_v20 = vmul.f32 %v1159_v18, %v1153_v29 }
 0x5be   : > { %v1161_v19 = vpop.eup %1160 }
 0x5bf   : > { %v1163_v21 = vpop.eup %1162  ;;  %v770_v55 = vmul.f32 %v1161_v19, %v1155_v9 }
 0x5c0   : > { %v769_v22 = vmul.f32 %v1163_v21, %v1157_v11 }
 0x5c1   : > { %v772_v56 = vpack.c.bf16 %v770_v55, %v770_v55 }
 0x5c2   : > { %v771_v23 = vpack.c.bf16 %v769_v22, %v768_v20 }
 0x5c4   : > { %1081 = vmatprep.mubr.msk.bf16.mxu0 %vm449_vm3, %v771_v23 }
 0x5c5   : > { %1082 = vmatmul.mubr.msk.bf16.vlgmr.msra.gmra.mxu0 %vm449_vm3, %v772_v56 }
 0x685   : > { %v1083_v24 = vpop.f32.mrf.mxu0 }
 0x687   : > { %v830_v25 = vpop.f32.mrf.mxu0 }
 0x688   : > { %v1113_v26 = vpack.i.bf16 %v830_v25, %v1083_v24 }
 0x689   : > { %v1084_v28 = vpop.f32.mrf.mxu0 }
 0x68a   : > { %1114 = vrot.lane.b32.xlu1 %v1113_v26, %s1173_s11 }
 0x68b   : > { %v833_v4 = vpop.f32.mrf.mxu0 }
 0x68c   : > { %849 = vrot.lane.b32.xlu0 %v833_v4, %s1173_s11 }
 0x6fc   : > { %v1115_v3 = vpop.permute.xlu1 %1114 }
 0x6fd   : > { %v1117_v30 = vunpack.i.h.bf16 %v1115_v3  ;;  %v1116_v31 = vunpack.i.l.bf16 %v1115_v3 }
 0x6fe   : > { %v850_v33 = vpop.permute.xlu0 %849 }
 0x6ff   : > { %v856_v2 = vsel %vm292_vm0, %v1408_v43, %v1117_v30  ;;  %v858_v35 = vsel %vm292_vm0, %v1406_v42, %v1116_v31  ;;  %v857_v36 = vsel %vm292_vm0, %v1410_v45, %v850_v33 }
 0x700   : > { %v994_v37 = vpack.c.bf16 %v856_v2, %v856_v2  ;;  %v996_v38 = vpack.c.bf16 %v858_v35, %v858_v35  ;;  %v995_v39 = vpack.c.bf16 %v857_v36, %v857_v36 }
 0x702   : > { %v879_v40 = vsel %vm877_vm7, %v996_v38, %v878_v34  ;;  %873 = vst.msk [vmem:[%s264_s14] sm:$0xf] %vm872_vm8, %v994_v37  ;;  %874 = vst.msk [vmem:[%s264_s14 + $0x4] sm:$0xf] %vm872_vm8, %v995_v39 }
 0x703   : > { %880 = vst [vmem:[%s264_s14 + $0x8] sm:$0x1] %v879_v40 }
 0x704 PF: > { %s15_s18 = sadd.s32 1, %s1170_s18  }
 0x705   : > { %p12_p4 = scmp.ge.s32.totalorder %s15_s18, 4  }
 0x707   :  { %14 = sbr.rel (!%p12_p4) target bundleno = 1 (0x1), region = 76 }

// kernel: _lambda_.41
= control target key start
LH: loop header
LB: loop body
LE: loop exit
PB: predicated region body
PF: predicated region fallthrough
CT: control target
= control target key end

     0   :  { %vm45_vm0 = vcmask 523264   ;;  %v536_v40 = vmov 0   ;;  %s735_s0 = inlined_call_operand.vmem [shape: bf16[40,64], index: 0, kind: input, shape index: {}]   ;;  %s736_s1 = inlined_call_operand.vmem [shape: bf16[64,256], index: 1, kind: input, shape index: {}]   ;;  %s737_s3 = inlined_call_operand.vmem [shape: f32[1,64], index: 3, kind: input, shape index: {}]   ;;  %s738_s4 = inlined_call_operand.vmem [shape: f32[1,64], index: 4, kind: input, shape index: {}]   ;;  %s739_s2 = inlined_call_operand.vmem [shape: f32[1,256], index: 2, kind: input, shape index: {}]   ;;  %s740_s5 = inlined_call_operand.vmem [shape: bf16[40,256], index: 5, kind: output, shape index: {}]  }
   0x1   :  { %v484_v0 = vld [vmem:[%s735_s0 + $0x8] sm:$0xff]   ;;  %v477_v1 = vld [vmem:[%s735_s0] sm:$0xff]   ;;  %v39_v5 = vld [vmem:[%s735_s0 + $0x10] sm:$0xf]  ;;  %248 = vmatprep.mubr.bf16.mxu1 %v536_v40  ;;  %238 = vmatprep.mubr.bf16.mxu0 %v536_v40 }
   0x2   :  { %v482_v2 = vunpack.c.l.bf16 %v484_v0  ;;  %v483_v3 = vunpack.c.h.bf16 %v484_v0  ;;  %v478_v4 = vunpack.c.l.bf16 %v477_v1  ;;  %v479_v6 = vunpack.c.h.bf16 %v477_v1  ;;  %v494_v38 = vld [vmem:[%s736_s1 + $0x34] ss:$8 sps:$4 sm:$0xff]   ;;  %v496_v39 = vld [vmem:[%s736_s1 + $0x30] ss:$8 sps:$4 sm:$0xff]   ;;  %v497_v41 = vld [vmem:[%s736_s1 + $0x24] ss:$8 sps:$4 sm:$0xff]  }
   0x3   :  { %v44_v10 = vunpack.c.l.bf16 %v39_v5  ;;  %485 = vmatprep.subr.bf16.mxu1 %v494_v38  ;;  %214 = vmatprep.subr.bf16.mxu0 %v494_v38  ;;  %v499_v42 = vld [vmem:[%s736_s1 + $0x20] ss:$8 sps:$4 sm:$0xff]   ;;  %v500_v43 = vld [vmem:[%s736_s1 + $0x14] ss:$8 sps:$4 sm:$0xff]   ;;  %v502_v44 = vld [vmem:[%s736_s1 + $0x10] ss:$8 sps:$4 sm:$0xff]  }
   0x4   :  { %v52_v7 = vsel %vm45_vm0, %v482_v2, 0.0  ;;  %v46_v8 = vsel %vm45_vm0, %v478_v4, 0.0  ;;  %v55_v9 = vsel %vm45_vm0, %v483_v3, 0.0  ;;  %v49_v11 = vsel %vm45_vm0, %v479_v6, 0.0  ;;  %489 = vmatpush1.bf16.msra.mxu1 %v496_v39  ;;  %215 = vmatpush1.bf16.msra.mxu0 %v496_v39  ;;  %v503_v45 = vld [vmem:[%s736_s1 + $0x4] ss:$8 sps:$4 sm:$0xff]  }
   0x5   :  { %53 = vadd.xlane.f32.xlu0 %v52_v7  ;;  %47 = vadd.xlane.f32.xlu1 %v46_v8  ;;  %v58_v12 = vsel %vm45_vm0, %v44_v10, 0.0  ;;  %v505_v46 = vld [vmem:[%s736_s1] ss:$8 sps:$4 sm:$0xff]  }
   0x6   :  { %486 = vmatprep.subr.bf16.mxu1 %v497_v41  ;;  %216 = vmatprep.subr.bf16.mxu0 %v497_v41  ;;  %v453_v0 = vld [vmem:[%s737_s3] ss:$0 sm:$0xff] }
   0x7   :  { %v454_v5 = vld [vmem:[%s738_s4] ss:$0 sm:$0xff] }
   0x8   :  { %490 = vmatpush1.bf16.msra.mxu1 %v499_v42  ;;  %217 = vmatpush1.bf16.msra.mxu0 %v499_v42 }
   0x9   :  { %56 = vadd.xlane.f32.xlu0 %v55_v9  ;;  %50 = vadd.xlane.f32.xlu1 %v49_v11 }
   0xa   :  { %487 = vmatprep.subr.bf16.mxu1 %v500_v43  ;;  %218 = vmatprep.subr.bf16.mxu0 %v500_v43 }
   0xc   :  { %491 = vmatpush1.bf16.msra.mxu1 %v502_v44  ;;  %219 = vmatpush1.bf16.msra.mxu0 %v502_v44 }
   0xd   :  { %59 = vadd.xlane.f32.xlu0 %v58_v12  ;;  %488 = vmatprep.subr.bf16.mxu1 %v503_v45 }
   0xe   :  { %220 = vmatprep.subr.bf16.mxu0 %v503_v45 }
  0x10   :  { %492 = vmatpush1.bf16.msra.mxu1 %v505_v46  ;;  %221 = vmatpush1.bf16.msra.mxu0 %v505_v46 }
  0x8e   :  { %v54_v13 = vpop.xlane.xlu0 %53  ;;  %v48_v14 = vpop.xlane.xlu1 %47 }
  0x8f   :  { %v64_v15 = vmul.f32 0.015625, %v54_v13  ;;  %v62_v16 = vmul.f32 0.015625, %v48_v14 }
  0x91   :  { %v581_v17 = vsub.f32 %v482_v2, %v64_v15  ;;  %v583_v18 = vsub.f32 %v478_v4, %v62_v16 }
  0x92   :  { %v57_v19 = vpop.xlane.xlu0 %56  ;;  %v51_v20 = vpop.xlane.xlu1 %50 }
  0x93   :  { %v65_v21 = vmul.f32 0.015625, %v57_v19  ;;  %v74_v22 = vmul.f32 %v581_v17, %v581_v17  ;;  %v63_v23 = vmul.f32 0.015625, %v51_v20  ;;  %v72_v24 = vmul.f32 %v583_v18, %v583_v18 }
  0x95   :  { %v589_v25 = vsub.f32 %v483_v3, %v65_v21  ;;  %v83_v26 = vsel %vm45_vm0, %v74_v22, 0.0  ;;  %v592_v27 = vsub.f32 %v479_v6, %v63_v23  ;;  %v77_v31 = vsel %vm45_vm0, %v72_v24, 0.0 }
  0x96   :  { %v60_v28 = vpop.xlane.xlu0 %59  ;;  %84 = vadd.xlane.f32.xlu1 %v83_v26  ;;  %v302_v23 = vlaneseq  ;;  %v300_v26 = vld [vmem:[%s739_s2] sm:$0x3] }
  0x97   :  { %v66_v29 = vmul.f32 0.015625, %v60_v28  ;;  %v75_v30 = vmul.f32 %v589_v25, %v589_v25  ;;  %v73_v32 = vmul.f32 %v592_v27, %v592_v27 }
  0x98   :  { %v303_v24 = vshrl.u32 %v302_v23, 7 }
  0x99   :  { %v599_v33 = vsub.f32 %v44_v10, %v66_v29  ;;  %v86_v34 = vsel %vm45_vm0, %v75_v30, 0.0  ;;  %v80_v36 = vsel %vm45_vm0, %v73_v32, 0.0 }
  0x9a   :  { %87 = vadd.xlane.f32.xlu0 %v86_v34  ;;  %78 = vadd.xlane.f32.xlu1 %v77_v31 }
  0x9b   :  { %v76_v35 = vmul.f32 %v599_v33, %v599_v33 }
  0x9d   :  { %v89_v37 = vsel %vm45_vm0, %v76_v35, 0.0 }
  0x9e   :  { %90 = vadd.xlane.f32.xlu1 %v89_v37  ;;  %81 = vadd.xlane.f32.xlu0 %v80_v36 }
 0x11f   :  { %v85_v47 = vpop.xlane.xlu1 %84 }
 0x120   :  { %v94_v48 = vmul.f32 0.015625, %v85_v47 }
 0x122   :  { %v99_v49 = vadd.f32 1e-06, %v94_v48 }
 0x123   :  { %v88_v50 = vpop.xlane.xlu0 %87  ;;  %v79_v51 = vpop.xlane.xlu1 %78 }
 0x124   :  { %506 = vrsqrt.f32 %v99_v49  ;;  %v95_v52 = vmul.f32 0.015625, %v88_v50  ;;  %v92_v53 = vmul.f32 0.015625, %v79_v51 }
 0x126   :  { %v100_v54 = vadd.f32 1e-06, %v95_v52  ;;  %v97_v55 = vadd.f32 1e-06, %v92_v53 }
 0x127   :  { %v82_v56 = vpop.xlane.xlu0 %81  ;;  %v91_v57 = vpop.xlane.xlu1 %90 }
 0x128   :  { %508 = vrsqrt.f32 %v100_v54  ;;  %v93_v58 = vmul.f32 0.015625, %v82_v56  ;;  %v96_v59 = vmul.f32 0.015625, %v91_v57 }
 0x129   :  { %510 = vrsqrt.f32 %v97_v55 }
 0x12a   :  { %v98_v60 = vadd.f32 1e-06, %v93_v58  ;;  %v101_v61 = vadd.f32 1e-06, %v96_v59 }
 0x12c   :  { %512 = vrsqrt.f32 %v98_v60 }
 0x12d   :  { %514 = vrsqrt.f32 %v101_v61 }
 0x131   :  { %v507_v62 = vpop.eup %506 }
 0x132   :  { %v109_v63 = vmul.f32 %v507_v62, %v581_v17 }
 0x134   :  { %v121_v4 = vmul.f32 %v453_v0, %v109_v63 }
 0x135   :  { %v509_v1 = vpop.eup %508 }
 0x136   :  { %v511_v2 = vpop.eup %510  ;;  %v110_v3 = vmul.f32 %v509_v1, %v589_v25  ;;  %v133_v10 = vadd.f32 %v454_v5, %v121_v4  ;;  %v304_v25 = vsub.s32 0, %v303_v24 }
 0x137   :  { %v107_v6 = vmul.f32 %v511_v2, %v583_v18 }
 0x138   :  { %v122_v7 = vmul.f32 %v453_v0, %v110_v3  ;;  %v305_v28 = vrot.slane %v300_v26, %v304_v25 }
 0x139   :  { %v513_v8 = vpop.eup %512  ;;  %v119_v13 = vmul.f32 %v453_v0, %v107_v6 }
 0x13a   :  { %v515_v9 = vpop.eup %514  ;;  %v134_v11 = vadd.f32 %v454_v5, %v122_v7  ;;  %v108_v12 = vmul.f32 %v513_v8, %v592_v27  ;;  %v308_v27 = vsub.s32 1, %v303_v24 }
 0x13b   :  { %v111_v14 = vmul.f32 %v515_v9, %v599_v33  ;;  %v131_v19 = vadd.f32 %v454_v5, %v119_v13 }
 0x13c   :  { %v137_v15 = vpack.c.bf16 %v134_v11, %v133_v10  ;;  %v120_v16 = vmul.f32 %v453_v0, %v108_v12  ;;  %v650_v29 = vrot.slane %v300_v26, %v308_v27 }
 0x13d   :  { %v123_v17 = vmul.f32 %v453_v0, %v111_v14 }
 0x13e   :  { %464 = vmatmul.mubr.msk.bf16.vlgmr.msra.gmra.mxu1 %vm45_vm0, %v137_v15  ;;  %v132_v20 = vadd.f32 %v454_v5, %v120_v16 }
 0x13f   :  { %258 = vmatprep.mubr.bf16.mxu1 %v536_v40  ;;  %v135_v21 = vadd.f32 %v454_v5, %v123_v17 }
 0x140   :  { %v136_v18 = vpack.c.bf16 %v132_v20, %v131_v19 }
 0x141   :  { %v138_v22 = vpack.c.bf16 %v135_v21, %v135_v21 }
 0x142   :  { %463 = vmatmul.mubr.msk.bf16.vlgmr.msra.gmra.mxu0 %vm45_vm0, %v136_v18 }
 0x146   :  { %465 = vmatmul.mubr.msk.bf16.gmra.mxu1 %vm45_vm0, %v138_v22 }
 0x1fe   :  { %v250_v30 = vpop.f32.mrf.mxu1 }
 0x1ff   :  { %v652_v31 = vadd.f32 %v305_v28, %v250_v30 }
 0x200   :  { %v252_v32 = vpop.f32.mrf.mxu1 }
 0x201   :  { %v336_v33 = vmul.f32 0.044715, %v652_v31  ;;  %v656_v34 = vadd.f32 %v650_v29, %v252_v32 }
 0x202   :  { %v240_v35 = vpop.f32.mrf.mxu0  ;;  %v254_v36 = vpop.f32.mrf.mxu1 }
 0x203   :  { %v346_v37 = vmul.f32 %v336_v33, %v652_v31  ;;  %v337_v38 = vmul.f32 0.044715, %v656_v34  ;;  %v660_v39 = vadd.f32 %v305_v28, %v240_v35  ;;  %v662_v40 = vadd.f32 %v305_v28, %v254_v36 }
 0x204   :  { %v242_v41 = vpop.f32.mrf.mxu0  ;;  %v256_v42 = vpop.f32.mrf.mxu1 }
 0x205   :  { %v356_v43 = vmul.f32 %v346_v37, %v652_v31  ;;  %v347_v44 = vmul.f32 %v337_v38, %v656_v34  ;;  %v332_v45 = vmul.f32 0.044715, %v660_v39  ;;  %v338_v46 = vmul.f32 0.044715, %v662_v40 }
 0x206   :  { %v669_v47 = vadd.f32 %v650_v29, %v242_v41  ;;  %v672_v48 = vadd.f32 %v650_v29, %v256_v42  ;;  %v244_v49 = vpop.f32.mrf.mxu0  ;;  %v260_v50 = vpop.f32.mrf.mxu1 }
 0x207   :  { %v366_v51 = vadd.f32 %v356_v43, %v652_v31  ;;  %v357_v52 = vmul.f32 %v347_v44, %v656_v34  ;;  %v342_v53 = vmul.f32 %v332_v45, %v660_v39  ;;  %v677_v54 = vadd.f32 %v305_v28, %v244_v49 }
 0x208   :  { %v348_v55 = vmul.f32 %v338_v46, %v662_v40  ;;  %v333_v56 = vmul.f32 0.044715, %v669_v47  ;;  %v262_v57 = vpop.f32.mrf.mxu1  ;;  %v339_v61 = vmul.f32 0.044715, %v672_v48  ;;  %v246_v1 = vpop.f32.mrf.mxu0  ;;  %v692_v9 = vadd.f32 %v305_v28, %v260_v50 }
 0x209   :  { %v376_v58 = vmul.f32 0.7978846, %v366_v51  ;;  %v367_v59 = vadd.f32 %v357_v52, %v656_v34  ;;  %v352_v60 = vmul.f32 %v342_v53, %v660_v39  ;;  %v334_v0 = vmul.f32 0.044715, %v677_v54 }
 0x20a   :  { %v358_v62 = vmul.f32 %v348_v55, %v662_v40  ;;  %v343_v63 = vmul.f32 %v333_v56, %v669_v47  ;;  %v264_v2 = vpop.f32.mrf.mxu1  ;;  %v349_v5 = vmul.f32 %v339_v61, %v672_v48  ;;  %v696_v13 = vadd.f32 %v650_v29, %v246_v1 }
 0x20b   :  { %516 = vtanh.f32 %v376_v58  ;;  %v377_v3 = vmul.f32 0.7978846, %v367_v59  ;;  %v362_v4 = vadd.f32 %v352_v60, %v660_v39  ;;  %v344_v8 = vmul.f32 %v334_v0, %v677_v54 }
 0x20c   :  { %v368_v6 = vadd.f32 %v358_v62, %v662_v40  ;;  %v353_v7 = vmul.f32 %v343_v63, %v669_v47  ;;  %v265_v10 = vpop.f32.mrf.mxu1  ;;  %v359_v12 = vmul.f32 %v349_v5, %v672_v48  ;;  %v340_v19 = vmul.f32 0.044715, %v692_v9 }
 0x20d   :  { %518 = vtanh.f32 %v377_v3  ;;  %v372_v11 = vmul.f32 0.7978846, %v362_v4  ;;  %v354_v16 = vmul.f32 %v344_v8, %v677_v54  ;;  %v335_v21 = vmul.f32 0.044715, %v696_v13 }
 0x20e   :  { %v378_v14 = vmul.f32 0.7978846, %v368_v6  ;;  %v363_v15 = vadd.f32 %v353_v7, %v669_v47  ;;  %v369_v17 = vadd.f32 %v359_v12, %v672_v48  ;;  %v350_v23 = vmul.f32 %v340_v19, %v692_v9 }
 0x20f   :  { %520 = vtanh.f32 %v372_v11  ;;  %v364_v18 = vadd.f32 %v354_v16, %v677_v54  ;;  %v321_v24 = vadd.f32 %v650_v29, %v262_v57  ;;  %v345_v26 = vmul.f32 %v335_v21, %v696_v13 }
 0x210   :  { %522 = vtanh.f32 %v378_v14  ;;  %v373_v20 = vmul.f32 0.7978846, %v363_v15  ;;  %v379_v22 = vmul.f32 0.7978846, %v369_v17  ;;  %v360_v27 = vmul.f32 %v350_v23, %v692_v9 }
 0x211   :  { %v374_v25 = vmul.f32 0.7978846, %v364_v18  ;;  %v341_v28 = vmul.f32 0.044715, %v321_v24  ;;  %v355_v30 = vmul.f32 %v345_v26, %v696_v13  ;;  %v326_v44 = vmul.f32 0.5, %v652_v31 }
 0x212   :  { %524 = vtanh.f32 %v373_v20  ;;  %v370_v32 = vadd.f32 %v360_v27, %v692_v9  ;;  %v327_v45 = vmul.f32 0.5, %v656_v34  ;;  %v322_v60 = vmul.f32 0.5, %v660_v39 }
 0x213   :  { %526 = vtanh.f32 %v379_v22  ;;  %v351_v33 = vmul.f32 %v341_v28, %v321_v24  ;;  %v365_v35 = vadd.f32 %v355_v30, %v696_v13  ;;  %v323_v61 = vmul.f32 0.5, %v669_v47 }
 0x214   :  { %528 = vtanh.f32 %v374_v25  ;;  %v380_v36 = vmul.f32 0.7978846, %v370_v32  ;;  %v328_v31 = vmul.f32 0.5, %v662_v40  ;;  %v329_v34 = vmul.f32 0.5, %v672_v48 }
 0x215   :  { %v361_v37 = vmul.f32 %v351_v33, %v321_v24  ;;  %v375_v29 = vmul.f32 0.7978846, %v365_v35  ;;  %v324_v40 = vmul.f32 0.5, %v677_v54  ;;  %v325_v48 = vmul.f32 0.5, %v696_v13 }
 0x216   :  { %530 = vtanh.f32 %v380_v36  ;;  %v330_v15 = vmul.f32 0.5, %v692_v9  ;;  %v331_v16 = vmul.f32 0.5, %v321_v24 }
 0x217   :  { %v371_v42 = vadd.f32 %v361_v37, %v321_v24  ;;  %532 = vtanh.f32 %v375_v29 }
 0x218   :  { %v517_v38 = vpop.eup %516 }
 0x219   :  { %v396_v41 = vadd.f32 1.0, %v517_v38  ;;  %v381_v49 = vmul.f32 0.7978846, %v371_v42 }
 0x21a   :  { %v519_v43 = vpop.eup %518 }
 0x21b   :  { %v397_v46 = vadd.f32 1.0, %v519_v43  ;;  %v406_v52 = vmul.f32 %v396_v41, %v326_v44  ;;  %534 = vtanh.f32 %v381_v49 }
 0x21c   :  { %v521_v50 = vpop.eup %520 }
 0x21d   :  { %v523_v51 = vpop.eup %522  ;;  %v407_v53 = vmul.f32 %v397_v46, %v327_v45  ;;  %v392_v55 = vadd.f32 1.0, %v521_v50 }
 0x21e   :  { %v398_v58 = vadd.f32 1.0, %v523_v51 }
 0x21f   :  { %v525_v56 = vpop.eup %524  ;;  %v473_v57 = vpack.c.bf16 %v407_v53, %v406_v52  ;;  %v402_v0 = vmul.f32 %v392_v55, %v322_v60 }
 0x220   :  { %v527_v59 = vpop.eup %526  ;;  %v393_v62 = vadd.f32 1.0, %v525_v56  ;;  %v408_v3 = vmul.f32 %v398_v58, %v328_v31 }
 0x221   :  { %446 = vst [vmem:[%s740_s5 + $0x10] sm:$0xff] %v473_v57  ;;  %v399_v63 = vadd.f32 1.0, %v527_v59  ;;  %v529_v2 = vpop.eup %528 }
 0x222   :  { %v403_v1 = vmul.f32 %v393_v62, %v323_v61  ;;  %v394_v47 = vadd.f32 1.0, %v529_v2 }
 0x223   :  { %v409_v4 = vmul.f32 %v399_v63, %v329_v34  ;;  %v531_v39 = vpop.eup %530 }
 0x224   :  { %v471_v5 = vpack.c.bf16 %v403_v1, %v402_v0  ;;  %v533_v7 = vpop.eup %532  ;;  %v400_v10 = vadd.f32 1.0, %v531_v39  ;;  %v404_v12 = vmul.f32 %v394_v47, %v324_v40 }
 0x225   :  { %v474_v6 = vpack.c.bf16 %v409_v4, %v408_v3  ;;  %v395_v8 = vadd.f32 1.0, %v533_v7 }
 0x226   :  { %444 = vst [vmem:[%s740_s5] sm:$0xff] %v471_v5  ;;  %v410_v20 = vmul.f32 %v400_v10, %v330_v15 }
 0x227   :  { %447 = vst [vmem:[%s740_s5 + $0x18] sm:$0xff] %v474_v6  ;;  %v405_v14 = vmul.f32 %v395_v8, %v325_v48 }
 0x228   :  { %v535_v11 = vpop.eup %534 }
 0x229   :  { %v401_v17 = vadd.f32 1.0, %v535_v11  ;;  %v472_v19 = vpack.c.bf16 %v405_v14, %v404_v12 }
 0x22b   :  { %v411_v18 = vmul.f32 %v401_v17, %v331_v16  ;;  %445 = vst [vmem:[%s740_s5 + $0x8] sm:$0xff] %v472_v19 }
 0x22d   :  { %v475_v21 = vpack.c.bf16 %v411_v18, %v410_v20 }
 0x22f   :  { %448 = vst [vmem:[%s740_s5 + $0x20] sm:$0xff] %v475_v21 }

// kernel: _lambda_.42
= control target key start
LH: loop header
LB: loop body
LE: loop exit
PB: predicated region body
PF: predicated region fallthrough
CT: control target
= control target key end

     0   :  { %vm22_vm0 = vcmask 523264   ;;  %v443_v23 = vmov 0.0   ;;  %vm316_vm1 = vcmask 519168   ;;  %s574_s1 = inlined_call_operand.vmem [shape: bf16[256,64], index: 1, kind: input, shape index: {}]   ;;  %s575_s0 = inlined_call_operand.vmem [shape: bf16[40,256], index: 0, kind: input, shape index: {}]   ;;  %s576_s3 = inlined_call_operand.vmem [shape: bf16[40,64], index: 3, kind: input, shape index: {}]   ;;  %s577_s2 = inlined_call_operand.vmem [shape: f32[1,64], index: 2, kind: input, shape index: {}]   ;;  %s578_s4 = inlined_call_operand.vmem [shape: bf16[40,64], index: 4, kind: output, shape index: {}]  }
   0x1   :  { %v419_v0 = vld [vmem:[%s574_s1 + $0x78] sm:$0xff]   ;;  %v421_v2 = vld [vmem:[%s574_s1 + $0x70] sm:$0xff]   ;;  %v423_v4 = vld [vmem:[%s574_s1 + $0x68] sm:$0xff]   ;;  %23 = vst.msk [vmem:[#allocation2] sm:$0xff] %vm22_vm0, %v443_v23 }
   0x2   :  { %v420_v1 = vld [vmem:[%s574_s1 + $0x38] sm:$0xff]   ;;  %368 = vmatprep.subr.bf16.mxu0 %v419_v0  ;;  %402 = vmatprep.subr.bf16.mxu1 %v419_v0  ;;  %v422_v3 = vld [vmem:[%s574_s1 + $0x30] sm:$0xff]   ;;  %v424_v5 = vld [vmem:[%s574_s1 + $0x28] sm:$0xff]   ;;  %24 = vst.msk [vmem:[#allocation2 + $0x8] sm:$0xff] %vm22_vm0, %v443_v23 }
   0x3   :  { %369 = vmatpush3.bf16.msra.mxu0 %v420_v1  ;;  %410 = vmatpush3.bf16.msra.mxu1 %v420_v1  ;;  %v425_v6 = vld [vmem:[%s574_s1 + $0x60] sm:$0xff]   ;;  %v427_v8 = vld [vmem:[%s574_s1 + $0x58] sm:$0xff]   ;;  %v429_v10 = vld [vmem:[%s574_s1 + $0x50] sm:$0xff]   ;;  %25 = vst.msk [vmem:[#allocation2 + $0x10] sm:$0xff] %vm22_vm0, %v443_v23 }
   0x4   :  { %370 = vmatprep.subr.bf16.mxu0 %v421_v2  ;;  %403 = vmatprep.subr.bf16.mxu1 %v421_v2  ;;  %v426_v7 = vld [vmem:[%s574_s1 + $0x20] sm:$0xff]   ;;  %v428_v9 = vld [vmem:[%s574_s1 + $0x18] sm:$0xff]   ;;  %v430_v13 = vld [vmem:[%s574_s1 + $0x10] sm:$0xff]   ;;  %26 = vst.msk [vmem:[#allocation2 + $0x18] sm:$0xff] %vm22_vm0, %v443_v23 }
   0x5   :  { %v437_v11 = vld [vmem:[%s575_s0 + $0x4] ss:$8 sps:$4 sm:$0xff]   ;;  %v440_v12 = vld [vmem:[%s575_s0 + $0x14] ss:$8 sps:$4 sm:$0xff]   ;;  %v435_v19 = vld [vmem:[%s575_s0] ss:$8 sps:$4 sm:$0xff]  }
   0x6   :  { %v431_v14 = vld [vmem:[%s574_s1 + $0x48] sm:$0xff]   ;;  %225 = vmatprep.mubr.bf16.mxu0 %v437_v11  ;;  %233 = vmatprep.mubr.bf16.mxu1 %v440_v12  ;;  %v433_v16 = vld [vmem:[%s574_s1 + $0x40] sm:$0xff]   ;;  %v438_v20 = vld [vmem:[%s575_s0 + $0x10] ss:$8 sps:$4 sm:$0xff]   ;;  %27 = vst.msk [vmem:[#allocation2 + $0x20] sm:$0xff] %vm22_vm0, %v443_v23 }
   0x7   :  { %371 = vmatpush3.bf16.msra.mxu0 %v422_v3  ;;  %411 = vmatpush3.bf16.msra.mxu1 %v422_v3  ;;  %v432_v15 = vld [vmem:[%s574_s1 + $0x8] sm:$0xff]   ;;  %v434_v17 = vld [vmem:[%s574_s1] sm:$0xff]   ;;  %v284_v2 = vld [vmem:[%s576_s3 + $0x10] sm:$0xf] }
   0x8   :  { %372 = vmatprep.subr.bf16.mxu0 %v423_v4  ;;  %404 = vmatprep.subr.bf16.mxu1 %v423_v4  ;;  %v32_v18 = vld [vmem:[%s575_s0 + $0x20] sm:$0xff]  ;;  %v367_v46 = vld [vmem:[%s576_s3 + $0x8] sm:$0xff]  }
   0x9   :  { %v331_v21 = vcombine.high %v32_v18, %v32_v18  ;;  %v330_v22 = vcombine.low %v32_v18, %v32_v18  ;;  %v33_v26 = vld [vmem:[#allocation2] sm:$0xff]  ;;  %v34_v36 = vld [vmem:[#allocation2 + $0x8] sm:$0xff]  ;;  %v365_v53 = vunpack.c.l.bf16 %v367_v46  ;;  %v366_v63 = vunpack.c.h.bf16 %v367_v46 }
   0xa   :  { %v35_v28 = vld [vmem:[#allocation2 + $0x10] sm:$0xff]  ;;  %v360_v45 = vld [vmem:[%s576_s3] sm:$0xff]  }
   0xb   :  { %373 = vmatpush3.bf16.msra.mxu0 %v424_v5  ;;  %412 = vmatpush3.bf16.msra.mxu1 %v424_v5  ;;  %v36_v38 = vld [vmem:[#allocation2 + $0x18] sm:$0xff]  ;;  %v348_v50 = vld [vmem:[%s577_s2] ss:$0 sm:$0xff]  ;;  %v361_v52 = vunpack.c.l.bf16 %v360_v45  ;;  %v362_v62 = vunpack.c.h.bf16 %v360_v45 }
   0xc   :  { %374 = vmatprep.subr.bf16.mxu0 %v425_v6  ;;  %405 = vmatprep.subr.bf16.mxu1 %v425_v6 }
   0xd   :  { %v37_v47 = vld [vmem:[#allocation2 + $0x20] sm:$0xff] }
   0xf   :  { %375 = vmatpush3.bf16.msra.mxu0 %v426_v7  ;;  %413 = vmatpush3.bf16.msra.mxu1 %v426_v7 }
  0x10   :  { %376 = vmatprep.subr.bf16.mxu0 %v427_v8  ;;  %406 = vmatprep.subr.bf16.mxu1 %v427_v8 }
  0x13   :  { %377 = vmatpush3.bf16.msra.mxu0 %v428_v9  ;;  %414 = vmatpush3.bf16.msra.mxu1 %v428_v9  ;;  %v289_v9 = vunpack.c.l.bf16 %v284_v2 }
  0x14   :  { %378 = vmatprep.subr.bf16.mxu0 %v429_v10  ;;  %407 = vmatprep.subr.bf16.mxu1 %v429_v10 }
  0x17   :  { %379 = vmatpush3.bf16.msra.mxu0 %v430_v13  ;;  %415 = vmatpush3.bf16.msra.mxu1 %v430_v13 }
  0x18   :  { %380 = vmatprep.subr.bf16.mxu0 %v431_v14  ;;  %408 = vmatprep.subr.bf16.mxu1 %v431_v14 }
  0x1b   :  { %381 = vmatpush3.bf16.msra.mxu0 %v432_v15  ;;  %416 = vmatpush3.bf16.msra.mxu1 %v432_v15 }
  0x1c   :  { %382 = vmatprep.subr.bf16.mxu0 %v433_v16  ;;  %409 = vmatprep.subr.bf16.mxu1 %v433_v16 }
  0x1f   :  { %383 = vmatpush3.bf16.msra.mxu0 %v434_v17  ;;  %417 = vmatpush3.bf16.msra.mxu1 %v434_v17 }
  0x22   :  { %226 = vmatmul.mubr.bf16.vlgmr.msra.gmra.mxu0 %v435_v19  ;;  %234 = vmatmul.mubr.bf16.vlgmr.msra.gmra.mxu1 %v438_v20 }
  0x23   :  { %241 = vmatprep.mubr.bf16.mxu1 %v331_v21 }
  0x2a   :  { %242 = vmatmul.mubr.bf16.gmra.mxu1 %v330_v22 }
  0xe2   :  { %v384_v24 = vpop.f32.mrf.mxu0  ;;  %v390_v25 = vpop.f32.mrf.mxu1 }
  0xe4   :  { %v385_v27 = vpop.f32.mrf.mxu0  ;;  %v391_v29 = vpop.f32.mrf.mxu1 }
  0xe5   :  { %v386_v30 = vadd.f32 %v385_v27, %v384_v24  ;;  %v392_v31 = vadd.f32 %v391_v29, %v390_v25 }
  0xe6   :  { %v387_v32 = vpop.f32.mrf.mxu0  ;;  %v393_v33 = vpop.f32.mrf.mxu1 }
  0xe7   :  { %v249_v34 = vadd.f32 %v386_v30, %v33_v26  ;;  %v251_v35 = vadd.f32 %v392_v31, %v35_v28 }
  0xe8   :  { %v388_v37 = vpop.f32.mrf.mxu0  ;;  %v394_v39 = vpop.f32.mrf.mxu1 }
  0xe9   :  { %255 = vst.msk [vmem:[#allocation2] sm:$0xff] %vm22_vm0, %v249_v34  ;;  %257 = vst.msk [vmem:[#allocation2 + $0x10] sm:$0xff] %vm22_vm0, %v251_v35  ;;  %v389_v40 = vadd.f32 %v388_v37, %v387_v32  ;;  %v395_v41 = vadd.f32 %v394_v39, %v393_v33 }
  0xea   :  { %v396_v42 = vpop.f32.mrf.mxu1 }
  0xeb   :  { %v250_v43 = vadd.f32 %v389_v40, %v34_v36  ;;  %v252_v44 = vadd.f32 %v395_v41, %v36_v38 }
  0xec   :  { %v397_v48 = vpop.f32.mrf.mxu1 }
  0xed   :  { %256 = vst.msk [vmem:[#allocation2 + $0x8] sm:$0xff] %vm22_vm0, %v250_v43  ;;  %258 = vst.msk [vmem:[#allocation2 + $0x18] sm:$0xff] %vm22_vm0, %v252_v44  ;;  %v398_v49 = vadd.f32 %v397_v48, %v396_v42 }
  0xee   :  { %v399_v51 = vpop.f32.mrf.mxu1 }
  0xef   :  { %v253_v54 = vadd.f32 %v398_v49, %v37_v47 }
  0xf0   :  { %v263_v55 = vld [vmem:[#allocation2] sm:$0xff]  ;;  %v265_v56 = vld [vmem:[#allocation2 + $0x10] sm:$0xff]  ;;  %v400_v57 = vpop.f32.mrf.mxu1 }
  0xf1   :  { %v275_v58 = vadd.f32 %v348_v50, %v263_v55  ;;  %v277_v59 = vadd.f32 %v348_v50, %v265_v56  ;;  %259 = vst.msk [vmem:[#allocation2 + $0x20] sm:$0xff] %vm22_vm0, %v253_v54 }
  0xf3   :  { %v290_v60 = vadd.f32 %v361_v52, %v275_v58  ;;  %v292_v61 = vadd.f32 %v365_v53, %v277_v59 }
  0xf4   :  { %v264_v0 = vld [vmem:[#allocation2 + $0x8] sm:$0xff]  ;;  %v266_v1 = vld [vmem:[#allocation2 + $0x18] sm:$0xff] }
  0xf5   :  { %v354_v3 = vpack.c.bf16 %v290_v60, %v290_v60  ;;  %v356_v4 = vpack.c.bf16 %v292_v61, %v292_v61  ;;  %v276_v5 = vadd.f32 %v348_v50, %v264_v0  ;;  %v278_v6 = vadd.f32 %v348_v50, %v266_v1 }
  0xf7   :  { %317 = vst.msk [vmem:[%s578_s4] sm:$0xf] %vm316_vm1, %v354_v3  ;;  %319 = vst.msk [vmem:[%s578_s4 + $0x8] sm:$0xf] %vm316_vm1, %v356_v4  ;;  %v291_v7 = vadd.f32 %v362_v62, %v276_v5  ;;  %v293_v8 = vadd.f32 %v366_v63, %v278_v6 }
  0xf8   :  { %v267_v10 = vld [vmem:[#allocation2 + $0x20] sm:$0xff] }
  0xf9   :  { %v355_v11 = vpack.c.bf16 %v291_v7, %v291_v7  ;;  %v357_v12 = vpack.c.bf16 %v293_v8, %v293_v8  ;;  %v279_v13 = vadd.f32 %v348_v50, %v267_v10 }
  0xfb   :  { %318 = vst.msk [vmem:[%s578_s4 + $0x4] sm:$0xf] %vm316_vm1, %v355_v11  ;;  %320 = vst.msk [vmem:[%s578_s4 + $0xc] sm:$0xf] %vm316_vm1, %v357_v12  ;;  %v294_v14 = vadd.f32 %v289_v9, %v279_v13 }
  0xfd   :  { %v358_v15 = vpack.c.bf16 %v294_v14, %v294_v14 }
  0xff   :  { %321 = vst.msk [vmem:[%s578_s4 + $0x10] sm:$0xf] %vm316_vm1, %v358_v15 }

// kernel: _lambda_.43
= control target key start
LH: loop header
LB: loop body
LE: loop exit
PB: predicated region body
PF: predicated region fallthrough
CT: control target
= control target key end

     0   :  { %vm26_vm0 = vcmask 523264   ;;  %v431_v40 = vmov 0   ;;  %v432_v47 = vmov 0.0   ;;  %vm355_vm1 = vcmask 1043456   ;;  %s585_s0 = inlined_call_operand.vmem [shape: bf16[40,64], index: 0, kind: input, shape index: {}]   ;;  %s586_s1 = inlined_call_operand.vmem [shape: bf16[64,192], index: 1, kind: input, shape index: {}]   ;;  %s587_s3 = inlined_call_operand.vmem [shape: f32[1,64], index: 3, kind: input, shape index: {}]   ;;  %s588_s4 = inlined_call_operand.vmem [shape: f32[1,64], index: 4, kind: input, shape index: {}]   ;;  %s589_s2 = inlined_call_operand.vmem [shape: f32[1,192], index: 2, kind: input, shape index: {}]   ;;  %s590_s5 = inlined_call_operand.vmem [shape: bf16[40,192], index: 5, kind: output, shape index: {}]  }
   0x1   :  { %v398_v0 = vld [vmem:[%s585_s0 + $0x8] sm:$0xff]   ;;  %v391_v1 = vld [vmem:[%s585_s0] sm:$0xff]   ;;  %v40_v5 = vld [vmem:[%s585_s0 + $0x10] sm:$0xf]  ;;  %249 = vmatprep.mubr.bf16.mxu1 %v431_v40  ;;  %239 = vmatprep.mubr.bf16.mxu0 %v431_v40  ;;  %27 = vst.msk [vmem:[#allocation2 + $0x8] sm:$0xff] %vm26_vm0, %v432_v47  ;;  %vm356_vm2 = vcmask 523268  }
   0x2   :  { %v396_v2 = vunpack.c.l.bf16 %v398_v0  ;;  %v397_v3 = vunpack.c.h.bf16 %v398_v0  ;;  %v392_v4 = vunpack.c.l.bf16 %v391_v1  ;;  %v393_v6 = vunpack.c.h.bf16 %v391_v1  ;;  %v409_v38 = vld [vmem:[%s586_s1 + $0x34] ss:$8 sps:$4 sm:$0xff]   ;;  %v411_v39 = vld [vmem:[%s586_s1 + $0x30] ss:$8 sps:$4 sm:$0xff]   ;;  %v412_v41 = vld [vmem:[%s586_s1 + $0x24] ss:$8 sps:$4 sm:$0xff]  }
   0x3   :  { %v45_v10 = vunpack.c.l.bf16 %v40_v5  ;;  %399 = vmatprep.subr.bf16.mxu1 %v409_v38  ;;  %215 = vmatprep.subr.bf16.mxu0 %v409_v38  ;;  %v414_v42 = vld [vmem:[%s586_s1 + $0x20] ss:$8 sps:$4 sm:$0xff]   ;;  %v415_v43 = vld [vmem:[%s586_s1 + $0x14] ss:$8 sps:$4 sm:$0xff]   ;;  %v417_v44 = vld [vmem:[%s586_s1 + $0x10] ss:$8 sps:$4 sm:$0xff]  }
   0x4   :  { %v53_v7 = vsel %vm26_vm0, %v396_v2, 0.0  ;;  %v47_v8 = vsel %vm26_vm0, %v392_v4, 0.0  ;;  %v56_v9 = vsel %vm26_vm0, %v397_v3, 0.0  ;;  %v50_v11 = vsel %vm26_vm0, %v393_v6, 0.0  ;;  %403 = vmatpush1.bf16.msra.mxu1 %v411_v39  ;;  %216 = vmatpush1.bf16.msra.mxu0 %v411_v39  ;;  %v418_v45 = vld [vmem:[%s586_s1 + $0x4] ss:$8 sps:$4 sm:$0xff]   ;;  %vm556_vm3 = vmor %vm356_vm2, %vm355_vm1 }
   0x5   :  { %54 = vadd.xlane.f32.xlu0 %v53_v7  ;;  %48 = vadd.xlane.f32.xlu1 %v47_v8  ;;  %v59_v12 = vsel %vm26_vm0, %v45_v10, 0.0  ;;  %v420_v46 = vld [vmem:[%s586_s1] ss:$8 sps:$4 sm:$0xff]   ;;  %29 = vst.msk [vmem:[#allocation2 + $0x18] sm:$0xff] %vm26_vm0, %v432_v47  ;;  %31 = vst.msk [vmem:[#allocation2 + $0x28] sm:$0xff] %vm26_vm0, %v432_v47 }
   0x6   :  { %400 = vmatprep.subr.bf16.mxu1 %v412_v41  ;;  %217 = vmatprep.subr.bf16.mxu0 %v412_v41  ;;  %33 = vst.msk [vmem:[#allocation2 + $0x38] sm:$0xff] %vm26_vm0, %v432_v47  ;;  %35 = vst.msk [vmem:[#allocation2 + $0x48] sm:$0xff] %vm26_vm0, %v432_v47  ;;  %v367_v1 = vld [vmem:[%s587_s3] ss:$0 sm:$0xff] }
   0x8   :  { %404 = vmatpush1.bf16.msra.mxu1 %v414_v42  ;;  %218 = vmatpush1.bf16.msra.mxu0 %v414_v42 }
   0x9   :  { %57 = vadd.xlane.f32.xlu0 %v56_v9  ;;  %51 = vadd.xlane.f32.xlu1 %v50_v11 }
   0xa   :  { %401 = vmatprep.subr.bf16.mxu1 %v415_v43  ;;  %219 = vmatprep.subr.bf16.mxu0 %v415_v43 }
   0xc   :  { %405 = vmatpush1.bf16.msra.mxu1 %v417_v44  ;;  %220 = vmatpush1.bf16.msra.mxu0 %v417_v44  ;;  %v143_v43 = vld [vmem:[#allocation2 + $0x18] sm:$0xff] }
   0xd   :  { %60 = vadd.xlane.f32.xlu0 %v59_v12  ;;  %402 = vmatprep.subr.bf16.mxu1 %v418_v45  ;;  %v149_v44 = vld [vmem:[#allocation2 + $0x48] sm:$0xff] }
   0xe   :  { %221 = vmatprep.subr.bf16.mxu0 %v418_v45 }
  0x10   :  { %406 = vmatpush1.bf16.msra.mxu1 %v420_v46  ;;  %222 = vmatpush1.bf16.msra.mxu0 %v420_v46 }
  0x8e   :  { %v55_v13 = vpop.xlane.xlu0 %54  ;;  %v49_v14 = vpop.xlane.xlu1 %48 }
  0x8f   :  { %v65_v15 = vmul.f32 0.015625, %v55_v13  ;;  %v63_v16 = vmul.f32 0.015625, %v49_v14 }
  0x91   :  { %v477_v17 = vsub.f32 %v396_v2, %v65_v15  ;;  %v479_v18 = vsub.f32 %v392_v4, %v63_v16 }
  0x92   :  { %v58_v19 = vpop.xlane.xlu0 %57  ;;  %v52_v20 = vpop.xlane.xlu1 %51 }
  0x93   :  { %v66_v21 = vmul.f32 0.015625, %v58_v19  ;;  %v75_v22 = vmul.f32 %v477_v17, %v477_v17  ;;  %v64_v23 = vmul.f32 0.015625, %v52_v20  ;;  %v73_v24 = vmul.f32 %v479_v18, %v479_v18 }
  0x95   :  { %v485_v25 = vsub.f32 %v397_v3, %v66_v21  ;;  %v84_v26 = vsel %vm26_vm0, %v75_v22, 0.0  ;;  %v488_v27 = vsub.f32 %v393_v6, %v64_v23  ;;  %v78_v31 = vsel %vm26_vm0, %v73_v24, 0.0  ;;  %v368_v6 = vld [vmem:[%s588_s4] ss:$0 sm:$0xff] }
  0x96   :  { %v61_v28 = vpop.xlane.xlu0 %60  ;;  %85 = vadd.xlane.f32.xlu1 %v84_v26  ;;  %v303_v24 = vlaneseq  ;;  %v145_v26 = vld [vmem:[#allocation2 + $0x28] sm:$0xff] }
  0x97   :  { %v67_v29 = vmul.f32 0.015625, %v61_v28  ;;  %v76_v30 = vmul.f32 %v485_v25, %v485_v25  ;;  %v74_v32 = vmul.f32 %v488_v27, %v488_v27 }
  0x99   :  { %v495_v33 = vsub.f32 %v45_v10, %v67_v29  ;;  %v87_v34 = vsel %vm26_vm0, %v76_v30, 0.0  ;;  %v81_v36 = vsel %vm26_vm0, %v74_v32, 0.0  ;;  %v141_v32 = vld [vmem:[#allocation2 + $0x8] sm:$0xff] }
  0x9a   :  { %88 = vadd.xlane.f32.xlu0 %v87_v34  ;;  %79 = vadd.xlane.f32.xlu1 %v78_v31 }
  0x9b   :  { %v77_v35 = vmul.f32 %v495_v33, %v495_v33 }
  0x9d   :  { %v90_v37 = vsel %vm26_vm0, %v77_v35, 0.0 }
  0x9e   :  { %91 = vadd.xlane.f32.xlu1 %v90_v37  ;;  %82 = vadd.xlane.f32.xlu0 %v81_v36  ;;  %v301_v36 = vld [vmem:[%s589_s2] sm:$0x3] }
 0x11f   :  { %v86_v48 = vpop.xlane.xlu1 %85 }
 0x120   :  { %v95_v49 = vmul.f32 0.015625, %v86_v48 }
 0x122   :  { %v100_v50 = vadd.f32 1e-06, %v95_v49 }
 0x123   :  { %v89_v51 = vpop.xlane.xlu0 %88  ;;  %v80_v52 = vpop.xlane.xlu1 %79 }
 0x124   :  { %421 = vrsqrt.f32 %v100_v50  ;;  %v96_v53 = vmul.f32 0.015625, %v89_v51  ;;  %v93_v54 = vmul.f32 0.015625, %v80_v52 }
 0x126   :  { %v101_v55 = vadd.f32 1e-06, %v96_v53  ;;  %v98_v56 = vadd.f32 1e-06, %v93_v54 }
 0x127   :  { %v83_v57 = vpop.xlane.xlu0 %82  ;;  %v92_v58 = vpop.xlane.xlu1 %91 }
 0x128   :  { %423 = vrsqrt.f32 %v101_v55  ;;  %v94_v59 = vmul.f32 0.015625, %v83_v57  ;;  %v97_v60 = vmul.f32 0.015625, %v92_v58 }
 0x129   :  { %425 = vrsqrt.f32 %v98_v56 }
 0x12a   :  { %v99_v61 = vadd.f32 1e-06, %v94_v59  ;;  %v102_v62 = vadd.f32 1e-06, %v97_v60 }
 0x12c   :  { %427 = vrsqrt.f32 %v99_v61 }
 0x12d   :  { %429 = vrsqrt.f32 %v102_v62 }
 0x131   :  { %v422_v63 = vpop.eup %421 }
 0x132   :  { %v110_v0 = vmul.f32 %v422_v63, %v477_v17 }
 0x134   :  { %v122_v5 = vmul.f32 %v367_v1, %v110_v0 }
 0x135   :  { %v424_v2 = vpop.eup %423 }
 0x136   :  { %v426_v3 = vpop.eup %425  ;;  %v111_v4 = vmul.f32 %v424_v2, %v485_v25  ;;  %v134_v11 = vadd.f32 %v368_v6, %v122_v5 }
 0x137   :  { %v108_v7 = vmul.f32 %v426_v3, %v479_v18 }
 0x138   :  { %v123_v8 = vmul.f32 %v367_v1, %v111_v4 }
 0x139   :  { %v428_v9 = vpop.eup %427  ;;  %v120_v14 = vmul.f32 %v367_v1, %v108_v7 }
 0x13a   :  { %v430_v10 = vpop.eup %429  ;;  %v135_v12 = vadd.f32 %v368_v6, %v123_v8  ;;  %v109_v13 = vmul.f32 %v428_v9, %v488_v27  ;;  %v304_v27 = vshrl.u32 %v303_v24, 7 }
 0x13b   :  { %v112_v15 = vmul.f32 %v430_v10, %v495_v33  ;;  %v132_v20 = vadd.f32 %v368_v6, %v120_v14  ;;  %v147_v33 = vld [vmem:[#allocation2 + $0x38] sm:$0xff] }
 0x13c   :  { %v138_v16 = vpack.c.bf16 %v135_v12, %v134_v11  ;;  %v121_v17 = vmul.f32 %v367_v1, %v109_v13  ;;  %v305_v34 = vsub.s32 0, %v304_v27  ;;  %v309_v35 = vsub.s32 1, %v304_v27 }
 0x13d   :  { %v124_v19 = vmul.f32 %v367_v1, %v112_v15 }
 0x13e   :  { %378 = vmatmul.mubr.msk.bf16.vlgmr.msra.gmra.mxu1 %vm26_vm0, %v138_v16  ;;  %v133_v21 = vadd.f32 %v368_v6, %v121_v17  ;;  %v306_v45 = vrot.slane %v301_v36, %v305_v34  ;;  %v310_v46 = vrot.slane %v301_v36, %v309_v35 }
 0x13f   :  { %259 = vmatprep.mubr.bf16.mxu1 %v431_v40  ;;  %v136_v22 = vadd.f32 %v368_v6, %v124_v19 }
 0x140   :  { %v137_v18 = vpack.c.bf16 %v133_v21, %v132_v20 }
 0x141   :  { %v139_v23 = vpack.c.bf16 %v136_v22, %v136_v22 }
 0x142   :  { %377 = vmatmul.mubr.msk.bf16.vlgmr.msra.gmra.mxu0 %vm26_vm0, %v137_v18 }
 0x146   :  { %379 = vmatmul.mubr.msk.bf16.gmra.mxu1 %vm26_vm0, %v139_v23 }
 0x1fe   :  { %v251_v25 = vpop.f32.mrf.mxu1 }
 0x1ff   :  { %v317_v53 = vadd.f32 %v306_v45, %v251_v25 }
 0x200   :  { %v253_v28 = vpop.f32.mrf.mxu1 }
 0x201   :  { %v273_v29 = vadd.f32 %v253_v28, %v145_v26 }
 0x202   :  { %v241_v30 = vpop.f32.mrf.mxu0  ;;  %v255_v31 = vpop.f32.mrf.mxu1 }
 0x203   :  { %283 = vst.msk [vmem:[#allocation2 + $0x28] sm:$0xff] %vm26_vm0, %v273_v29  ;;  %v313_v60 = vadd.f32 %v306_v45, %v241_v30  ;;  %v319_v61 = vadd.f32 %v306_v45, %v255_v31 }
 0x204   :  { %v243_v37 = vpop.f32.mrf.mxu0  ;;  %v257_v38 = vpop.f32.mrf.mxu1 }
 0x205   :  { %v269_v39 = vadd.f32 %v243_v37, %v141_v32  ;;  %v275_v40 = vadd.f32 %v257_v38, %v147_v33 }
 0x206   :  { %v245_v41 = vpop.f32.mrf.mxu0  ;;  %v261_v42 = vpop.f32.mrf.mxu1 }
 0x207   :  { %279 = vst.msk [vmem:[#allocation2 + $0x8] sm:$0xff] %vm26_vm0, %v269_v39  ;;  %285 = vst.msk [vmem:[#allocation2 + $0x38] sm:$0xff] %vm26_vm0, %v275_v40  ;;  %v315_v4 = vadd.f32 %v306_v45, %v245_v41  ;;  %v321_v5 = vadd.f32 %v306_v45, %v261_v42 }
 0x208   :  { %v247_v47 = vpop.f32.mrf.mxu0  ;;  %v263_v48 = vpop.f32.mrf.mxu1 }
 0x209   :  { %v271_v49 = vadd.f32 %v247_v47, %v143_v43  ;;  %v277_v50 = vadd.f32 %v263_v48, %v149_v44 }
 0x20a   :  { %v296_v51 = vld [vmem:[#allocation2 + $0x28] sm:$0xff]  ;;  %v265_v52 = vpop.f32.mrf.mxu1 }
 0x20b   :  { %v318_v54 = vadd.f32 %v310_v46, %v296_v51  ;;  %281 = vst.msk [vmem:[#allocation2 + $0x18] sm:$0xff] %vm26_vm0, %v271_v49  ;;  %287 = vst.msk [vmem:[#allocation2 + $0x48] sm:$0xff] %vm26_vm0, %v277_v50 }
 0x20c   :  { %v266_v56 = vpop.f32.mrf.mxu1 }
 0x20d   :  { %v387_v57 = vpack.c.bf16 %v318_v54, %v317_v53 }
 0x20e   :  { %v292_v58 = vld [vmem:[#allocation2 + $0x8] sm:$0xff]  ;;  %v298_v59 = vld [vmem:[#allocation2 + $0x38] sm:$0xff] }
 0x20f   :  { %360 = vst.msk [vmem:[%s590_s5 + $0x10] sm:$0xff] %vm556_vm3, %v387_v57  ;;  %v314_v62 = vadd.f32 %v310_v46, %v292_v58  ;;  %v320_v63 = vadd.f32 %v310_v46, %v298_v59 }
 0x211   :  { %v385_v0 = vpack.c.bf16 %v314_v62, %v313_v60  ;;  %v388_v1 = vpack.c.bf16 %v320_v63, %v319_v61 }
 0x212   :  { %v294_v2 = vld [vmem:[#allocation2 + $0x18] sm:$0xff]  ;;  %v300_v3 = vld [vmem:[#allocation2 + $0x48] sm:$0xff] }
 0x213   :  { %358 = vst.msk [vmem:[%s590_s5] sm:$0xff] %vm556_vm3, %v385_v0  ;;  %361 = vst.msk [vmem:[%s590_s5 + $0x18] sm:$0xff] %vm556_vm3, %v388_v1  ;;  %v316_v6 = vadd.f32 %v310_v46, %v294_v2  ;;  %v322_v7 = vadd.f32 %v310_v46, %v300_v3 }
 0x215   :  { %v386_v8 = vpack.c.bf16 %v316_v6, %v315_v4  ;;  %v389_v9 = vpack.c.bf16 %v322_v7, %v321_v5 }
 0x217   :  { %359 = vst.msk [vmem:[%s590_s5 + $0x8] sm:$0xff] %vm556_vm3, %v386_v8  ;;  %362 = vst.msk [vmem:[%s590_s5 + $0x20] sm:$0xff] %vm556_vm3, %v389_v9 }

// kernel: _lambda_.44
= control target key start
LH: loop header
LB: loop body
LE: loop exit
PB: predicated region body
PF: predicated region fallthrough
CT: control target
= control target key end

     0   :  { %s852_s12 = smov 0   ;;  %s940_s0 = inlined_call_operand.vmem [shape: bf16[2,17,64], index: 0, kind: input, shape index: {}]   ;;  %s941_s1 = inlined_call_operand.vmem [shape: bf16[2,17,64], index: 1, kind: input, shape index: {}]   ;;  %s942_s2 = inlined_call_operand.vmem [shape: bf16[2,17,64], index: 2, kind: input, shape index: {}]   ;;  %s943_s3 = inlined_call_operand.vmem [shape: bf16[2,17,64], index: 3, kind: output, shape index: {}]  }
   0x1 LB: > { %s691_s13 = sadd.s32 4294967295, %s827_s12   ;;  %p695_p0 = scmp.ge.s32.totalorder %s827_s12, 1  ;;  %s827_s12 = sphi %s852_s12, %s13_s12  }
   0x2   : > { %p157_p1 = scmp.lt.s32.totalorder %s827_s12, 3 }
   0x4   : > { %p158_p2 = pnand %p695_p0, %p157_p1 }
   0x5   : > { %p191_p3 = scmp.lt.s32.totalorder (!%p158_p2), %s691_s13, 1  ;;  %s830_s24 = smov (!%p158_p2), 96  }
   0x6   : > { %161 = sbr.rel (%p158_p2) target bundleno = 1402 (0x57a), region = 32  ;;  %s831_s25 = smov (!%p158_p2), 32  }
   0xb   : > { %s945_s13 = smov (!%p191_p3, %s691_s13), 1  ;;  %vm237_vm0 = vcmask 261120   ;;  %vm308_vm1 = vcmask 131072   ;;  %vm301_vm2 = vcmask 138240   ;;  %vm353_vm3 = vcmask 1040384  }
   0xc   : > { %s860_s14 = smul.u32 12, %s945_s13  ;;  %v829_v32 = vmov 0   ;;  %vm606_vm4 = vcmask 516096   ;;  %vm607_vm5 = vsmask.f32 256  ;;  %vm603_vm6 = vcmask 519168  }
   0xd   : > { %v888_v33 = vsel %vm353_vm3, 65535, %v829_v32  ;;  %vm608_vm7 = vmand %vm606_vm4, %vm607_vm5 }
   0xe   : > { %s200_s17 = scalar_lea.vmem %s941_s1, %s860_s14  ;;  %s195_s20 = scalar_lea.vmem %s940_s0, %s860_s14 }
   0xf   : > { %v791_v0 = vld [vmem:[%s200_s17 + $0x8] ss:$0 sps:$4 sm:$0x11]   ;;  %v792_v1 = vld [vmem:[%s200_s17] sm:$0xff]   ;;  %s205_s23 = scalar_lea.vmem %s942_s2, %s860_s14  ;;  %s210_s28 = scalar_lea.vmem %s943_s3, %s860_s14 }
  0x10   : > { %770 = vmatprep.subr.msk.bf16.mxu0 %vm237_vm0, %v791_v0  ;;  %v248_v2 = vsel %vm237_vm0, %v791_v0, 0  ;;  %v793_v3 = vld [vmem:[%s195_s20] sm:$0xff]   ;;  %v245_v4 = vsel %vm237_vm0, %v792_v1, 0  ;;  %v794_v5 = vld [vmem:[%s195_s20 + $0x8] ss:$0 sps:$4 sm:$0x11]  }
  0x11   : > { %739 = vmatpush3.bf16.xpose.msra.mxu0 %v248_v2  ;;  %742 = vmatprep.mubr.msk.bf16.mxu0 %vm237_vm0, %v793_v3  ;;  %v886_v31 = vld [vmem:[%s205_s23 + $0x8] ss:$0 sps:$4 sm:$0x11]   ;;  %v892_v35 = vld [vmem:[%s205_s23] sm:$0xff]  }
  0x12   : > { %771 = vmatprep.subr.msk.bf16.mxu0 %vm237_vm0, %v792_v1  ;;  %v357_v34 = vand.u32 %v886_v31, %v888_v33 }
  0x14   : > { %746 = vmatprep.subr.bf16.mxu1 %v357_v34 }
  0x15   : > { %747 = vmatpush3.bf16.msra.mxu1 %v357_v34 }
  0x16   : > { %748 = vmatprep.subr.bf16.mxu1 %v892_v35 }
  0x19   : > { %741 = vmatpush3.bf16.xpose.msra.mxu0 %v245_v4  ;;  %749 = vmatpush3.bf16.msra.mxu1 %v892_v35 }
  0x20   : > { %743 = vmatmul.mubr.msk.bf16.vlgmr.msra.gmra.mxu0 %vm237_vm0, %v794_v5 }
  0xe0   : > { %v744_v6 = vpop.f32.mrf.mxu0 }
  0xe1   : > { %v300_v7 = vmul.f32 0.17677669, %v744_v6 }
  0xe2   : > { %v284_v8 = vpop.f32.mrf.mxu0 }
  0xe3   : > { %v298_v9 = vmul.f32 0.17677669, %v284_v8  ;;  %v309_v10 = vsel %vm308_vm1, %v300_v7, -inf }
  0xe4   : > { %310 = vmax.xlane.f32.xlu1 %v309_v10  ;;  %v745_v11 = vpop.f32.mrf.mxu0 }
  0xe5   : > { %v302_v12 = vsel %vm301_vm2, %v298_v9, -inf }
  0xe6   : > { %303 = vmax.xlane.f32.xlu0 %v302_v12  ;;  %v287_v13 = vpop.f32.mrf.mxu0 }
  0xe7   : > { %v299_v14 = vmul.f32 0.17677669, %v287_v13 }
  0xe9   : > { %v305_v15 = vsel %vm301_vm2, %v299_v14, -inf }
  0xea   : > { %306 = vmax.xlane.f32.xlu0 %v305_v15 }
 0x16d   : > { %v311_v16 = vpop.xlane.xlu1 %310 }
 0x16e   : > { %v314_v17 = vsub.f32 %v300_v7, %v311_v16 }
 0x16f   : > { %v304_v18 = vpop.xlane.xlu0 %303 }
 0x170   : > { %v312_v19 = vsub.f32 %v298_v9, %v304_v18  ;;  %v319_v20 = vmul.f32 1.442695, %v314_v17 }
 0x172   : > { %v315_v21 = vmul.f32 1.442695, %v312_v19 }
 0x173   : > { %v307_v22 = vpop.xlane.xlu0 %306 }
 0x174   : > { %797 = vpow2.f32 %v315_v21  ;;  %v313_v23 = vsub.f32 %v299_v14, %v307_v22 }
 0x175   : > { %799 = vpow2.f32 %v319_v20 }
 0x176   : > { %v317_v24 = vmul.f32 1.442695, %v313_v23 }
 0x178   : > { %801 = vpow2.f32 %v317_v24 }
 0x181   : > { %v798_v25 = vpop.eup %797 }
 0x182   : > { %v321_v26 = vsel %vm301_vm2, %v798_v25, 0.0  ;;  %v800_v27 = vpop.eup %799 }
 0x183   : > { %322 = vadd.xlane.f32.xlu1 %v321_v26  ;;  %v327_v29 = vsel %vm308_vm1, %v800_v27, 0.0 }
 0x185   : > { %v802_v28 = vpop.eup %801 }
 0x186   : > { %v324_v30 = vsel %vm301_vm2, %v802_v28, 0.0 }
 0x187   : > { %328 = vadd.xlane.f32.xlu1 %v327_v29  ;;  %325 = vadd.xlane.f32.xlu0 %v324_v30 }
 0x198   : > { %411 = vrot.lane.b32.xlu1 %v792_v1, %s830_s24 }
 0x19c   : > { %407 = vrot.lane.b32.xlu1 %v793_v3, %s830_s24 }
 0x19d   : > { %413 = vrot.lane.b32.xlu0 %v791_v0, %s830_s24 }
 0x1a0   : > { %409 = vrot.lane.b32.xlu1 %v794_v5, %s830_s24 }
 0x20c   : > { %v323_v36 = vpop.xlane.xlu1 %322 }
 0x20d   : > { %803 = vrcp.f32 %v323_v36 }
 0x210   : > { %v329_v37 = vpop.xlane.xlu1 %328  ;;  %v326_v38 = vpop.xlane.xlu0 %325 }
 0x211   : > { %805 = vrcp.f32 %v329_v37 }
 0x212   : > { %807 = vrcp.f32 %v326_v38 }
 0x214   : > { %v414_v39 = vpop.permute.xlu0 %413  ;;  %v412_v41 = vpop.permute.xlu1 %411 }
 0x215   : > { %772 = vmatprep.subr.msk.bf16.mxu1 %vm237_vm0, %v414_v39  ;;  %v425_v49 = vsel %vm237_vm0, %v414_v39, 0  ;;  %v422_v51 = vsel %vm237_vm0, %v412_v41, 0 }
 0x218   : > { %v408_v50 = vpop.permute.xlu1 %407 }
 0x21a   : > { %v804_v40 = vpop.eup %803 }
 0x21b   : > { %v333_v45 = vmul.f32 %v804_v40, %v798_v25 }
 0x21c   : > { %v410_v52 = vpop.permute.xlu1 %409 }
 0x21e   : > { %v806_v42 = vpop.eup %805 }
 0x21f   : > { %v808_v43 = vpop.eup %807  ;;  %v335_v44 = vmul.f32 %v806_v42, %v800_v27  ;;  %v609_v42 = vld [vmem:[%s210_s28 + $0x8] sm:$0x1] }
 0x220   : > { %v334_v46 = vmul.f32 %v808_v43, %v802_v28 }
 0x221   : > { %v337_v47 = vpack.c.bf16 %v335_v44, %v335_v44 }
 0x222   : > { %v336_v48 = vpack.c.bf16 %v334_v46, %v333_v45 }
 0x224   : > { %750 = vmatprep.mubr.msk.bf16.mxu1 %vm301_vm2, %v336_v48 }
 0x225   : > { %751 = vmatmul.mubr.msk.bf16.vlgmr.msra.gmra.mxu1 %vm301_vm2, %v337_v47 }
 0x226   : > { %755 = vmatpush3.bf16.xpose.msra.mxu1 %v425_v49  ;;  %758 = vmatprep.mubr.msk.bf16.mxu1 %vm237_vm0, %v408_v50 }
 0x227   : > { %773 = vmatprep.subr.msk.bf16.mxu1 %vm237_vm0, %v412_v41 }
 0x22e   : > { %757 = vmatpush3.bf16.xpose.msra.mxu1 %v422_v51 }
 0x235   : > { %759 = vmatmul.mubr.msk.bf16.vlgmr.msra.gmra.mxu1 %vm237_vm0, %v410_v52 }
 0x2e5   : > { %v908_v53 = vpop.f32.mrf.mxu1 }
 0x2e7   : > { %v910_v54 = vpop.f32.mrf.mxu1 }
 0x2e9   : > { %v753_v55 = vpop.f32.mrf.mxu1 }
 0x2eb   : > { %v912_v56 = vpop.f32.mrf.mxu1 }
 0x2f5   : > { %v760_v57 = vpop.f32.mrf.mxu1 }
 0x2f6   : > { %v477_v61 = vmul.f32 0.17677669, %v760_v57 }
 0x2f7   : > { %v461_v58 = vpop.f32.mrf.mxu1 }
 0x2f8   : > { %v475_v59 = vmul.f32 0.17677669, %v461_v58  ;;  %v484_v1 = vsel %vm308_vm1, %v477_v61, -inf }
 0x2f9   : > { %v761_v60 = vpop.f32.mrf.mxu1 }
 0x2fa   : > { %v478_v62 = vsel %vm301_vm2, %v475_v59, -inf }
 0x2fb   : > { %479 = vmax.xlane.f32.xlu0 %v478_v62  ;;  %v464_v63 = vpop.f32.mrf.mxu1 }
 0x2fc   : > { %v476_v0 = vmul.f32 0.17677669, %v464_v63 }
 0x2fe   : > { %v481_v2 = vsel %vm301_vm2, %v476_v0, -inf }
 0x2ff   : > { %485 = vmax.xlane.f32.xlu0 %v484_v1  ;;  %482 = vmax.xlane.f32.xlu1 %v481_v2 }
 0x384   : > { %v480_v3 = vpop.xlane.xlu0 %479 }
 0x385   : > { %v487_v4 = vsub.f32 %v475_v59, %v480_v3 }
 0x387   : > { %v490_v5 = vmul.f32 1.442695, %v487_v4 }
 0x388   : > { %v486_v6 = vpop.xlane.xlu0 %485  ;;  %v483_v7 = vpop.xlane.xlu1 %482 }
 0x389   : > { %809 = vpow2.f32 %v490_v5  ;;  %v489_v8 = vsub.f32 %v477_v61, %v486_v6  ;;  %v488_v9 = vsub.f32 %v476_v0, %v483_v7 }
 0x38b   : > { %v494_v10 = vmul.f32 1.442695, %v489_v8  ;;  %v492_v11 = vmul.f32 1.442695, %v488_v9 }
 0x38d   : > { %811 = vpow2.f32 %v494_v10 }
 0x38e   : > { %813 = vpow2.f32 %v492_v11 }
 0x396   : > { %v810_v12 = vpop.eup %809 }
 0x397   : > { %v496_v13 = vsel %vm301_vm2, %v810_v12, 0.0 }
 0x398   : > { %497 = vadd.xlane.f32.xlu0 %v496_v13 }
 0x39a   : > { %v812_v14 = vpop.eup %811 }
 0x39b   : > { %v814_v15 = vpop.eup %813  ;;  %v502_v16 = vsel %vm308_vm1, %v812_v14, 0.0 }
 0x39c   : > { %503 = vadd.xlane.f32.xlu1 %v502_v16  ;;  %v499_v17 = vsel %vm301_vm2, %v814_v15, 0.0 }
 0x39d   : > { %500 = vadd.xlane.f32.xlu0 %v499_v17 }
 0x3ad   : > { %513 = vrot.lane.b32.xlu1 %v892_v35, %s830_s24 }
 0x3b3   : > { %515 = vrot.lane.b32.xlu0 %v886_v31, %s830_s24 }
 0x421   : > { %v498_v18 = vpop.xlane.xlu0 %497 }
 0x422   : > { %815 = vrcp.f32 %v498_v18 }
 0x425   : > { %v504_v19 = vpop.xlane.xlu1 %503 }
 0x426   : > { %v501_v20 = vpop.xlane.xlu0 %500  ;;  %817 = vrcp.f32 %v504_v19 }
 0x427   : > { %819 = vrcp.f32 %v501_v20 }
 0x429   : > { %v514_v23 = vpop.permute.xlu1 %513 }
 0x42a   : > { %v516_v21 = vpop.permute.xlu0 %515 }
 0x42b   : > { %v525_v22 = vand.u32 %v516_v21, %v888_v33 }
 0x42d   : > { %762 = vmatprep.subr.bf16.mxu0 %v525_v22 }
 0x42e   : > { %763 = vmatpush3.bf16.msra.mxu0 %v525_v22 }
 0x42f   : > { %764 = vmatprep.subr.bf16.mxu0 %v514_v23  ;;  %v816_v24 = vpop.eup %815 }
 0x430   : > { %v508_v28 = vmul.f32 %v816_v24, %v810_v12 }
 0x432   : > { %765 = vmatpush3.bf16.msra.mxu0 %v514_v23 }
 0x433   : > { %v818_v25 = vpop.eup %817 }
 0x434   : > { %v820_v26 = vpop.eup %819  ;;  %v510_v27 = vmul.f32 %v818_v25, %v812_v14 }
 0x435   : > { %v509_v29 = vmul.f32 %v820_v26, %v814_v15 }
 0x436   : > { %v512_v30 = vpack.c.bf16 %v510_v27, %v510_v27 }
 0x437   : > { %v511_v31 = vpack.c.bf16 %v509_v29, %v508_v28 }
 0x439   : > { %766 = vmatprep.mubr.msk.bf16.mxu0 %vm301_vm2, %v511_v31 }
 0x43a   : > { %767 = vmatmul.mubr.msk.bf16.vlgmr.msra.gmra.mxu0 %vm301_vm2, %v512_v30 }
 0x4fa   : > { %v768_v32 = vpop.f32.mrf.mxu0 }
 0x4fc   : > { %v561_v33 = vpop.f32.mrf.mxu0 }
 0x4fd   : > { %v786_v34 = vpack.i.bf16 %v561_v33, %v768_v32 }
 0x4fe   : > { %v769_v35 = vpop.f32.mrf.mxu0 }
 0x4ff   : > { %787 = vrot.lane.b32.xlu1 %v786_v34, %s831_s25 }
 0x500   : > { %v564_v36 = vpop.f32.mrf.mxu0 }
 0x503   : > { %580 = vrot.lane.b32.xlu1 %v564_v36, %s831_s25 }
 0x571   : > { %v788_v37 = vpop.permute.xlu1 %787 }
 0x572   : > { %v790_v38 = vunpack.i.h.bf16 %v788_v37  ;;  %v789_v39 = vunpack.i.l.bf16 %v788_v37 }
 0x574   : > { %v587_v40 = vsel %vm237_vm0, %v910_v54, %v790_v38  ;;  %v589_v41 = vsel %vm237_vm0, %v908_v53, %v789_v39 }
 0x575   : > { %v719_v43 = vpack.c.bf16 %v587_v40, %v587_v40  ;;  %v721_v44 = vpack.c.bf16 %v589_v41, %v589_v41  ;;  %v581_v45 = vpop.permute.xlu1 %580 }
 0x576   : > { %v588_v46 = vsel %vm237_vm0, %v912_v56, %v581_v45 }
 0x577   : > { %604 = vst.msk [vmem:[%s210_s28] sm:$0xf] %vm603_vm6, %v719_v43  ;;  %v610_v47 = vsel %vm608_vm7, %v721_v44, %v609_v42  ;;  %v720_v48 = vpack.c.bf16 %v588_v46, %v588_v46 }
 0x578   : > { %611 = vst [vmem:[%s210_s28 + $0x8] sm:$0x1] %v610_v47 }
 0x579   : > { %605 = vst.msk [vmem:[%s210_s28 + $0x4] sm:$0xf] %vm603_vm6, %v720_v48 }
 0x57a PF: > { %s13_s12 = sadd.s32 1, %s827_s12  }
 0x57b   : > { %p10_p4 = scmp.ge.s32.totalorder %s13_s12, 4  }
 0x57d   :  { %12 = sbr.rel (!%p10_p4) target bundleno = 1 (0x1), region = 68 }

// kernel: _lambda_.53
= control target key start
LH: loop header
LB: loop body
LE: loop exit
PB: predicated region body
PF: predicated region fallthrough
CT: control target
= control target key end

     0   :  { %vm31_vm0 = vcmask 519168   ;;  %s431_s0 = inlined_call_operand.vmem [shape: bf16[8,4,64], index: 0, kind: input, shape index: {}]   ;;  %s432_s1 = inlined_call_operand.vmem [shape: f32[1,64], index: 1, kind: input, shape index: {}]   ;;  %s433_s2 = inlined_call_operand.vmem [shape: f32[1,64], index: 2, kind: input, shape index: {}]   ;;  %s434_s3 = inlined_call_operand.hbm [shape: f32[8,64], index: 3, kind: output, shape index: {}]  }
   0x1   :  { %v15_v0 = vld [vmem:[%s431_s0] sm:$0x3]  ;;  %v17_v1 = vld [vmem:[%s431_s0 + $0x4] sm:$0x3]  ;;  %v16_v4 = vld [vmem:[%s431_s0 + $0x2] sm:$0x3] }
   0x2   :  { %v23_v2 = vunpack.c.l.bf16 %v15_v0  ;;  %v25_v3 = vunpack.c.l.bf16 %v17_v1  ;;  %v18_v5 = vld [vmem:[%s431_s0 + $0x6] sm:$0x3]  ;;  %v24_v6 = vunpack.c.l.bf16 %v16_v4  ;;  %v19_v8 = vld [vmem:[%s431_s0 + $0x8] sm:$0x3]  ;;  %v20_v9 = vld [vmem:[%s431_s0 + $0xa] sm:$0x3] }
   0x3   :  { %v26_v7 = vunpack.c.l.bf16 %v18_v5 }
   0x4   :  { %v32_v10 = vsel %vm31_vm0, %v23_v2, 0.0  ;;  %v38_v11 = vsel %vm31_vm0, %v25_v3, 0.0 }
   0x5   :  { %8 = vsyncpa [#allocation3], 0  ;;  %33 = vadd.xlane.f32.xlu0 %v32_v10  ;;  %39 = vadd.xlane.f32.xlu1 %v38_v11  ;;  %v35_v12 = vsel %vm31_vm0, %v24_v6, 0.0  ;;  %v41_v13 = vsel %vm31_vm0, %v26_v7, 0.0  ;;  %v27_v14 = vunpack.c.l.bf16 %v19_v8  ;;  %v28_v15 = vunpack.c.l.bf16 %v20_v9  ;;  %v21_v16 = vld [vmem:[%s431_s0 + $0xc] sm:$0x3] }
   0x6   :  { %v22_v17 = vld [vmem:[%s431_s0 + $0xe] sm:$0x3]  ;;  %v29_v20 = vunpack.c.l.bf16 %v21_v16  ;;  %vm240_vm1 = vcmask 1041409   ;;  %vm242_vm2 = vcmask 1042434   ;;  %vm244_vm3 = vcmask 1043459  }
   0x7   :  { %v44_v18 = vsel %vm31_vm0, %v27_v14, 0.0  ;;  %v47_v19 = vsel %vm31_vm0, %v28_v15, 0.0  ;;  %v30_v21 = vunpack.c.l.bf16 %v22_v17  ;;  %vm246_vm4 = vcmask 1044484  }
   0x8   :  { %v50_v22 = vsel %vm31_vm0, %v29_v20, 0.0  ;;  %vm248_vm5 = vcmask 1045509   ;;  %vm250_vm6 = vcmask 1046534   ;;  %vm252_vm7 = vcmask 1047559  }
   0x9   :  { %36 = vadd.xlane.f32.xlu0 %v35_v12  ;;  %42 = vadd.xlane.f32.xlu1 %v41_v13  ;;  %v53_v23 = vsel %vm31_vm0, %v30_v21, 0.0  ;;  %vm255_vm8 = vcmask 523264  }
   0xd   :  { %45 = vadd.xlane.f32.xlu0 %v44_v18  ;;  %48 = vadd.xlane.f32.xlu1 %v47_v19 }
  0x11   :  { %51 = vadd.xlane.f32.xlu0 %v50_v22  ;;  %54 = vadd.xlane.f32.xlu1 %v53_v23 }
  0x8e   :  { %v34_v24 = vpop.xlane.xlu0 %33  ;;  %v40_v25 = vpop.xlane.xlu1 %39 }
  0x8f   :  { %v57_v26 = vmul.f32 0.015625, %v34_v24  ;;  %v59_v27 = vmul.f32 0.015625, %v40_v25  ;;  %v271_v24 = vld [vmem:[%s432_s1] ss:$0 sm:$0xff]  ;;  %s312_s1 = smov [#allocation2]  }
  0x91   :  { %v365_v28 = vsub.f32 %v23_v2, %v57_v26  ;;  %v367_v29 = vsub.f32 %v25_v3, %v59_v27  ;;  %v272_v27 = vld [vmem:[%s433_s2] ss:$0 sm:$0xff]  ;;  %s263_s2 = sshll.u32 %s312_s1, 4  ;;  %s264_s2 = int_to_ptr.vmem [resolvable:$true] %s263_s2 }
  0x92   :  { %v37_v30 = vpop.xlane.xlu0 %36  ;;  %v43_v31 = vpop.xlane.xlu1 %42  ;;  %s290_s4 = scalar_lea.vmem %s264_s2, 128  ;;  %p295_p1 = scmp.lt.s32.totalorder %s264_s2, %s264_s2 }
  0x93   :  { %v58_v32 = vmul.f32 0.015625, %v37_v30  ;;  %v60_v33 = vmul.f32 0.015625, %v43_v31  ;;  %v73_v34 = vmul.f32 %v365_v28, %v365_v28  ;;  %v75_v35 = vmul.f32 %v367_v29, %v367_v29  ;;  %p291_p0 = scmp.ne.s32.totalorder %s264_s2, %s290_s4  ;;  %p296_p2 = scmp.lt.s32.totalorder %s290_s4, %s290_s4 }
  0x95   :  { %v373_v36 = vsub.f32 %v24_v6, %v58_v32  ;;  %v375_v37 = vsub.f32 %v26_v7, %v60_v33  ;;  %v81_v38 = vsel %vm31_vm0, %v73_v34, 0.0  ;;  %v87_v41 = vsel %vm31_vm0, %v75_v35, 0.0  ;;  %p297_p3 = por %p296_p2, %p295_p1 }
  0x96   :  { %82 = vadd.xlane.f32.xlu0 %v81_v38  ;;  %v46_v39 = vpop.xlane.xlu0 %45  ;;  %v49_v40 = vpop.xlane.xlu1 %48 }
  0x97   :  { %v61_v42 = vmul.f32 0.015625, %v46_v39  ;;  %v62_v43 = vmul.f32 0.015625, %v49_v40  ;;  %v74_v44 = vmul.f32 %v373_v36, %v373_v36  ;;  %v76_v45 = vmul.f32 %v375_v37, %v375_v37  ;;  %p298_p4 = pnand %p297_p3, %p291_p0 }
  0x99   :  { %v383_v46 = vsub.f32 %v27_v14, %v61_v42  ;;  %v385_v47 = vsub.f32 %v28_v15, %v62_v43  ;;  %v84_v48 = vsel %vm31_vm0, %v74_v44, 0.0  ;;  %v90_v51 = vsel %vm31_vm0, %v76_v45, 0.0 }
  0x9a   :  { %88 = vadd.xlane.f32.xlu0 %v87_v41  ;;  %85 = vadd.xlane.f32.xlu1 %v84_v48  ;;  %v52_v49 = vpop.xlane.xlu0 %51  ;;  %v55_v50 = vpop.xlane.xlu1 %54 }
  0x9b   :  { %v63_v52 = vmul.f32 0.015625, %v52_v49  ;;  %v64_v53 = vmul.f32 0.015625, %v55_v50  ;;  %v77_v54 = vmul.f32 %v383_v46, %v383_v46  ;;  %v78_v55 = vmul.f32 %v385_v47, %v385_v47 }
  0x9d   :  { %v393_v56 = vsub.f32 %v29_v20, %v63_v52  ;;  %v395_v57 = vsub.f32 %v30_v21, %v64_v53  ;;  %v93_v58 = vsel %vm31_vm0, %v77_v54, 0.0  ;;  %v96_v59 = vsel %vm31_vm0, %v78_v55, 0.0 }
  0x9e   :  { %91 = vadd.xlane.f32.xlu1 %v90_v51  ;;  %94 = vadd.xlane.f32.xlu0 %v93_v58 }
  0x9f   :  { %v79_v60 = vmul.f32 %v393_v56, %v393_v56  ;;  %v80_v61 = vmul.f32 %v395_v57, %v395_v57 }
  0xa1   :  { %v99_v62 = vsel %vm31_vm0, %v79_v60, 0.0  ;;  %v102_v63 = vsel %vm31_vm0, %v80_v61, 0.0 }
  0xa2   :  { %97 = vadd.xlane.f32.xlu1 %v96_v59  ;;  %100 = vadd.xlane.f32.xlu0 %v99_v62 }
  0xa6   :  { %103 = vadd.xlane.f32.xlu1 %v102_v63 }
 0x11f   :  { %v83_v0 = vpop.xlane.xlu0 %82 }
 0x120   :  { %v105_v1 = vmul.f32 0.015625, %v83_v0 }
 0x122   :  { %v113_v2 = vadd.f32 1e-06, %v105_v1 }
 0x123   :  { %v86_v3 = vpop.xlane.xlu1 %85  ;;  %v89_v4 = vpop.xlane.xlu0 %88 }
 0x124   :  { %274 = vrsqrt.f32 %v113_v2  ;;  %v106_v5 = vmul.f32 0.015625, %v86_v3  ;;  %v107_v6 = vmul.f32 0.015625, %v89_v4 }
 0x126   :  { %v114_v7 = vadd.f32 1e-06, %v106_v5  ;;  %v115_v8 = vadd.f32 1e-06, %v107_v6 }
 0x127   :  { %v92_v9 = vpop.xlane.xlu1 %91  ;;  %v95_v10 = vpop.xlane.xlu0 %94 }
 0x128   :  { %276 = vrsqrt.f32 %v114_v7  ;;  %v108_v11 = vmul.f32 0.015625, %v92_v9  ;;  %v109_v12 = vmul.f32 0.015625, %v95_v10 }
 0x129   :  { %278 = vrsqrt.f32 %v115_v8 }
 0x12a   :  { %v116_v13 = vadd.f32 1e-06, %v108_v11  ;;  %v117_v14 = vadd.f32 1e-06, %v109_v12 }
 0x12b   :  { %v98_v15 = vpop.xlane.xlu1 %97  ;;  %v101_v16 = vpop.xlane.xlu0 %100 }
 0x12c   :  { %280 = vrsqrt.f32 %v116_v13  ;;  %v110_v17 = vmul.f32 0.015625, %v98_v15  ;;  %v111_v18 = vmul.f32 0.015625, %v101_v16 }
 0x12d   :  { %282 = vrsqrt.f32 %v117_v14 }
 0x12e   :  { %v118_v19 = vadd.f32 1e-06, %v110_v17  ;;  %v119_v20 = vadd.f32 1e-06, %v111_v18 }
 0x12f   :  { %v104_v21 = vpop.xlane.xlu1 %103 }
 0x130   :  { %284 = vrsqrt.f32 %v118_v19  ;;  %v112_v22 = vmul.f32 0.015625, %v104_v21 }
 0x131   :  { %v275_v23 = vpop.eup %274  ;;  %286 = vrsqrt.f32 %v119_v20 }
 0x132   :  { %v129_v25 = vmul.f32 %v275_v23, %v365_v28  ;;  %v120_v26 = vadd.f32 1e-06, %v112_v22 }
 0x134   :  { %v144_v30 = vmul.f32 %v271_v24, %v129_v25  ;;  %288 = vrsqrt.f32 %v120_v26 }
 0x135   :  { %v277_v31 = vpop.eup %276 }
 0x136   :  { %v279_v32 = vpop.eup %278  ;;  %v159_v33 = vadd.f32 %v272_v27, %v144_v30  ;;  %v130_v34 = vmul.f32 %v277_v31, %v373_v36 }
 0x137   :  { %v131_v35 = vmul.f32 %v279_v32, %v367_v29 }
 0x138   :  { %v167_v38 = vsel %vm31_vm0, %v159_v33, 0.0  ;;  %v145_v39 = vmul.f32 %v271_v24, %v130_v34 }
 0x139   :  { %v281_v40 = vpop.eup %280  ;;  %v168_v41 = vrot.slane %v167_v38, 4  ;;  %v146_v28 = vmul.f32 %v271_v24, %v131_v35 }
 0x13a   :  { %v283_v42 = vpop.eup %282  ;;  %v160_v43 = vadd.f32 %v272_v27, %v145_v39  ;;  %v132_v44 = vmul.f32 %v281_v40, %v375_v37 }
 0x13b   :  { %v169_v45 = vadd.f32 %v168_v41, %v167_v38  ;;  %v161_v48 = vadd.f32 %v272_v27, %v146_v28  ;;  %v133_v49 = vmul.f32 %v283_v42, %v383_v46 }
 0x13c   :  { %v174_v50 = vsel %vm31_vm0, %v160_v43, 0.0  ;;  %v147_v51 = vmul.f32 %v271_v24, %v132_v44 }
 0x13d   :  { %v285_v36 = vpop.eup %284  ;;  %v170_v52 = vrot.slane %v169_v45, 2  ;;  %v175_v29 = vrot.slane %v174_v50, 4  ;;  %v181_v53 = vsel %vm31_vm0, %v161_v48, 0.0  ;;  %v148_v54 = vmul.f32 %v271_v24, %v133_v49 }
 0x13e   :  { %v287_v55 = vpop.eup %286  ;;  %v182_v58 = vrot.slane %v181_v53, 4  ;;  %v162_v59 = vadd.f32 %v272_v27, %v147_v51  ;;  %v134_v60 = vmul.f32 %v285_v36, %v385_v47 }
 0x13f   :  { %v176_v61 = vadd.f32 %v175_v29, %v174_v50  ;;  %v163_v37 = vadd.f32 %v272_v27, %v148_v54  ;;  %v135_v62 = vmul.f32 %v287_v55, %v393_v56  ;;  %v171_v63 = vadd.f32 %v170_v52, %v169_v45 }
 0x140   :  { %v183_v46 = vadd.f32 %v182_v58, %v181_v53  ;;  %v188_v0 = vsel %vm31_vm0, %v162_v59, 0.0  ;;  %v149_v1 = vmul.f32 %v271_v24, %v134_v60 }
 0x141   :  { %v289_v2 = vpop.eup %288  ;;  %v177_v3 = vrot.slane %v176_v61, 2  ;;  %v189_v4 = vrot.slane %v188_v0, 4  ;;  %v150_v5 = vmul.f32 %v271_v24, %v135_v62  ;;  %v172_v6 = vrot.slane %v171_v63, 1 }
 0x142   :  { %v136_v7 = vmul.f32 %v289_v2, %v395_v57  ;;  %v164_v8 = vadd.f32 %v272_v27, %v149_v1  ;;  %v184_v9 = vrot.slane %v183_v46, 2  ;;  %v195_v47 = vsel %vm31_vm0, %v163_v37, 0.0 }
 0x143   :  { %v165_v10 = vadd.f32 %v272_v27, %v150_v5  ;;  %v173_v11 = vadd.f32 %v172_v6, %v171_v63  ;;  %v178_v56 = vadd.f32 %v177_v3, %v176_v61  ;;  %v190_v12 = vadd.f32 %v189_v4, %v188_v0 }
 0x144   :  { %v151_v13 = vmul.f32 %v271_v24, %v136_v7  ;;  %v185_v14 = vadd.f32 %v184_v9, %v183_v46  ;;  %v196_v15 = vrot.slane %v195_v47, 4  ;;  %v202_v16 = vsel %vm31_vm0, %v164_v8, 0.0 }
 0x145   :  { %v179_v17 = vrot.slane %v178_v56, 1  ;;  %v191_v18 = vrot.slane %v190_v12, 2  ;;  %v203_v19 = vrot.slane %v202_v16, 4  ;;  %v209_v20 = vsel %vm31_vm0, %v165_v10, 0.0 }
 0x146   :  { %v166_v21 = vadd.f32 %v272_v27, %v151_v13  ;;  %v186_v57 = vrot.slane %v185_v14, 1  ;;  %v197_v22 = vadd.f32 %v196_v15, %v195_v47  ;;  %v210_v23 = vrot.slane %v209_v20, 4 }
 0x147   :  { %v180_v25 = vadd.f32 %v179_v17, %v178_v56  ;;  %v192_v26 = vadd.f32 %v191_v18, %v190_v12  ;;  %v204_v30 = vadd.f32 %v203_v19, %v202_v16  ;;  %v224_v31 = vmul.f32 0.25, %v173_v11 }
 0x148   :  { %v187_v32 = vadd.f32 %v186_v57, %v185_v14  ;;  %v198_v33 = vrot.slane %v197_v22, 2  ;;  %v211_v24 = vadd.f32 %v210_v23, %v209_v20  ;;  %v216_v34 = vsel %vm31_vm0, %v166_v21, 0.0 }
 0x149   :  { %v193_v35 = vrot.slane %v192_v26, 1  ;;  %v205_v38 = vrot.slane %v204_v30, 2  ;;  %v217_v39 = vrot.slane %v216_v34, 4  ;;  %v225_v40 = vmul.f32 0.25, %v180_v25 }
 0x14a   :  { %v199_v41 = vadd.f32 %v198_v33, %v197_v22  ;;  %v212_v28 = vrot.slane %v211_v24, 2  ;;  %v226_v42 = vmul.f32 0.25, %v187_v32 }
 0x14b   :  { %v194_v27 = vadd.f32 %v193_v35, %v192_v26  ;;  %v206_v43 = vadd.f32 %v205_v38, %v204_v30  ;;  %v218_v44 = vadd.f32 %v217_v39, %v216_v34  ;;  %v241_v45 = vsel %vm240_vm1, %v225_v40, %v224_v31 }
 0x14c   :  { %v200_v48 = vrot.slane %v199_v41, 1  ;;  %v213_v49 = vadd.f32 %v212_v28, %v211_v24  ;;  %v243_v53 = vsel %vm242_vm2, %v226_v42, %v241_v45 }
 0x14d   :  { %v207_v50 = vrot.slane %v206_v43, 1  ;;  %v219_v51 = vrot.slane %v218_v44, 2  ;;  %v227_v36 = vmul.f32 0.25, %v194_v27 }
 0x14e   :  { %v201_v52 = vadd.f32 %v200_v48, %v199_v41  ;;  %v214_v29 = vrot.slane %v213_v49, 1 }
 0x14f   :  { %v208_v54 = vadd.f32 %v207_v50, %v206_v43  ;;  %v220_v55 = vadd.f32 %v219_v51, %v218_v44  ;;  %v245_v58 = vsel %vm244_vm3, %v227_v36, %v243_v53 }
 0x150   :  { %v215_v59 = vadd.f32 %v214_v29, %v213_v49  ;;  %v228_v60 = vmul.f32 0.25, %v201_v52 }
 0x151   :  { %v221_v61 = vrot.slane %v220_v55, 1  ;;  %v229_v37 = vmul.f32 0.25, %v208_v54 }
 0x152   :  { %v230_v62 = vmul.f32 0.25, %v215_v59  ;;  %v247_v63 = vsel %vm246_vm4, %v228_v60, %v245_v58 }
 0x153   :  { %v222_v46 = vadd.f32 %v221_v61, %v220_v55  ;;  %v249_v0 = vsel %vm248_vm5, %v229_v37, %v247_v63 }
 0x154   :  { %v251_v2 = vsel %vm250_vm6, %v230_v62, %v249_v0 }
 0x155   :  { %v231_v1 = vmul.f32 0.25, %v222_v46 }
 0x157   :  { %v253_v3 = vsel %vm252_vm7, %v231_v1, %v251_v2 }
 0x158   :  { %256 = vst.msk [vmem:[#allocation2] sm:$0xff] %vm255_vm8, %v253_v3 }
 0x159   :  { %301 = shalt.err (!%p298_p4)
}
 0x15a   :  { %266 = dma.vmem_to_hbm [thread:$0]  %s264_s2, 128, %s434_s3, [#allocation3]  }
 0x15b   :  { %310 = dma.done.wait [#allocation3], 128  }
 0x15c   :  { %311 = vsyncadd [#allocation3], 4294967168 }
 0x15d   :  { %270 = vsyncpa [#allocation3], 1 }

</bundles_post_ra>
